<compile_context>
chip_gen: v6e
topology: v6e:2x2x1
jax: 0.10.0
libtpu: 0.0.40
codegen_flags: <defaults>
</compile_context>

<pallas_src>
import math

import jax
import jax.numpy as jnp
from jax.experimental import pallas as pl
from jax.experimental.pallas import tpu as pltpu

_MiB = 1024 * 1024


def _compiler_params(sem, vmem_needed_bytes):
    limit = int(min(max(int(vmem_needed_bytes) + 4 * _MiB, 32 * _MiB), 64 * _MiB))
    return pltpu.CompilerParams(dimension_semantics=sem, vmem_limit_bytes=limit)


# -----------------------------------------------------------------------------
# ConvTranspose2d(kernel=2, stride=2) kernel
# -----------------------------------------------------------------------------
def _upconv2x2_kernel(x_ref, w_ref, b_ref, o_ref):
    # x_ref: (h, w, Cin) f32 ; w_ref: (Cin, 4*Cu) bf16, columns ordered (dy, dx, co)
    # b_ref: (1, 4*Cu) f32   ; o_ref: (h, 2, w, 2*Cu) bf16  (quadrant layout)
    h, w, cin = x_ref.shape
    two_cu = o_ref.shape[-1]
    xm = x_ref[...].reshape(h * w, cin).astype(jnp.bfloat16)
    acc = jnp.dot(xm, w_ref[...], preferred_element_type=jnp.float32)
    acc = acc + b_ref[...]                                  # bias in f32
    o_ref[:, 0, :, :] = acc[:, :two_cu].reshape(h, w, two_cu).astype(o_ref.dtype)
    o_ref[:, 1, :, :] = acc[:, two_cu:].reshape(h, w, two_cu).astype(o_ref.dtype)


def upconv2x2(x, w_pt, b):
    """ConvTranspose2d(kernel=2, stride=2, bias=True).

    x: (N, h, w, Cin) f32 NHWC ; w_pt: (Cin, Cu, 2, 2) PyTorch ; b: (Cu,)
    returns (N, 2h, 2w, Cu) bf16 (internal tensor, consumed by the conv block).
    """
    N, h, w, cin = x.shape
    cu = w_pt.shape[1]
    wm = jnp.transpose(w_pt, (0, 2, 3, 1)).reshape(cin, 4 * cu).astype(jnp.bfloat16)
    bm = jnp.tile(b, 4).reshape(1, 4 * cu).astype(jnp.float32)

    block_bytes = (h * w * cin * 4 + cin * 4 * cu * 2 + h * w * 4 * cu * 2) * 2 \
                  + h * w * 4 * cu * 4
    y = pl.pallas_call(
        _upconv2x2_kernel,
        out_shape=jax.ShapeDtypeStruct((N, h, 2, w, 2 * cu), jnp.bfloat16),
        grid=(N,),
        in_specs=[
            pl.BlockSpec((None, h, w, cin), lambda n: (n, 0, 0, 0)),
            pl.BlockSpec((cin, 4 * cu), lambda n: (0, 0)),
            pl.BlockSpec((1, 4 * cu), lambda n: (0, 0)),
        ],
        out_specs=pl.BlockSpec((None, h, 2, w, 2 * cu), lambda n: (n, 0, 0, 0, 0)),
        compiler_params=_compiler_params(("parallel",), block_bytes),
        cost_estimate=pl.CostEstimate(
            flops=2 * N * h * w * cin * 4 * cu,
            transcendentals=0,
            bytes_accessed=N * h * w * (cin * 4 + 4 * cu * 2) + cin * 4 * cu * 2),
    )(x, wm, bm)
    # (N, h, 2, w, 2*Cu) is row-major identical to (N, 2h, 2w, Cu): the 2x2
    # pixel interleave is a free reshape, never an HBM round-trip.
    return y.reshape(N, 2 * h, 2 * w, cu)


# -----------------------------------------------------------------------------
# [concat +] Conv3x3(SAME) + InstanceNorm2d(affine=False) + LeakyReLU(0.01)
# -----------------------------------------------------------------------------
def _conv3x3_in_lrelu(xb, w_ref, o_ref):
    # xb: (H, W, Ct) bf16 value ; w_ref: (9*Ct, Cout) bf16 ; o_ref: (H, W, Cout) f32
    H, W, cout = o_ref.shape
    ct = xb.shape[-1]
    # SAME zero padding built in VMEM/vregs (no jnp.pad in HBM).
    zr = jnp.zeros((1, W, ct), jnp.bfloat16)
    xp = jnp.concatenate([zr, xb, zr], axis=0)              # (H+2, W,   Ct)
    zc = jnp.zeros((H + 2, 1, ct), jnp.bfloat16)
    xp = jnp.concatenate([zc, xp, zc], axis=1)              # (H+2, W+2, Ct)
    # im2col -> one deep-K matmul (K = 9*Ct) instead of 9 shallow per-tap dots.
    cols = []
    for dy in range(3):
        for dx in range(3):
            cols.append(xp[dy:dy + H, dx:dx + W, :].reshape(H * W, ct))
    col = jnp.concatenate(cols, axis=-1)                    # (H*W, 9*Ct) bf16
    acc = jnp.dot(col, w_ref[...], preferred_element_type=jnp.float32)
    # Conv bias skipped: InstanceNorm2d(affine=False) removes any constant
    # per-channel offset exactly, so it is a mathematical no-op.
    # InstanceNorm2d: biased variance over H*W per channel, eps=1e-5.
    mean = jnp.mean(acc, axis=0, keepdims=True)
    cent = acc - mean
    var = jnp.mean(cent * cent, axis=0, keepdims=True)
    y = cent * jax.lax.rsqrt(var + 1e-5)
    y = jnp.where(y > 0.0, y, 0.01 * y)                     # LeakyReLU(0.01)
    o_ref[...] = y.reshape(H, W, cout).astype(o_ref.dtype)


def _convblock_cat_kernel(skip_ref, up_ref, w_ref, o_ref):
    # Fused torch.cat([skip, up], 1) + Conv3x3 + InstanceNorm + LeakyReLU.
    xb = jnp.concatenate(
        [skip_ref[...].astype(jnp.bfloat16), up_ref[...].astype(jnp.bfloat16)],
        axis=-1)
    _conv3x3_in_lrelu(xb, w_ref, o_ref)


def _convblock_kernel(x_ref, w_ref, o_ref):
    _conv3x3_in_lrelu(x_ref[...].astype(jnp.bfloat16), w_ref, o_ref)


def _conv_call(kernel, inputs, in_specs, w_pt, H, W, N):
    cout, cin_tot = w_pt.shape[0], w_pt.shape[1]
    wf = jnp.transpose(w_pt, (2, 3, 1, 0)).reshape(9 * cin_tot, cout).astype(jnp.bfloat16)
    in_bytes = sum(int(a.size) * a.dtype.itemsize for a in inputs) // N
    interm = (H + 2) * (W + 2) * cin_tot * 2 + H * W * 9 * cin_tot * 2 + H * W * cout * 4
    block_bytes = (in_bytes + int(wf.size) * 2 + H * W * cout * 4) * 2 + interm
    return pl.pallas_call(
        kernel,
        out_shape=jax.ShapeDtypeStruct((N, H, W, cout), jnp.float32),
        grid=(N,),
        in_specs=in_specs + [pl.BlockSpec((9 * cin_tot, cout), lambda n: (0, 0))],
        out_specs=pl.BlockSpec((None, H, W, cout), lambda n: (n, 0, 0, 0)),
        compiler_params=_compiler_params(("parallel",), block_bytes),
        cost_estimate=pl.CostEstimate(
            flops=2 * N * H * W * 9 * cin_tot * cout,
            transcendentals=N * cout,
            bytes_accessed=int(N * in_bytes + N * H * W * cout * 4 + int(wf.size) * 2)),
    )(*inputs, wf)


def conv_block_cat(skip, up, w_pt):
    """cat([skip, up], channel) -> Conv3x3(SAME) -> InstanceNorm -> LeakyReLU."""
    N, H, W, cs = skip.shape
    cu = up.shape[-1]
    in_specs = [
        pl.BlockSpec((None, H, W, cs), lambda n: (n, 0, 0, 0)),
        pl.BlockSpec((None, H, W, cu), lambda n: (n, 0, 0, 0)),
    ]
    return _conv_call(_convblock_cat_kernel, [skip, up], in_specs, w_pt, H, W, N)


def conv_block(x, w_pt):
    """Conv3x3(SAME) -> InstanceNorm -> LeakyReLU."""
    N, H, W, cin = x.shape
    in_specs = [pl.BlockSpec((None, H, W, cin), lambda n: (n, 0, 0, 0))]
    return _conv_call(_convblock_kernel, [x], in_specs, w_pt, H, W, N)


# -----------------------------------------------------------------------------
# Final 1x1 "score" conv, computed transposed -> lane-dense, NCHW output
# -----------------------------------------------------------------------------
def _score_kernel(x_ref, w_ref, b_ref, o_ref):
    # x_ref: (Mt, C) f32 ; w_ref: (O, C) bf16 ; b_ref: (O, 1) f32 ; o_ref: (O, Mt) f32
    xb = x_ref[...].astype(jnp.bfloat16)
    acc = jax.lax.dot_general(
        w_ref[...], xb,
        dimension_numbers=(((1,), (1,)), ((), ())),
        preferred_element_type=jnp.float32)                 # (O, Mt): lane-dense
    o_ref[...] = (acc + b_ref[...]).astype(o_ref.dtype)


def _pick_row_tile(m):
    if m <= 2048:
        return m
    for t in (2048, 1024, 512, 256, 128):
        if m % t == 0:
            return t
    return m  # ragged H*W: single monolithic block fallback


def score_conv1x1(x, w, b):
    """1x1 conv; output written as (N, out_ch, H*W) -> directly NCHW."""
    N, H, W, c = x.shape
    o = w.shape[0]
    m = H * W
    tile = _pick_row_tile(m)
    xm = x.reshape(N, m, c)
    wb = w.astype(jnp.bfloat16)
    bm = b.reshape(o, 1).astype(jnp.float32)
    block_bytes = (tile * c * 4 + o * tile * 4 + o * c * 2) * 2
    out = pl.pallas_call(
        _score_kernel,
        out_shape=jax.ShapeDtypeStruct((N, o, m), jnp.float32),
        grid=(N, m // tile),
        in_specs=[
            pl.BlockSpec((None, tile, c), lambda n, t: (n, t, 0)),
            pl.BlockSpec((o, c), lambda n, t: (0, 0)),
            pl.BlockSpec((o, 1), lambda n, t: (0, 0)),
        ],
        out_specs=pl.BlockSpec((None, o, tile), lambda n, t: (n, 0, t)),
        compiler_params=_compiler_params(("parallel", "parallel"), block_bytes),
        cost_estimate=pl.CostEstimate(
            flops=2 * N * m * c * o,
            transcendentals=0,
            bytes_accessed=N * m * (c + o) * 4 + o * c * 2),
    )(xm, wb, bm)
    return out.reshape(N, o, H, W)


# -----------------------------------------------------------------------------
# UNetDecoder forward
# -----------------------------------------------------------------------------
def unet_decoder_forward(params, inputs_nchw, encoder_outputs_nchw, levels):
    # Public API is NCHW (PyTorch); kernels run NHWC internally.
    x = jnp.transpose(inputs_nchw, (0, 2, 3, 1))
    enc = [jnp.transpose(e, (0, 2, 3, 1)) for e in encoder_outputs_nchw]
    enc = enc[::-1]                                         # encoder_outputs.reverse()
    decoder_outputs = []
    for i in range(levels):
        p = params["level%d" % i]
        up = upconv2x2(x, p["up_w"], p["up_b"])             # (N, 2h, 2w, Cu) bf16
        # channel concat is fused into the conv kernel (no HBM concat);
        # c1_b / c2_b are exact no-ops under InstanceNorm(affine=False).
        x = conv_block_cat(enc[i], up, p["c1_w"])
        x = conv_block(x, p["c2_w"])
        decoder_outputs.append(jnp.transpose(x, (0, 3, 1, 2)))  # NCHW for the API
    score = score_conv1x1(x, params["score_w"], params["score_b"])
    return decoder_outputs, score


# -----------------------------------------------------------------------------
# Deterministic parameter init (synthetic weights, PyTorch shapes)
# -----------------------------------------------------------------------------
def init_params(key, out_channels, feature_maps, levels):
    params = {}
    for i in range(levels):
        cin = 2 ** (levels - i) * feature_maps
        cout = 2 ** (levels - i - 1) * feature_maps
        key, k1, k2, k3, k4, k5, k6 = jax.random.split(key, 7)
        params["level%d" % i] = dict(
            up_w=jax.random.normal(k1, (cin, cout, 2, 2), jnp.float32) / math.sqrt(4 * cin),
            up_b=0.01 * jax.random.normal(k2, (cout,), jnp.float32),
            c1_w=jax.random.normal(k3, (cout, cin, 3, 3), jnp.float32) / math.sqrt(9 * cin),
            # kept for interface fidelity; unused (exact no-op under InstanceNorm)
            c1_b=0.01 * jax.random.normal(k4, (cout,), jnp.float32),
            c2_w=jax.random.normal(k5, (cout, cout, 3, 3), jnp.float32) / math.sqrt(9 * cout),
            c2_b=0.01 * jax.random.normal(k6, (cout,), jnp.float32),
        )
    key, k1, k2 = jax.random.split(key, 3)
    params["score_w"] = jax.random.normal(
        k1, (out_channels, feature_maps), jnp.float32) / math.sqrt(feature_maps)
    params["score_b"] = 0.01 * jax.random.normal(k2, (out_channels,), jnp.float32)
    return params


# -----------------------------------------------------------------------------
if __name__ == "__main__":
    out_channels, feature_maps, levels = 3, 8, 2
    N, H0 = 2, 4                                   # bottleneck spatial = 4x4

    key = jax.random.PRNGKey(0)
    pkey, xkey, e1key, e2key = jax.random.split(key, 4)

    params = init_params(pkey, out_channels, feature_maps, levels)

    # bottleneck input: (N, 2^levels * fm, H0, W0) == (2, 32, 4, 4)
    inputs = jax.random.normal(xkey, (N, 2 ** levels * feature_maps, H0, H0), jnp.float32)
    # encoder skips (shallow -> deep); decoder reverses them internally:
    encoder_outputs = [
        jax.random.normal(e1key, (N, feature_maps, 4 * H0, 4 * H0), jnp.float32),      # (2, 8, 16, 16)
        jax.random.normal(e2key, (N, 2 * feature_maps, 2 * H0, 2 * H0), jnp.float32),  # (2, 16, 8, 8)
    ]

    fwd = jax.jit(lambda p, x, e: unet_decoder_forward(p, x, e, levels))
    decoder_outputs, score = fwd(params, inputs, tuple(encoder_outputs))

    jax.block_until_ready(score)
    for d in decoder_outputs:
        jax.block_until_ready(d)

    Hf = H0 * (2 ** levels)
    assert score.shape == (N, out_channels, Hf, Hf), score.shape
    assert decoder_outputs[0].shape == (N, 2 * feature_maps, 2 * H0, 2 * H0)
    assert decoder_outputs[1].shape == (N, feature_maps, 4 * H0, 4 * H0)
    assert bool(jnp.all(jnp.isfinite(score)))
    for d in decoder_outputs:
        assert bool(jnp.all(jnp.isfinite(d)))

    print("KERNEL_OK")
</pallas_src>

<mosaic_0001>
module attributes {stable_mosaic.version = 11 : i64} {
  func.func @_upconv2x2_kernel(%arg0: i32, %arg1: memref<1x4x4x32xf32, #tpu.memory_space<vmem>>, %arg2: memref<32x64xbf16, #tpu.memory_space<vmem>>, %arg3: memref<1x64xf32, #tpu.memory_space<vmem>>, %arg4: memref<1x4x2x4x32xbf16, #tpu.memory_space<vmem>>) attributes {dimension_semantics = [#tpu.dimension_semantics<parallel>], iteration_bounds = array<i64: 2>, scalar_prefetch = 0 : i64, scratch_operands = 0 : i64, tpu.core_type = #tpu.core_type<tc>, window_params = [{transform_indices = @transform_0, window_bounds = array<i64: 1, 4, 4, 32>}, {pipeline_mode = #tpu.pipeline_mode<synchronous>, transform_indices = @transform_1, window_bounds = array<i64: 32, 64>}, {pipeline_mode = #tpu.pipeline_mode<synchronous>, transform_indices = @transform_2, window_bounds = array<i64: 1, 64>}, {transform_indices = @transform_3, window_bounds = array<i64: 1, 4, 2, 4, 32>}]} {
    %c0 = arith.constant 0 : index
    %c0_0 = arith.constant 0 : index
    %c0_1 = arith.constant 0 : index
    %c0_2 = arith.constant 0 : index
    %0 = vector.load %arg1[%c0, %c0_0, %c0_1, %c0_2] : memref<1x4x4x32xf32, #tpu.memory_space<vmem>>, vector<1x4x4x32xf32>
    %1 = vector.shape_cast %0 : vector<1x4x4x32xf32> to vector<4x4x32xf32>
    %2 = vector.shape_cast %1 : vector<4x4x32xf32> to vector<16x32xf32>
    %3 = arith.truncf %2 : vector<16x32xf32> to vector<16x32xbf16>
    %c0_3 = arith.constant 0 : index
    %c0_4 = arith.constant 0 : index
    %4 = vector.load %arg2[%c0_3, %c0_4] : memref<32x64xbf16, #tpu.memory_space<vmem>>, vector<32x64xbf16>
    %cst = arith.constant dense<0.000000e+00> : vector<16x64xf32>
    %5 = tpu.matmul %3, %4, %cst {dimension_numbers = #tpu.dot_dimension_numbers<[1], [0], [0], [1], [0, 0, 1, 1], [], []>} : vector<16x32xbf16>, vector<32x64xbf16>, vector<16x64xf32> -> vector<16x64xf32>
    %c0_5 = arith.constant 0 : index
    %c0_6 = arith.constant 0 : index
    %6 = vector.load %arg3[%c0_5, %c0_6] : memref<1x64xf32, #tpu.memory_space<vmem>>, vector<1x64xf32>
    %7 = vector.broadcast %6 : vector<1x64xf32> to vector<16x64xf32>
    %8 = arith.addf %5, %7 : vector<16x64xf32>
    %9 = vector.extract_strided_slice %8 {offsets = [0, 0], sizes = [16, 32], strides = [1, 1]} : vector<16x64xf32> to vector<16x32xf32>
    %10 = vector.shape_cast %9 : vector<16x32xf32> to vector<4x4x32xf32>
    %11 = arith.truncf %10 : vector<4x4x32xf32> to vector<4x4x32xbf16>
    %c0_7 = arith.constant 0 : index
    %c0_8 = arith.constant 0 : index
    %c0_9 = arith.constant 0 : index
    %c0_10 = arith.constant 0 : index
    %c0_11 = arith.constant 0 : index
    %12 = vector.load %arg4[%c0_7, %c0_8, %c0_9, %c0_10, %c0_11] : memref<1x4x2x4x32xbf16, #tpu.memory_space<vmem>>, vector<1x4x1x4x32xbf16>
    %13 = vector.shape_cast %12 : vector<1x4x1x4x32xbf16> to vector<4x4x32xbf16>
    %14 = vector.shape_cast %11 : vector<4x4x32xbf16> to vector<1x4x1x4x32xbf16>
    tpu.vector_store %arg4[%c0_7, %c0_8, %c0_9, %c0_10, %c0_11], %14 {strides = array<i32>} : memref<1x4x2x4x32xbf16, #tpu.memory_space<vmem>>, vector<1x4x1x4x32xbf16>,
    %15 = vector.extract_strided_slice %8 {offsets = [0, 32], sizes = [16, 32], strides = [1, 1]} : vector<16x64xf32> to vector<16x32xf32>
    %16 = vector.shape_cast %15 : vector<16x32xf32> to vector<4x4x32xf32>
    %17 = arith.truncf %16 : vector<4x4x32xf32> to vector<4x4x32xbf16>
    %c0_12 = arith.constant 0 : index
    %c0_13 = arith.constant 0 : index
    %c1 = arith.constant 1 : index
    %c0_14 = arith.constant 0 : index
    %c0_15 = arith.constant 0 : index
    %18 = vector.load %arg4[%c0_12, %c0_13, %c1, %c0_14, %c0_15] : memref<1x4x2x4x32xbf16, #tpu.memory_space<vmem>>, vector<1x4x1x4x32xbf16>
    %19 = vector.shape_cast %18 : vector<1x4x1x4x32xbf16> to vector<4x4x32xbf16>
    %20 = vector.shape_cast %17 : vector<4x4x32xbf16> to vector<1x4x1x4x32xbf16>
    tpu.vector_store %arg4[%c0_12, %c0_13, %c1, %c0_14, %c0_15], %20 {strides = array<i32>} : memref<1x4x2x4x32xbf16, #tpu.memory_space<vmem>>, vector<1x4x1x4x32xbf16>,
    return
  }
  func.func @transform_0(%arg0: i32) -> (i32, i32, i32, i32) {
    %c0_i32 = arith.constant 0 : i32
    %c0_i32_0 = arith.constant 0 : i32
    %c0_i32_1 = arith.constant 0 : i32
    %c0_i32_2 = arith.constant 0 : i32
    return %arg0, %c0_i32, %c0_i32_0, %c0_i32_1 : i32, i32, i32, i32
  }
  func.func @transform_1(%arg0: i32) -> (i32, i32) {
    %c0_i32 = arith.constant 0 : i32
    %c0_i32_0 = arith.constant 0 : i32
    %c0_i32_1 = arith.constant 0 : i32
    return %c0_i32, %c0_i32_0 : i32, i32
  }
  func.func @transform_2(%arg0: i32) -> (i32, i32) {
    %c0_i32 = arith.constant 0 : i32
    %c0_i32_0 = arith.constant 0 : i32
    %c0_i32_1 = arith.constant 0 : i32
    return %c0_i32, %c0_i32_0 : i32, i32
  }
  func.func @transform_3(%arg0: i32) -> (i32, i32, i32, i32, i32) {
    %c0_i32 = arith.constant 0 : i32
    %c0_i32_0 = arith.constant 0 : i32
    %c0_i32_1 = arith.constant 0 : i32
    %c0_i32_2 = arith.constant 0 : i32
    %c0_i32_3 = arith.constant 0 : i32
    return %arg0, %c0_i32, %c0_i32_0, %c0_i32_1, %c0_i32_2 : i32, i32, i32, i32, i32
  }
}

module attributes {stable_mosaic.version = 11 : i64} {
  func.func @_convblock_cat_kernel(%arg0: i32, %arg1: memref<1x8x8x16xf32, #tpu.memory_space<vmem>>, %arg2: memref<1x8x8x16xbf16, #tpu.memory_space<vmem>>, %arg3: memref<288x16xbf16, #tpu.memory_space<vmem>>, %arg4: memref<1x8x8x16xf32, #tpu.memory_space<vmem>>) attributes {dimension_semantics = [#tpu.dimension_semantics<parallel>], iteration_bounds = array<i64: 2>, scalar_prefetch = 0 : i64, scratch_operands = 0 : i64, tpu.core_type = #tpu.core_type<tc>, window_params = [{transform_indices = @transform_0, window_bounds = array<i64: 1, 8, 8, 16>}, {transform_indices = @transform_1, window_bounds = array<i64: 1, 8, 8, 16>}, {pipeline_mode = #tpu.pipeline_mode<synchronous>, transform_indices = @transform_2, window_bounds = array<i64: 288, 16>}, {transform_indices = @transform_3, window_bounds = array<i64: 1, 8, 8, 16>}]} {
    %c0 = arith.constant 0 : index
    %c0_0 = arith.constant 0 : index
    %c0_1 = arith.constant 0 : index
    %c0_2 = arith.constant 0 : index
    %0 = vector.load %arg1[%c0, %c0_0, %c0_1, %c0_2] : memref<1x8x8x16xf32, #tpu.memory_space<vmem>>, vector<1x8x8x16xf32>
    %1 = vector.shape_cast %0 : vector<1x8x8x16xf32> to vector<8x8x16xf32>
    %2 = arith.truncf %1 : vector<8x8x16xf32> to vector<8x8x16xbf16>
    %c0_3 = arith.constant 0 : index
    %c0_4 = arith.constant 0 : index
    %c0_5 = arith.constant 0 : index
    %c0_6 = arith.constant 0 : index
    %3 = vector.load %arg2[%c0_3, %c0_4, %c0_5, %c0_6] : memref<1x8x8x16xbf16, #tpu.memory_space<vmem>>, vector<1x8x8x16xbf16>
    %4 = vector.shape_cast %3 : vector<1x8x8x16xbf16> to vector<8x8x16xbf16>
    %5 = tpu.concatenate %2, %4 in 2 : vector<8x8x16xbf16>, vector<8x8x16xbf16> -> vector<8x8x32xbf16>
    %cst = arith.constant 0.000000e+00 : bf16
    %6 = vector.broadcast %cst : bf16 to vector<1x8x32xbf16>
    %7 = tpu.concatenate %6, %5, %6 in 0 : vector<1x8x32xbf16>, vector<8x8x32xbf16>, vector<1x8x32xbf16> -> vector<10x8x32xbf16>
    %cst_7 = arith.constant 0.000000e+00 : bf16
    %8 = vector.broadcast %cst_7 : bf16 to vector<10x1x32xbf16>
    %9 = tpu.concatenate %8, %7, %8 in 1 : vector<10x1x32xbf16>, vector<10x8x32xbf16>, vector<10x1x32xbf16> -> vector<10x10x32xbf16>
    %10 = vector.extract_strided_slice %9 {offsets = [0, 0, 0], sizes = [8, 8, 32], strides = [1, 1, 1]} : vector<10x10x32xbf16> to vector<8x8x32xbf16>
    %11 = vector.shape_cast %10 : vector<8x8x32xbf16> to vector<64x32xbf16>
    %12 = vector.extract_strided_slice %9 {offsets = [0, 1, 0], sizes = [8, 8, 32], strides = [1, 1, 1]} : vector<10x10x32xbf16> to vector<8x8x32xbf16>
    %13 = vector.shape_cast %12 : vector<8x8x32xbf16> to vector<64x32xbf16>
    %14 = vector.extract_strided_slice %9 {offsets = [0, 2, 0], sizes = [8, 8, 32], strides = [1, 1, 1]} : vector<10x10x32xbf16> to vector<8x8x32xbf16>
    %15 = vector.shape_cast %14 : vector<8x8x32xbf16> to vector<64x32xbf16>
    %16 = vector.extract_strided_slice %9 {offsets = [1, 0, 0], sizes = [8, 8, 32], strides = [1, 1, 1]} : vector<10x10x32xbf16> to vector<8x8x32xbf16>
    %17 = vector.shape_cast %16 : vector<8x8x32xbf16> to vector<64x32xbf16>
    %18 = vector.extract_strided_slice %9 {offsets = [1, 1, 0], sizes = [8, 8, 32], strides = [1, 1, 1]} : vector<10x10x32xbf16> to vector<8x8x32xbf16>
    %19 = vector.shape_cast %18 : vector<8x8x32xbf16> to vector<64x32xbf16>
    %20 = vector.extract_strided_slice %9 {offsets = [1, 2, 0], sizes = [8, 8, 32], strides = [1, 1, 1]} : vector<10x10x32xbf16> to vector<8x8x32xbf16>
    %21 = vector.shape_cast %20 : vector<8x8x32xbf16> to vector<64x32xbf16>
    %22 = vector.extract_strided_slice %9 {offsets = [2, 0, 0], sizes = [8, 8, 32], strides = [1, 1, 1]} : vector<10x10x32xbf16> to vector<8x8x32xbf16>
    %23 = vector.shape_cast %22 : vector<8x8x32xbf16> to vector<64x32xbf16>
    %24 = vector.extract_strided_slice %9 {offsets = [2, 1, 0], sizes = [8, 8, 32], strides = [1, 1, 1]} : vector<10x10x32xbf16> to vector<8x8x32xbf16>
    %25 = vector.shape_cast %24 : vector<8x8x32xbf16> to vector<64x32xbf16>
    %26 = vector.extract_strided_slice %9 {offsets = [2, 2, 0], sizes = [8, 8, 32], strides = [1, 1, 1]} : vector<10x10x32xbf16> to vector<8x8x32xbf16>
    %27 = vector.shape_cast %26 : vector<8x8x32xbf16> to vector<64x32xbf16>
    %28 = tpu.concatenate %11, %13, %15, %17, %19, %21, %23, %25, %27 in 1 : vector<64x32xbf16>, vector<64x32xbf16>, vector<64x32xbf16>, vector<64x32xbf16>, vector<64x32xbf16>, vector<64x32xbf16>, vector<64x32xbf16>, vector<64x32xbf16>, vector<64x32xbf16> -> vector<64x288xbf16>
    %c0_8 = arith.constant 0 : index
    %c0_9 = arith.constant 0 : index
    %29 = vector.load %arg3[%c0_8, %c0_9] : memref<288x16xbf16, #tpu.memory_space<vmem>>, vector<288x16xbf16>
    %cst_10 = arith.constant dense<0.000000e+00> : vector<64x16xf32>
    %30 = tpu.matmul %28, %29, %cst_10 {dimension_numbers = #tpu.dot_dimension_numbers<[1], [0], [0], [1], [0, 0, 1, 1], [], []>} : vector<64x288xbf16>, vector<288x16xbf16>, vector<64x16xf32> -> vector<64x16xf32>
    %cst_11 = arith.constant dense<0.000000e+00> : vector<16xf32>
    %31 = vector.multi_reduction <add>, %30, %cst_11 [0] : vector<64x16xf32> to vector<16xf32>
    %32 = vector.shape_cast %31 : vector<16xf32> to vector<1x16xf32>
    %cst_12 = arith.constant 6.400000e+01 : f32
    %33 = vector.broadcast %cst_12 : f32 to vector<1x16xf32>
    %34 = arith.divf %32, %33 : vector<1x16xf32>
    %35 = vector.broadcast %34 : vector<1x16xf32> to vector<64x16xf32>
    %36 = arith.subf %30, %35 : vector<64x16xf32>
    %37 = arith.mulf %36, %36 : vector<64x16xf32>
    %cst_13 = arith.constant dense<0.000000e+00> : vector<16xf32>
    %38 = vector.multi_reduction <add>, %37, %cst_13 [0] : vector<64x16xf32> to vector<16xf32>
    %39 = vector.shape_cast %38 : vector<16xf32> to vector<1x16xf32>
    %cst_14 = arith.constant 6.400000e+01 : f32
    %40 = vector.broadcast %cst_14 : f32 to vector<1x16xf32>
    %41 = arith.divf %39, %40 : vector<1x16xf32>
    %cst_15 = arith.constant 9.99999974E-6 : f32
    %42 = vector.broadcast %cst_15 : f32 to vector<1x16xf32>
    %43 = arith.addf %41, %42 : vector<1x16xf32>
    %44 = math.rsqrt %43 : vector<1x16xf32>
    %45 = vector.broadcast %44 : vector<1x16xf32> to vector<64x16xf32>
    %46 = arith.mulf %36, %45 : vector<64x16xf32>
    %cst_16 = arith.constant 0.000000e+00 : f32
    %47 = vector.broadcast %cst_16 : f32 to vector<64x16xf32>
    %48 = arith.cmpf ogt, %46, %47 : vector<64x16xf32>
    %cst_17 = arith.constant 0.00999999977 : f32
    %49 = vector.broadcast %cst_17 : f32 to vector<64x16xf32>
    %50 = arith.mulf %49, %46 : vector<64x16xf32>
    %51 = arith.select %48, %46, %50 : vector<64x16xi1>, vector<64x16xf32>
    %52 = vector.shape_cast %51 : vector<64x16xf32> to vector<8x8x16xf32>
    %c0_18 = arith.constant 0 : index
    %c0_19 = arith.constant 0 : index
    %c0_20 = arith.constant 0 : index
    %c0_21 = arith.constant 0 : index
    %53 = vector.load %arg4[%c0_18, %c0_19, %c0_20, %c0_21] : memref<1x8x8x16xf32, #tpu.memory_space<vmem>>, vector<1x8x8x16xf32>
    %54 = vector.shape_cast %53 : vector<1x8x8x16xf32> to vector<8x8x16xf32>
    %55 = vector.shape_cast %52 : vector<8x8x16xf32> to vector<1x8x8x16xf32>
    tpu.vector_store %arg4[%c0_18, %c0_19, %c0_20, %c0_21], %55 {strides = array<i32>} : memref<1x8x8x16xf32, #tpu.memory_space<vmem>>, vector<1x8x8x16xf32>,
    return
  }
  func.func @transform_0(%arg0: i32) -> (i32, i32, i32, i32) {
    %c0_i32 = arith.constant 0 : i32
    %c0_i32_0 = arith.constant 0 : i32
    %c0_i32_1 = arith.constant 0 : i32
    %c0_i32_2 = arith.constant 0 : i32
    return %arg0, %c0_i32, %c0_i32_0, %c0_i32_1 : i32, i32, i32, i32
  }
  func.func @transform_1(%arg0: i32) -> (i32, i32, i32, i32) {
    %c0_i32 = arith.constant 0 : i32
    %c0_i32_0 = arith.constant 0 : i32
    %c0_i32_1 = arith.constant 0 : i32
    %c0_i32_2 = arith.constant 0 : i32
    return %arg0, %c0_i32, %c0_i32_0, %c0_i32_1 : i32, i32, i32, i32
  }
  func.func @transform_2(%arg0: i32) -> (i32, i32) {
    %c0_i32 = arith.constant 0 : i32
    %c0_i32_0 = arith.constant 0 : i32
    %c0_i32_1 = arith.constant 0 : i32
    return %c0_i32, %c0_i32_0 : i32, i32
  }
  func.func @transform_3(%arg0: i32) -> (i32, i32, i32, i32) {
    %c0_i32 = arith.constant 0 : i32
    %c0_i32_0 = arith.constant 0 : i32
    %c0_i32_1 = arith.constant 0 : i32
    %c0_i32_2 = arith.constant 0 : i32
    return %arg0, %c0_i32, %c0_i32_0, %c0_i32_1 : i32, i32, i32, i32
  }
}

module attributes {stable_mosaic.version = 11 : i64} {
  func.func @_convblock_kernel(%arg0: i32, %arg1: memref<1x8x8x16xf32, #tpu.memory_space<vmem>>, %arg2: memref<144x16xbf16, #tpu.memory_space<vmem>>, %arg3: memref<1x8x8x16xf32, #tpu.memory_space<vmem>>) attributes {dimension_semantics = [#tpu.dimension_semantics<parallel>], iteration_bounds = array<i64: 2>, scalar_prefetch = 0 : i64, scratch_operands = 0 : i64, tpu.core_type = #tpu.core_type<tc>, window_params = [{transform_indices = @transform_0, window_bounds = array<i64: 1, 8, 8, 16>}, {pipeline_mode = #tpu.pipeline_mode<synchronous>, transform_indices = @transform_1, window_bounds = array<i64: 144, 16>}, {transform_indices = @transform_2, window_bounds = array<i64: 1, 8, 8, 16>}]} {
    %c0 = arith.constant 0 : index
    %c0_0 = arith.constant 0 : index
    %c0_1 = arith.constant 0 : index
    %c0_2 = arith.constant 0 : index
    %0 = vector.load %arg1[%c0, %c0_0, %c0_1, %c0_2] : memref<1x8x8x16xf32, #tpu.memory_space<vmem>>, vector<1x8x8x16xf32>
    %1 = vector.shape_cast %0 : vector<1x8x8x16xf32> to vector<8x8x16xf32>
    %2 = arith.truncf %1 : vector<8x8x16xf32> to vector<8x8x16xbf16>
    %cst = arith.constant 0.000000e+00 : bf16
    %3 = vector.broadcast %cst : bf16 to vector<1x8x16xbf16>
    %4 = tpu.concatenate %3, %2, %3 in 0 : vector<1x8x16xbf16>, vector<8x8x16xbf16>, vector<1x8x16xbf16> -> vector<10x8x16xbf16>
    %cst_3 = arith.constant 0.000000e+00 : bf16
    %5 = vector.broadcast %cst_3 : bf16 to vector<10x1x16xbf16>
    %6 = tpu.concatenate %5, %4, %5 in 1 : vector<10x1x16xbf16>, vector<10x8x16xbf16>, vector<10x1x16xbf16> -> vector<10x10x16xbf16>
    %7 = vector.extract_strided_slice %6 {offsets = [0, 0, 0], sizes = [8, 8, 16], strides = [1, 1, 1]} : vector<10x10x16xbf16> to vector<8x8x16xbf16>
    %8 = vector.shape_cast %7 : vector<8x8x16xbf16> to vector<64x16xbf16>
    %9 = vector.extract_strided_slice %6 {offsets = [0, 1, 0], sizes = [8, 8, 16], strides = [1, 1, 1]} : vector<10x10x16xbf16> to vector<8x8x16xbf16>
    %10 = vector.shape_cast %9 : vector<8x8x16xbf16> to vector<64x16xbf16>
    %11 = vector.extract_strided_slice %6 {offsets = [0, 2, 0], sizes = [8, 8, 16], strides = [1, 1, 1]} : vector<10x10x16xbf16> to vector<8x8x16xbf16>
    %12 = vector.shape_cast %11 : vector<8x8x16xbf16> to vector<64x16xbf16>
    %13 = vector.extract_strided_slice %6 {offsets = [1, 0, 0], sizes = [8, 8, 16], strides = [1, 1, 1]} : vector<10x10x16xbf16> to vector<8x8x16xbf16>
    %14 = vector.shape_cast %13 : vector<8x8x16xbf16> to vector<64x16xbf16>
    %15 = vector.extract_strided_slice %6 {offsets = [1, 1, 0], sizes = [8, 8, 16], strides = [1, 1, 1]} : vector<10x10x16xbf16> to vector<8x8x16xbf16>
    %16 = vector.shape_cast %15 : vector<8x8x16xbf16> to vector<64x16xbf16>
    %17 = vector.extract_strided_slice %6 {offsets = [1, 2, 0], sizes = [8, 8, 16], strides = [1, 1, 1]} : vector<10x10x16xbf16> to vector<8x8x16xbf16>
    %18 = vector.shape_cast %17 : vector<8x8x16xbf16> to vector<64x16xbf16>
    %19 = vector.extract_strided_slice %6 {offsets = [2, 0, 0], sizes = [8, 8, 16], strides = [1, 1, 1]} : vector<10x10x16xbf16> to vector<8x8x16xbf16>
    %20 = vector.shape_cast %19 : vector<8x8x16xbf16> to vector<64x16xbf16>
    %21 = vector.extract_strided_slice %6 {offsets = [2, 1, 0], sizes = [8, 8, 16], strides = [1, 1, 1]} : vector<10x10x16xbf16> to vector<8x8x16xbf16>
    %22 = vector.shape_cast %21 : vector<8x8x16xbf16> to vector<64x16xbf16>
    %23 = vector.extract_strided_slice %6 {offsets = [2, 2, 0], sizes = [8, 8, 16], strides = [1, 1, 1]} : vector<10x10x16xbf16> to vector<8x8x16xbf16>
    %24 = vector.shape_cast %23 : vector<8x8x16xbf16> to vector<64x16xbf16>
    %25 = tpu.concatenate %8, %10, %12, %14, %16, %18, %20, %22, %24 in 1 : vector<64x16xbf16>, vector<64x16xbf16>, vector<64x16xbf16>, vector<64x16xbf16>, vector<64x16xbf16>, vector<64x16xbf16>, vector<64x16xbf16>, vector<64x16xbf16>, vector<64x16xbf16> -> vector<64x144xbf16>
    %c0_4 = arith.constant 0 : index
    %c0_5 = arith.constant 0 : index
    %26 = vector.load %arg2[%c0_4, %c0_5] : memref<144x16xbf16, #tpu.memory_space<vmem>>, vector<144x16xbf16>
    %cst_6 = arith.constant dense<0.000000e+00> : vector<64x16xf32>
    %27 = tpu.matmul %25, %26, %cst_6 {dimension_numbers = #tpu.dot_dimension_numbers<[1], [0], [0], [1], [0, 0, 1, 1], [], []>} : vector<64x144xbf16>, vector<144x16xbf16>, vector<64x16xf32> -> vector<64x16xf32>
    %cst_7 = arith.constant dense<0.000000e+00> : vector<16xf32>
    %28 = vector.multi_reduction <add>, %27, %cst_7 [0] : vector<64x16xf32> to vector<16xf32>
    %29 = vector.shape_cast %28 : vector<16xf32> to vector<1x16xf32>
    %cst_8 = arith.constant 6.400000e+01 : f32
    %30 = vector.broadcast %cst_8 : f32 to vector<1x16xf32>
    %31 = arith.divf %29, %30 : vector<1x16xf32>
    %32 = vector.broadcast %31 : vector<1x16xf32> to vector<64x16xf32>
    %33 = arith.subf %27, %32 : vector<64x16xf32>
    %34 = arith.mulf %33, %33 : vector<64x16xf32>
    %cst_9 = arith.constant dense<0.000000e+00> : vector<16xf32>
    %35 = vector.multi_reduction <add>, %34, %cst_9 [0] : vector<64x16xf32> to vector<16xf32>
    %36 = vector.shape_cast %35 : vector<16xf32> to vector<1x16xf32>
    %cst_10 = arith.constant 6.400000e+01 : f32
    %37 = vector.broadcast %cst_10 : f32 to vector<1x16xf32>
    %38 = arith.divf %36, %37 : vector<1x16xf32>
    %cst_11 = arith.constant 9.99999974E-6 : f32
    %39 = vector.broadcast %cst_11 : f32 to vector<1x16xf32>
    %40 = arith.addf %38, %39 : vector<1x16xf32>
    %41 = math.rsqrt %40 : vector<1x16xf32>
    %42 = vector.broadcast %41 : vector<1x16xf32> to vector<64x16xf32>
    %43 = arith.mulf %33, %42 : vector<64x16xf32>
    %cst_12 = arith.constant 0.000000e+00 : f32
    %44 = vector.broadcast %cst_12 : f32 to vector<64x16xf32>
    %45 = arith.cmpf ogt, %43, %44 : vector<64x16xf32>
    %cst_13 = arith.constant 0.00999999977 : f32
    %46 = vector.broadcast %cst_13 : f32 to vector<64x16xf32>
    %47 = arith.mulf %46, %43 : vector<64x16xf32>
    %48 = arith.select %45, %43, %47 : vector<64x16xi1>, vector<64x16xf32>
    %49 = vector.shape_cast %48 : vector<64x16xf32> to vector<8x8x16xf32>
    %c0_14 = arith.constant 0 : index
    %c0_15 = arith.constant 0 : index
    %c0_16 = arith.constant 0 : index
    %c0_17 = arith.constant 0 : index
    %50 = vector.load %arg3[%c0_14, %c0_15, %c0_16, %c0_17] : memref<1x8x8x16xf32, #tpu.memory_space<vmem>>, vector<1x8x8x16xf32>
    %51 = vector.shape_cast %50 : vector<1x8x8x16xf32> to vector<8x8x16xf32>
    %52 = vector.shape_cast %49 : vector<8x8x16xf32> to vector<1x8x8x16xf32>
    tpu.vector_store %arg3[%c0_14, %c0_15, %c0_16, %c0_17], %52 {strides = array<i32>} : memref<1x8x8x16xf32, #tpu.memory_space<vmem>>, vector<1x8x8x16xf32>,
    return
  }
  func.func @transform_0(%arg0: i32) -> (i32, i32, i32, i32) {
    %c0_i32 = arith.constant 0 : i32
    %c0_i32_0 = arith.constant 0 : i32
    %c0_i32_1 = arith.constant 0 : i32
    %c0_i32_2 = arith.constant 0 : i32
    return %arg0, %c0_i32, %c0_i32_0, %c0_i32_1 : i32, i32, i32, i32
  }
  func.func @transform_1(%arg0: i32) -> (i32, i32) {
    %c0_i32 = arith.constant 0 : i32
    %c0_i32_0 = arith.constant 0 : i32
    %c0_i32_1 = arith.constant 0 : i32
    return %c0_i32, %c0_i32_0 : i32, i32
  }
  func.func @transform_2(%arg0: i32) -> (i32, i32, i32, i32) {
    %c0_i32 = arith.constant 0 : i32
    %c0_i32_0 = arith.constant 0 : i32
    %c0_i32_1 = arith.constant 0 : i32
    %c0_i32_2 = arith.constant 0 : i32
    return %arg0, %c0_i32, %c0_i32_0, %c0_i32_1 : i32, i32, i32, i32
  }
}

module attributes {stable_mosaic.version = 11 : i64} {
  func.func @_upconv2x2_kernel(%arg0: i32, %arg1: memref<1x8x8x16xf32, #tpu.memory_space<vmem>>, %arg2: memref<16x32xbf16, #tpu.memory_space<vmem>>, %arg3: memref<1x32xf32, #tpu.memory_space<vmem>>, %arg4: memref<1x8x2x8x16xbf16, #tpu.memory_space<vmem>>) attributes {dimension_semantics = [#tpu.dimension_semantics<parallel>], iteration_bounds = array<i64: 2>, scalar_prefetch = 0 : i64, scratch_operands = 0 : i64, tpu.core_type = #tpu.core_type<tc>, window_params = [{transform_indices = @transform_0, window_bounds = array<i64: 1, 8, 8, 16>}, {pipeline_mode = #tpu.pipeline_mode<synchronous>, transform_indices = @transform_1, window_bounds = array<i64: 16, 32>}, {pipeline_mode = #tpu.pipeline_mode<synchronous>, transform_indices = @transform_2, window_bounds = array<i64: 1, 32>}, {transform_indices = @transform_3, window_bounds = array<i64: 1, 8, 2, 8, 16>}]} {
    %c0 = arith.constant 0 : index
    %c0_0 = arith.constant 0 : index
    %c0_1 = arith.constant 0 : index
    %c0_2 = arith.constant 0 : index
    %0 = vector.load %arg1[%c0, %c0_0, %c0_1, %c0_2] : memref<1x8x8x16xf32, #tpu.memory_space<vmem>>, vector<1x8x8x16xf32>
    %1 = vector.shape_cast %0 : vector<1x8x8x16xf32> to vector<8x8x16xf32>
    %2 = vector.shape_cast %1 : vector<8x8x16xf32> to vector<64x16xf32>
    %3 = arith.truncf %2 : vector<64x16xf32> to vector<64x16xbf16>
    %c0_3 = arith.constant 0 : index
    %c0_4 = arith.constant 0 : index
    %4 = vector.load %arg2[%c0_3, %c0_4] : memref<16x32xbf16, #tpu.memory_space<vmem>>, vector<16x32xbf16>
    %cst = arith.constant dense<0.000000e+00> : vector<64x32xf32>
    %5 = tpu.matmul %3, %4, %cst {dimension_numbers = #tpu.dot_dimension_numbers<[1], [0], [0], [1], [0, 0, 1, 1], [], []>} : vector<64x16xbf16>, vector<16x32xbf16>, vector<64x32xf32> -> vector<64x32xf32>
    %c0_5 = arith.constant 0 : index
    %c0_6 = arith.constant 0 : index
    %6 = vector.load %arg3[%c0_5, %c0_6] : memref<1x32xf32, #tpu.memory_space<vmem>>, vector<1x32xf32>
    %7 = vector.broadcast %6 : vector<1x32xf32> to vector<64x32xf32>
    %8 = arith.addf %5, %7 : vector<64x32xf32>
    %9 = vector.extract_strided_slice %8 {offsets = [0, 0], sizes = [64, 16], strides = [1, 1]} : vector<64x32xf32> to vector<64x16xf32>
    %10 = vector.shape_cast %9 : vector<64x16xf32> to vector<8x8x16xf32>
    %11 = arith.truncf %10 : vector<8x8x16xf32> to vector<8x8x16xbf16>
    %c0_7 = arith.constant 0 : index
    %c0_8 = arith.constant 0 : index
    %c0_9 = arith.constant 0 : index
    %c0_10 = arith.constant 0 : index
    %c0_11 = arith.constant 0 : index
    %12 = vector.load %arg4[%c0_7, %c0_8, %c0_9, %c0_10, %c0_11] : memref<1x8x2x8x16xbf16, #tpu.memory_space<vmem>>, vector<1x8x1x8x16xbf16>
    %13 = vector.shape_cast %12 : vector<1x8x1x8x16xbf16> to vector<8x8x16xbf16>
    %14 = vector.shape_cast %11 : vector<8x8x16xbf16> to vector<1x8x1x8x16xbf16>
    tpu.vector_store %arg4[%c0_7, %c0_8, %c0_9, %c0_10, %c0_11], %14 {strides = array<i32>} : memref<1x8x2x8x16xbf16, #tpu.memory_space<vmem>>, vector<1x8x1x8x16xbf16>,
    %15 = vector.extract_strided_slice %8 {offsets = [0, 16], sizes = [64, 16], strides = [1, 1]} : vector<64x32xf32> to vector<64x16xf32>
    %16 = vector.shape_cast %15 : vector<64x16xf32> to vector<8x8x16xf32>
    %17 = arith.truncf %16 : vector<8x8x16xf32> to vector<8x8x16xbf16>
    %c0_12 = arith.constant 0 : index
    %c0_13 = arith.constant 0 : index
    %c1 = arith.constant 1 : index
    %c0_14 = arith.constant 0 : index
    %c0_15 = arith.constant 0 : index
    %18 = vector.load %arg4[%c0_12, %c0_13, %c1, %c0_14, %c0_15] : memref<1x8x2x8x16xbf16, #tpu.memory_space<vmem>>, vector<1x8x1x8x16xbf16>
    %19 = vector.shape_cast %18 : vector<1x8x1x8x16xbf16> to vector<8x8x16xbf16>
    %20 = vector.shape_cast %17 : vector<8x8x16xbf16> to vector<1x8x1x8x16xbf16>
    tpu.vector_store %arg4[%c0_12, %c0_13, %c1, %c0_14, %c0_15], %20 {strides = array<i32>} : memref<1x8x2x8x16xbf16, #tpu.memory_space<vmem>>, vector<1x8x1x8x16xbf16>,
    return
  }
  func.func @transform_0(%arg0: i32) -> (i32, i32, i32, i32) {
    %c0_i32 = arith.constant 0 : i32
    %c0_i32_0 = arith.constant 0 : i32
    %c0_i32_1 = arith.constant 0 : i32
    %c0_i32_2 = arith.constant 0 : i32
    return %arg0, %c0_i32, %c0_i32_0, %c0_i32_1 : i32, i32, i32, i32
  }
  func.func @transform_1(%arg0: i32) -> (i32, i32) {
    %c0_i32 = arith.constant 0 : i32
    %c0_i32_0 = arith.constant 0 : i32
    %c0_i32_1 = arith.constant 0 : i32
    return %c0_i32, %c0_i32_0 : i32, i32
  }
  func.func @transform_2(%arg0: i32) -> (i32, i32) {
    %c0_i32 = arith.constant 0 : i32
    %c0_i32_0 = arith.constant 0 : i32
    %c0_i32_1 = arith.constant 0 : i32
    return %c0_i32, %c0_i32_0 : i32, i32
  }
  func.func @transform_3(%arg0: i32) -> (i32, i32, i32, i32, i32) {
    %c0_i32 = arith.constant 0 : i32
    %c0_i32_0 = arith.constant 0 : i32
    %c0_i32_1 = arith.constant 0 : i32
    %c0_i32_2 = arith.constant 0 : i32
    %c0_i32_3 = arith.constant 0 : i32
    return %arg0, %c0_i32, %c0_i32_0, %c0_i32_1, %c0_i32_2 : i32, i32, i32, i32, i32
  }
}

module attributes {stable_mosaic.version = 11 : i64} {
  func.func @_convblock_cat_kernel(%arg0: i32, %arg1: memref<1x16x16x8xf32, #tpu.memory_space<vmem>>, %arg2: memref<1x16x16x8xbf16, #tpu.memory_space<vmem>>, %arg3: memref<144x8xbf16, #tpu.memory_space<vmem>>, %arg4: memref<1x16x16x8xf32, #tpu.memory_space<vmem>>) attributes {dimension_semantics = [#tpu.dimension_semantics<parallel>], iteration_bounds = array<i64: 2>, scalar_prefetch = 0 : i64, scratch_operands = 0 : i64, tpu.core_type = #tpu.core_type<tc>, window_params = [{transform_indices = @transform_0, window_bounds = array<i64: 1, 16, 16, 8>}, {transform_indices = @transform_1, window_bounds = array<i64: 1, 16, 16, 8>}, {pipeline_mode = #tpu.pipeline_mode<synchronous>, transform_indices = @transform_2, window_bounds = array<i64: 144, 8>}, {transform_indices = @transform_3, window_bounds = array<i64: 1, 16, 16, 8>}]} {
    %c0 = arith.constant 0 : index
    %c0_0 = arith.constant 0 : index
    %c0_1 = arith.constant 0 : index
    %c0_2 = arith.constant 0 : index
    %0 = vector.load %arg1[%c0, %c0_0, %c0_1, %c0_2] : memref<1x16x16x8xf32, #tpu.memory_space<vmem>>, vector<1x16x16x8xf32>
    %1 = vector.shape_cast %0 : vector<1x16x16x8xf32> to vector<16x16x8xf32>
    %2 = arith.truncf %1 : vector<16x16x8xf32> to vector<16x16x8xbf16>
    %c0_3 = arith.constant 0 : index
    %c0_4 = arith.constant 0 : index
    %c0_5 = arith.constant 0 : index
    %c0_6 = arith.constant 0 : index
    %3 = vector.load %arg2[%c0_3, %c0_4, %c0_5, %c0_6] : memref<1x16x16x8xbf16, #tpu.memory_space<vmem>>, vector<1x16x16x8xbf16>
    %4 = vector.shape_cast %3 : vector<1x16x16x8xbf16> to vector<16x16x8xbf16>
    %5 = tpu.concatenate %2, %4 in 2 : vector<16x16x8xbf16>, vector<16x16x8xbf16> -> vector<16x16x16xbf16>
    %cst = arith.constant 0.000000e+00 : bf16
    %6 = vector.broadcast %cst : bf16 to vector<1x16x16xbf16>
    %7 = tpu.concatenate %6, %5, %6 in 0 : vector<1x16x16xbf16>, vector<16x16x16xbf16>, vector<1x16x16xbf16> -> vector<18x16x16xbf16>
    %cst_7 = arith.constant 0.000000e+00 : bf16
    %8 = vector.broadcast %cst_7 : bf16 to vector<18x1x16xbf16>
    %9 = tpu.concatenate %8, %7, %8 in 1 : vector<18x1x16xbf16>, vector<18x16x16xbf16>, vector<18x1x16xbf16> -> vector<18x18x16xbf16>
    %10 = vector.extract_strided_slice %9 {offsets = [0, 0, 0], sizes = [16, 16, 16], strides = [1, 1, 1]} : vector<18x18x16xbf16> to vector<16x16x16xbf16>
    %11 = vector.shape_cast %10 : vector<16x16x16xbf16> to vector<256x16xbf16>
    %12 = vector.extract_strided_slice %9 {offsets = [0, 1, 0], sizes = [16, 16, 16], strides = [1, 1, 1]} : vector<18x18x16xbf16> to vector<16x16x16xbf16>
    %13 = vector.shape_cast %12 : vector<16x16x16xbf16> to vector<256x16xbf16>
    %14 = vector.extract_strided_slice %9 {offsets = [0, 2, 0], sizes = [16, 16, 16], strides = [1, 1, 1]} : vector<18x18x16xbf16> to vector<16x16x16xbf16>
    %15 = vector.shape_cast %14 : vector<16x16x16xbf16> to vector<256x16xbf16>
    %16 = vector.extract_strided_slice %9 {offsets = [1, 0, 0], sizes = [16, 16, 16], strides = [1, 1, 1]} : vector<18x18x16xbf16> to vector<16x16x16xbf16>
    %17 = vector.shape_cast %16 : vector<16x16x16xbf16> to vector<256x16xbf16>
    %18 = vector.extract_strided_slice %9 {offsets = [1, 1, 0], sizes = [16, 16, 16], strides = [1, 1, 1]} : vector<18x18x16xbf16> to vector<16x16x16xbf16>
    %19 = vector.shape_cast %18 : vector<16x16x16xbf16> to vector<256x16xbf16>
    %20 = vector.extract_strided_slice %9 {offsets = [1, 2, 0], sizes = [16, 16, 16], strides = [1, 1, 1]} : vector<18x18x16xbf16> to vector<16x16x16xbf16>
    %21 = vector.shape_cast %20 : vector<16x16x16xbf16> to vector<256x16xbf16>
    %22 = vector.extract_strided_slice %9 {offsets = [2, 0, 0], sizes = [16, 16, 16], strides = [1, 1, 1]} : vector<18x18x16xbf16> to vector<16x16x16xbf16>
    %23 = vector.shape_cast %22 : vector<16x16x16xbf16> to vector<256x16xbf16>
    %24 = vector.extract_strided_slice %9 {offsets = [2, 1, 0], sizes = [16, 16, 16], strides = [1, 1, 1]} : vector<18x18x16xbf16> to vector<16x16x16xbf16>
    %25 = vector.shape_cast %24 : vector<16x16x16xbf16> to vector<256x16xbf16>
    %26 = vector.extract_strided_slice %9 {offsets = [2, 2, 0], sizes = [16, 16, 16], strides = [1, 1, 1]} : vector<18x18x16xbf16> to vector<16x16x16xbf16>
    %27 = vector.shape_cast %26 : vector<16x16x16xbf16> to vector<256x16xbf16>
    %28 = tpu.concatenate %11, %13, %15, %17, %19, %21, %23, %25, %27 in 1 : vector<256x16xbf16>, vector<256x16xbf16>, vector<256x16xbf16>, vector<256x16xbf16>, vector<256x16xbf16>, vector<256x16xbf16>, vector<256x16xbf16>, vector<256x16xbf16>, vector<256x16xbf16> -> vector<256x144xbf16>
    %c0_8 = arith.constant 0 : index
    %c0_9 = arith.constant 0 : index
    %29 = vector.load %arg3[%c0_8, %c0_9] : memref<144x8xbf16, #tpu.memory_space<vmem>>, vector<144x8xbf16>
    %cst_10 = arith.constant dense<0.000000e+00> : vector<256x8xf32>
    %30 = tpu.matmul %28, %29, %cst_10 {dimension_numbers = #tpu.dot_dimension_numbers<[1], [0], [0], [1], [0, 0, 1, 1], [], []>} : vector<256x144xbf16>, vector<144x8xbf16>, vector<256x8xf32> -> vector<256x8xf32>
    %cst_11 = arith.constant dense<0.000000e+00> : vector<8xf32>
    %31 = vector.multi_reduction <add>, %30, %cst_11 [0] : vector<256x8xf32> to vector<8xf32>
    %32 = vector.shape_cast %31 : vector<8xf32> to vector<1x8xf32>
    %cst_12 = arith.constant 2.560000e+02 : f32
    %33 = vector.broadcast %cst_12 : f32 to vector<1x8xf32>
    %34 = arith.divf %32, %33 : vector<1x8xf32>
    %35 = vector.broadcast %34 : vector<1x8xf32> to vector<256x8xf32>
    %36 = arith.subf %30, %35 : vector<256x8xf32>
    %37 = arith.mulf %36, %36 : vector<256x8xf32>
    %cst_13 = arith.constant dense<0.000000e+00> : vector<8xf32>
    %38 = vector.multi_reduction <add>, %37, %cst_13 [0] : vector<256x8xf32> to vector<8xf32>
    %39 = vector.shape_cast %38 : vector<8xf32> to vector<1x8xf32>
    %cst_14 = arith.constant 2.560000e+02 : f32
    %40 = vector.broadcast %cst_14 : f32 to vector<1x8xf32>
    %41 = arith.divf %39, %40 : vector<1x8xf32>
    %cst_15 = arith.constant 9.99999974E-6 : f32
    %42 = vector.broadcast %cst_15 : f32 to vector<1x8xf32>
    %43 = arith.addf %41, %42 : vector<1x8xf32>
    %44 = math.rsqrt %43 : vector<1x8xf32>
    %45 = vector.broadcast %44 : vector<1x8xf32> to vector<256x8xf32>
    %46 = arith.mulf %36, %45 : vector<256x8xf32>
    %cst_16 = arith.constant 0.000000e+00 : f32
    %47 = vector.broadcast %cst_16 : f32 to vector<256x8xf32>
    %48 = arith.cmpf ogt, %46, %47 : vector<256x8xf32>
    %cst_17 = arith.constant 0.00999999977 : f32
    %49 = vector.broadcast %cst_17 : f32 to vector<256x8xf32>
    %50 = arith.mulf %49, %46 : vector<256x8xf32>
    %51 = arith.select %48, %46, %50 : vector<256x8xi1>, vector<256x8xf32>
    %52 = vector.shape_cast %51 : vector<256x8xf32> to vector<16x16x8xf32>
    %c0_18 = arith.constant 0 : index
    %c0_19 = arith.constant 0 : index
    %c0_20 = arith.constant 0 : index
    %c0_21 = arith.constant 0 : index
    %53 = vector.load %arg4[%c0_18, %c0_19, %c0_20, %c0_21] : memref<1x16x16x8xf32, #tpu.memory_space<vmem>>, vector<1x16x16x8xf32>
    %54 = vector.shape_cast %53 : vector<1x16x16x8xf32> to vector<16x16x8xf32>
    %55 = vector.shape_cast %52 : vector<16x16x8xf32> to vector<1x16x16x8xf32>
    tpu.vector_store %arg4[%c0_18, %c0_19, %c0_20, %c0_21], %55 {strides = array<i32>} : memref<1x16x16x8xf32, #tpu.memory_space<vmem>>, vector<1x16x16x8xf32>,
    return
  }
  func.func @transform_0(%arg0: i32) -> (i32, i32, i32, i32) {
    %c0_i32 = arith.constant 0 : i32
    %c0_i32_0 = arith.constant 0 : i32
    %c0_i32_1 = arith.constant 0 : i32
    %c0_i32_2 = arith.constant 0 : i32
    return %arg0, %c0_i32, %c0_i32_0, %c0_i32_1 : i32, i32, i32, i32
  }
  func.func @transform_1(%arg0: i32) -> (i32, i32, i32, i32) {
    %c0_i32 = arith.constant 0 : i32
    %c0_i32_0 = arith.constant 0 : i32
    %c0_i32_1 = arith.constant 0 : i32
    %c0_i32_2 = arith.constant 0 : i32
    return %arg0, %c0_i32, %c0_i32_0, %c0_i32_1 : i32, i32, i32, i32
  }
  func.func @transform_2(%arg0: i32) -> (i32, i32) {
    %c0_i32 = arith.constant 0 : i32
    %c0_i32_0 = arith.constant 0 : i32
    %c0_i32_1 = arith.constant 0 : i32
    return %c0_i32, %c0_i32_0 : i32, i32
  }
  func.func @transform_3(%arg0: i32) -> (i32, i32, i32, i32) {
    %c0_i32 = arith.constant 0 : i32
    %c0_i32_0 = arith.constant 0 : i32
    %c0_i32_1 = arith.constant 0 : i32
    %c0_i32_2 = arith.constant 0 : i32
    return %arg0, %c0_i32, %c0_i32_0, %c0_i32_1 : i32, i32, i32, i32
  }
}

module attributes {stable_mosaic.version = 11 : i64} {
  func.func @_convblock_kernel(%arg0: i32, %arg1: memref<1x16x16x8xf32, #tpu.memory_space<vmem>>, %arg2: memref<72x8xbf16, #tpu.memory_space<vmem>>, %arg3: memref<1x16x16x8xf32, #tpu.memory_space<vmem>>) attributes {dimension_semantics = [#tpu.dimension_semantics<parallel>], iteration_bounds = array<i64: 2>, scalar_prefetch = 0 : i64, scratch_operands = 0 : i64, tpu.core_type = #tpu.core_type<tc>, window_params = [{transform_indices = @transform_0, window_bounds = array<i64: 1, 16, 16, 8>}, {pipeline_mode = #tpu.pipeline_mode<synchronous>, transform_indices = @transform_1, window_bounds = array<i64: 72, 8>}, {transform_indices = @transform_2, window_bounds = array<i64: 1, 16, 16, 8>}]} {
    %c0 = arith.constant 0 : index
    %c0_0 = arith.constant 0 : index
    %c0_1 = arith.constant 0 : index
    %c0_2 = arith.constant 0 : index
    %0 = vector.load %arg1[%c0, %c0_0, %c0_1, %c0_2] : memref<1x16x16x8xf32, #tpu.memory_space<vmem>>, vector<1x16x16x8xf32>
    %1 = vector.shape_cast %0 : vector<1x16x16x8xf32> to vector<16x16x8xf32>
    %2 = arith.truncf %1 : vector<16x16x8xf32> to vector<16x16x8xbf16>
    %cst = arith.constant 0.000000e+00 : bf16
    %3 = vector.broadcast %cst : bf16 to vector<1x16x8xbf16>
    %4 = tpu.concatenate %3, %2, %3 in 0 : vector<1x16x8xbf16>, vector<16x16x8xbf16>, vector<1x16x8xbf16> -> vector<18x16x8xbf16>
    %cst_3 = arith.constant 0.000000e+00 : bf16
    %5 = vector.broadcast %cst_3 : bf16 to vector<18x1x8xbf16>
    %6 = tpu.concatenate %5, %4, %5 in 1 : vector<18x1x8xbf16>, vector<18x16x8xbf16>, vector<18x1x8xbf16> -> vector<18x18x8xbf16>
    %7 = vector.extract_strided_slice %6 {offsets = [0, 0, 0], sizes = [16, 16, 8], strides = [1, 1, 1]} : vector<18x18x8xbf16> to vector<16x16x8xbf16>
    %8 = vector.shape_cast %7 : vector<16x16x8xbf16> to vector<256x8xbf16>
    %9 = vector.extract_strided_slice %6 {offsets = [0, 1, 0], sizes = [16, 16, 8], strides = [1, 1, 1]} : vector<18x18x8xbf16> to vector<16x16x8xbf16>
    %10 = vector.shape_cast %9 : vector<16x16x8xbf16> to vector<256x8xbf16>
    %11 = vector.extract_strided_slice %6 {offsets = [0, 2, 0], sizes = [16, 16, 8], strides = [1, 1, 1]} : vector<18x18x8xbf16> to vector<16x16x8xbf16>
    %12 = vector.shape_cast %11 : vector<16x16x8xbf16> to vector<256x8xbf16>
    %13 = vector.extract_strided_slice %6 {offsets = [1, 0, 0], sizes = [16, 16, 8], strides = [1, 1, 1]} : vector<18x18x8xbf16> to vector<16x16x8xbf16>
    %14 = vector.shape_cast %13 : vector<16x16x8xbf16> to vector<256x8xbf16>
    %15 = vector.extract_strided_slice %6 {offsets = [1, 1, 0], sizes = [16, 16, 8], strides = [1, 1, 1]} : vector<18x18x8xbf16> to vector<16x16x8xbf16>
    %16 = vector.shape_cast %15 : vector<16x16x8xbf16> to vector<256x8xbf16>
    %17 = vector.extract_strided_slice %6 {offsets = [1, 2, 0], sizes = [16, 16, 8], strides = [1, 1, 1]} : vector<18x18x8xbf16> to vector<16x16x8xbf16>
    %18 = vector.shape_cast %17 : vector<16x16x8xbf16> to vector<256x8xbf16>
    %19 = vector.extract_strided_slice %6 {offsets = [2, 0, 0], sizes = [16, 16, 8], strides = [1, 1, 1]} : vector<18x18x8xbf16> to vector<16x16x8xbf16>
    %20 = vector.shape_cast %19 : vector<16x16x8xbf16> to vector<256x8xbf16>
    %21 = vector.extract_strided_slice %6 {offsets = [2, 1, 0], sizes = [16, 16, 8], strides = [1, 1, 1]} : vector<18x18x8xbf16> to vector<16x16x8xbf16>
    %22 = vector.shape_cast %21 : vector<16x16x8xbf16> to vector<256x8xbf16>
    %23 = vector.extract_strided_slice %6 {offsets = [2, 2, 0], sizes = [16, 16, 8], strides = [1, 1, 1]} : vector<18x18x8xbf16> to vector<16x16x8xbf16>
    %24 = vector.shape_cast %23 : vector<16x16x8xbf16> to vector<256x8xbf16>
    %25 = tpu.concatenate %8, %10, %12, %14, %16, %18, %20, %22, %24 in 1 : vector<256x8xbf16>, vector<256x8xbf16>, vector<256x8xbf16>, vector<256x8xbf16>, vector<256x8xbf16>, vector<256x8xbf16>, vector<256x8xbf16>, vector<256x8xbf16>, vector<256x8xbf16> -> vector<256x72xbf16>
    %c0_4 = arith.constant 0 : index
    %c0_5 = arith.constant 0 : index
    %26 = vector.load %arg2[%c0_4, %c0_5] : memref<72x8xbf16, #tpu.memory_space<vmem>>, vector<72x8xbf16>
    %cst_6 = arith.constant dense<0.000000e+00> : vector<256x8xf32>
    %27 = tpu.matmul %25, %26, %cst_6 {dimension_numbers = #tpu.dot_dimension_numbers<[1], [0], [0], [1], [0, 0, 1, 1], [], []>} : vector<256x72xbf16>, vector<72x8xbf16>, vector<256x8xf32> -> vector<256x8xf32>
    %cst_7 = arith.constant dense<0.000000e+00> : vector<8xf32>
    %28 = vector.multi_reduction <add>, %27, %cst_7 [0] : vector<256x8xf32> to vector<8xf32>
    %29 = vector.shape_cast %28 : vector<8xf32> to vector<1x8xf32>
    %cst_8 = arith.constant 2.560000e+02 : f32
    %30 = vector.broadcast %cst_8 : f32 to vector<1x8xf32>
    %31 = arith.divf %29, %30 : vector<1x8xf32>
    %32 = vector.broadcast %31 : vector<1x8xf32> to vector<256x8xf32>
    %33 = arith.subf %27, %32 : vector<256x8xf32>
    %34 = arith.mulf %33, %33 : vector<256x8xf32>
    %cst_9 = arith.constant dense<0.000000e+00> : vector<8xf32>
    %35 = vector.multi_reduction <add>, %34, %cst_9 [0] : vector<256x8xf32> to vector<8xf32>
    %36 = vector.shape_cast %35 : vector<8xf32> to vector<1x8xf32>
    %cst_10 = arith.constant 2.560000e+02 : f32
    %37 = vector.broadcast %cst_10 : f32 to vector<1x8xf32>
    %38 = arith.divf %36, %37 : vector<1x8xf32>
    %cst_11 = arith.constant 9.99999974E-6 : f32
    %39 = vector.broadcast %cst_11 : f32 to vector<1x8xf32>
    %40 = arith.addf %38, %39 : vector<1x8xf32>
    %41 = math.rsqrt %40 : vector<1x8xf32>
    %42 = vector.broadcast %41 : vector<1x8xf32> to vector<256x8xf32>
    %43 = arith.mulf %33, %42 : vector<256x8xf32>
    %cst_12 = arith.constant 0.000000e+00 : f32
    %44 = vector.broadcast %cst_12 : f32 to vector<256x8xf32>
    %45 = arith.cmpf ogt, %43, %44 : vector<256x8xf32>
    %cst_13 = arith.constant 0.00999999977 : f32
    %46 = vector.broadcast %cst_13 : f32 to vector<256x8xf32>
    %47 = arith.mulf %46, %43 : vector<256x8xf32>
    %48 = arith.select %45, %43, %47 : vector<256x8xi1>, vector<256x8xf32>
    %49 = vector.shape_cast %48 : vector<256x8xf32> to vector<16x16x8xf32>
    %c0_14 = arith.constant 0 : index
    %c0_15 = arith.constant 0 : index
    %c0_16 = arith.constant 0 : index
    %c0_17 = arith.constant 0 : index
    %50 = vector.load %arg3[%c0_14, %c0_15, %c0_16, %c0_17] : memref<1x16x16x8xf32, #tpu.memory_space<vmem>>, vector<1x16x16x8xf32>
    %51 = vector.shape_cast %50 : vector<1x16x16x8xf32> to vector<16x16x8xf32>
    %52 = vector.shape_cast %49 : vector<16x16x8xf32> to vector<1x16x16x8xf32>
    tpu.vector_store %arg3[%c0_14, %c0_15, %c0_16, %c0_17], %52 {strides = array<i32>} : memref<1x16x16x8xf32, #tpu.memory_space<vmem>>, vector<1x16x16x8xf32>,
    return
  }
  func.func @transform_0(%arg0: i32) -> (i32, i32, i32, i32) {
    %c0_i32 = arith.constant 0 : i32
    %c0_i32_0 = arith.constant 0 : i32
    %c0_i32_1 = arith.constant 0 : i32
    %c0_i32_2 = arith.constant 0 : i32
    return %arg0, %c0_i32, %c0_i32_0, %c0_i32_1 : i32, i32, i32, i32
  }
  func.func @transform_1(%arg0: i32) -> (i32, i32) {
    %c0_i32 = arith.constant 0 : i32
    %c0_i32_0 = arith.constant 0 : i32
    %c0_i32_1 = arith.constant 0 : i32
    return %c0_i32, %c0_i32_0 : i32, i32
  }
  func.func @transform_2(%arg0: i32) -> (i32, i32, i32, i32) {
    %c0_i32 = arith.constant 0 : i32
    %c0_i32_0 = arith.constant 0 : i32
    %c0_i32_1 = arith.constant 0 : i32
    %c0_i32_2 = arith.constant 0 : i32
    return %arg0, %c0_i32, %c0_i32_0, %c0_i32_1 : i32, i32, i32, i32
  }
}

module attributes {stable_mosaic.version = 11 : i64} {
  func.func @_score_kernel(%arg0: i32, %arg1: i32, %arg2: memref<1x256x8xf32, #tpu.memory_space<vmem>>, %arg3: memref<3x8xbf16, #tpu.memory_space<vmem>>, %arg4: memref<3x1xf32, #tpu.memory_space<vmem>>, %arg5: memref<1x3x256xf32, #tpu.memory_space<vmem>>) attributes {dimension_semantics = [#tpu.dimension_semantics<parallel>, #tpu.dimension_semantics<parallel>], iteration_bounds = array<i64: 2, 1>, scalar_prefetch = 0 : i64, scratch_operands = 0 : i64, tpu.core_type = #tpu.core_type<tc>, window_params = [{transform_indices = @transform_0, window_bounds = array<i64: 1, 256, 8>}, {pipeline_mode = #tpu.pipeline_mode<synchronous>, transform_indices = @transform_1, window_bounds = array<i64: 3, 8>}, {pipeline_mode = #tpu.pipeline_mode<synchronous>, transform_indices = @transform_2, window_bounds = array<i64: 3, 1>}, {transform_indices = @transform_3, window_bounds = array<i64: 1, 3, 256>}]} {
    %c0 = arith.constant 0 : index
    %c0_0 = arith.constant 0 : index
    %c0_1 = arith.constant 0 : index
    %0 = vector.load %arg2[%c0, %c0_0, %c0_1] : memref<1x256x8xf32, #tpu.memory_space<vmem>>, vector<1x256x8xf32>
    %1 = vector.shape_cast %0 : vector<1x256x8xf32> to vector<256x8xf32>
    %2 = arith.truncf %1 : vector<256x8xf32> to vector<256x8xbf16>
    %c0_2 = arith.constant 0 : index
    %c0_3 = arith.constant 0 : index
    %3 = vector.load %arg3[%c0_2, %c0_3] : memref<3x8xbf16, #tpu.memory_space<vmem>>, vector<3x8xbf16>
    %cst = arith.constant dense<0.000000e+00> : vector<3x256xf32>
    %4 = tpu.matmul %3, %2, %cst {dimension_numbers = #tpu.dot_dimension_numbers<[1], [1], [0], [0], [0, 0, 1, 0], [], []>} : vector<3x8xbf16>, vector<256x8xbf16>, vector<3x256xf32> -> vector<3x256xf32>
    %c0_4 = arith.constant 0 : index
    %c0_5 = arith.constant 0 : index
    %5 = vector.load %arg4[%c0_4, %c0_5] : memref<3x1xf32, #tpu.memory_space<vmem>>, vector<3x1xf32>
    %6 = vector.broadcast %5 : vector<3x1xf32> to vector<3x256xf32>
    %7 = arith.addf %4, %6 : vector<3x256xf32>
    %c0_6 = arith.constant 0 : index
    %c0_7 = arith.constant 0 : index
    %c0_8 = arith.constant 0 : index
    %8 = vector.load %arg5[%c0_6, %c0_7, %c0_8] : memref<1x3x256xf32, #tpu.memory_space<vmem>>, vector<1x3x256xf32>
    %9 = vector.shape_cast %8 : vector<1x3x256xf32> to vector<3x256xf32>
    %10 = vector.shape_cast %7 : vector<3x256xf32> to vector<1x3x256xf32>
    tpu.vector_store %arg5[%c0_6, %c0_7, %c0_8], %10 {strides = array<i32>} : memref<1x3x256xf32, #tpu.memory_space<vmem>>, vector<1x3x256xf32>,
    return
  }
  func.func @transform_0(%arg0: i32, %arg1: i32) -> (i32, i32, i32) {
    %c0_i32 = arith.constant 0 : i32
    %c0_i32_0 = arith.constant 0 : i32
    return %arg0, %arg1, %c0_i32 : i32, i32, i32
  }
  func.func @transform_1(%arg0: i32, %arg1: i32) -> (i32, i32) {
    %c0_i32 = arith.constant 0 : i32
    %c0_i32_0 = arith.constant 0 : i32
    %c0_i32_1 = arith.constant 0 : i32
    return %c0_i32, %c0_i32_0 : i32, i32
  }
  func.func @transform_2(%arg0: i32, %arg1: i32) -> (i32, i32) {
    %c0_i32 = arith.constant 0 : i32
    %c0_i32_0 = arith.constant 0 : i32
    %c0_i32_1 = arith.constant 0 : i32
    return %c0_i32, %c0_i32_0 : i32, i32
  }
  func.func @transform_3(%arg0: i32, %arg1: i32) -> (i32, i32, i32) {
    %c0_i32 = arith.constant 0 : i32
    %c0_i32_0 = arith.constant 0 : i32
    return %arg0, %c0_i32, %arg1 : i32, i32, i32
  }
}

</mosaic_0001>

<bundles_post_ra>
// kernel: tile.13
= control target key start
LH: loop header
LB: loop body
LE: loop exit
PB: predicated region body
PF: predicated region fallthrough
CT: control target
= control target key end

     0   :  { %s22_s0 = inlined_call_operand.vmem [shape: f32[16], index: 0, kind: input, shape index: {}]   ;;  %s23_s1 = inlined_call_operand.vmem [shape: f32[4,16], index: 1, kind: output, shape index: {}]  }
   0x1   :  { %v4_v0 = vld [vmem:[%s22_s0] ss:$0 sm:$0xff] }
   0x2   :  { %5 = vst [vmem:[%s23_s1] sm:$0xf] %v4_v0 }

// kernel: tile.14
= control target key start
LH: loop header
LB: loop body
LE: loop exit
PB: predicated region body
PF: predicated region fallthrough
CT: control target
= control target key end

     0   :  { %vm8_vm0 = vcmask 130048   ;;  %s40_s8 = smov 16   ;;  %s41_s9 = smov 32   ;;  %vm14_vm1 = vcmask 523648   ;;  %vm20_vm2 = vcmask 392448   ;;  %vm26_vm3 = vcmask 261248   ;;  %s58_s0 = inlined_call_operand.vmem [shape: f32[4,16], index: 0, kind: input, shape index: {}]   ;;  %s59_s1 = inlined_call_operand.vmem [shape: f32[1,64], index: 1, kind: output, shape index: {}]  }
   0x1   :  { %v5_v0 = vld [vmem:[%s58_s0] sm:$0xf]  ;;  %s39_s0 = smov 48  }
   0x2   :  { %6 = vst [vmem:[#allocation1] sm:$0xf] %v5_v0 }
   0x9   :  { %v11_v1 = vld [vmem:[#allocation1 + $0x3] sm:$0x1]   ;;  %v23_v2 = vld [vmem:[#allocation1 + $0x1] sm:$0x1]   ;;  %v7_v3 = vld [vmem:[#allocation1] sm:$0x1]  }
   0xa   :  { %12 = vrot.lane.b32.xlu0 %v11_v1, %s39_s0  ;;  %24 = vrot.lane.b32.xlu1 %v23_v2, %s40_s8  ;;  %v17_v4 = vld [vmem:[#allocation1 + $0x2] sm:$0x1]   ;;  %9 = vst.msk [vmem:[#allocation0] sm:$0x1] %vm8_vm0, %v7_v3  }
   0xe   :  { %18 = vrot.lane.b32.xlu0 %v17_v4, %s41_s9 }
  0x7c   :  { %v13_v5 = vpop.permute.xlu0 %12   ;;  %v25_v6 = vpop.permute.xlu1 %24  }
  0x7d   :  { %15 = vst.msk [vmem:[#allocation0] sm:$0x1] %vm14_vm1, %v13_v5  }
  0x80   :  { %v19_v7 = vpop.permute.xlu0 %18  }
  0x81   :  { %21 = vst.msk [vmem:[#allocation0] sm:$0x1] %vm20_vm2, %v19_v7  }
  0x82   :  { %27 = vst.msk [vmem:[#allocation0] sm:$0x1] %vm26_vm3, %v25_v6  }
  0x89   :  { %v32_v8 = vld [vmem:[#allocation0] sm:$0x1] }
  0x8a   :  { %35 = vst [vmem:[%s59_s1] sm:$0x1] %v32_v8 }

// kernel: tile.18
= control target key start
LH: loop header
LB: loop body
LE: loop exit
PB: predicated region body
PF: predicated region fallthrough
CT: control target
= control target key end

     0   :  { %s22_s0 = inlined_call_operand.vmem [shape: f32[8], index: 0, kind: input, shape index: {}]   ;;  %s23_s1 = inlined_call_operand.vmem [shape: f32[4,8], index: 1, kind: output, shape index: {}]  }
   0x1   :  { %v4_v0 = vld [vmem:[%s22_s0] ss:$0 sm:$0xff] }
   0x2   :  { %5 = vst [vmem:[%s23_s1] sm:$0xf] %v4_v0 }

// kernel: tile.19
= control target key start
LH: loop header
LB: loop body
LE: loop exit
PB: predicated region body
PF: predicated region fallthrough
CT: control target
= control target key end

     0   :  { %vm8_vm0 = vcmask 64512   ;;  %s40_s8 = smov 8   ;;  %s41_s9 = smov 16   ;;  %vm14_vm1 = vcmask 261312   ;;  %vm20_vm2 = vcmask 195712   ;;  %vm26_vm3 = vcmask 130112   ;;  %s58_s0 = inlined_call_operand.vmem [shape: f32[4,8], index: 0, kind: input, shape index: {}]   ;;  %s59_s1 = inlined_call_operand.vmem [shape: f32[1,32], index: 1, kind: output, shape index: {}]  }
   0x1   :  { %v5_v0 = vld [vmem:[%s58_s0] sm:$0xf]  ;;  %s39_s0 = smov 24  }
   0x2   :  { %6 = vst [vmem:[#allocation1] sm:$0xf] %v5_v0 }
   0x9   :  { %v11_v1 = vld [vmem:[#allocation1 + $0x3] sm:$0x1]   ;;  %v23_v2 = vld [vmem:[#allocation1 + $0x1] sm:$0x1]   ;;  %v7_v3 = vld [vmem:[#allocation1] sm:$0x1]  }
   0xa   :  { %12 = vrot.lane.b32.xlu0 %v11_v1, %s39_s0  ;;  %24 = vrot.lane.b32.xlu1 %v23_v2, %s40_s8  ;;  %v17_v4 = vld [vmem:[#allocation1 + $0x2] sm:$0x1]   ;;  %9 = vst.msk [vmem:[#allocation0] sm:$0x1] %vm8_vm0, %v7_v3  }
   0xe   :  { %18 = vrot.lane.b32.xlu0 %v17_v4, %s41_s9 }
  0x7c   :  { %v13_v5 = vpop.permute.xlu0 %12   ;;  %v25_v6 = vpop.permute.xlu1 %24  }
  0x7d   :  { %15 = vst.msk [vmem:[#allocation0] sm:$0x1] %vm14_vm1, %v13_v5  }
  0x80   :  { %v19_v7 = vpop.permute.xlu0 %18  }
  0x81   :  { %21 = vst.msk [vmem:[#allocation0] sm:$0x1] %vm20_vm2, %v19_v7  }
  0x82   :  { %27 = vst.msk [vmem:[#allocation0] sm:$0x1] %vm26_vm3, %v25_v6  }
  0x89   :  { %v32_v8 = vld [vmem:[#allocation0] sm:$0x1] }
  0x8a   :  { %35 = vst [vmem:[%s59_s1] sm:$0x1] %v32_v8 }

// kernel: _lambda_.7
= control target key start
LH: loop header
LB: loop body
LE: loop exit
PB: predicated region body
PF: predicated region fallthrough
CT: control target
= control target key end

     0   :  { %s452_s12 = smov 0   ;;  %s496_s0 = inlined_call_operand.vmem [shape: f32[2,4,4,32], index: 0, kind: input, shape index: {}]   ;;  %s497_s1 = inlined_call_operand.vmem [shape: bf16[32,64], index: 1, kind: input, shape index: {}]   ;;  %s498_s2 = inlined_call_operand.vmem [shape: f32[1,64], index: 2, kind: input, shape index: {}]   ;;  %s499_s3 = inlined_call_operand.vmem [shape: bf16[2,4,2,4,32], index: 3, kind: output, shape index: {}]  }
   0x1 LB: > { %s372_s13 = sadd.s32 4294967295, %s426_s12   ;;  %p376_p0 = scmp.ge.s32.totalorder %s426_s12, 1  ;;  %s426_s12 = sphi %s452_s12, %s13_s12  }
   0x2   : > { %p137_p1 = scmp.lt.s32.totalorder %s426_s12, 3 }
   0x4   : > { %p138_p2 = pnand %p376_p0, %p137_p1 }
   0x5   : > { %p161_p3 = scmp.lt.s32.totalorder (!%p138_p2), %s372_s13, 1  ;;  %s431_s27 = smov (!%p138_p2), 96  }
   0x6   : > { %141 = sbr.rel (%p138_p2) target bundleno = 343 (0x157), region = 32 }
   0xb   : > { %v416_v0 = vld [vmem:[%s497_s1 + $0x8] sm:$0xff]   ;;  %v428_v1 = vmov 0.0   ;;  %v417_v2 = vld [vmem:[%s497_s1] sm:$0xff]   ;;  %vm429_vm0 = vmmov 0   ;;  %s501_s13 = smov (!%p161_p3, %s372_s13), 1  ;;  %vm208_vm1 = vcmask 261120   ;;  %v275_v8 = vlaneseq }
   0xc   : > { %396 = vmatprep.subr.bf16.mxu0 %v428_v1  ;;  %400 = vmatprep.mubr.msk.bf16.mxu0 %vm429_vm0, %v428_v1  ;;  %s391_s18 = sshll.u32 %s501_s13, 4  ;;  %v430_v6 = vmov 1983009808   ;;  %v381_v11 = vld [vmem:[%s498_s2] ss:$0 sm:$0xff]  ;;  %vm263_vm2 = vcmask 254976  }
   0xd   : > { %397 = vmatpush3.bf16.msra.mxu0 %v416_v0  ;;  %s165_s21 = scalar_lea.vmem %s496_s0, %s391_s18  ;;  %v273_v7 = vunpack.c.l.s4 %v430_v6  ;;  %v276_v10 = vshrl.u32 %v275_v8, 7  ;;  %s475_s26 = scalar_lea.vmem %s499_s3, %s391_s18 }
   0xe   : > { %398 = vmatprep.subr.bf16.mxu0 %v428_v1  ;;  %v418_v3 = vld [vmem:[%s165_s21] sm:$0xff]   ;;  %v419_v4 = vld [vmem:[%s165_s21 + $0x8] sm:$0xff]  }
   0xf   : > { %v184_v5 = vpack.c.bf16 %v419_v4, %v418_v3  ;;  %v274_v9 = vunpack.c.0.s8 %v273_v7 }
  0x11   : > { %399 = vmatpush3.bf16.msra.mxu0 %v417_v2  ;;  %v277_v14 = vsub.s32 %v274_v9, %v276_v10 }
  0x14   : > { %401 = vmatmul.mubr.msk.bf16.vlgmr.msra.gmra.mxu0 %vm208_vm1, %v184_v5 }
  0xd4   : > { %v246_v12 = vpop.f32.mrf.mxu0 }
  0xd5   : > { %v247_v13 = vadd.f32 %v381_v11, %v246_v12 }
  0xd6   : > { %v402_v15 = vpop.f32.mrf.mxu0 }
  0xd7   : > { %v255_v16 = vcombine.high %v247_v13, %v247_v13  ;;  %v259_v17 = vpack.c.bf16 %v247_v13, %v247_v13 }
  0xd8   : > { %v249_v18 = vpop.f32.mrf.mxu0 }
  0xd9   : > { %v260_v19 = vpack.c.bf16 %v255_v16, %v255_v16  ;;  %264 = vst.msk [vmem:[%s475_s26] sm:$0x3] %vm263_vm2, %v259_v17  ;;  %v250_v20 = vadd.f32 %v381_v11, %v249_v18  ;;  %v278_v21 = vrot.slane %v259_v17, %v277_v14 }
  0xda   : > { %v403_v22 = vpop.f32.mrf.mxu0 }
  0xdb   : > { %265 = vst.msk [vmem:[%s475_s26 + $0x4] sm:$0x3] %vm263_vm2, %v260_v19  ;;  %v256_v23 = vcombine.high %v250_v20, %v250_v20  ;;  %v261_v24 = vpack.c.bf16 %v250_v20, %v250_v20  ;;  %300 = vrot.lane.b32.xlu0 %v278_v21, %s431_s27  ;;  %v285_v26 = vrot.slane %v260_v19, %v277_v14 }
  0xdd   : > { %v262_v25 = vpack.c.bf16 %v256_v23, %v256_v23  ;;  %266 = vst.msk [vmem:[%s475_s26 + $0x8] sm:$0x3] %vm263_vm2, %v261_v24  ;;  %v292_v27 = vrot.slane %v261_v24, %v277_v14 }
  0xdf   : > { %267 = vst.msk [vmem:[%s475_s26 + $0xc] sm:$0x3] %vm263_vm2, %v262_v25  ;;  %302 = vrot.lane.b32.xlu0 %v285_v26, %s431_s27  ;;  %304 = vrot.lane.b32.xlu1 %v292_v27, %s431_s27  ;;  %v299_v28 = vrot.slane %v262_v25, %v277_v14 }
  0xe3   : > { %306 = vrot.lane.b32.xlu1 %v299_v28, %s431_s27 }
 0x14d   : > { %v301_v29 = vpop.permute.xlu0 %300 }
 0x14e   : > { %385 = vst.msk [vmem:[%s475_s26 + $0x2] sm:$0x3] %vm263_vm2, %v301_v29 }
 0x151   : > { %v303_v30 = vpop.permute.xlu0 %302  ;;  %v305_v31 = vpop.permute.xlu1 %304 }
 0x152   : > { %386 = vst.msk [vmem:[%s475_s26 + $0x6] sm:$0x3] %vm263_vm2, %v303_v30  ;;  %387 = vst.msk [vmem:[%s475_s26 + $0xa] sm:$0x3] %vm263_vm2, %v305_v31 }
 0x155   : > { %v307_v32 = vpop.permute.xlu1 %306 }
 0x156   : > { %388 = vst.msk [vmem:[%s475_s26 + $0xe] sm:$0x3] %vm263_vm2, %v307_v32 }
 0x157 PF: > { %s13_s12 = sadd.s32 1, %s426_s12  }
 0x158   : > { %p10_p4 = scmp.ge.s32.totalorder %s13_s12, 4  }
 0x15a   :  { %12 = sbr.rel (!%p10_p4) target bundleno = 1 (0x1), region = 63 }

// kernel: _lambda_.10
= control target key start
LH: loop header
LB: loop body
LE: loop exit
PB: predicated region body
PF: predicated region fallthrough
CT: control target
= control target key end

     0   :  { %s505_s12 = smov 0   ;;  %s562_s0 = inlined_call_operand.vmem [shape: f32[2,8,8,16], index: 0, kind: input, shape index: {}]   ;;  %s563_s1 = inlined_call_operand.vmem [shape: bf16[16,32], index: 1, kind: input, shape index: {}]   ;;  %s564_s2 = inlined_call_operand.vmem [shape: f32[1,32], index: 2, kind: input, shape index: {}]   ;;  %s565_s3 = inlined_call_operand.vmem [shape: bf16[2,8,2,8,16], index: 3, kind: output, shape index: {}]  }
   0x1 LB: > { %s406_s13 = sadd.s32 4294967295, %s482_s12   ;;  %p410_p0 = scmp.ge.s32.totalorder %s482_s12, 1  ;;  %s482_s12 = sphi %s505_s12, %s13_s12  }
   0x2   : > { %p137_p1 = scmp.lt.s32.totalorder %s482_s12, 3 }
   0x4   : > { %p138_p2 = pnand %p410_p0, %p137_p1 }
   0x5   : > { %p161_p3 = scmp.lt.s32.totalorder (!%p138_p2), %s406_s13, 1  ;;  %s484_s25 = smov (!%p138_p2), 112  }
   0x6   : > { %141 = sbr.rel (%p138_p2) target bundleno = 345 (0x159), region = 32 }
   0xb   : > { %v475_v0 = vld [vmem:[%s563_s1] sm:$0xff]   ;;  %s567_s13 = smov (!%p161_p3, %s406_s13), 1  ;;  %vm199_vm0 = vcmask 130048   ;;  %vm285_vm1 = vcmask 125952  }
   0xc   : > { %454 = vmatprep.subr.bf16.mxu0 %v475_v0  ;;  %464 = vmatprep.subr.bf16.mxu1 %v475_v0  ;;  %s439_s16 = sshll.u32 %s567_s13, 6  ;;  %v415_v13 = vld [vmem:[%s564_s2] ss:$0 sm:$0xff] }
   0xd   : > { %455 = vmatpush3.bf16.msra.mxu0 %v475_v0  ;;  %465 = vmatpush3.bf16.msra.mxu1 %v475_v0  ;;  %s165_s19 = scalar_lea.vmem %s562_s0, %s439_s16  ;;  %s525_s24 = scalar_lea.vmem %s565_s3, %s439_s16 }
   0xe   : > { %v172_v1 = vld [vmem:[%s165_s19] sm:$0xff]  ;;  %v173_v2 = vld [vmem:[%s165_s19 + $0x8] sm:$0xff]  ;;  %v174_v6 = vld [vmem:[%s165_s19 + $0x10] sm:$0xff] }
   0xf   : > { %v176_v3 = vld [vmem:[%s165_s19 + $0x20] sm:$0xff]  ;;  %v180_v4 = vpack.c.bf16 %v173_v2, %v172_v1  ;;  %v177_v5 = vld [vmem:[%s165_s19 + $0x28] sm:$0xff]  ;;  %v175_v7 = vld [vmem:[%s165_s19 + $0x18] sm:$0xff] }
  0x10   : > { %v182_v8 = vpack.c.bf16 %v177_v5, %v176_v3  ;;  %v181_v9 = vpack.c.bf16 %v175_v7, %v174_v6  ;;  %v178_v10 = vld [vmem:[%s165_s19 + $0x30] sm:$0xff]  ;;  %v179_v11 = vld [vmem:[%s165_s19 + $0x38] sm:$0xff] }
  0x11   : > { %456 = vmatprep.mubr.msk.bf16.mxu0 %vm199_vm0, %v180_v4  ;;  %v183_v12 = vpack.c.bf16 %v179_v11, %v178_v10 }
  0x12   : > { %460 = vmatprep.mubr.msk.bf16.mxu1 %vm199_vm0, %v182_v8  ;;  %457 = vmatmul.mubr.msk.bf16.vlgmr.msra.gmra.mxu0 %vm199_vm0, %v181_v9 }
  0x13   : > { %461 = vmatmul.mubr.msk.bf16.vlgmr.msra.gmra.mxu1 %vm199_vm0, %v183_v12 }
  0xd2   : > { %v458_v14 = vpop.f32.mrf.mxu0 }
  0xd3   : > { %v255_v15 = vadd.f32 %v458_v14, %v415_v13  ;;  %v462_v16 = vpop.f32.mrf.mxu1 }
  0xd4   : > { %v271_v17 = vadd.f32 %v462_v16, %v415_v13  ;;  %v246_v18 = vpop.f32.mrf.mxu0 }
  0xd5   : > { %v279_v19 = vpack.c.bf16 %v255_v15, %v255_v15  ;;  %v247_v20 = vadd.f32 %v415_v13, %v246_v18  ;;  %v262_v21 = vpop.f32.mrf.mxu1 }
  0xd6   : > { %v283_v22 = vpack.c.bf16 %v271_v17, %v271_v17  ;;  %v263_v23 = vadd.f32 %v415_v13, %v262_v21  ;;  %v459_v24 = vpop.f32.mrf.mxu0 }
  0xd7   : > { %288 = vst.msk [vmem:[%s525_s24 + $0x10] sm:$0xf] %vm285_vm1, %v279_v19  ;;  %v277_v25 = vpack.c.bf16 %v247_v20, %v247_v20  ;;  %v258_v26 = vadd.f32 %v459_v24, %v415_v13  ;;  %v463_v27 = vpop.f32.mrf.mxu1  ;;  %322 = vrot.lane.b32.xlu1 %v279_v19, %s484_s25 }
  0xd8   : > { %292 = vst.msk [vmem:[%s525_s24 + $0x30] sm:$0xf] %vm285_vm1, %v283_v22  ;;  %v281_v28 = vpack.c.bf16 %v263_v23, %v263_v23  ;;  %v274_v29 = vadd.f32 %v463_v27, %v415_v13  ;;  %v249_v30 = vpop.f32.mrf.mxu0 }
  0xd9   : > { %286 = vst.msk [vmem:[%s525_s24] sm:$0xf] %vm285_vm1, %v277_v25  ;;  %v280_v31 = vpack.c.bf16 %v258_v26, %v258_v26  ;;  %v250_v32 = vadd.f32 %v415_v13, %v249_v30  ;;  %v265_v33 = vpop.f32.mrf.mxu1  ;;  %318 = vrot.lane.b32.xlu0 %v277_v25, %s484_s25 }
  0xda   : > { %290 = vst.msk [vmem:[%s525_s24 + $0x20] sm:$0xf] %vm285_vm1, %v281_v28  ;;  %v284_v34 = vpack.c.bf16 %v274_v29, %v274_v29  ;;  %v266_v35 = vadd.f32 %v415_v13, %v265_v33 }
  0xdb   : > { %289 = vst.msk [vmem:[%s525_s24 + $0x18] sm:$0xf] %vm285_vm1, %v280_v31  ;;  %v278_v36 = vpack.c.bf16 %v250_v32, %v250_v32  ;;  %324 = vrot.lane.b32.xlu1 %v280_v31, %s484_s25 }
  0xdc   : > { %293 = vst.msk [vmem:[%s525_s24 + $0x38] sm:$0xf] %vm285_vm1, %v284_v34  ;;  %v282_v37 = vpack.c.bf16 %v266_v35, %v266_v35 }
  0xdd   : > { %287 = vst.msk [vmem:[%s525_s24 + $0x8] sm:$0xf] %vm285_vm1, %v278_v36  ;;  %326 = vrot.lane.b32.xlu0 %v281_v28, %s484_s25 }
  0xde   : > { %291 = vst.msk [vmem:[%s525_s24 + $0x28] sm:$0xf] %vm285_vm1, %v282_v37 }
  0xdf   : > { %328 = vrot.lane.b32.xlu1 %v282_v37, %s484_s25 }
  0xe1   : > { %320 = vrot.lane.b32.xlu0 %v278_v36, %s484_s25 }
  0xe3   : > { %332 = vrot.lane.b32.xlu1 %v284_v34, %s484_s25 }
  0xe5   : > { %330 = vrot.lane.b32.xlu0 %v283_v22, %s484_s25 }
 0x149   : > { %v323_v38 = vpop.permute.xlu1 %322 }
 0x14a   : > { %431 = vst.msk [vmem:[%s525_s24 + $0x14] sm:$0xf] %vm285_vm1, %v323_v38 }
 0x14b   : > { %v319_v39 = vpop.permute.xlu0 %318 }
 0x14c   : > { %429 = vst.msk [vmem:[%s525_s24 + $0x4] sm:$0xf] %vm285_vm1, %v319_v39 }
 0x14d   : > { %v325_v40 = vpop.permute.xlu1 %324 }
 0x14e   : > { %432 = vst.msk [vmem:[%s525_s24 + $0x1c] sm:$0xf] %vm285_vm1, %v325_v40 }
 0x14f   : > { %v327_v41 = vpop.permute.xlu0 %326 }
 0x150   : > { %433 = vst.msk [vmem:[%s525_s24 + $0x24] sm:$0xf] %vm285_vm1, %v327_v41 }
 0x151   : > { %v329_v42 = vpop.permute.xlu1 %328 }
 0x152   : > { %434 = vst.msk [vmem:[%s525_s24 + $0x2c] sm:$0xf] %vm285_vm1, %v329_v42 }
 0x153   : > { %v321_v43 = vpop.permute.xlu0 %320 }
 0x154   : > { %430 = vst.msk [vmem:[%s525_s24 + $0xc] sm:$0xf] %vm285_vm1, %v321_v43 }
 0x155   : > { %v333_v44 = vpop.permute.xlu1 %332 }
 0x156   : > { %436 = vst.msk [vmem:[%s525_s24 + $0x3c] sm:$0xf] %vm285_vm1, %v333_v44 }
 0x157   : > { %v331_v45 = vpop.permute.xlu0 %330 }
 0x158   : > { %435 = vst.msk [vmem:[%s525_s24 + $0x34] sm:$0xf] %vm285_vm1, %v331_v45 }
 0x159 PF: > { %s13_s12 = sadd.s32 1, %s482_s12  }
 0x15a   : > { %p10_p4 = scmp.ge.s32.totalorder %s13_s12, 4  }
 0x15c   :  { %12 = sbr.rel (!%p10_p4) target bundleno = 1 (0x1), region = 63 }

// kernel: _lambda_.9
= control target key start
LH: loop header
LB: loop body
LE: loop exit
PB: predicated region body
PF: predicated region fallthrough
CT: control target
= control target key end

     0   :  { %s1105_s9 = smov 0   ;;  %s1516_s0 = inlined_call_operand.vmem [shape: f32[2,8,8,16], index: 0, kind: input, shape index: {}]   ;;  %s1517_s1 = inlined_call_operand.vmem [shape: bf16[144,16], index: 1, kind: input, shape index: {}]   ;;  %s1518_s2 = inlined_call_operand.vmem [shape: f32[2,8,8,16], index: 2, kind: output, shape index: {}]  }
   0x1 LB: > { %s949_s10 = sadd.s32 4294967295, %s1080_s9   ;;  %p953_p0 = scmp.ge.s32.totalorder %s1080_s9, 1  ;;  %s1080_s9 = sphi %s1105_s9, %s12_s9  }
   0x2   : > { %p112_p1 = scmp.lt.s32.totalorder %s1080_s9, 3 }
   0x4   : > { %p113_p2 = pnand %p953_p0, %p112_p1 }
   0x5   : > { %p134_p3 = scmp.lt.s32.totalorder (!%p113_p2), %s949_s10, 1  ;;  %s1083_s25 = smov (!%p113_p2), 48  }
   0x6   : > { %116 = sbr.rel (%p113_p2) target bundleno = 479 (0x1df), region = 28  ;;  %s1084_s28 = smov (!%p113_p2), 96  }
   0x7   : > { %s1085_s29 = smov (!%p113_p2), 32   ;;  %s1086_s4 = smov (!%p113_p2), 80  }
   0x8   : > { %s1087_s12 = smov (!%p113_p2), 16   ;;  %s1088_s13 = smov (!%p113_p2), 64  }
   0x9   : > { %s1089_s14 = smov (!%p113_p2), 112  }
   0xb   : > { %vm233_vm0 = vcmask 1040384   ;;  %vm234_vm1 = vsmask.f32 256  ;;  %vm245_vm2 = vcmask 1044480   ;;  %vm246_vm4 = vsmask.f32 4352 }
   0xc   : > { %vm1113_vm3 = vmand %vm233_vm0, %vm234_vm1  ;;  %s1528_s10 = smov (!%p134_p3, %s949_s10), 1  ;;  %v1082_v2 = vmov 0   ;;  %v1063_v5 = vld [vmem:[%s1517_s1 + $0x38] sm:$0xff]   ;;  %v1064_v7 = vld [vmem:[%s1517_s1 + $0x30] sm:$0xff]   ;;  %vm412_vm6 = vcmask 1042432   ;;  %vm413_vm7 = vcmask 1046532  }
   0xd   : > { %vm1119_vm5 = vmand %vm245_vm2, %vm246_vm4  ;;  %v164_v3 = vrot.slane %v1082_v2, 7  ;;  %726 = vmatprep.subr.bf16.mxu0 %v1082_v2  ;;  %1029 = vmatprep.subr.bf16.mxu1 %v1082_v2  ;;  %s1027_s11 = sshll.u32 %s1528_s10, 6  ;;  %v1065_v23 = vld [vmem:[%s1517_s1 + $0x28] sm:$0xff]   ;;  %v1066_v41 = vld [vmem:[%s1517_s1 + $0x20] sm:$0xff]   ;;  %vm297_vm9 = vsmask.f32 3328 }
   0xe   : > { %s1137_s16 = scalar_lea.vmem %s1516_s0, %s1027_s11  ;;  %727 = vmatpush1.bf16.msra.mxu0 %v1063_v5  ;;  %1038 = vmatpush1.bf16.msra.mxu1 %v1063_v5  ;;  %vm1169_vm8 = vmor %vm412_vm6, %vm413_vm7  ;;  %vm298_vm10 = vsmask.f32 7440  ;;  %v1067_v5 = vld [vmem:[%s1517_s1 + $0x18] sm:$0xff]   ;;  %vm571_vm12 = vcmask 130048   ;;  %vm584_vm13 = vcmask 261120   ;;  %vm593_vm14 = vcmask 392192   ;;  %s143_s17 = scalar_lea.vmem %s1518_s2, %s1027_s11 }
   0xf   : > { %v236_v4 = vsel %vm1113_vm3, 0, %v164_v3  ;;  %v145_v8 = vld [vmem:[%s1137_s16] sm:$0xff]  ;;  %v146_v9 = vld [vmem:[%s1137_s16 + $0x8] sm:$0xff]  ;;  %v147_v17 = vld [vmem:[%s1137_s16 + $0x10] sm:$0xff]  ;;  %728 = vmatprep.subr.bf16.mxu0 %v1082_v2  ;;  %1030 = vmatprep.subr.bf16.mxu1 %v1082_v2  ;;  %vm602_vm15 = vcmask 523264   ;;  %vm611_vm0 = vcmask 654336  }
  0x10   : > { %v1141_v6 = vsel %vm1119_vm5, %v236_v4, 0  ;;  %v149_v10 = vld [vmem:[%s1137_s16 + $0x20] sm:$0xff]  ;;  %v153_v13 = vpack.c.bf16 %v145_v8, %v145_v8  ;;  %v154_v14 = vpack.c.bf16 %v146_v9, %v146_v9  ;;  %v150_v15 = vld [vmem:[%s1137_s16 + $0x28] sm:$0xff]  ;;  %v155_v19 = vpack.c.bf16 %v147_v17, %v147_v17  ;;  %v148_v22 = vld [vmem:[%s1137_s16 + $0x18] sm:$0xff] }
  0x11   : > { %v1151_v11 = vcombine.low %v1141_v6, %v1141_v6  ;;  %v1155_v12 = vcombine.high %v1141_v6, %v1141_v6  ;;  %v157_v16 = vpack.c.bf16 %v149_v10, %v149_v10  ;;  %v158_v18 = vpack.c.bf16 %v150_v15, %v150_v15  ;;  %vm1319_vm11 = vmor %vm297_vm9, %vm298_vm10 }
  0x12   : > { %v169_v24 = vshrl.u32 %v153_v13, 16  ;;  %v172_v25 = vshll.u32 %v153_v13, 16  ;;  %v176_v26 = vshrl.u32 %v154_v14, 16  ;;  %v179_v27 = vshll.u32 %v154_v14, 16  ;;  %729 = vmatpush1.bf16.msra.mxu0 %v1064_v7  ;;  %1039 = vmatpush1.bf16.msra.mxu1 %v1064_v7 }
  0x13   : > { %v974_v20 = vrot.slane %v1151_v11, 9  ;;  %v417_v21 = vrot.slane %v1155_v12, 5  ;;  %v197_v29 = vshrl.u32 %v157_v16, 16  ;;  %v200_v30 = vshll.u32 %v157_v16, 16  ;;  %730 = vmatprep.subr.bf16.mxu0 %v1082_v2  ;;  %1031 = vmatprep.subr.bf16.mxu1 %v1082_v2 }
  0x14   : > { %v204_v31 = vshrl.u32 %v158_v18, 16  ;;  %v207_v32 = vshll.u32 %v158_v18, 16  ;;  %v171_v33 = vrot.slane %v169_v24, 7  ;;  %v178_v34 = vrot.slane %v176_v26, 7 }
  0x15   : > { %v183_v35 = vshrl.u32 %v155_v19, 16  ;;  %v186_v36 = vshll.u32 %v155_v19, 16  ;;  %v199_v37 = vrot.slane %v197_v29, 7  ;;  %v1177_v39 = vsel %vm1169_vm8, %v974_v20, %v417_v21 }
  0x16   : > { %v206_v38 = vrot.slane %v204_v31, 7  ;;  %v1179_v40 = vpack.c.bf16 %v148_v22, %v148_v22  ;;  %v174_v42 = vor.u32 %v172_v25, %v171_v33  ;;  %v181_v43 = vor.u32 %v179_v27, %v178_v34  ;;  %731 = vmatpush1.bf16.msra.mxu0 %v1065_v23  ;;  %1040 = vmatpush1.bf16.msra.mxu1 %v1065_v23  ;;  %v1068_v25 = vld [vmem:[%s1517_s1 + $0x10] sm:$0xff]  }
  0x17   : > { %v185_v44 = vrot.slane %v183_v35, 7  ;;  %v301_v45 = vshrl.u32 %v1151_v11, 16  ;;  %v202_v46 = vor.u32 %v200_v30, %v199_v37  ;;  %732 = vmatprep.subr.bf16.mxu0 %v1082_v2  ;;  %1032 = vmatprep.subr.bf16.mxu1 %v1082_v2  ;;  %v304_v33 = vshll.u32 %v1151_v11, 16 }
  0x18   : > { %v209_v47 = vor.u32 %v207_v32, %v206_v38  ;;  %v190_v48 = vshrl.u32 %v1179_v40, 16  ;;  %v193_v49 = vshll.u32 %v1179_v40, 16  ;;  %v237_v50 = vsel %vm1113_vm3, 0, %v174_v42  ;;  %v1069_v42 = vld [vmem:[%s1517_s1 + $0x8] sm:$0xff]  }
  0x19   : > { %v238_v51 = vsel %vm1113_vm3, 0, %v181_v43  ;;  %v188_v52 = vor.u32 %v186_v36, %v185_v44  ;;  %v1191_v53 = vrot.slane %v301_v45, 4  ;;  %v1197_v54 = vsel %vm1119_vm5, %v237_v50, 0 }
  0x1a   : > { %v250_v55 = vsel %vm1119_vm5, %v238_v51, 0  ;;  %v241_v56 = vsel %vm1113_vm3, 0, %v202_v46  ;;  %v242_v57 = vsel %vm1113_vm3, 0, %v209_v47  ;;  %v1212_v61 = vcombine.low %v1197_v54, %v1197_v54  ;;  %733 = vmatpush1.bf16.msra.mxu0 %v1066_v41  ;;  %1041 = vmatpush1.bf16.msra.mxu1 %v1066_v41 }
  0x1b   : > { %v1205_v58 = vcombine.low %v250_v55, %v250_v55  ;;  %v1207_v59 = vcombine.high %v250_v55, %v250_v55  ;;  %v997_v60 = vcombine.low %v1197_v54, %v250_v55  ;;  %v1216_v62 = vcombine.high %v1197_v54, %v1197_v54  ;;  %734 = vmatprep.subr.bf16.mxu0 %v1082_v2 }
  0x1c   : > { %v1220_v63 = vsel %vm1119_vm5, %v241_v56, 0  ;;  %v1224_v3 = vsel %vm1119_vm5, %v242_v57, 0  ;;  %v239_v4 = vsel %vm1113_vm3, 0, %v188_v52  ;;  %v975_v15 = vrot.slane %v1212_v61, 9  ;;  %1033 = vmatprep.subr.bf16.mxu1 %v1082_v2 }
  0x1d   : > { %518 = vrot.lane.b32.xlu1 %v997_v60, %s1083_s25  ;;  %v1234_v7 = vcombine.low %v1224_v3, %v1224_v3  ;;  %v1238_v8 = vcombine.high %v1224_v3, %v1224_v3  ;;  %v999_v9 = vcombine.low %v1220_v63, %v1224_v3  ;;  %v1244_v10 = vcombine.low %v1220_v63, %v1220_v63 }
  0x1e   : > { %v1248_v13 = vcombine.high %v1220_v63, %v1220_v63  ;;  %v251_v14 = vsel %vm1119_vm5, %v239_v4, 0  ;;  %v421_v16 = vrot.slane %v1216_v62, 5  ;;  %v192_v19 = vrot.slane %v190_v48, 7  ;;  %735 = vmatpush1.bf16.msra.mxu0 %v1067_v5  ;;  %1042 = vmatpush1.bf16.msra.mxu1 %v1067_v5  ;;  %v1070_v4 = vld [vmem:[%s1517_s1] sm:$0xff]  }
  0x1f   : > { %522 = vrot.lane.b32.xlu0 %v999_v9, %s1083_s25  ;;  %v1257_v17 = vcombine.low %v251_v14, %v251_v14  ;;  %v1259_v18 = vcombine.low %v250_v55, %v251_v14  ;;  %v976_v20 = vrot.slane %v1205_v58, 9  ;;  %v425_v22 = vrot.slane %v1207_v59, 5  ;;  %736 = vmatprep.subr.bf16.mxu0 %v1082_v2 }
  0x20   : > { %v422_v21 = vsel %vm1169_vm8, %v975_v15, %v421_v16  ;;  %v1265_v23 = vcombine.high %v251_v14, %v251_v14  ;;  %v979_v24 = vrot.slane %v1244_v10, 9  ;;  %v195_v27 = vor.u32 %v193_v49, %v192_v19  ;;  %1034 = vmatprep.subr.bf16.mxu1 %v1082_v2 }
  0x21   : > { %553 = vrot.lane.b32.xlu1 %v1259_v18, %s1084_s28  ;;  %v993_v26 = vcombine.low %v1177_v39, %v422_v21  ;;  %v977_v29 = vrot.slane %v1257_v17, 9  ;;  %v437_v30 = vrot.slane %v1248_v13, 5  ;;  %v426_v31 = vsel %vm1169_vm8, %v976_v20, %v425_v22 }
  0x22   : > { %v429_v32 = vrot.slane %v1265_v23, 5  ;;  %v310_v34 = vshll.u32 %v1155_v12, 16  ;;  %v240_v35 = vsel %vm1113_vm3, 0, %v195_v27  ;;  %v1005_v36 = vcombine.low %v422_v21, %v426_v31  ;;  %737 = vmatpush1.bf16.msra.mxu0 %v1068_v25  ;;  %1043 = vmatpush1.bf16.msra.mxu1 %v1068_v25 }
  0x23   : > { %506 = vrot.lane.b32.xlu0 %v993_v26, %s1085_s29  ;;  %v1288_v37 = vsel %vm1169_vm8, %v979_v24, %v437_v30  ;;  %v315_v38 = vshrl.u32 %v1212_v61, 16  ;;  %v1293_v11 = vsel %vm1119_vm5, %v240_v35, 0  ;;  %v306_v40 = vrot.slane %v304_v33, 5  ;;  %738 = vmatprep.subr.bf16.mxu0 %v1082_v2  ;;  %v1071_v30 = vld [vmem:[%s1517_s1 + $0x40] sm:$0xff]  }
  0x24   : > { %v1297_v12 = vsel %vm1169_vm8, %v977_v29, %v429_v32  ;;  %v312_v41 = vrot.slane %v310_v34, 5  ;;  %v966_v43 = vcombine.low %v1293_v11, %v1293_v11  ;;  %v998_v44 = vcombine.low %v251_v14, %v1293_v11  ;;  %1035 = vmatprep.subr.bf16.mxu1 %v1082_v2 }
  0x25   : > { %v1306_v45 = vcombine.low %v426_v31, %v1297_v12  ;;  %v967_v46 = vcombine.high %v1293_v11, %v1293_v11  ;;  %v307_v47 = vor.u32 %v306_v40, %v1191_v53  ;;  %v317_v48 = vrot.slane %v315_v38, 4 }
  0x26   : > { %v318_v49 = vshll.u32 %v1212_v61, 16  ;;  %v324_v50 = vshll.u32 %v1216_v62, 16  ;;  %520 = vrot.lane.b32.xlu1 %v998_v44, %s1083_s25  ;;  %v978_v51 = vrot.slane %v966_v43, 9  ;;  %v329_v53 = vshrl.u32 %v1205_v58, 16  ;;  %739 = vmatpush1.bf16.msra.mxu0 %v1069_v42 }
  0x27   : > { %544 = vrot.lane.b32.xlu0 %v1005_v36, %s1086_s4  ;;  %v433_v52 = vrot.slane %v967_v46, 5  ;;  %v332_v56 = vshll.u32 %v1205_v58, 16  ;;  %v308_v57 = vrot.slane %v307_v47, 4  ;;  %v338_v62 = vshll.u32 %v1207_v59, 16  ;;  %1044 = vmatpush1.bf16.msra.mxu1 %v1069_v42 }
  0x28   : > { %v320_v60 = vrot.slane %v318_v49, 5  ;;  %v326_v61 = vrot.slane %v324_v50, 5  ;;  %v331_v9 = vrot.slane %v329_v53, 4  ;;  %v343_v15 = vshrl.u32 %v1257_v17, 16  ;;  %740 = vmatprep.subr.bf16.mxu0 %v1082_v2  ;;  %1036 = vmatprep.subr.bf16.mxu1 %v1082_v2 }
  0x29   : > { %v434_v5 = vsel %vm1169_vm8, %v978_v51, %v433_v52  ;;  %v334_v14 = vrot.slane %v332_v56, 5  ;;  %v1340_v16 = vsel %vm1319_vm11, %v308_v57, %v312_v41  ;;  %v340_v21 = vrot.slane %v338_v62, 5  ;;  %v151_v57 = vld [vmem:[%s1137_s16 + $0x30] sm:$0xff]  ;;  %1021 = vmatprep.mubr.msk.bf16.mxu0 %vm571_vm12, %v1306_v45 }
  0x2a   : > { %v1335_v58 = vcombine.low %v434_v5, %v1288_v37  ;;  %v1006_v59 = vcombine.low %v1297_v12, %v434_v5  ;;  %v321_v19 = vor.u32 %v320_v60, %v317_v48  ;;  %508 = vrot.lane.b32.xlu1 %v1306_v45, %s1085_s29  ;;  %v345_v22 = vrot.slane %v343_v15, 4  ;;  %741 = vmatpush1.bf16.msra.mxu0 %v1070_v4  ;;  %v152_v60 = vld [vmem:[%s1137_s16 + $0x38] sm:$0xff] }
  0x2b   : > { %v335_v20 = vor.u32 %v334_v14, %v331_v9  ;;  %v346_v24 = vshll.u32 %v1257_v17, 16  ;;  %v352_v26 = vshll.u32 %v1265_v23, 16  ;;  %v357_v27 = vshrl.u32 %v966_v43, 16  ;;  %756 = vmatprep.subr.bf16.mxu0 %v1082_v2  ;;  %1045 = vmatpush1.bf16.msra.mxu1 %v1070_v4 }
  0x2c   : > { %510 = vrot.lane.b32.xlu0 %v1335_v58, %s1085_s29  ;;  %v322_v25 = vrot.slane %v321_v19, 4  ;;  %v360_v29 = vshll.u32 %v966_v43, 16  ;;  %v366_v33 = vshll.u32 %v967_v46, 16  ;;  %v371_v34 = vshrl.u32 %v1244_v10, 16  ;;  %1037 = vmatprep.subr.bf16.mxu1 %v1082_v2 }
  0x2d   : > { %v336_v31 = vrot.slane %v335_v20, 4  ;;  %v348_v32 = vrot.slane %v346_v24, 5  ;;  %v354_v35 = vrot.slane %v352_v26, 5  ;;  %v359_v23 = vrot.slane %v357_v27, 4 }
  0x2e   : > { %v327_v17 = vsel %vm1319_vm11, %v322_v25, %v326_v61  ;;  %v362_v36 = vrot.slane %v360_v29, 5  ;;  %546 = vrot.lane.b32.xlu1 %v1006_v59, %s1086_s4  ;;  %v368_v41 = vrot.slane %v366_v33, 5  ;;  %v373_v44 = vrot.slane %v371_v34, 4  ;;  %757 = vmatpush2.bf16.msra.mxu0 %v1071_v30 }
  0x2f   : > { %v989_v38 = vcombine.low %v1340_v16, %v327_v17  ;;  %v341_v12 = vsel %vm1319_vm11, %v336_v31, %v340_v21  ;;  %v349_v40 = vor.u32 %v348_v32, %v345_v22  ;;  %v374_v46 = vshll.u32 %v1244_v10, 16  ;;  %1046 = vmatpush2.bf16.msra.mxu1 %v1071_v30 }
  0x30   : > { %v1001_v42 = vcombine.low %v327_v17, %v341_v12  ;;  %v363_v43 = vor.u32 %v362_v36, %v359_v23  ;;  %v380_v47 = vshll.u32 %v1248_v13, 16  ;;  %v385_v48 = vshrl.u32 %v1234_v7, 16 }
  0x31   : > { %486 = vrot.lane.b32.xlu0 %v989_v38, %s1087_s12  ;;  %v350_v2 = vrot.slane %v349_v40, 4  ;;  %v388_v49 = vshll.u32 %v1234_v7, 16  ;;  %v376_v51 = vrot.slane %v374_v46, 5  ;;  %v394_v52 = vshll.u32 %v1238_v8, 16 }
  0x32   : > { %v364_v50 = vrot.slane %v363_v43, 4  ;;  %531 = vrot.lane.b32.xlu1 %v1001_v42, %s1088_s13  ;;  %v387_v53 = vrot.slane %v385_v48, 4  ;;  %v382_v62 = vrot.slane %v380_v47, 5  ;;  %v159_v15 = vpack.c.bf16 %v151_v57, %v151_v57 }
  0x33   : > { %v355_v10 = vsel %vm1319_vm11, %v350_v2, %v354_v35  ;;  %v390_v56 = vrot.slane %v388_v49, 5  ;;  %v377_v61 = vor.u32 %v376_v51, %v373_v44  ;;  %v396_v9 = vrot.slane %v394_v52, 5 }
  0x34   : > { %v990_v13 = vcombine.low %v341_v12, %v355_v10  ;;  %v369_v4 = vsel %vm1319_vm11, %v364_v50, %v368_v41  ;;  %v160_v59 = vpack.c.bf16 %v152_v60, %v152_v60  ;;  %v985_v19 = vcombine.low %v1141_v6, %v1197_v54 }
  0x35   : > { %v391_v5 = vor.u32 %v390_v56, %v387_v53  ;;  %v378_v14 = vrot.slane %v377_v61, 4  ;;  %v1002_v20 = vcombine.low %v355_v10, %v369_v4  ;;  %v980_v22 = vrot.slane %v1234_v7, 9 }
  0x36   : > { %562 = vrot.lane.b32.xlu0 %v990_v13, %s1089_s14  ;;  %488 = vrot.lane.b32.xlu1 %v990_v13, %s1087_s12  ;;  %v441_v25 = vrot.slane %v1238_v8, 5  ;;  %v211_v26 = vshrl.u32 %v159_v15, 16  ;;  %v214_v27 = vshll.u32 %v159_v15, 16  ;;  %v218_v31 = vshrl.u32 %v160_v59, 16 }
  0x37   : > { %v392_v21 = vrot.slane %v391_v5, 4  ;;  %v383_v24 = vsel %vm1319_vm11, %v378_v14, %v382_v62  ;;  %v221_v32 = vshll.u32 %v160_v59, 16  ;;  %v1389_v8 = vcombine.low %v1293_v11, %v1220_v63 }
  0x38   : > { %v991_v29 = vcombine.low %v369_v4, %v383_v24  ;;  %v213_v33 = vrot.slane %v211_v26, 7  ;;  %v220_v34 = vrot.slane %v218_v31, 7  ;;  %v442_v45 = vsel %vm1169_vm8, %v980_v22, %v441_v25 }
  0x39   : > { %v397_v30 = vsel %vm1319_vm11, %v392_v21, %v396_v9  ;;  %v1007_v36 = vcombine.low %v1288_v37, %v442_v45  ;;  %vm620_vm1 = vcmask 785408   ;;  %vm629_vm2 = vcmask 916480  }
  0x3a   : > { %490 = vrot.lane.b32.xlu0 %v991_v29, %s1087_s12  ;;  %533 = vrot.lane.b32.xlu1 %v1002_v20, %s1088_s13  ;;  %v1003_v7 = vcombine.low %v383_v24, %v397_v30  ;;  %v216_v17 = vor.u32 %v214_v27, %v213_v33  ;;  %v223_v35 = vor.u32 %v221_v32, %v220_v34 }
  0x3c   : > { %v243_v23 = vsel %vm1113_vm3, 0, %v216_v17  ;;  %v244_v11 = vsel %vm1113_vm3, 0, %v223_v35 }
  0x3d   : > { %v255_v63 = vsel %vm1119_vm5, %v243_v23, 0  ;;  %v256_v40 = vsel %vm1119_vm5, %v244_v11, 0 }
  0x3e   : > { %535 = vrot.lane.b32.xlu0 %v1003_v7, %s1088_s13  ;;  %555 = vrot.lane.b32.xlu1 %v1389_v8, %s1084_s28  ;;  %v972_v38 = vcombine.low %v255_v63, %v255_v63  ;;  %v973_v12 = vcombine.high %v255_v63, %v255_v63  ;;  %v982_v41 = vcombine.low %v256_v40, %v256_v40 }
  0x3f   : > { %v983_v42 = vcombine.high %v256_v40, %v256_v40  ;;  %v1408_v37 = vcombine.low %v1224_v3, %v255_v63  ;;  %v1000_v59 = vcombine.low %v255_v63, %v256_v40  ;;  %v1009_v22 = vcombine.low %v256_v40, %v1141_v6 }
  0x40   : > { %v399_v43 = vshrl.u32 %v972_v38, 16  ;;  %v402_v44 = vshll.u32 %v972_v38, 16  ;;  %v408_v46 = vshll.u32 %v973_v12, 16  ;;  %v981_v2 = vrot.slane %v972_v38, 9 }
  0x41   : > { %v445_v0 = vrot.slane %v973_v12, 5  ;;  %v453_v47 = vshrl.u32 %v982_v41, 16  ;;  %v456_v48 = vshll.u32 %v982_v41, 16  ;;  %v984_v1 = vrot.slane %v982_v41, 9 }
  0x42   : > { %548 = vrot.lane.b32.xlu0 %v1007_v36, %s1086_s4  ;;  %564 = vrot.lane.b32.xlu1 %v991_v29, %s1089_s14  ;;  %v401_v49 = vrot.slane %v399_v43, 4  ;;  %v404_v50 = vrot.slane %v402_v44, 5  ;;  %v462_v53 = vshll.u32 %v983_v42, 16  ;;  %v410_v57 = vrot.slane %v408_v46, 5 }
  0x43   : > { %v446_v51 = vsel %vm1169_vm8, %v981_v2, %v445_v0  ;;  %v455_v52 = vrot.slane %v453_v47, 4  ;;  %v458_v10 = vrot.slane %v456_v48, 5  ;;  %v468_v13 = vrot.slane %v983_v42, 5 }
  0x44   : > { %v405_v56 = vor.u32 %v404_v50, %v401_v49  ;;  %v996_v60 = vcombine.low %v442_v45, %v446_v51  ;;  %v464_v14 = vrot.slane %v462_v53, 5 }
  0x45   : > { %v459_v3 = vor.u32 %v458_v10, %v455_v52  ;;  %v1416_v62 = vsel %vm1169_vm8, %v984_v1, %v468_v13 }
  0x46   : > { %557 = vrot.lane.b32.xlu0 %v1408_v37, %s1084_s28  ;;  %v406_v61 = vrot.slane %v405_v56, 4  ;;  %1023 = vmatprep.mubr.msk.bf16.mxu1 %vm571_vm12, %v996_v60  ;;  %v1011_v4 = vcombine.low %v1416_v62, %v1177_v39  ;;  %v1008_v21 = vcombine.low %v446_v51, %v1416_v62 }
  0x47   : > { %v460_v9 = vrot.slane %v459_v3, 4 }
  0x48   : > { %v411_v5 = vsel %vm1319_vm11, %v406_v61, %v410_v57 }
  0x49   : > { %v992_v15 = vcombine.low %v397_v30, %v411_v5  ;;  %v465_v28 = vsel %vm1319_vm11, %v460_v9, %v464_v14 }
  0x4a   : > { %v1004_v20 = vcombine.low %v411_v5, %v465_v28  ;;  %v1010_v24 = vcombine.low %v465_v28, %v1340_v16 }
  0x4b   : > { %566 = vrot.lane.b32.xlu0 %v992_v15, %s1089_s14  ;;  %492 = vrot.lane.b32.xlu1 %v992_v15, %s1087_s12 }
  0x4f   : > { %512 = vrot.lane.b32.xlu0 %v996_v60, %s1085_s29  ;;  %524 = vrot.lane.b32.xlu1 %v1000_v59, %s1083_s25 }
  0x53   : > { %537 = vrot.lane.b32.xlu0 %v1004_v20, %s1088_s13  ;;  %550 = vrot.lane.b32.xlu1 %v1008_v21, %s1086_s4 }
  0x57   : > { %559 = vrot.lane.b32.xlu0 %v1009_v22, %s1084_s28  ;;  %568 = vrot.lane.b32.xlu1 %v1010_v24, %s1089_s14 }
  0x8f   : > { %v519_v55 = vpop.permute.xlu1 %518 }
  0x91   : > { %v523_v25 = vpop.permute.xlu0 %522 }
  0x93   : > { %v554_v26 = vpop.permute.xlu1 %553 }
  0x95   : > { %v507_v27 = vpop.permute.xlu0 %506 }
  0x98   : > { %v521_v29 = vpop.permute.xlu1 %520 }
  0x99   : > { %v545_v30 = vpop.permute.xlu0 %544 }
  0x9c   : > { %v509_v31 = vpop.permute.xlu1 %508 }
  0x9e   : > { %v511_v32 = vpop.permute.xlu0 %510 }
  0xa0   : > { %v547_v33 = vpop.permute.xlu1 %546 }
  0xa3   : > { %v487_v7 = vpop.permute.xlu0 %486 }
  0xa4   : > { %v574_v16 = vsel %vm571_vm12, %v985_v19, %v487_v7  ;;  %v532_v45 = vpop.permute.xlu1 %531 }
  0xa5   : > { %v586_v34 = vsel %vm584_vm13, %v574_v16, %v507_v27 }
  0xa6   : > { %v595_v17 = vsel %vm593_vm14, %v586_v34, %v519_v55 }
  0xa7   : > { %v604_v35 = vsel %vm602_vm15, %v595_v17, %v532_v45 }
  0xa8   : > { %v613_v23 = vsel %vm611_vm0, %v604_v35, %v545_v30  ;;  %v563_v36 = vpop.permute.xlu0 %562  ;;  %v489_v63 = vpop.permute.xlu1 %488 }
  0xa9   : > { %v622_v11 = vsel %vm620_vm1, %v613_v23, %v554_v26  ;;  %v577_v6 = vsel %vm571_vm12, %v1259_v18, %v489_v63 }
  0xaa   : > { %v631_v54 = vsel %vm629_vm2, %v622_v11, %v563_v36  ;;  %v588_v19 = vsel %vm584_vm13, %v577_v6, %v509_v31 }
  0xab   : > { %759 = vmatmul.mubr.bf16.vlgmr.msra.gmra.mxu0 %v631_v54  ;;  %v597_v40 = vsel %vm593_vm14, %v588_v19, %v521_v29 }
  0xac   : > { %1022 = vmatprep.mubr.msk.bf16.mxu0 %vm571_vm12, %v1335_v58  ;;  %v491_v38 = vpop.permute.xlu0 %490  ;;  %v534_v12 = vpop.permute.xlu1 %533 }
  0xad   : > { %v606_v41 = vsel %vm602_vm15, %v597_v40, %v534_v12  ;;  %v580_v44 = vsel %vm571_vm12, %v1389_v8, %v491_v38 }
  0xae   : > { %v615_v18 = vsel %vm611_vm0, %v606_v41, %v547_v33  ;;  %v590_v58 = vsel %vm584_vm13, %v580_v44, %v511_v32 }
  0xaf   : > { %v599_v49 = vsel %vm593_vm14, %v590_v58, %v523_v25 }
  0xb0   : > { %v536_v42 = vpop.permute.xlu0 %535  ;;  %v556_v43 = vpop.permute.xlu1 %555 }
  0xb1   : > { %v624_v46 = vsel %vm620_vm1, %v615_v18, %v556_v43  ;;  %v608_v50 = vsel %vm602_vm15, %v599_v49, %v536_v42 }
  0xb4   : > { %v549_v2 = vpop.permute.xlu0 %548  ;;  %v565_v0 = vpop.permute.xlu1 %564 }
  0xb5   : > { %v634_v47 = vsel %vm629_vm2, %v624_v46, %v565_v0  ;;  %v617_v1 = vsel %vm611_vm0, %v608_v50, %v549_v2 }
  0xb6   : > { %767 = vmatmul.mubr.bf16.gmra.mxu0 %v634_v47 }
  0xb8   : > { %v558_v48 = vpop.permute.xlu0 %557 }
  0xb9   : > { %v626_v8 = vsel %vm620_vm1, %v617_v1, %v558_v48 }
  0xbd   : > { %v567_v51 = vpop.permute.xlu0 %566  ;;  %v493_v52 = vpop.permute.xlu1 %492 }
  0xbe   : > { %v637_v10 = vsel %vm629_vm2, %v626_v8, %v567_v51  ;;  %v583_v53 = vsel %vm571_vm12, %v1408_v37, %v493_v52 }
  0xbf   : > { %775 = vmatmul.mubr.bf16.vlgmr.msra.gmra.mxu1 %v637_v10 }
  0xc0   : > { %1024 = vmatprep.mubr.msk.bf16.mxu1 %vm571_vm12, %v1011_v4 }
  0xc1   : > { %v513_v56 = vpop.permute.xlu0 %512  ;;  %v525_v57 = vpop.permute.xlu1 %524 }
  0xc2   : > { %v592_v60 = vsel %vm584_vm13, %v583_v53, %v513_v56 }
  0xc3   : > { %v601_v13 = vsel %vm593_vm14, %v592_v60, %v525_v57 }
  0xc5   : > { %v538_v3 = vpop.permute.xlu0 %537  ;;  %v551_v61 = vpop.permute.xlu1 %550 }
  0xc6   : > { %v610_v5 = vsel %vm602_vm15, %v601_v13, %v538_v3 }
  0xc7   : > { %v619_v9 = vsel %vm611_vm0, %v610_v5, %v551_v61 }
  0xc9   : > { %v560_v14 = vpop.permute.xlu0 %559  ;;  %v569_v15 = vpop.permute.xlu1 %568 }
  0xca   : > { %v628_v39 = vsel %vm620_vm1, %v619_v9, %v560_v14 }
  0xcb   : > { %v640_v62 = vsel %vm629_vm2, %v628_v39, %v569_v15 }
  0xcc   : > { %783 = vmatmul.mubr.bf16.gmra.mxu1 %v640_v62 }
 0x16b   : > { %v760_v37 = vpop.f32.mrf.mxu0 }
 0x16c   : > { %v791_v26 = vsel %vm571_vm12, %v760_v37, 0.0 }
 0x16d   : > { %v762_v4 = vpop.f32.mrf.mxu0 }
 0x16f   : > { %v763_v59 = vpop.f32.mrf.mxu0 }
 0x170   : > { %v792_v55 = vsel %vm571_vm12, %v763_v59, 0.0 }
 0x171   : > { %v765_v28 = vpop.f32.mrf.mxu0  ;;  %v793_v30 = vadd.f32 %v792_v55, %v791_v26 }
 0x176   : > { %v768_v20 = vpop.f32.mrf.mxu0 }
 0x177   : > { %v794_v27 = vsel %vm571_vm12, %v768_v20, 0.0 }
 0x178   : > { %v770_v21 = vpop.f32.mrf.mxu0  ;;  %v795_v33 = vadd.f32 %v794_v27, %v793_v30 }
 0x17a   : > { %v771_v22 = vpop.f32.mrf.mxu0 }
 0x17b   : > { %v796_v31 = vsel %vm571_vm12, %v771_v22, 0.0 }
 0x17c   : > { %v773_v24 = vpop.f32.mrf.mxu0  ;;  %v797_v16 = vadd.f32 %v796_v31, %v795_v33 }
 0x17f   : > { %v776_v25 = vpop.f32.mrf.mxu1 }
 0x180   : > { %v798_v34 = vsel %vm571_vm12, %v776_v25, 0.0 }
 0x181   : > { %v778_v29 = vpop.f32.mrf.mxu1  ;;  %v799_v45 = vadd.f32 %v798_v34, %v797_v16 }
 0x183   : > { %v779_v32 = vpop.f32.mrf.mxu1 }
 0x184   : > { %v800_v17 = vsel %vm571_vm12, %v779_v32, 0.0 }
 0x185   : > { %v781_v7 = vpop.f32.mrf.mxu1  ;;  %v801_v36 = vadd.f32 %v800_v17, %v799_v45 }
 0x18c   : > { %v784_v35 = vpop.f32.mrf.mxu1 }
 0x18d   : > { %v802_v23 = vsel %vm571_vm12, %v784_v35, 0.0 }
 0x18e   : > { %v786_v63 = vpop.f32.mrf.mxu1  ;;  %v803_v11 = vadd.f32 %v802_v23, %v801_v36 }
 0x190   : > { %v787_v6 = vpop.f32.mrf.mxu1 }
 0x191   : > { %v804_v54 = vsel %vm571_vm12, %v787_v6, 0.0 }
 0x192   : > { %v805_v19 = vadd.f32 %v804_v54, %v803_v11  ;;  %v789_v38 = vpop.f32.mrf.mxu1 }
 0x194   : > { %v806_v12 = vrot.slane %v805_v19, 4 }
 0x196   : > { %v807_v40 = vadd.f32 %v806_v12, %v805_v19 }
 0x198   : > { %v808_v41 = vrot.slane %v807_v40, 2 }
 0x19a   : > { %v809_v42 = vadd.f32 %v808_v41, %v807_v40 }
 0x19c   : > { %v810_v43 = vrot.slane %v809_v42, 1 }
 0x19e   : > { %v811_v44 = vadd.f32 %v810_v43, %v809_v42 }
 0x1a0   : > { %v813_v18 = vmul.f32 0.015625, %v811_v44 }
 0x1a2   : > { %v814_v46 = vsub.f32 %v760_v37, %v813_v18  ;;  %v815_v2 = vsub.f32 %v763_v59, %v813_v18  ;;  %v816_v0 = vsub.f32 %v768_v20, %v813_v18  ;;  %v817_v47 = vsub.f32 %v771_v22, %v813_v18 }
 0x1a3   : > { %v818_v58 = vsub.f32 %v776_v25, %v813_v18  ;;  %v819_v1 = vsub.f32 %v779_v32, %v813_v18  ;;  %v820_v53 = vsub.f32 %v784_v35, %v813_v18  ;;  %v821_v13 = vsub.f32 %v787_v6, %v813_v18 }
 0x1a4   : > { %v822_v48 = vmul.f32 %v814_v46, %v814_v46  ;;  %v823_v49 = vmul.f32 %v815_v2, %v815_v2  ;;  %v824_v50 = vmul.f32 %v816_v0, %v816_v0  ;;  %v825_v8 = vmul.f32 %v817_v47, %v817_v47 }
 0x1a5   : > { %v826_v56 = vmul.f32 %v818_v58, %v818_v58  ;;  %v827_v3 = vmul.f32 %v819_v1, %v819_v1  ;;  %v828_v9 = vmul.f32 %v820_v53, %v820_v53  ;;  %v829_v39 = vmul.f32 %v821_v13, %v821_v13 }
 0x1a6   : > { %v830_v51 = vsel %vm571_vm12, %v822_v48, 0.0  ;;  %v831_v52 = vsel %vm571_vm12, %v823_v49, 0.0  ;;  %v833_v57 = vsel %vm571_vm12, %v824_v50, 0.0  ;;  %v835_v61 = vsel %vm571_vm12, %v825_v8, 0.0 }
 0x1a7   : > { %v832_v10 = vadd.f32 %v831_v52, %v830_v51  ;;  %v837_v14 = vsel %vm571_vm12, %v826_v56, 0.0  ;;  %v839_v62 = vsel %vm571_vm12, %v827_v3, 0.0  ;;  %v841_v4 = vsel %vm571_vm12, %v828_v9, 0.0 }
 0x1a8   : > { %v843_v28 = vsel %vm571_vm12, %v829_v39, 0.0 }
 0x1a9   : > { %v834_v60 = vadd.f32 %v833_v57, %v832_v10 }
 0x1ab   : > { %v836_v5 = vadd.f32 %v835_v61, %v834_v60 }
 0x1ad   : > { %v838_v15 = vadd.f32 %v837_v14, %v836_v5 }
 0x1af   : > { %v840_v37 = vadd.f32 %v839_v62, %v838_v15 }
 0x1b1   : > { %v842_v59 = vadd.f32 %v841_v4, %v840_v37 }
 0x1b3   : > { %v844_v20 = vadd.f32 %v843_v28, %v842_v59 }
 0x1b5   : > { %v845_v21 = vrot.slane %v844_v20, 4 }
 0x1b7   : > { %v846_v22 = vadd.f32 %v845_v21, %v844_v20 }
 0x1b9   : > { %v847_v24 = vrot.slane %v846_v22, 2 }
 0x1bb   : > { %v848_v55 = vadd.f32 %v847_v24, %v846_v22 }
 0x1bd   : > { %v849_v25 = vrot.slane %v848_v55, 1 }
 0x1bf   : > { %v850_v26 = vadd.f32 %v849_v25, %v848_v55 }
 0x1c1   : > { %v851_v27 = vmul.f32 0.015625, %v850_v26 }
 0x1c3   : > { %v852_v29 = vadd.f32 1e-05, %v851_v27 }
 0x1c5   : > { %1072 = vrsqrt.f32 %v852_v29 }
 0x1d2   : > { %v1073_v30 = vpop.eup %1072 }
 0x1d3   : > { %v854_v31 = vmul.f32 %v1073_v30, %v814_v46  ;;  %v855_v32 = vmul.f32 %v1073_v30, %v815_v2  ;;  %v856_v33 = vmul.f32 %v1073_v30, %v816_v0  ;;  %v857_v7 = vmul.f32 %v1073_v30, %v817_v47 }
 0x1d4   : > { %v858_v16 = vmul.f32 %v1073_v30, %v818_v58  ;;  %v859_v34 = vmul.f32 %v1073_v30, %v819_v1  ;;  %v860_v45 = vmul.f32 %v1073_v30, %v820_v53  ;;  %v861_v17 = vmul.f32 %v1073_v30, %v821_v13 }
 0x1d5   : > { %vm862_vm3 = vcmp.gt.f32.partialorder %v854_v31, 0.0  ;;  %vm863_vm4 = vcmp.gt.f32.partialorder %v855_v32, 0.0  ;;  %vm864_vm5 = vcmp.gt.f32.partialorder %v856_v33, 0.0  ;;  %vm865_vm6 = vcmp.gt.f32.partialorder %v857_v7, 0.0 }
 0x1d6   : > { %vm866_vm7 = vcmp.gt.f32.partialorder %v858_v16, 0.0  ;;  %vm867_vm8 = vcmp.gt.f32.partialorder %v859_v34, 0.0  ;;  %vm868_vm9 = vcmp.gt.f32.partialorder %v860_v45, 0.0  ;;  %vm869_vm10 = vcmp.gt.f32.partialorder %v861_v17, 0.0 }
 0x1d7   : > { %v870_v35 = vmul.f32 0.01, %v854_v31  ;;  %v871_v23 = vmul.f32 0.01, %v855_v32  ;;  %v872_v36 = vmul.f32 0.01, %v856_v33 }
 0x1d8   : > { %v873_v63 = vmul.f32 0.01, %v857_v7  ;;  %v874_v11 = vmul.f32 0.01, %v858_v16  ;;  %v875_v6 = vmul.f32 0.01, %v859_v34 }
 0x1d9   : > { %v876_v54 = vmul.f32 0.01, %v860_v45  ;;  %v877_v19 = vmul.f32 0.01, %v861_v17  ;;  %v878_v38 = vsel %vm862_vm3, %v854_v31, %v870_v35  ;;  %v879_v12 = vsel %vm863_vm4, %v855_v32, %v871_v23 }
 0x1da   : > { %v880_v40 = vsel %vm864_vm5, %v856_v33, %v872_v36  ;;  %v881_v41 = vsel %vm865_vm6, %v857_v7, %v873_v63  ;;  %v882_v42 = vsel %vm866_vm7, %v858_v16, %v874_v11  ;;  %v883_v43 = vsel %vm867_vm8, %v859_v34, %v875_v6  ;;  %886 = vst.msk [vmem:[%s143_s17] sm:$0xff] %vm571_vm12, %v878_v38 }
 0x1db   : > { %887 = vst.msk [vmem:[%s143_s17 + $0x8] sm:$0xff] %vm571_vm12, %v879_v12  ;;  %v884_v44 = vsel %vm868_vm9, %v860_v45, %v876_v54  ;;  %v885_v18 = vsel %vm869_vm10, %v861_v17, %v877_v19  ;;  %888 = vst.msk [vmem:[%s143_s17 + $0x10] sm:$0xff] %vm571_vm12, %v880_v40 }
 0x1dc   : > { %889 = vst.msk [vmem:[%s143_s17 + $0x18] sm:$0xff] %vm571_vm12, %v881_v41  ;;  %890 = vst.msk [vmem:[%s143_s17 + $0x20] sm:$0xff] %vm571_vm12, %v882_v42 }
 0x1dd   : > { %891 = vst.msk [vmem:[%s143_s17 + $0x28] sm:$0xff] %vm571_vm12, %v883_v43  ;;  %892 = vst.msk [vmem:[%s143_s17 + $0x30] sm:$0xff] %vm571_vm12, %v884_v44 }
 0x1de   : > { %893 = vst.msk [vmem:[%s143_s17 + $0x38] sm:$0xff] %vm571_vm12, %v885_v18 }
 0x1df PF: > { %s12_s9 = sadd.s32 1, %s1080_s9  }
 0x1e0   : > { %p9_p4 = scmp.ge.s32.totalorder %s12_s9, 4  }
 0x1e2   :  { %11 = sbr.rel (!%p9_p4) target bundleno = 1 (0x1), region = 58 }

// kernel: _lambda_.8
= control target key start
LH: loop header
LB: loop body
LE: loop exit
PB: predicated region body
PF: predicated region fallthrough
CT: control target
= control target key end

     0   :  { %s1446_s12 = smov 0   ;;  %s1927_s0 = inlined_call_operand.vmem [shape: f32[2,8,8,16], index: 0, kind: input, shape index: {}]   ;;  %s1928_s1 = inlined_call_operand.vmem [shape: bf16[2,8,8,16], index: 1, kind: input, shape index: {}]   ;;  %s1929_s2 = inlined_call_operand.vmem [shape: bf16[288,16], index: 2, kind: input, shape index: {}]   ;;  %s1930_s3 = inlined_call_operand.vmem [shape: f32[2,8,8,16], index: 3, kind: output, shape index: {}]  }
   0x1 LB: > { %s1198_s13 = sadd.s32 4294967295, %s1419_s12   ;;  %p1202_p0 = scmp.ge.s32.totalorder %s1419_s12, 1  ;;  %s1419_s12 = sphi %s1446_s12, %s13_s12  }
   0x2   : > { %p147_p1 = scmp.lt.s32.totalorder %s1419_s12, 3 }
   0x4   : > { %p148_p2 = pnand %p1202_p0, %p147_p1 }
   0x5   : > { %p176_p3 = scmp.lt.s32.totalorder (!%p148_p2), %s1198_s13, 1  ;;  %s1421_s18 = smov (!%p148_p2), 16  }
   0x6   : > { %151 = sbr.rel (%p148_p2) target bundleno = 598 (0x256), region = 32  ;;  %s1423_s22 = smov (!%p148_p2), 64  }
   0x7   : > { %s1424_s23 = smov (!%p148_p2), 96   ;;  %s1425_s6 = smov (!%p148_p2), 32  }
   0xb   : > { %s1940_s13 = smov (!%p176_p3, %s1198_s13), 1  ;;  %v1393_v8 = vld [vmem:[%s1929_s2 + $0x78] sm:$0xff]   ;;  %v1395_v10 = vld [vmem:[%s1929_s2 + $0x70] sm:$0xff]   ;;  %vm345_vm0 = vcmask 1040384   ;;  %vm346_vm1 = vsmask.f32 256 }
   0xc   : > { %s1296_s14 = sshll.u32 %s1940_s13, 5  ;;  %v1394_v9 = vld [vmem:[%s1929_s2 + $0x38] sm:$0xff]   ;;  %1298 = vmatprep.subr.bf16.mxu0 %v1393_v8  ;;  %1356 = vmatprep.subr.bf16.mxu1 %v1393_v8  ;;  %v1396_v11 = vld [vmem:[%s1929_s2 + $0x30] sm:$0xff]   ;;  %v1422_v12 = vmov 0   ;;  %vm1472_vm2 = vmand %vm345_vm0, %vm346_vm1  ;;  %vm357_vm3 = vcmask 1044480   ;;  %s1295_s27 = sshll.u32 %s1940_s13, 6 }
   0xd   : > { %s185_s17 = scalar_lea.vmem %s1928_s1, %s1296_s14  ;;  %1299 = vmatpush3.bf16.msra.mxu0 %v1394_v9  ;;  %1364 = vmatpush3.bf16.msra.mxu1 %v1394_v9  ;;  %v284_v13 = vrot.slane %v1422_v12, 7  ;;  %vm358_vm4 = vsmask.f32 4352  ;;  %s1494_s30 = scalar_lea.vmem %s1927_s0, %s1295_s27  ;;  %vm256_vm6 = vcmask 130048   ;;  %vm524_vm7 = vcmask 1042432   ;;  %v1397_v60 = vld [vmem:[%s1929_s2 + $0x68] sm:$0xff]  }
   0xe   : > { %v1385_v0 = vld [vmem:[%s185_s17 + $0x8] ss:$0 sps:$4 sm:$0xff]   ;;  %v1386_v1 = vld [vmem:[%s185_s17] ss:$0 sps:$4 sm:$0xff]   ;;  %v1387_v2 = vld [vmem:[%s185_s17 + $0x14] ss:$0 sps:$4 sm:$0xff]   ;;  %1300 = vmatprep.subr.bf16.mxu0 %v1395_v10  ;;  %1357 = vmatprep.subr.bf16.mxu1 %v1395_v10  ;;  %s190_s15 = scalar_lea.vmem %s1930_s3, %s1295_s27 }
   0xf   : > { %244 = vrot.lane.b32.xlu1 %v1385_v0, %s1421_s18  ;;  %240 = vrot.lane.b32.xlu0 %v1386_v1, %s1421_s18  ;;  %v1388_v3 = vld [vmem:[%s185_s17 + $0x4] ss:$0 sps:$4 sm:$0xff]   ;;  %v1389_v4 = vld [vmem:[%s185_s17 + $0x1c] ss:$0 sps:$4 sm:$0xff]   ;;  %vm1476_vm5 = vmand %vm357_vm3, %vm358_vm4  ;;  %v348_v16 = vsel %vm1472_vm2, 0, %v284_v13  ;;  %vm525_vm8 = vcmask 1046532  }
  0x10   : > { %v1390_v5 = vld [vmem:[%s185_s17 + $0x18] ss:$0 sps:$4 sm:$0xff]   ;;  %v1391_v6 = vld [vmem:[%s185_s17 + $0x10] ss:$0 sps:$4 sm:$0xff]   ;;  %v1392_v7 = vld [vmem:[%s185_s17 + $0xc] ss:$0 sps:$4 sm:$0xff]  }
  0x11   : > { %1301 = vmatpush3.bf16.msra.mxu0 %v1396_v11  ;;  %1365 = vmatpush3.bf16.msra.mxu1 %v1396_v11  ;;  %v1484_v17 = vsel %vm1476_vm5, %v348_v16, 0  ;;  %v194_v21 = vld [vmem:[%s1494_s30 + $0x10] sm:$0xff]  ;;  %v192_v22 = vld [vmem:[%s1494_s30] sm:$0xff]  ;;  %v197_v28 = vld [vmem:[%s1494_s30 + $0x28] sm:$0xff]  ;;  %vm409_vm9 = vsmask.f32 3328 }
  0x12   : > { %v1217_v18 = vcombine.low %v1484_v17, %v1484_v17  ;;  %v202_v25 = vpack.c.bf16 %v194_v21, %v194_v21  ;;  %v1218_v26 = vcombine.high %v1484_v17, %v1484_v17  ;;  %v200_v27 = vpack.c.bf16 %v192_v22, %v192_v22  ;;  %v193_v29 = vld [vmem:[%s1494_s30 + $0x8] sm:$0xff]  ;;  %v199_v36 = vld [vmem:[%s1494_s30 + $0x38] sm:$0xff]  ;;  %v198_v37 = vld [vmem:[%s1494_s30 + $0x30] sm:$0xff]  ;;  %1302 = vmatprep.subr.bf16.mxu0 %v1397_v60 }
  0x13   : > { %250 = vrot.lane.b32.xlu1 %v1387_v2, %s1421_s18  ;;  %242 = vrot.lane.b32.xlu0 %v1388_v3, %s1421_s18  ;;  %v205_v35 = vpack.c.bf16 %v197_v28, %v197_v28  ;;  %vm410_vm10 = vsmask.f32 7440  ;;  %v201_v40 = vpack.c.bf16 %v193_v29, %v193_v29  ;;  %v1507_v41 = vld [vmem:[%s1494_s30 + $0x20] sm:$0xff]  ;;  %v1510_v44 = vld [vmem:[%s1494_s30 + $0x18] sm:$0xff]  ;;  %vm1514_vm11 = vmor %vm524_vm7, %vm525_vm8  ;;  %v207_v52 = vpack.c.bf16 %v199_v36, %v199_v36 }
  0x14   : > { %v413_v19 = vshrl.u32 %v1217_v18, 16  ;;  %v416_v20 = vshll.u32 %v1217_v18, 16  ;;  %v422_v31 = vshll.u32 %v1218_v26, 16  ;;  %v1233_v42 = vrot.slane %v1217_v18, 9  ;;  %vm1520_vm12 = vmor %vm409_vm9, %vm410_vm10  ;;  %v1398_v61 = vld [vmem:[%s1929_s2 + $0x28] sm:$0xff]   ;;  %1358 = vmatprep.subr.bf16.mxu1 %v1397_v60 }
  0x15   : > { %v529_v46 = vrot.slane %v1218_v26, 5  ;;  %v206_v53 = vpack.c.bf16 %v198_v37, %v198_v37  ;;  %v204_v59 = vpack.c.bf16 %v1507_v41, %v1507_v41  ;;  %v203_v1 = vpack.c.bf16 %v1510_v44, %v1510_v44  ;;  %1303 = vmatpush3.bf16.msra.mxu0 %v1398_v61  ;;  %1366 = vmatpush3.bf16.msra.mxu1 %v1398_v61 }
  0x16   : > { %v415_v23 = vrot.slane %v413_v19, 4  ;;  %v418_v24 = vrot.slane %v416_v20, 5  ;;  %v424_v48 = vrot.slane %v422_v31, 5  ;;  %v1399_v19 = vld [vmem:[%s1929_s2 + $0x60] sm:$0xff]   ;;  %vm675_vm13 = vcmask 261120  }
  0x17   : > { %254 = vrot.lane.b32.xlu1 %v1389_v4, %s1421_s18  ;;  %252 = vrot.lane.b32.xlu0 %v1390_v5, %s1421_s18  ;;  %v1538_v4 = vsel %vm1514_vm11, %v1233_v42, %v529_v46  ;;  %v1400_v20 = vld [vmem:[%s1929_s2 + $0x20] sm:$0xff]   ;;  %vm688_vm14 = vcmask 523264   ;;  %vm697_vm15 = vcmask 785408  }
  0x18   : > { %v419_v30 = vor.u32 %v418_v24, %v415_v23  ;;  %1304 = vmatprep.subr.bf16.mxu0 %v1399_v19  ;;  %1359 = vmatprep.subr.bf16.mxu1 %v1399_v19 }
  0x19   : > { %1305 = vmatpush3.bf16.msra.mxu0 %v1400_v20  ;;  %1367 = vmatpush3.bf16.msra.mxu1 %v1400_v20 }
  0x1a   : > { %v420_v47 = vrot.slane %v419_v30, 4 }
  0x1b   : > { %248 = vrot.lane.b32.xlu1 %v1391_v6, %s1421_s18  ;;  %246 = vrot.lane.b32.xlu0 %v1392_v7, %s1421_s18 }
  0x1c   : > { %v1542_v5 = vsel %vm1520_vm12, %v420_v47, %v424_v48 }
  0x81   : > { %v245_v32 = vpop.permute.xlu1 %244  ;;  %v241_v34 = vpop.permute.xlu0 %240 }
  0x82   : > { %v265_v33 = vsel %vm256_vm6, %v202_v25, %v245_v32  ;;  %v259_v39 = vsel %vm256_vm6, %v200_v27, %v241_v34 }
  0x83   : > { %v300_v38 = vshrl.u32 %v265_v33, 16  ;;  %v288_v43 = vshrl.u32 %v259_v39, 16  ;;  %v303_v50 = vshll.u32 %v265_v33, 16  ;;  %v291_v56 = vshll.u32 %v259_v39, 16  ;;  %v1402_v39 = vld [vmem:[%s1929_s2 + $0x18] sm:$0xff]  }
  0x85   : > { %v302_v49 = vrot.slane %v300_v38, 7  ;;  %v251_v51 = vpop.permute.xlu1 %250  ;;  %v290_v55 = vrot.slane %v288_v43, 7  ;;  %v243_v58 = vpop.permute.xlu0 %242  ;;  %v1401_v38 = vld [vmem:[%s1929_s2 + $0x58] sm:$0xff]  }
  0x86   : > { %v274_v57 = vsel %vm256_vm6, %v205_v35, %v251_v51  ;;  %v262_v0 = vsel %vm256_vm6, %v201_v40, %v243_v58  ;;  %1306 = vmatprep.subr.bf16.mxu0 %v1401_v38  ;;  %1360 = vmatprep.subr.bf16.mxu1 %v1401_v38 }
  0x87   : > { %v305_v62 = vor.u32 %v303_v50, %v302_v49  ;;  %v318_v63 = vshrl.u32 %v274_v57, 16  ;;  %v293_v2 = vor.u32 %v291_v56, %v290_v55  ;;  %v294_v3 = vshrl.u32 %v262_v0, 16  ;;  %1307 = vmatpush3.bf16.msra.mxu0 %v1402_v39  ;;  %1368 = vmatpush3.bf16.msra.mxu1 %v1402_v39 }
  0x88   : > { %v321_v8 = vshll.u32 %v274_v57, 16  ;;  %v297_v9 = vshll.u32 %v262_v0, 16 }
  0x89   : > { %v351_v6 = vsel %vm1472_vm2, 0, %v305_v62  ;;  %v320_v7 = vrot.slane %v318_v63, 7  ;;  %v255_v10 = vpop.permute.xlu1 %254  ;;  %v349_v12 = vsel %vm1472_vm2, 0, %v293_v2  ;;  %v296_v13 = vrot.slane %v294_v3, 7  ;;  %v253_v18 = vpop.permute.xlu0 %252  ;;  %v1403_v62 = vld [vmem:[%s1929_s2 + $0x50] sm:$0xff]  }
  0x8a   : > { %v1548_v11 = vsel %vm1476_vm5, %v351_v6, 0  ;;  %v280_v16 = vsel %vm256_vm6, %v207_v52, %v255_v10  ;;  %v1565_v22 = vsel %vm1476_vm5, %v349_v12, 0  ;;  %v277_v27 = vsel %vm256_vm6, %v206_v53, %v253_v18  ;;  %v1404_v63 = vld [vmem:[%s1929_s2 + $0x10] sm:$0xff]   ;;  %1308 = vmatprep.subr.bf16.mxu0 %v1403_v62  ;;  %1361 = vmatprep.subr.bf16.mxu1 %v1403_v62 }
  0x8b   : > { %v1561_v21 = vcombine.low %v1548_v11, %v1548_v11  ;;  %v323_v23 = vor.u32 %v321_v8, %v320_v7  ;;  %v330_v24 = vshrl.u32 %v280_v16, 16  ;;  %v1569_v25 = vcombine.low %v1565_v22, %v1565_v22  ;;  %1309 = vmatpush3.bf16.msra.mxu0 %v1404_v63  ;;  %1369 = vmatpush3.bf16.msra.mxu1 %v1404_v63 }
  0x8c   : > { %v299_v26 = vor.u32 %v297_v9, %v296_v13  ;;  %v333_v30 = vshll.u32 %v280_v16, 16  ;;  %v324_v31 = vshrl.u32 %v277_v27, 16  ;;  %v327_v35 = vshll.u32 %v277_v27, 16 }
  0x8d   : > { %v354_v28 = vsel %vm1472_vm2, 0, %v323_v23  ;;  %v332_v29 = vrot.slane %v330_v24, 7  ;;  %v249_v32 = vpop.permute.xlu1 %248  ;;  %v247_v37 = vpop.permute.xlu0 %246  ;;  %v1591_v43 = vcombine.high %v1565_v22, %v1565_v22  ;;  %v1234_v2 = vrot.slane %v1569_v25, 9  ;;  %v1405_v24 = vld [vmem:[%s1929_s2 + $0x48] sm:$0xff]  }
  0x8e   : > { %v1576_v33 = vsel %vm1476_vm5, %v354_v28, 0  ;;  %v350_v34 = vsel %vm1472_vm2, 0, %v299_v26  ;;  %v271_v36 = vsel %vm256_vm6, %v204_v59, %v249_v32  ;;  %v326_v42 = vrot.slane %v324_v31, 7  ;;  %v1406_v26 = vld [vmem:[%s1929_s2 + $0x8] sm:$0xff]   ;;  %1310 = vmatprep.subr.bf16.mxu0 %v1405_v24  ;;  %1362 = vmatprep.subr.bf16.mxu1 %v1405_v24 }
  0x8f   : > { %v362_v40 = vsel %vm1476_vm5, %v350_v34, 0  ;;  %v335_v41 = vor.u32 %v333_v30, %v332_v29  ;;  %v1595_v44 = vcombine.low %v1576_v33, %v1576_v33  ;;  %v312_v47 = vshrl.u32 %v271_v36, 16  ;;  %1311 = vmatpush3.bf16.msra.mxu0 %v1406_v26  ;;  %1370 = vmatpush3.bf16.msra.mxu1 %v1406_v26 }
  0x90   : > { %v1597_v46 = vcombine.low %v362_v40, %v362_v40  ;;  %v268_v48 = vsel %vm256_vm6, %v203_v1, %v247_v37  ;;  %v329_v50 = vor.u32 %v327_v35, %v326_v42  ;;  %v315_v51 = vshll.u32 %v271_v36, 16 }
  0x91   : > { %v356_v49 = vsel %vm1472_vm2, 0, %v335_v41  ;;  %v306_v52 = vshrl.u32 %v268_v48, 16  ;;  %v314_v55 = vrot.slane %v312_v47, 7  ;;  %v1605_v56 = vcombine.low %v362_v40, %v1548_v11 }
  0x92   : > { %v368_v53 = vsel %vm1476_vm5, %v356_v49, 0  ;;  %v1256_v57 = vcombine.low %v1565_v22, %v362_v40  ;;  %v355_v58 = vsel %vm1472_vm2, 0, %v329_v50  ;;  %v309_v60 = vshll.u32 %v268_v48, 16  ;;  %v1407_v50 = vld [vmem:[%s1929_s2 + $0x40] sm:$0xff]  }
  0x93   : > { %v308_v59 = vrot.slane %v306_v52, 7  ;;  %v1268_v61 = vcombine.low %v368_v53, %v1484_v17  ;;  %v1619_v0 = vsel %vm1476_vm5, %v355_v58, 0  ;;  %v317_v1 = vor.u32 %v315_v51, %v314_v55  ;;  %657 = vrot.lane.b32.xlu0 %v1605_v56, %s1423_s22  ;;  %v1408_v51 = vld [vmem:[%s1929_s2] sm:$0xff]   ;;  %1312 = vmatprep.subr.bf16.mxu0 %v1407_v50 }
  0x94   : > { %630 = vrot.lane.b32.xlu1 %v1256_v57, %s1424_s23  ;;  %v533_v3 = vrot.slane %v1591_v43, 5  ;;  %v1628_v6 = vcombine.low %v1619_v0, %v1619_v0  ;;  %v1259_v8 = vcombine.low %v1619_v0, %v368_v53  ;;  %v1631_v9 = vcombine.high %v362_v40, %v362_v40  ;;  %1363 = vmatprep.subr.bf16.mxu1 %v1407_v50 }
  0x95   : > { %v311_v7 = vor.u32 %v309_v60, %v308_v59  ;;  %v353_v10 = vsel %vm1472_vm2, 0, %v317_v1  ;;  %v1235_v13 = vrot.slane %v1597_v46, 9  ;;  %v1640_v16 = vcombine.high %v1576_v33, %v1576_v33  ;;  %1313 = vmatpush3.bf16.msra.mxu0 %v1408_v51  ;;  %1371 = vmatpush3.bf16.msra.mxu1 %v1408_v51 }
  0x96   : > { %v534_v12 = vsel %vm1514_vm11, %v1234_v2, %v533_v3  ;;  %v1642_v18 = vcombine.low %v368_v53, %v368_v53  ;;  %v1646_v19 = vsel %vm1476_vm5, %v353_v10, 0  ;;  %v537_v23 = vrot.slane %v1631_v9, 5 }
  0x97   : > { %v352_v20 = vsel %vm1472_vm2, 0, %v311_v7  ;;  %663 = vrot.lane.b32.xlu0 %v1268_v61, %s1423_s22  ;;  %v1252_v14 = vcombine.low %v1538_v4, %v534_v12  ;;  %v1666_v28 = vcombine.high %v1619_v0, %v1619_v0  ;;  %v1239_v29 = vrot.slane %v1595_v44, 9 }
  0x98   : > { %v1659_v27 = vsel %vm1476_vm5, %v352_v20, 0  ;;  %636 = vrot.lane.b32.xlu1 %v1259_v8, %s1424_s23  ;;  %v538_v31 = vsel %vm1514_vm11, %v1235_v13, %v537_v23  ;;  %v553_v32 = vrot.slane %v1640_v16, 5  ;;  %v1240_v35 = vrot.slane %v1628_v6, 9 }
  0x99   : > { %v1671_v30 = vcombine.low %v1659_v27, %v1659_v27  ;;  %v1675_v15 = vcombine.low %v1659_v27, %v1646_v19  ;;  %v1264_v34 = vcombine.low %v534_v12, %v538_v31  ;;  %v557_v36 = vrot.slane %v1666_v28, 5 }
  0x9a   : > { %v1682_v37 = vcombine.high %v368_v53, %v368_v53  ;;  %v1686_v38 = vsel %vm1514_vm11, %v1239_v29, %v553_v32  ;;  %v1243_v39 = vrot.slane %v1642_v18, 9  ;;  %v1691_v40 = vcombine.high %v1548_v11, %v1548_v11 }
  0x9b   : > { %v1236_v41 = vrot.slane %v1561_v21, 9  ;;  %659 = vrot.lane.b32.xlu0 %v1675_v15, %s1423_s22  ;;  %v558_v42 = vsel %vm1514_vm11, %v1240_v35, %v557_v36  ;;  %v1702_v48 = vcombine.high %v1659_v27, %v1659_v27  ;;  %v1237_v49 = vrot.slane %v1671_v30, 9 }
  0x9c   : > { %618 = vrot.lane.b32.xlu1 %v1252_v14, %s1423_s22  ;;  %v580_v47 = vrot.slane %v1682_v37, 5  ;;  %v1712_v52 = vcombine.low %v1686_v38, %v558_v42  ;;  %v541_v53 = vrot.slane %v1691_v40, 5  ;;  %v427_v55 = vshrl.u32 %v1569_v25, 16 }
  0x9d   : > { %v430_v57 = vshll.u32 %v1569_v25, 16  ;;  %v545_v59 = vrot.slane %v1702_v48, 5  ;;  %v436_v60 = vshll.u32 %v1591_v43, 16  ;;  %v497_v61 = vshrl.u32 %v1595_v44, 16 }
  0x9e   : > { %v1719_v58 = vsel %vm1514_vm11, %v1243_v39, %v580_v47  ;;  %v1726_v62 = vcombine.low %v1646_v19, %v1646_v19  ;;  %v542_v25 = vsel %vm1514_vm11, %v1236_v41, %v541_v53  ;;  %v429_v1 = vrot.slane %v427_v55, 4 }
  0x9f   : > { %v1270_v63 = vcombine.low %v1719_v58, %v1538_v4  ;;  %648 = vrot.lane.b32.xlu0 %v1264_v34, %s1425_s6  ;;  %v1267_v43 = vcombine.low %v558_v42, %v1719_v58  ;;  %v1736_v2 = vcombine.low %v538_v31, %v542_v25  ;;  %v1740_v3 = vsel %vm1514_vm11, %v1237_v49, %v545_v59 }
  0xa0   : > { %624 = vrot.lane.b32.xlu1 %v1712_v52, %s1423_s22  ;;  %v432_v7 = vrot.slane %v430_v57, 5  ;;  %v438_v8 = vrot.slane %v436_v60, 5  ;;  %v499_v10 = vrot.slane %v497_v61, 4  ;;  %v500_v12 = vshll.u32 %v1595_v44, 16 }
  0xa1   : > { %v506_v13 = vshll.u32 %v1640_v16, 16  ;;  %v1265_v20 = vcombine.low %v542_v25, %v1740_v3  ;;  %v511_v24 = vshrl.u32 %v1628_v6, 16  ;;  %v514_v26 = vshll.u32 %v1628_v6, 16 }
  0xa2   : > { %v433_v23 = vor.u32 %v432_v7, %v429_v1  ;;  %v502_v14 = vrot.slane %v500_v12, 5  ;;  %v520_v29 = vshll.u32 %v1666_v28, 16  ;;  %v441_v31 = vshrl.u32 %v1597_v46, 16  ;;  %v1770_v1 = vld [vmem:[%s1929_s2 + $0x88] sm:$0xff]  }
  0xa3   : > { %v444_v32 = vshll.u32 %v1597_v46, 16  ;;  %654 = vrot.lane.b32.xlu0 %v1267_v43, %s1425_s6  ;;  %v508_v16 = vrot.slane %v506_v13, 5  ;;  %v513_v34 = vrot.slane %v511_v24, 4  ;;  %v516_v35 = vrot.slane %v514_v26, 5  ;;  %1344 = vmatprep.subr.bf16.mxu1 %v1770_v1 }
  0xa4   : > { %620 = vrot.lane.b32.xlu1 %v1736_v2, %s1423_s22  ;;  %v434_v44 = vrot.slane %v433_v23, 4  ;;  %v503_v36 = vor.u32 %v502_v14, %v499_v10  ;;  %v443_v39 = vrot.slane %v441_v31, 4  ;;  %v450_v6 = vshll.u32 %v1631_v9, 16 }
  0xa5   : > { %v446_v41 = vrot.slane %v444_v32, 5  ;;  %v517_v42 = vor.u32 %v516_v35, %v513_v34  ;;  %v455_v46 = vshrl.u32 %v1561_v21, 16  ;;  %v458_v47 = vshll.u32 %v1561_v21, 16 }
  0xa6   : > { %v1756_v28 = vsel %vm1520_vm12, %v434_v44, %v438_v8  ;;  %v504_v50 = vrot.slane %v503_v36, 4  ;;  %v522_v51 = vrot.slane %v520_v29, 5  ;;  %v464_v59 = vshll.u32 %v1691_v40, 16 }
  0xa7   : > { %v1248_v49 = vcombine.low %v1542_v5, %v1756_v28  ;;  %v447_v53 = vor.u32 %v446_v41, %v443_v39  ;;  %650 = vrot.lane.b32.xlu0 %v1265_v20, %s1425_s6  ;;  %v518_v55 = vrot.slane %v517_v42, 4  ;;  %v457_v57 = vrot.slane %v455_v46, 4 }
  0xa8   : > { %v460_v9 = vrot.slane %v458_v47, 5  ;;  %v452_v61 = vrot.slane %v450_v6, 5  ;;  %v565_v25 = vshrl.u32 %v1642_v18, 16  ;;  %v568_v21 = vshll.u32 %v1642_v18, 16 }
  0xa9   : > { %598 = vrot.lane.b32.xlu1 %v1248_v49, %s1425_s6  ;;  %v448_v60 = vrot.slane %v447_v53, 4  ;;  %v1774_v43 = vsel %vm1520_vm12, %v504_v50, %v508_v16  ;;  %v1778_v40 = vsel %vm1520_vm12, %v518_v55, %v522_v51  ;;  %v574_v8 = vshll.u32 %v1682_v37, 16 }
  0xaa   : > { %v461_v7 = vor.u32 %v460_v9, %v457_v57  ;;  %v1251_v10 = vcombine.low %v1774_v43, %v1778_v40  ;;  %v567_v12 = vrot.slane %v565_v25, 4  ;;  %v570_v13 = vrot.slane %v568_v21, 5 }
  0xab   : > { %v1785_v18 = vsel %vm1520_vm12, %v448_v60, %v452_v61  ;;  %v466_v23 = vrot.slane %v464_v59, 5  ;;  %v576_v37 = vrot.slane %v574_v8, 5  ;;  %v1228_v14 = vcombine.high %v1646_v19, %v1646_v19 }
  0xac   : > { %v462_v20 = vrot.slane %v461_v7, 4  ;;  %v1260_v24 = vcombine.low %v1756_v28, %v1785_v18  ;;  %604 = vrot.lane.b32.xlu0 %v1251_v10, %s1425_s6  ;;  %v571_v26 = vor.u32 %v570_v13, %v567_v12  ;;  %v469_v29 = vshrl.u32 %v1671_v30, 16 }
  0xad   : > { %v1238_v32 = vrot.slane %v1726_v62, 9  ;;  %v472_v44 = vshll.u32 %v1671_v30, 16  ;;  %v483_v16 = vshrl.u32 %v1726_v62, 16  ;;  %v549_v36 = vrot.slane %v1228_v14, 5 }
  0xae   : > { %v1796_v31 = vsel %vm1520_vm12, %v462_v20, %v466_v23  ;;  %v572_v35 = vrot.slane %v571_v26, 4  ;;  %v471_v39 = vrot.slane %v469_v29, 4  ;;  %v478_v6 = vshll.u32 %v1702_v48, 16 }
  0xaf   : > { %v1249_v34 = vcombine.low %v1785_v18, %v1796_v31  ;;  %v474_v41 = vrot.slane %v472_v44, 5  ;;  %v486_v42 = vshll.u32 %v1726_v62, 16  ;;  %v485_v47 = vrot.slane %v483_v16, 4 }
  0xb0   : > { %v577_v46 = vsel %vm1520_vm12, %v572_v35, %v576_v37  ;;  %v1257_v51 = vcombine.low %v1548_v11, %v1659_v27  ;;  %v550_v53 = vsel %vm1514_vm11, %v1238_v32, %v549_v36  ;;  %v492_v55 = vshll.u32 %v1228_v14, 16 }
  0xb1   : > { %666 = vrot.lane.b32.xlu1 %v1249_v34, %s1424_s23  ;;  %v1263_v30 = vcombine.low %v1778_v40, %v577_v46  ;;  %v1269_v49 = vcombine.low %v577_v46, %v1542_v5  ;;  %v475_v50 = vor.u32 %v474_v41, %v471_v39  ;;  %v488_v48 = vrot.slane %v486_v42, 5  ;;  %v1410_v39 = vld [vmem:[%s1929_s2 + $0x80] sm:$0xff]  }
  0xb2   : > { %v480_v57 = vrot.slane %v478_v6, 5  ;;  %v1266_v59 = vcombine.low %v550_v53, %v1686_v38  ;;  %v494_v61 = vrot.slane %v492_v55, 5  ;;  %v1254_v25 = vcombine.low %v1740_v3, %v550_v53 }
  0xb3   : > { %672 = vrot.lane.b32.xlu0 %v1269_v49, %s1424_s23  ;;  %v476_v62 = vrot.slane %v475_v50, 4  ;;  %v489_v9 = vor.u32 %v488_v48, %v485_v47  ;;  %v1247_v21 = vcombine.low %v1576_v33, %v1619_v0  ;;  %v1258_v54 = vcombine.low %v1646_v19, %v1576_v33 }
  0xb4   : > { %v1244_v33 = vcombine.low %v1484_v17, %v1565_v22 }
  0xb5   : > { %632 = vrot.lane.b32.xlu1 %v1257_v51, %s1424_s23  ;;  %v481_v5 = vsel %vm1520_vm12, %v476_v62, %v480_v57  ;;  %v490_v60 = vrot.slane %v489_v9, 4 }
  0xb6   : > { %v1261_v11 = vcombine.low %v1796_v31, %v481_v5 }
  0xb7   : > { %652 = vrot.lane.b32.xlu0 %v1266_v59, %s1425_s6  ;;  %v1824_v45 = vsel %vm1520_vm12, %v490_v60, %v494_v61 }
  0xb8   : > { %v1250_v27 = vcombine.low %v481_v5, %v1824_v45  ;;  %v1262_v38 = vcombine.low %v1824_v45, %v1774_v43 }
  0xb9   : > { %600 = vrot.lane.b32.xlu1 %v1249_v34, %s1425_s6 }
  0xbb   : > { %668 = vrot.lane.b32.xlu0 %v1250_v27, %s1424_s23 }
  0xbd   : > { %622 = vrot.lane.b32.xlu1 %v1254_v25, %s1423_s22 }
  0xbf   : > { %661 = vrot.lane.b32.xlu0 %v1247_v21, %s1423_s22 }
  0xc1   : > { %602 = vrot.lane.b32.xlu1 %v1250_v27, %s1425_s6 }
  0xc3   : > { %670 = vrot.lane.b32.xlu0 %v1251_v10, %s1424_s23 }
  0xc5   : > { %634 = vrot.lane.b32.xlu1 %v1258_v54, %s1424_s23 }
 0x105   : > { %v658_v40 = vpop.permute.xlu0 %657 }
 0x106   : > { %v631_v3 = vpop.permute.xlu1 %630 }
 0x109   : > { %v664_v7 = vpop.permute.xlu0 %663 }
 0x10a   : > { %v637_v8 = vpop.permute.xlu1 %636 }
 0x10d   : > { %v660_v12 = vpop.permute.xlu0 %659 }
 0x10e   : > { %v619_v13 = vpop.permute.xlu1 %618 }
 0x111   : > { %v649_v20 = vpop.permute.xlu0 %648 }
 0x112   : > { %v625_v23 = vpop.permute.xlu1 %624  ;;  %v712_v29 = vsel %vm675_vm13, %v1260_v24, %v649_v20 }
 0x113   : > { %v723_v34 = vsel %vm688_vm14, %v712_v29, %v658_v40 }
 0x115   : > { %v655_v0 = vpop.permute.xlu0 %654 }
 0x116   : > { %v621_v26 = vpop.permute.xlu1 %620  ;;  %v721_v44 = vsel %vm675_vm13, %v1263_v30, %v655_v0 }
 0x117   : > { %v729_v24 = vsel %vm688_vm14, %v721_v44, %v664_v7 }
 0x119   : > { %v651_v37 = vpop.permute.xlu0 %650 }
 0x11a   : > { %v715_v42 = vsel %vm675_vm13, %v1261_v11, %v651_v37 }
 0x11b   : > { %v599_v14 = vpop.permute.xlu1 %598  ;;  %v725_v50 = vsel %vm688_vm14, %v715_v42, %v660_v12 }
 0x11c   : > { %v678_v19 = vsel %vm675_vm13, %v1244_v33, %v599_v14 }
 0x11d   : > { %v690_v32 = vsel %vm688_vm14, %v678_v19, %v619_v13 }
 0x11e   : > { %v605_v10 = vpop.permute.xlu0 %604  ;;  %v699_v22 = vsel %vm697_vm15, %v690_v32, %v631_v3 }
 0x11f   : > { %v687_v31 = vsel %vm675_vm13, %v1247_v21, %v605_v10 }
 0x120   : > { %v696_v28 = vsel %vm688_vm14, %v687_v31, %v625_v23 }
 0x121   : > { %v708_v41 = vsel %vm697_vm15, %v696_v28, %v637_v8 }
 0x123   : > { %v667_v16 = vpop.permute.xlu1 %666 }
 0x124   : > { %v731_v17 = vsel %vm697_vm15, %v723_v34, %v667_v16 }
 0x125   : > { %930 = vmatprep.mubr.bf16.mxu0 %v731_v17  ;;  %v673_v18 = vpop.permute.xlu0 %672 }
 0x126   : > { %931 = vmatmul.mubr.bf16.vlgmr.msra.gmra.mxu0 %v699_v22  ;;  %v740_v36 = vsel %vm697_vm15, %v729_v24, %v673_v18 }
 0x127   : > { %v633_v35 = vpop.permute.xlu1 %632  ;;  %954 = vmatprep.mubr.bf16.mxu1 %v740_v36 }
 0x128   : > { %955 = vmatmul.mubr.bf16.vlgmr.msra.gmra.mxu1 %v708_v41 }
 0x129   : > { %v653_v6 = vpop.permute.xlu0 %652  ;;  %1345 = vmatpush3.bf16.msra.mxu1 %v1770_v1  ;;  %1348 = vmatprep.mubr.msk.bf16.mxu1 %vm675_vm13, %v1736_v2 }
 0x12a   : > { %1346 = vmatprep.subr.bf16.mxu1 %v1410_v39  ;;  %v718_v55 = vsel %vm675_vm13, %v1262_v38, %v653_v6 }
 0x12b   : > { %v601_v46 = vpop.permute.xlu1 %600 }
 0x12c   : > { %v681_v47 = vsel %vm675_vm13, %v1605_v56, %v601_v46 }
 0x12d   : > { %v692_v30 = vsel %vm688_vm14, %v681_v47, %v621_v26  ;;  %v669_v49 = vpop.permute.xlu0 %668  ;;  %1347 = vmatpush3.bf16.msra.mxu1 %v1410_v39 }
 0x12e   : > { %v734_v53 = vsel %vm697_vm15, %v725_v50, %v669_v49  ;;  %v702_v1 = vsel %vm697_vm15, %v692_v30, %v633_v35 }
 0x12f   : > { %v623_v51 = vpop.permute.xlu1 %622  ;;  %938 = vmatprep.mubr.bf16.mxu0 %v734_v53 }
 0x130   : > { %939 = vmatmul.mubr.bf16.gmra.mxu0 %v702_v1  ;;  %1349 = vmatmul.mubr.msk.bf16.vlgmr.msra.gmra.mxu1 %vm675_vm13, %v1254_v25 }
 0x131   : > { %v662_v2 = vpop.permute.xlu0 %661  ;;  %1352 = vmatprep.mubr.msk.bf16.mxu1 %vm675_vm13, %v1712_v52 }
 0x132   : > { %v727_v62 = vsel %vm688_vm14, %v718_v55, %v662_v2 }
 0x133   : > { %v603_v56 = vpop.permute.xlu1 %602 }
 0x134   : > { %v684_v48 = vsel %vm675_vm13, %v1675_v15, %v603_v56 }
 0x135   : > { %v671_v57 = vpop.permute.xlu0 %670  ;;  %v694_v5 = vsel %vm688_vm14, %v684_v48, %v623_v51 }
 0x136   : > { %v737_v59 = vsel %vm697_vm15, %v727_v62, %v671_v57 }
 0x137   : > { %v635_v9 = vpop.permute.xlu1 %634  ;;  %946 = vmatprep.mubr.bf16.mxu0 %v737_v59 }
 0x138   : > { %v705_v52 = vsel %vm697_vm15, %v694_v5, %v635_v9  ;;  %1353 = vmatmul.mubr.msk.bf16.gmra.mxu1 %vm675_vm13, %v1270_v63 }
 0x139   : > { %947 = vmatmul.mubr.bf16.gmra.mxu0 %v705_v52 }
 0x1e6   : > { %v1314_v15 = vpop.f32.mrf.mxu0 }
 0x1e8   : > { %v1315_v43 = vpop.f32.mrf.mxu0  ;;  %v1332_v60 = vpop.f32.mrf.mxu1 }
 0x1e9   : > { %v1316_v3 = vadd.f32 %v1315_v43, %v1314_v15 }
 0x1ea   : > { %v1317_v61 = vpop.f32.mrf.mxu0  ;;  %v1333_v11 = vpop.f32.mrf.mxu1 }
 0x1eb   : > { %v1334_v35 = vadd.f32 %v1333_v11, %v1332_v60 }
 0x1ec   : > { %v1335_v45 = vpop.f32.mrf.mxu1  ;;  %v1318_v27 = vpop.f32.mrf.mxu0 }
 0x1ed   : > { %v1319_v13 = vadd.f32 %v1318_v27, %v1317_v61 }
 0x1ee   : > { %v1336_v38 = vpop.f32.mrf.mxu1 }
 0x1ef   : > { %v1337_v6 = vadd.f32 %v1336_v38, %v1335_v45 }
 0x1f0   : > { %v1320_v25 = vpop.f32.mrf.mxu0  ;;  %v1350_v21 = vpop.f32.mrf.mxu1 }
 0x1f2   : > { %v1321_v54 = vpop.f32.mrf.mxu0  ;;  %v997_v40 = vpop.f32.mrf.mxu1 }
 0x1f3   : > { %v1322_v7 = vadd.f32 %v1321_v54, %v1320_v25  ;;  %v998_v4 = vadd.f32 %v1316_v3, %v997_v40 }
 0x1f4   : > { %v1323_v8 = vpop.f32.mrf.mxu0  ;;  %v1351_v12 = vpop.f32.mrf.mxu1 }
 0x1f5   : > { %v1006_v20 = vadd.f32 %v1350_v21, %v1322_v7  ;;  %v1028_v14 = vsel %vm256_vm6, %v998_v4, 0.0 }
 0x1f6   : > { %v1324_v58 = vpop.f32.mrf.mxu0  ;;  %v1000_v63 = vpop.f32.mrf.mxu1 }
 0x1f7   : > { %v1325_v23 = vadd.f32 %v1324_v58, %v1323_v8  ;;  %v1001_v0 = vadd.f32 %v1319_v13, %v1000_v63  ;;  %v1031_v32 = vsel %vm256_vm6, %v1006_v20, 0.0 }
 0x1f8   : > { %v1354_v37 = vpop.f32.mrf.mxu1 }
 0x1f9   : > { %v1326_v26 = vpop.f32.mrf.mxu0  ;;  %v1009_v33 = vadd.f32 %v1351_v12, %v1325_v23  ;;  %v1029_v19 = vsel %vm256_vm6, %v1001_v0, 0.0  ;;  %v1022_v42 = vadd.f32 %v1354_v37, %v1334_v35 }
 0x1fa   : > { %v1030_v10 = vadd.f32 %v1029_v19, %v1028_v14  ;;  %v1013_v31 = vpop.f32.mrf.mxu1 }
 0x1fb   : > { %v1327_v29 = vpop.f32.mrf.mxu0  ;;  %v1033_v22 = vsel %vm256_vm6, %v1009_v33, 0.0  ;;  %v1039_v51 = vsel %vm256_vm6, %v1022_v42, 0.0 }
 0x1fc   : > { %v1328_v44 = vadd.f32 %v1327_v29, %v1326_v26  ;;  %v1032_v16 = vadd.f32 %v1031_v32, %v1030_v10  ;;  %v1355_v17 = vpop.f32.mrf.mxu1 }
 0x1fd   : > { %v1329_v34 = vpop.f32.mrf.mxu0  ;;  %v1025_v30 = vadd.f32 %v1355_v17, %v1337_v6 }
 0x1fe   : > { %v1014_v28 = vadd.f32 %v1328_v44, %v1013_v31  ;;  %v1034_v18 = vadd.f32 %v1033_v22, %v1032_v16  ;;  %v1016_v41 = vpop.f32.mrf.mxu1 }
 0x1ff   : > { %v1330_v24 = vpop.f32.mrf.mxu0  ;;  %v1041_v1 = vsel %vm256_vm6, %v1025_v30, 0.0 }
 0x200   : > { %v1035_v36 = vsel %vm256_vm6, %v1014_v28, 0.0  ;;  %v1331_v39 = vadd.f32 %v1330_v24, %v1329_v34 }
 0x201   : > { %v1036_v47 = vadd.f32 %v1035_v36, %v1034_v18 }
 0x202   : > { %v1017_v46 = vadd.f32 %v1331_v39, %v1016_v41 }
 0x204   : > { %v1037_v49 = vsel %vm256_vm6, %v1017_v46, 0.0 }
 0x205   : > { %v1038_v50 = vadd.f32 %v1037_v49, %v1036_v47 }
 0x207   : > { %v1040_v53 = vadd.f32 %v1039_v51, %v1038_v50 }
 0x209   : > { %v1042_v2 = vadd.f32 %v1041_v1, %v1040_v53 }
 0x20b   : > { %v1043_v56 = vrot.slane %v1042_v2, 4 }
 0x20d   : > { %v1044_v48 = vadd.f32 %v1043_v56, %v1042_v2 }
 0x20f   : > { %v1045_v55 = vrot.slane %v1044_v48, 2 }
 0x211   : > { %v1046_v62 = vadd.f32 %v1045_v55, %v1044_v48 }
 0x213   : > { %v1047_v57 = vrot.slane %v1046_v62, 1 }
 0x215   : > { %v1048_v9 = vadd.f32 %v1047_v57, %v1046_v62 }
 0x217   : > { %v1050_v59 = vmul.f32 0.015625, %v1048_v9 }
 0x219   : > { %v1051_v5 = vsub.f32 %v998_v4, %v1050_v59  ;;  %v1052_v52 = vsub.f32 %v1001_v0, %v1050_v59  ;;  %v1053_v15 = vsub.f32 %v1006_v20, %v1050_v59  ;;  %v1054_v43 = vsub.f32 %v1009_v33, %v1050_v59 }
 0x21a   : > { %v1055_v60 = vsub.f32 %v1014_v28, %v1050_v59  ;;  %v1056_v27 = vsub.f32 %v1017_v46, %v1050_v59  ;;  %v1057_v40 = vsub.f32 %v1022_v42, %v1050_v59  ;;  %v1058_v12 = vsub.f32 %v1025_v30, %v1050_v59 }
 0x21b   : > { %v1059_v61 = vmul.f32 %v1051_v5, %v1051_v5  ;;  %v1060_v11 = vmul.f32 %v1052_v52, %v1052_v52  ;;  %v1061_v45 = vmul.f32 %v1053_v15, %v1053_v15  ;;  %v1062_v38 = vmul.f32 %v1054_v43, %v1054_v43 }
 0x21c   : > { %v1063_v3 = vmul.f32 %v1055_v60, %v1055_v60  ;;  %v1064_v13 = vmul.f32 %v1056_v27, %v1056_v27  ;;  %v1065_v63 = vmul.f32 %v1057_v40, %v1057_v40  ;;  %v1066_v0 = vmul.f32 %v1058_v12, %v1058_v12 }
 0x21d   : > { %v1067_v25 = vsel %vm256_vm6, %v1059_v61, 0.0  ;;  %v1068_v21 = vsel %vm256_vm6, %v1060_v11, 0.0  ;;  %v1070_v7 = vsel %vm256_vm6, %v1061_v45, 0.0  ;;  %v1072_v4 = vsel %vm256_vm6, %v1062_v38, 0.0 }
 0x21e   : > { %v1069_v54 = vadd.f32 %v1068_v21, %v1067_v25  ;;  %v1074_v20 = vsel %vm256_vm6, %v1063_v3, 0.0  ;;  %v1076_v26 = vsel %vm256_vm6, %v1064_v13, 0.0  ;;  %v1078_v14 = vsel %vm256_vm6, %v1065_v63, 0.0 }
 0x21f   : > { %v1080_v19 = vsel %vm256_vm6, %v1066_v0, 0.0 }
 0x220   : > { %v1071_v8 = vadd.f32 %v1070_v7, %v1069_v54 }
 0x222   : > { %v1073_v58 = vadd.f32 %v1072_v4, %v1071_v8 }
 0x224   : > { %v1075_v23 = vadd.f32 %v1074_v20, %v1073_v58 }
 0x226   : > { %v1077_v37 = vadd.f32 %v1076_v26, %v1075_v23 }
 0x228   : > { %v1079_v33 = vadd.f32 %v1078_v14, %v1077_v37 }
 0x22a   : > { %v1081_v10 = vadd.f32 %v1080_v19, %v1079_v33 }
 0x22c   : > { %v1082_v29 = vrot.slane %v1081_v10, 4 }
 0x22e   : > { %v1083_v31 = vadd.f32 %v1082_v29, %v1081_v10 }
 0x230   : > { %v1084_v32 = vrot.slane %v1083_v31, 2 }
 0x232   : > { %v1085_v44 = vadd.f32 %v1084_v32, %v1083_v31 }
 0x234   : > { %v1086_v16 = vrot.slane %v1085_v44, 1 }
 0x236   : > { %v1087_v34 = vadd.f32 %v1086_v16, %v1085_v44 }
 0x238   : > { %v1088_v17 = vmul.f32 0.015625, %v1087_v34 }
 0x23a   : > { %v1089_v22 = vadd.f32 1e-05, %v1088_v17 }
 0x23c   : > { %1411 = vrsqrt.f32 %v1089_v22 }
 0x249   : > { %v1412_v28 = vpop.eup %1411 }
 0x24a   : > { %v1091_v18 = vmul.f32 %v1412_v28, %v1051_v5  ;;  %v1092_v24 = vmul.f32 %v1412_v28, %v1052_v52  ;;  %v1093_v35 = vmul.f32 %v1412_v28, %v1053_v15  ;;  %v1094_v36 = vmul.f32 %v1412_v28, %v1054_v43 }
 0x24b   : > { %v1095_v39 = vmul.f32 %v1412_v28, %v1055_v60  ;;  %v1096_v41 = vmul.f32 %v1412_v28, %v1056_v27  ;;  %v1097_v6 = vmul.f32 %v1412_v28, %v1057_v40  ;;  %v1098_v42 = vmul.f32 %v1412_v28, %v1058_v12 }
 0x24c   : > { %vm1099_vm0 = vcmp.gt.f32.partialorder %v1091_v18, 0.0  ;;  %vm1100_vm1 = vcmp.gt.f32.partialorder %v1092_v24, 0.0  ;;  %vm1101_vm2 = vcmp.gt.f32.partialorder %v1093_v35, 0.0  ;;  %vm1102_vm3 = vcmp.gt.f32.partialorder %v1094_v36, 0.0 }
 0x24d   : > { %vm1103_vm4 = vcmp.gt.f32.partialorder %v1095_v39, 0.0  ;;  %vm1104_vm5 = vcmp.gt.f32.partialorder %v1096_v41, 0.0  ;;  %vm1105_vm7 = vcmp.gt.f32.partialorder %v1097_v6, 0.0  ;;  %vm1106_vm8 = vcmp.gt.f32.partialorder %v1098_v42, 0.0 }
 0x24e   : > { %v1107_v46 = vmul.f32 0.01, %v1091_v18  ;;  %v1108_v47 = vmul.f32 0.01, %v1092_v24  ;;  %v1109_v30 = vmul.f32 0.01, %v1093_v35 }
 0x24f   : > { %v1110_v49 = vmul.f32 0.01, %v1094_v36  ;;  %v1111_v50 = vmul.f32 0.01, %v1095_v39  ;;  %v1112_v51 = vmul.f32 0.01, %v1096_v41 }
 0x250   : > { %v1113_v53 = vmul.f32 0.01, %v1097_v6  ;;  %v1114_v1 = vmul.f32 0.01, %v1098_v42  ;;  %v1115_v2 = vsel %vm1099_vm0, %v1091_v18, %v1107_v46  ;;  %v1116_v56 = vsel %vm1100_vm1, %v1092_v24, %v1108_v47 }
 0x251   : > { %v1117_v48 = vsel %vm1101_vm2, %v1093_v35, %v1109_v30  ;;  %v1118_v55 = vsel %vm1102_vm3, %v1094_v36, %v1110_v49  ;;  %v1119_v62 = vsel %vm1103_vm4, %v1095_v39, %v1111_v50  ;;  %v1120_v57 = vsel %vm1104_vm5, %v1096_v41, %v1112_v51  ;;  %1123 = vst.msk [vmem:[%s190_s15] sm:$0xff] %vm256_vm6, %v1115_v2 }
 0x252   : > { %1124 = vst.msk [vmem:[%s190_s15 + $0x8] sm:$0xff] %vm256_vm6, %v1116_v56  ;;  %v1121_v9 = vsel %vm1105_vm7, %v1097_v6, %v1113_v53  ;;  %v1122_v59 = vsel %vm1106_vm8, %v1098_v42, %v1114_v1  ;;  %1125 = vst.msk [vmem:[%s190_s15 + $0x10] sm:$0xff] %vm256_vm6, %v1117_v48 }
 0x253   : > { %1126 = vst.msk [vmem:[%s190_s15 + $0x18] sm:$0xff] %vm256_vm6, %v1118_v55  ;;  %1127 = vst.msk [vmem:[%s190_s15 + $0x20] sm:$0xff] %vm256_vm6, %v1119_v62 }
 0x254   : > { %1128 = vst.msk [vmem:[%s190_s15 + $0x28] sm:$0xff] %vm256_vm6, %v1120_v57  ;;  %1129 = vst.msk [vmem:[%s190_s15 + $0x30] sm:$0xff] %vm256_vm6, %v1121_v9 }
 0x255   : > { %1130 = vst.msk [vmem:[%s190_s15 + $0x38] sm:$0xff] %vm256_vm6, %v1122_v59 }
 0x256 PF: > { %s13_s12 = sadd.s32 1, %s1419_s12  }
 0x257   : > { %p10_p4 = scmp.ge.s32.totalorder %s13_s12, 4  }
 0x259   :  { %12 = sbr.rel (!%p10_p4) target bundleno = 1 (0x1), region = 65 }

// kernel: _lambda_.13
= control target key start
LH: loop header
LB: loop body
LE: loop exit
PB: predicated region body
PF: predicated region fallthrough
CT: control target
= control target key end

     0   :  { %s562_s12 = smov 0   ;;  %s564_s13 = smov 0   ;;  %s661_s0 = inlined_call_operand.vmem [shape: f32[2,256,8], index: 0, kind: input, shape index: {}]   ;;  %s662_s1 = inlined_call_operand.vmem [shape: bf16[3,8], index: 1, kind: input, shape index: {}]   ;;  %s663_s2 = inlined_call_operand.vmem [shape: f32[3,1], index: 2, kind: input, shape index: {}]   ;;  %s664_s3 = inlined_call_operand.vmem [shape: f32[2,3,256], index: 3, kind: output, shape index: {}]  }
   0x1   :  { %s566_s14 = smov 0  }
   0x2 LB: > { %s25_s15 = sadd.s32 1, %s535_s13  ;;  %p455_p0 = scmp.ge.s32.totalorder %s539_s14, 1  ;;  %s539_s14 = sphi %s566_s14, %s13_s14   ;;  %s535_s13 = sphi %s564_s13, %s666_s13   ;;  %s531_s12 = sphi %s562_s12, %s665_s12  }
   0x3   : > { %p27_p1 = scmp.ge.s32.totalorder %s25_s15, 2  ;;  %p158_p2 = scmp.lt.s32.totalorder %s539_s14, 3 }
   0x5   : > { %s668_s15 = smov (%p27_p1, %s25_s15), 0  ;;  %p159_p3 = pnand %p455_p0, %p158_p2 }
   0x6   : > { %p191_p4 = scmp.lt.s32.totalorder (!%p159_p3), %s531_s12, 1 }
   0x7   : > { %162 = sbr.rel (%p159_p3) target bundleno = 283 (0x11b), region = 32 }
   0xc   : > { %vm266_vm0 = vcmask 64512   ;;  %v583_v0 = vld [vmem:[%s662_s1] sm:$0x3]  ;;  %v541_v1 = vmov 0   ;;  %s670_s12 = smov (!%p191_p4, %s531_s12), 1 }
   0xd   : > { %481 = vmatprep.mubr.msk.bf16.mxu0 %vm266_vm0, %v583_v0  ;;  %516 = vset.pattern.permute.xlu0 %v541_v1  ;;  %v260_v2 = vld [vmem:[%s663_s2] sm:$0x7]  ;;  %s463_s20 = sshll.u32 %s670_s12, 8  ;;  %s464_s24 = sshll.u32 %s670_s12, 3 }
   0xe   : > { %263 = vperm.xlu0 %516, %v260_v2   ;;  %s596_s23 = scalar_lea.vmem %s661_s0, %s463_s20  ;;  %s208_s27 = scalar_lea.vmem %s664_s3, %s464_s24 }
   0xf   : > { %v241_v3 = vld [vmem:[%s596_s23 + $0xf0] sm:$0xff]  ;;  %v242_v4 = vld [vmem:[%s596_s23 + $0xf8] sm:$0xff]  ;;  %v239_v8 = vld [vmem:[%s596_s23 + $0xe0] sm:$0xff] }
  0x10   : > { %v225_v5 = vld [vmem:[%s596_s23 + $0x70] sm:$0xff]  ;;  %v258_v6 = vpack.c.bf16 %v242_v4, %v241_v3  ;;  %v226_v7 = vld [vmem:[%s596_s23 + $0x78] sm:$0xff]  ;;  %v240_v9 = vld [vmem:[%s596_s23 + $0xe8] sm:$0xff] }
  0x11   : > { %v250_v10 = vpack.c.bf16 %v226_v7, %v225_v5  ;;  %v257_v11 = vpack.c.bf16 %v240_v9, %v239_v8  ;;  %v223_v12 = vld [vmem:[%s596_s23 + $0x60] sm:$0xff]  ;;  %v224_v13 = vld [vmem:[%s596_s23 + $0x68] sm:$0xff]  ;;  %v237_v16 = vld [vmem:[%s596_s23 + $0xd0] sm:$0xff] }
  0x12   : > { %483 = vmatprep.subr.msk.bf16.mxu0 %vm266_vm0, %v258_v6  ;;  %v249_v15 = vpack.c.bf16 %v224_v13, %v223_v12  ;;  %v238_v17 = vld [vmem:[%s596_s23 + $0xd8] sm:$0xff]  ;;  %v221_v20 = vld [vmem:[%s596_s23 + $0x50] sm:$0xff]  ;;  %v235_v23 = vld [vmem:[%s596_s23 + $0xc0] sm:$0xff] }
  0x13   : > { %v292_v14 = vsel %vm266_vm0, %v250_v10, 0  ;;  %v256_v19 = vpack.c.bf16 %v238_v17, %v237_v16  ;;  %v222_v21 = vld [vmem:[%s596_s23 + $0x58] sm:$0xff]  ;;  %v236_v24 = vld [vmem:[%s596_s23 + $0xc8] sm:$0xff]  ;;  %v219_v27 = vld [vmem:[%s596_s23 + $0x40] sm:$0xff] }
  0x14   : > { %466 = vmatpush3.bf16.xpose.msra.mxu0 %v292_v14  ;;  %v289_v18 = vsel %vm266_vm0, %v249_v15, 0  ;;  %v248_v22 = vpack.c.bf16 %v222_v21, %v221_v20  ;;  %v255_v26 = vpack.c.bf16 %v236_v24, %v235_v23  ;;  %v220_v28 = vld [vmem:[%s596_s23 + $0x48] sm:$0xff]  ;;  %v233_v30 = vld [vmem:[%s596_s23 + $0xb0] sm:$0xff]  ;;  %v234_v31 = vld [vmem:[%s596_s23 + $0xb8] sm:$0xff] }
  0x15   : > { %484 = vmatprep.subr.msk.bf16.mxu0 %vm266_vm0, %v257_v11  ;;  %v247_v29 = vpack.c.bf16 %v220_v28, %v219_v27  ;;  %v254_v33 = vpack.c.bf16 %v234_v31, %v233_v30  ;;  %v217_v34 = vld [vmem:[%s596_s23 + $0x30] sm:$0xff]  ;;  %v218_v35 = vld [vmem:[%s596_s23 + $0x38] sm:$0xff]  ;;  %v231_v37 = vld [vmem:[%s596_s23 + $0xa0] sm:$0xff] }
  0x16   : > { %v286_v25 = vsel %vm266_vm0, %v248_v22, 0  ;;  %v246_v36 = vpack.c.bf16 %v218_v35, %v217_v34  ;;  %v232_v38 = vld [vmem:[%s596_s23 + $0xa8] sm:$0xff]  ;;  %v215_v41 = vld [vmem:[%s596_s23 + $0x20] sm:$0xff]  ;;  %v229_v44 = vld [vmem:[%s596_s23 + $0x90] sm:$0xff] }
  0x17   : > { %v283_v32 = vsel %vm266_vm0, %v247_v29, 0  ;;  %v253_v40 = vpack.c.bf16 %v232_v38, %v231_v37  ;;  %v216_v42 = vld [vmem:[%s596_s23 + $0x28] sm:$0xff]  ;;  %v230_v45 = vld [vmem:[%s596_s23 + $0x98] sm:$0xff]  ;;  %v213_v48 = vld [vmem:[%s596_s23 + $0x10] sm:$0xff] }
  0x18   : > { %v280_v39 = vsel %vm266_vm0, %v246_v36, 0  ;;  %v245_v43 = vpack.c.bf16 %v216_v42, %v215_v41  ;;  %v252_v47 = vpack.c.bf16 %v230_v45, %v229_v44  ;;  %v214_v49 = vld [vmem:[%s596_s23 + $0x18] sm:$0xff]  ;;  %v227_v51 = vld [vmem:[%s596_s23 + $0x80] sm:$0xff]  ;;  %v228_v52 = vld [vmem:[%s596_s23 + $0x88] sm:$0xff] }
  0x19   : > { %v244_v50 = vpack.c.bf16 %v214_v49, %v213_v48  ;;  %v251_v54 = vpack.c.bf16 %v228_v52, %v227_v51  ;;  %v211_v55 = vld [vmem:[%s596_s23] sm:$0xff]  ;;  %v212_v56 = vld [vmem:[%s596_s23 + $0x8] sm:$0xff] }
  0x1a   : > { %v277_v46 = vsel %vm266_vm0, %v245_v43, 0  ;;  %v243_v57 = vpack.c.bf16 %v212_v56, %v211_v55 }
  0x1b   : > { %v274_v53 = vsel %vm266_vm0, %v244_v50, 0 }
  0x1c   : > { %468 = vmatpush3.bf16.xpose.msra.mxu0 %v289_v18  ;;  %v271_v58 = vsel %vm266_vm0, %v243_v57, 0 }
  0x1d   : > { %485 = vmatprep.subr.msk.bf16.mxu0 %vm266_vm0, %v256_v19 }
  0x24   : > { %470 = vmatpush3.bf16.xpose.msra.mxu0 %v286_v25 }
  0x25   : > { %486 = vmatprep.subr.msk.bf16.mxu0 %vm266_vm0, %v255_v26 }
  0x2c   : > { %472 = vmatpush3.bf16.xpose.msra.mxu0 %v283_v32 }
  0x2d   : > { %487 = vmatprep.subr.msk.bf16.mxu0 %vm266_vm0, %v254_v33 }
  0x34   : > { %474 = vmatpush3.bf16.xpose.msra.mxu0 %v280_v39 }
  0x35   : > { %488 = vmatprep.subr.msk.bf16.mxu0 %vm266_vm0, %v253_v40 }
  0x3c   : > { %476 = vmatpush3.bf16.xpose.msra.mxu0 %v277_v46 }
  0x3d   : > { %489 = vmatprep.subr.msk.bf16.mxu0 %vm266_vm0, %v252_v47 }
  0x44   : > { %478 = vmatpush3.bf16.xpose.msra.mxu0 %v274_v53 }
  0x45   : > { %490 = vmatprep.subr.msk.bf16.mxu0 %vm266_vm0, %v251_v54 }
  0x4c   : > { %480 = vmatpush3.bf16.xpose.msra.mxu0 %v271_v58 }
  0x53   : > { %482 = vmatmul.mubr.msk.bf16.vlgmr.msra.gmra.mxu0 %vm266_vm0, %v583_v0 }
  0x89   : > { %v264_v59 = vpop.permute.xlu0 %263 }
 0x113   : > { %v352_v60 = vpop.f32.mrf.mxu0 }
 0x114   : > { %v353_v62 = vadd.f32 %v352_v60, %v264_v59 }
 0x115   : > { %v354_v61 = vpop.f32.mrf.mxu0 }
 0x116   : > { %v355_v63 = vadd.f32 %v354_v61, %v264_v59 }
 0x117   : > { %v356_v1 = vpop.f32.mrf.mxu0 }
 0x118   : > { %v361_v2 = vcombine.low %v353_v62, %v355_v63 }
 0x119   : > { %v357_v3 = vpop.f32.mrf.mxu0 }
 0x11a   : > { %363 = vst [vmem:[%s208_s27] sm:$0x77] %v361_v2 }
 0x11b PF: > { %s13_s14 = sadd.s32 1, %s539_s14   ;;  %s665_s12 = smov %s535_s13 }
 0x11c   : > { %p10_p5 = scmp.ge.s32.totalorder %s13_s14, 4   ;;  %s666_s13 = smov %s668_s15 }
 0x11e   :  { %12 = sbr.rel (!%p10_p5) target bundleno = 2 (0x2), region = 62 }

// kernel: _lambda_.12
= control target key start
LH: loop header
LB: loop body
LE: loop exit
PB: predicated region body
PF: predicated region fallthrough
CT: control target
= control target key end

     0   :  { %s2015_s9 = smov 0   ;;  %s3261_s0 = inlined_call_operand.vmem [shape: f32[2,16,16,8], index: 0, kind: input, shape index: {}]   ;;  %s3262_s1 = inlined_call_operand.vmem [shape: bf16[72,8], index: 1, kind: input, shape index: {}]   ;;  %s3263_s2 = inlined_call_operand.vmem [shape: f32[2,16,16,8], index: 2, kind: output, shape index: {}]  }
   0x1 LB: > { %s1850_s10 = sadd.s32 4294967295, %s1989_s9   ;;  %p1854_p0 = scmp.ge.s32.totalorder %s1989_s9, 1  ;;  %s1989_s9 = sphi %s2015_s9, %s12_s9  }
   0x2   : > { %p112_p1 = scmp.lt.s32.totalorder %s1989_s9, 3 }
   0x4   : > { %p113_p2 = pnand %p1854_p0, %p112_p1 }
   0x5   : > { %p134_p3 = scmp.lt.s32.totalorder (!%p113_p2), %s1850_s10, 1  ;;  %s1992_s15 = smov (!%p113_p2), 16  }
   0x6   : > { %116 = sbr.rel (%p113_p2) target bundleno = 745 (0x2e9), region = 28  ;;  %s1993_s16 = smov (!%p113_p2), 8  }
   0x7   : > { %s1994_s17 = smov (!%p113_p2), 24   ;;  %s1995_s18 = smov (!%p113_p2), 48  }
   0x8   : > { %s1996_s19 = smov (!%p113_p2), 40   ;;  %s1997_s20 = smov (!%p113_p2), 32  }
   0x9   : > { %s1998_s21 = smov (!%p113_p2), 56   ;;  %s1999_s26 = smov (!%p113_p2), 64  }
   0xb   : > { %vm346_vm0 = vcmask 1040384   ;;  %vm347_vm1 = vsmask.f32 256  ;;  %v1991_v0 = vmov 0   ;;  %vm608_vm3 = vcmask 1046528   ;;  %s3282_s10 = smov (!%p134_p3, %s1850_s10), 1 }
   0xc   : > { %v196_v1 = vrot.slane %v1991_v0, 7  ;;  %vm2023_vm2 = vmand %vm346_vm0, %vm347_vm1  ;;  %s1882_s11 = sshll.u32 %s3282_s10, 8  ;;  %vm383_vm4 = vsmask.f32 7424  ;;  %vm1263_vm5 = vcmask 1043456   ;;  %vm930_vm6 = vcmask 64512  }
   0xd   : > { %s2047_s14 = scalar_lea.vmem %s3261_s0, %s1882_s11  ;;  %vm963_vm7 = vcmask 130048   ;;  %vm996_vm8 = vcmask 195584   ;;  %vm1029_vm9 = vcmask 261120   ;;  %vm1062_vm10 = vcmask 326656   ;;  %s3042_s7 = scalar_lea.vmem %s3263_s2, %s1882_s11 }
   0xe   : > { %v2029_v3 = vsel %vm2023_vm2, 0, %v196_v1  ;;  %v366_v4 = vsel %vm2023_vm2, %v196_v1, 0  ;;  %v147_v13 = vld [vmem:[%s2047_s14 + $0x10] sm:$0xff]  ;;  %v148_v14 = vld [vmem:[%s2047_s14 + $0x18] sm:$0xff]  ;;  %v145_v15 = vld [vmem:[%s2047_s14] sm:$0xff]  ;;  %vm1095_vm11 = vcmask 392192  }
   0xf   : > { %v609_v5 = vrot.slane %v2029_v3, 1  ;;  %v610_v6 = vrot.slane %v366_v4, 1  ;;  %v385_v7 = vshrl.u32 %v2029_v3, 16  ;;  %v387_v8 = vshll.u32 %v2029_v3, 16  ;;  %v146_v18 = vld [vmem:[%s2047_s14 + $0x8] sm:$0xff]  ;;  %v149_v19 = vld [vmem:[%s2047_s14 + $0x20] sm:$0xff] }
  0x10   : > { %v392_v9 = vshll.u32 %v366_v4, 16  ;;  %v178_v17 = vpack.c.bf16 %v148_v14, %v147_v13  ;;  %v150_v20 = vld [vmem:[%s2047_s14 + $0x28] sm:$0xff]  ;;  %v177_v21 = vpack.c.bf16 %v146_v18, %v145_v15  ;;  %v151_v48 = vld [vmem:[%s2047_s14 + $0x30] sm:$0xff]  ;;  %v152_v49 = vld [vmem:[%s2047_s14 + $0x38] sm:$0xff]  ;;  %vm1128_vm12 = vcmask 457728  }
  0x11   : > { %v2040_v10 = vsel %vm608_vm3, %v609_v5, %v610_v6  ;;  %v389_v11 = vrot.slane %v387_v8, 1  ;;  %v179_v22 = vpack.c.bf16 %v150_v20, %v149_v19  ;;  %v180_v60 = vpack.c.bf16 %v152_v49, %v151_v48  ;;  %v153_v13 = vld [vmem:[%s2047_s14 + $0x40] sm:$0xff]  ;;  %v154_v14 = vld [vmem:[%s2047_s14 + $0x48] sm:$0xff] }
  0x12   : > { %706 = vrot.lane.b32.xlu1 %v2040_v10, %s1992_s15  ;;  %v394_v12 = vrot.slane %v392_v9, 1  ;;  %v208_v24 = vshrl.u32 %v178_v17, 16  ;;  %v211_v25 = vshll.u32 %v178_v17, 16  ;;  %v201_v26 = vshrl.u32 %v177_v21, 16  ;;  %v1976_v18 = vld [vmem:[%s3262_s1 + $0x20] ss:$0 sps:$4 sm:$0xff]  }
  0x13   : > { %v390_v16 = vor.u32 %v389_v11, %v385_v7  ;;  %v204_v27 = vshll.u32 %v177_v21, 16  ;;  %v215_v28 = vshrl.u32 %v179_v22, 16  ;;  %v218_v29 = vshll.u32 %v179_v22, 16  ;;  %1957 = vmatprep.subr.msk.bf16.mxu0 %vm1263_vm5, %v1976_v18  ;;  %1958 = vmatprep.subr.msk.bf16.mxu1 %vm1263_vm5, %v1976_v18 }
  0x14   : > { %v210_v30 = vrot.slane %v208_v24, 7  ;;  %v203_v31 = vrot.slane %v201_v26, 7  ;;  %v222_v6 = vshrl.u32 %v180_v60, 16  ;;  %v181_v17 = vpack.c.bf16 %v154_v14, %v153_v13  ;;  %v1977_v24 = vld [vmem:[%s3262_s1 + $0x18] sm:$0xff]  }
  0x15   : > { %v2058_v23 = vsel %vm383_vm4, %v390_v16, %v394_v12  ;;  %v217_v32 = vrot.slane %v215_v28, 7  ;;  %v225_v12 = vshll.u32 %v180_v60, 16  ;;  %vm1161_vm13 = vcmask 523264  }
  0x16   : > { %674 = vrot.lane.b32.xlu0 %v2058_v23, %s1993_s16  ;;  %v213_v33 = vor.u32 %v211_v25, %v210_v30  ;;  %v206_v34 = vor.u32 %v204_v27, %v203_v31  ;;  %v367_v36 = vsel %vm2023_vm2, %v203_v31, 0  ;;  %v368_v39 = vsel %vm2023_vm2, %v210_v30, 0  ;;  %v1978_v31 = vld [vmem:[%s3262_s1 + $0x10] sm:$0xff]  }
  0x17   : > { %v220_v35 = vor.u32 %v218_v29, %v217_v32  ;;  %v613_v42 = vrot.slane %v367_v36, 1  ;;  %v404_v45 = vshll.u32 %v367_v36, 16  ;;  %v616_v51 = vrot.slane %v368_v39, 1  ;;  %v1979_v36 = vld [vmem:[%s3262_s1 + $0x8] sm:$0xff]  }
  0x18   : > { %v2066_v37 = vsel %vm2023_vm2, 0, %v213_v33  ;;  %v2072_v38 = vsel %vm2023_vm2, 0, %v206_v34  ;;  %v416_v52 = vshll.u32 %v368_v39, 16  ;;  %v369_v59 = vsel %vm2023_vm2, %v217_v32, 0 }
  0x19   : > { %740 = vrot.lane.b32.xlu1 %v2066_v37, %s1994_s17  ;;  %v2080_v40 = vsel %vm2023_vm2, 0, %v220_v35  ;;  %v612_v41 = vrot.slane %v2072_v38, 1  ;;  %v399_v43 = vshll.u32 %v2072_v38, 16  ;;  %v397_v44 = vshrl.u32 %v2072_v38, 16 }
  0x1a   : > { %738 = vrot.lane.b32.xlu0 %v2072_v38, %s1994_s17  ;;  %v411_v46 = vshll.u32 %v2066_v37, 16  ;;  %v615_v50 = vrot.slane %v2066_v37, 1  ;;  %v409_v54 = vshrl.u32 %v2066_v37, 16  ;;  %v423_v56 = vshll.u32 %v2080_v40, 16 }
  0x1b   : > { %v401_v47 = vrot.slane %v399_v43, 1  ;;  %v614_v53 = vsel %vm608_vm3, %v612_v41, %v613_v42  ;;  %v406_v58 = vrot.slane %v404_v45, 1  ;;  %v418_v62 = vrot.slane %v416_v52, 1  ;;  %v1980_v43 = vld [vmem:[%s3262_s1] sm:$0xff]   ;;  %v156_v45 = vld [vmem:[%s2047_s14 + $0x58] sm:$0xff] }
  0x1c   : > { %v413_v55 = vrot.slane %v411_v46, 1  ;;  %v617_v61 = vsel %vm608_vm3, %v615_v50, %v616_v51  ;;  %v421_v0 = vshrl.u32 %v2080_v40, 16  ;;  %v425_v1 = vrot.slane %v423_v56, 1 }
  0x1d   : > { %836 = vrot.lane.b32.xlu1 %v2080_v40, %s1995_s18  ;;  %v402_v57 = vor.u32 %v401_v47, %v397_v44  ;;  %v428_v4 = vshll.u32 %v369_v59, 16  ;;  %v224_v11 = vrot.slane %v222_v6, 7  ;;  %v618_v19 = vrot.slane %v2080_v40, 1  ;;  %v155_v44 = vld [vmem:[%s2047_s14 + $0x50] sm:$0xff] }
  0x1e   : > { %834 = vrot.lane.b32.xlu0 %v2066_v37, %s1995_s18  ;;  %v414_v63 = vor.u32 %v413_v55, %v409_v54  ;;  %v426_v8 = vor.u32 %v425_v1, %v421_v0  ;;  %v619_v20 = vrot.slane %v369_v59, 1  ;;  %v229_v22 = vshrl.u32 %v181_v17, 16 }
  0x1f   : > { %v407_v5 = vsel %vm383_vm4, %v402_v57, %v406_v58  ;;  %v430_v9 = vrot.slane %v428_v4, 1  ;;  %v227_v16 = vor.u32 %v225_v12, %v224_v11  ;;  %v1265_v25 = vsel %vm1263_vm5, %v1976_v18, 0 }
  0x20   : > { %v419_v7 = vsel %vm383_vm4, %v414_v63, %v418_v62  ;;  %1906 = vmatpush3.bf16.msra.mxu0 %v1265_v25  ;;  %v620_v27 = vsel %vm608_vm3, %v618_v19, %v619_v20  ;;  %v370_v28 = vsel %vm2023_vm2, %v224_v11, 0  ;;  %v231_v29 = vrot.slane %v229_v22, 7  ;;  %1952 = vmatpush3.bf16.msra.mxu1 %v1265_v25  ;;  %v158_v62 = vld [vmem:[%s2047_s14 + $0x68] sm:$0xff]  ;;  %v159_v22 = vld [vmem:[%s2047_s14 + $0x70] sm:$0xff] }
  0x21   : > { %708 = vrot.lane.b32.xlu1 %v614_v53, %s1992_s15  ;;  %v2111_v15 = vsel %vm383_vm4, %v426_v8, %v430_v9  ;;  %v2122_v21 = vsel %vm2023_vm2, 0, %v227_v16  ;;  %v232_v30 = vshll.u32 %v181_v17, 16  ;;  %1907 = vmatprep.subr.bf16.mxu0 %v1977_v24  ;;  %v440_v34 = vshll.u32 %v370_v28, 16 }
  0x22   : > { %802 = vrot.lane.b32.xlu0 %v614_v53, %s1996_s19  ;;  %v435_v26 = vshll.u32 %v2122_v21, 16  ;;  %1948 = vmatprep.subr.bf16.mxu1 %v1977_v24  ;;  %v433_v32 = vshrl.u32 %v2122_v21, 16  ;;  %v621_v47 = vrot.slane %v2122_v21, 1  ;;  %v622_v48 = vrot.slane %v370_v28, 1 }
  0x23   : > { %v234_v35 = vor.u32 %v232_v30, %v231_v29  ;;  %v442_v41 = vrot.slane %v440_v34, 1  ;;  %v371_v50 = vsel %vm2023_vm2, %v231_v29, 0  ;;  %v182_v51 = vpack.c.bf16 %v156_v45, %v155_v44  ;;  %v161_v44 = vld [vmem:[%s2047_s14 + $0x80] sm:$0xff]  ;;  %v162_v45 = vld [vmem:[%s2047_s14 + $0x88] sm:$0xff] }
  0x24   : > { %v437_v33 = vrot.slane %v435_v26, 1  ;;  %1908 = vmatpush3.bf16.msra.mxu0 %v1977_v24  ;;  %1953 = vmatpush3.bf16.msra.mxu1 %v1977_v24  ;;  %v623_v52 = vsel %vm608_vm3, %v621_v47, %v622_v48  ;;  %v452_v55 = vshll.u32 %v371_v50, 16  ;;  %v160_v24 = vld [vmem:[%s2047_s14 + $0x78] sm:$0xff]  ;;  %v185_v48 = vpack.c.bf16 %v162_v45, %v161_v44 }
  0x25   : > { %804 = vrot.lane.b32.xlu1 %v617_v61, %s1996_s19  ;;  %1909 = vmatprep.subr.bf16.mxu0 %v1978_v31  ;;  %v2147_v42 = vsel %vm2023_vm2, 0, %v234_v35  ;;  %v236_v56 = vshrl.u32 %v182_v51, 16  ;;  %v239_v60 = vshll.u32 %v182_v51, 16  ;;  %v184_v30 = vpack.c.bf16 %v160_v24, %v159_v22 }
  0x26   : > { %676 = vrot.lane.b32.xlu0 %v407_v5, %s1993_s16  ;;  %1949 = vmatprep.subr.bf16.mxu1 %v1978_v31  ;;  %v438_v39 = vor.u32 %v437_v33, %v433_v32  ;;  %v447_v49 = vshll.u32 %v2147_v42, 16  ;;  %v445_v53 = vshrl.u32 %v2147_v42, 16  ;;  %v454_v58 = vrot.slane %v452_v55, 1 }
  0x27   : > { %v238_v59 = vrot.slane %v236_v56, 7  ;;  %v624_v4 = vrot.slane %v2147_v42, 1  ;;  %v250_v35 = vshrl.u32 %v184_v30, 16  ;;  %vm1230_vm14 = vcmask 588800  }
  0x28   : > { %1910 = vmatpush3.bf16.msra.mxu0 %v1978_v31  ;;  %1954 = vmatpush3.bf16.msra.mxu1 %v1978_v31  ;;  %v443_v46 = vsel %vm383_vm4, %v438_v39, %v442_v41  ;;  %v449_v54 = vrot.slane %v447_v49, 1 }
  0x29   : > { %772 = vrot.lane.b32.xlu1 %v419_v7, %s1997_s20  ;;  %1911 = vmatprep.subr.bf16.mxu0 %v1979_v36  ;;  %v241_v0 = vor.u32 %v239_v60, %v238_v59  ;;  %v372_v11 = vsel %vm2023_vm2, %v238_v59, 0  ;;  %v252_v41 = vrot.slane %v250_v35, 7 }
  0x2a   : > { %770 = vrot.lane.b32.xlu0 %v407_v5, %s1997_s20  ;;  %1950 = vmatprep.subr.bf16.mxu1 %v1979_v36  ;;  %v450_v57 = vor.u32 %v449_v54, %v445_v53  ;;  %v625_v5 = vrot.slane %v371_v50, 1  ;;  %v464_v16 = vshll.u32 %v372_v11, 16 }
  0x2b   : > { %v2182_v6 = vsel %vm2023_vm2, 0, %v241_v0  ;;  %v374_v55 = vsel %vm2023_vm2, %v252_v41, 0 }
  0x2c   : > { %1912 = vmatpush3.bf16.msra.mxu0 %v1979_v36  ;;  %1955 = vmatpush3.bf16.msra.mxu1 %v1979_v36  ;;  %v455_v63 = vsel %vm383_vm4, %v450_v57, %v454_v58  ;;  %v459_v8 = vshll.u32 %v2182_v6, 16  ;;  %v626_v9 = vsel %vm608_vm3, %v624_v4, %v625_v5  ;;  %v457_v14 = vshrl.u32 %v2182_v6, 16  ;;  %v164_v4 = vld [vmem:[%s2047_s14 + $0x98] sm:$0xff] }
  0x2d   : > { %868 = vrot.lane.b32.xlu1 %v2111_v15, %s1998_s21  ;;  %1913 = vmatprep.subr.bf16.mxu0 %v1980_v43  ;;  %v466_v19 = vrot.slane %v464_v16, 1  ;;  %v627_v26 = vrot.slane %v2182_v6, 1  ;;  %v260_v57 = vshll.u32 %v185_v48, 16  ;;  %v488_v60 = vshll.u32 %v374_v55, 16 }
  0x2e   : > { %866 = vrot.lane.b32.xlu0 %v419_v7, %s1998_s21  ;;  %1951 = vmatprep.subr.bf16.mxu1 %v1980_v43 }
  0x30   : > { %1914 = vmatpush3.bf16.msra.mxu0 %v1980_v43  ;;  %1956 = vmatpush3.bf16.msra.mxu1 %v1980_v43  ;;  %v253_v43 = vshll.u32 %v184_v30, 16 }
  0x31   : > { %678 = vrot.lane.b32.xlu1 %v419_v7, %s1993_s16 }
  0x32   : > { %898 = vrot.lane.b32.xlu0 %v617_v61, %s1999_s26  ;;  %v255_v47 = vor.u32 %v253_v43, %v252_v41 }
  0x34   : > { %v2228_v51 = vsel %vm2023_vm2, 0, %v255_v47 }
  0x35   : > { %680 = vrot.lane.b32.xlu1 %v2111_v15, %s1993_s16  ;;  %v483_v53 = vshll.u32 %v2228_v51, 16  ;;  %v481_v58 = vshrl.u32 %v2228_v51, 16 }
  0x36   : > { %900 = vrot.lane.b32.xlu0 %v620_v27, %s1999_s26 }
  0x37   : > { %v485_v59 = vrot.slane %v483_v53, 1 }
  0x39   : > { %712 = vrot.lane.b32.xlu1 %v620_v27, %s1992_s15 }
  0x3a   : > { %710 = vrot.lane.b32.xlu0 %v617_v61, %s1992_s15  ;;  %v157_v61 = vld [vmem:[%s2047_s14 + $0x60] sm:$0xff] }
  0x3b   : > { %v183_v1 = vpack.c.bf16 %v158_v62, %v157_v61  ;;  %v486_v62 = vor.u32 %v485_v59, %v481_v58 }
  0x3d   : > { %744 = vrot.lane.b32.xlu1 %v2122_v21, %s1994_s17  ;;  %v243_v7 = vshrl.u32 %v183_v1, 16  ;;  %v246_v13 = vshll.u32 %v183_v1, 16  ;;  %v163_v1 = vld [vmem:[%s2047_s14 + $0x90] sm:$0xff] }
  0x3e   : > { %742 = vrot.lane.b32.xlu0 %v2080_v40, %s1994_s17 }
  0x3f   : > { %v245_v12 = vrot.slane %v243_v7, 7  ;;  %v633_v7 = vrot.slane %v2228_v51, 1 }
  0x41   : > { %776 = vrot.lane.b32.xlu1 %v443_v46, %s1997_s20  ;;  %v248_v17 = vor.u32 %v246_v13, %v245_v12  ;;  %v373_v29 = vsel %vm2023_vm2, %v245_v12, 0  ;;  %v186_v12 = vpack.c.bf16 %v164_v4, %v163_v1 }
  0x42   : > { %774 = vrot.lane.b32.xlu0 %v2111_v15, %s1997_s20  ;;  %v461_v15 = vrot.slane %v459_v8, 1  ;;  %v476_v34 = vshll.u32 %v373_v29, 16  ;;  %v631_v50 = vrot.slane %v373_v29, 1  ;;  %v634_v8 = vrot.slane %v374_v55, 1 }
  0x43   : > { %v2197_v20 = vsel %vm2023_vm2, 0, %v248_v17  ;;  %v264_v17 = vshrl.u32 %v186_v12, 16 }
  0x44   : > { %v462_v18 = vor.u32 %v461_v15, %v457_v14  ;;  %v471_v28 = vshll.u32 %v2197_v20, 16  ;;  %v469_v32 = vshrl.u32 %v2197_v20, 16  ;;  %v478_v39 = vrot.slane %v476_v34, 1 }
  0x45   : > { %808 = vrot.lane.b32.xlu1 %v623_v52, %s1996_s19  ;;  %v630_v49 = vrot.slane %v2197_v20, 1  ;;  %v635_v13 = vsel %vm608_vm3, %v633_v7, %v634_v8  ;;  %v167_v8 = vld [vmem:[%s2047_s14 + $0xb0] sm:$0xff] }
  0x46   : > { %806 = vrot.lane.b32.xlu0 %v620_v27, %s1996_s19  ;;  %v467_v25 = vsel %vm383_vm4, %v462_v18, %v466_v19  ;;  %v628_v27 = vrot.slane %v372_v11, 1  ;;  %v473_v33 = vrot.slane %v471_v28, 1  ;;  %v166_v28 = vld [vmem:[%s2047_s14 + $0xa8] sm:$0xff] }
  0x47   : > { %v632_v54 = vsel %vm608_vm3, %v630_v49, %v631_v50 }
  0x48   : > { %v629_v31 = vsel %vm608_vm3, %v627_v26, %v628_v27  ;;  %v474_v36 = vor.u32 %v473_v33, %v469_v32  ;;  %v267_v26 = vshll.u32 %v186_v12, 16  ;;  %v165_v27 = vld [vmem:[%s2047_s14 + $0xa0] sm:$0xff] }
  0x49   : > { %840 = vrot.lane.b32.xlu1 %v2147_v42, %s1995_s18  ;;  %v187_v32 = vpack.c.bf16 %v166_v28, %v165_v27 }
  0x4a   : > { %838 = vrot.lane.b32.xlu0 %v2122_v21, %s1995_s18 }
  0x4b   : > { %v271_v41 = vshrl.u32 %v187_v32, 16  ;;  %v274_v49 = vshll.u32 %v187_v32, 16 }
  0x4d   : > { %872 = vrot.lane.b32.xlu1 %v455_v63, %s1998_s21 }
  0x4e   : > { %870 = vrot.lane.b32.xlu0 %v443_v46, %s1998_s21 }
  0x51   : > { %682 = vrot.lane.b32.xlu1 %v443_v46, %s1993_s16  ;;  %v479_v46 = vsel %vm383_vm4, %v474_v36, %v478_v39 }
  0x52   : > { %902 = vrot.lane.b32.xlu0 %v623_v52, %s1999_s26 }
  0x55   : > { %684 = vrot.lane.b32.xlu1 %v455_v63, %s1993_s16 }
  0x56   : > { %904 = vrot.lane.b32.xlu0 %v626_v9, %s1999_s26 }
  0x59   : > { %716 = vrot.lane.b32.xlu1 %v626_v9, %s1992_s15 }
  0x5a   : > { %714 = vrot.lane.b32.xlu0 %v623_v52, %s1992_s15  ;;  %v257_v52 = vshrl.u32 %v185_v48, 16  ;;  %v273_v48 = vrot.slane %v271_v41, 7 }
  0x5c   : > { %v259_v56 = vrot.slane %v257_v52, 7 }
  0x5d   : > { %748 = vrot.lane.b32.xlu1 %v2182_v6, %s1994_s17 }
  0x5e   : > { %746 = vrot.lane.b32.xlu0 %v2147_v42, %s1994_s17  ;;  %v262_v61 = vor.u32 %v260_v57, %v259_v56  ;;  %v375_v11 = vsel %vm2023_vm2, %v259_v56, 0  ;;  %v276_v56 = vor.u32 %v274_v49, %v273_v48 }
  0x5f   : > { %v500_v16 = vshll.u32 %v375_v11, 16  ;;  %v637_v36 = vrot.slane %v375_v11, 1 }
  0x60   : > { %v2243_v0 = vsel %vm2023_vm2, 0, %v262_v61  ;;  %v2305_v4 = vsel %vm2023_vm2, 0, %v276_v56 }
  0x61   : > { %780 = vrot.lane.b32.xlu1 %v467_v25, %s1997_s20  ;;  %v493_v14 = vshrl.u32 %v2243_v0, 16  ;;  %v502_v24 = vrot.slane %v500_v16, 1  ;;  %v636_v35 = vrot.slane %v2243_v0, 1  ;;  %v519_v16 = vshll.u32 %v2305_v4, 16 }
  0x62   : > { %778 = vrot.lane.b32.xlu0 %v455_v63, %s1997_s20  ;;  %v490_v63 = vrot.slane %v488_v60, 1  ;;  %v517_v28 = vshrl.u32 %v2305_v4, 16 }
  0x64   : > { %v491_v5 = vsel %vm383_vm4, %v486_v62, %v490_v63 }
  0x65   : > { %812 = vrot.lane.b32.xlu1 %v629_v31, %s1996_s19 }
  0x66   : > { %810 = vrot.lane.b32.xlu0 %v626_v9, %s1996_s19  ;;  %v495_v9 = vshll.u32 %v2243_v0, 16 }
  0x68   : > { %v497_v15 = vrot.slane %v495_v9, 1  ;;  %v168_v9 = vld [vmem:[%s2047_s14 + $0xb8] sm:$0xff] }
  0x69   : > { %844 = vrot.lane.b32.xlu1 %v2197_v20, %s1995_s18 }
  0x6a   : > { %842 = vrot.lane.b32.xlu0 %v2182_v6, %s1995_s18  ;;  %v498_v22 = vor.u32 %v497_v15, %v493_v14 }
  0x6c   : > { %v2269_v29 = vsel %vm383_vm4, %v498_v22, %v502_v24  ;;  %v188_v22 = vpack.c.bf16 %v168_v9, %v167_v8 }
  0x6d   : > { %876 = vrot.lane.b32.xlu1 %v479_v46, %s1998_s21 }
  0x6e   : > { %874 = vrot.lane.b32.xlu0 %v467_v25, %s1998_s21 }
  0x71   : > { %686 = vrot.lane.b32.xlu1 %v467_v25, %s1993_s16  ;;  %v266_v25 = vrot.slane %v264_v17, 7 }
  0x72   : > { %906 = vrot.lane.b32.xlu0 %v629_v31, %s1999_s26 }
  0x73   : > { %v376_v47 = vsel %vm2023_vm2, %v266_v25, 0 }
  0x75   : > { %688 = vrot.lane.b32.xlu1 %v479_v46, %s1993_s16 }
  0x76   : > { %908 = vrot.lane.b32.xlu0 %v632_v54, %s1999_s26 }
  0x79   : > { %720 = vrot.lane.b32.xlu1 %v632_v54, %s1992_s15 }
  0x7a   : > { %718 = vrot.lane.b32.xlu0 %v629_v31, %s1992_s15  ;;  %v269_v31 = vor.u32 %v267_v26, %v266_v25 }
  0x7c   : > { %v2279_v39 = vsel %vm2023_vm2, 0, %v269_v31 }
  0x7d   : > { %752 = vrot.lane.b32.xlu1 %v2228_v51, %s1994_s17  ;;  %v507_v44 = vshll.u32 %v2279_v39, 16  ;;  %v505_v52 = vshrl.u32 %v2279_v39, 16  ;;  %v639_v12 = vrot.slane %v2279_v39, 1 }
  0x7e   : > { %750 = vrot.lane.b32.xlu0 %v2197_v20, %s1994_s17 }
  0x7f   : > { %v509_v53 = vrot.slane %v507_v44, 1 }
  0x81   : > { %784 = vrot.lane.b32.xlu1 %v491_v5, %s1997_s20  ;;  %v510_v61 = vor.u32 %v509_v53, %v505_v52  ;;  %v169_v52 = vld [vmem:[%s2047_s14 + $0xc0] sm:$0xff] }
  0x82   : > { %782 = vrot.lane.b32.xlu0 %v479_v46, %s1997_s20  ;;  %v2285_v46 = vsel %vm608_vm3, %v636_v35, %v637_v36 }
  0x84   : > { %v707_v18 = vpop.permute.xlu1 %706 }
  0x85   : > { %816 = vrot.lane.b32.xlu1 %v635_v13, %s1996_s19 }
  0x86   : > { %814 = vrot.lane.b32.xlu0 %v632_v54, %s1996_s19  ;;  %v512_v54 = vshll.u32 %v376_v47, 16 }
  0x88   : > { %v675_v19 = vpop.permute.xlu0 %674  ;;  %v514_v62 = vrot.slane %v512_v54, 1 }
  0x89   : > { %848 = vrot.lane.b32.xlu1 %v2243_v0, %s1995_s18  ;;  %v932_v57 = vsel %vm930_vm6, %v2029_v3, %v675_v19  ;;  %v377_v19 = vsel %vm2023_vm2, %v273_v48, 0  ;;  %v281_v48 = vshll.u32 %v188_v22, 16 }
  0x8a   : > { %846 = vrot.lane.b32.xlu0 %v2228_v51, %s1995_s18  ;;  %v965_v63 = vsel %vm963_vm7, %v932_v57, %v707_v18  ;;  %v515_v15 = vsel %vm383_vm4, %v510_v61, %v514_v62  ;;  %v524_v31 = vshll.u32 %v377_v19, 16 }
  0x8b   : > { %v741_v30 = vpop.permute.xlu1 %740 }
  0x8c   : > { %v739_v33 = vpop.permute.xlu0 %738  ;;  %v526_v44 = vrot.slane %v524_v31, 1 }
  0x8d   : > { %880 = vrot.lane.b32.xlu1 %v2269_v29, %s1998_s21 }
  0x8e   : > { %878 = vrot.lane.b32.xlu0 %v491_v5, %s1998_s21 }
  0x8f   : > { %v2274_v34 = vpop.permute.xlu1 %836 }
  0x90   : > { %v835_v43 = vpop.permute.xlu0 %834 }
  0x91   : > { %690 = vrot.lane.b32.xlu1 %v491_v5, %s1993_s16 }
  0x92   : > { %910 = vrot.lane.b32.xlu0 %v635_v13, %s1999_s26 }
  0x93   : > { %v709_v45 = vpop.permute.xlu1 %708 }
  0x94   : > { %v803_v50 = vpop.permute.xlu0 %802 }
  0x95   : > { %692 = vrot.lane.b32.xlu1 %v2269_v29, %s1993_s16 }
  0x96   : > { %912 = vrot.lane.b32.xlu0 %v2285_v46, %s1999_s26 }
  0x97   : > { %v805_v55 = vpop.permute.xlu1 %804 }
  0x98   : > { %v677_v58 = vpop.permute.xlu0 %676 }
  0x99   : > { %v934_v59 = vsel %vm930_vm6, %v2072_v38, %v677_v58  ;;  %724 = vrot.lane.b32.xlu1 %v2285_v46, %s1992_s15  ;;  %v998_v38 = vsel %vm996_vm8, %v965_v63, %v739_v33  ;;  %v278_v33 = vshrl.u32 %v188_v22, 16 }
  0x9a   : > { %v967_v60 = vsel %vm963_vm7, %v934_v59, %v709_v45  ;;  %722 = vrot.lane.b32.xlu0 %v635_v13, %s1992_s15  ;;  %v640_v13 = vrot.slane %v376_v47, 1  ;;  %v642_v59 = vrot.slane %v2305_v4, 1 }
  0x9b   : > { %v773_v1 = vpop.permute.xlu1 %772  ;;  %v1000_v5 = vsel %vm996_vm8, %v967_v60, %v741_v30  ;;  %v521_v30 = vrot.slane %v519_v16, 1  ;;  %v280_v47 = vrot.slane %v278_v33, 7  ;;  %v643_v60 = vrot.slane %v377_v19, 1 }
  0x9c   : > { %v771_v7 = vpop.permute.xlu0 %770  ;;  %v1033_v17 = vsel %vm1029_vm9, %v1000_v5, %v773_v1  ;;  %v641_v26 = vsel %vm608_vm3, %v639_v12, %v640_v13 }
  0x9d   : > { %v1031_v11 = vsel %vm1029_vm9, %v998_v38, %v771_v7  ;;  %756 = vrot.lane.b32.xlu1 %v2279_v39, %s1994_s17  ;;  %v1066_v27 = vsel %vm1062_vm10, %v1033_v17, %v805_v55  ;;  %v283_v55 = vor.u32 %v281_v48, %v280_v47  ;;  %v644_v5 = vsel %vm608_vm3, %v642_v59, %v643_v60 }
  0x9e   : > { %v1064_v14 = vsel %vm1062_vm10, %v1031_v11, %v803_v50  ;;  %754 = vrot.lane.b32.xlu0 %v2243_v0, %s1994_s17  ;;  %v1099_v41 = vsel %vm1095_vm11, %v1066_v27, %v2274_v34  ;;  %v170_v34 = vld [vmem:[%s2047_s14 + $0xc8] sm:$0xff]  ;;  %v378_v7 = vsel %vm2023_vm2, %v280_v47, 0  ;;  %v171_v27 = vld [vmem:[%s2047_s14 + $0xd0] sm:$0xff] }
  0x9f   : > { %v869_v18 = vpop.permute.xlu1 %868  ;;  %v1097_v25 = vsel %vm1095_vm11, %v1064_v14, %v835_v43  ;;  %v522_v43 = vor.u32 %v521_v30, %v517_v28  ;;  %v189_v56 = vpack.c.bf16 %v170_v34, %v169_v52  ;;  %v2357_v61 = vsel %vm2023_vm2, 0, %v283_v55  ;;  %v172_v28 = vld [vmem:[%s2047_s14 + $0xd8] sm:$0xff] }
  0xa0   : > { %v867_v24 = vpop.permute.xlu0 %866  ;;  %v1132_v49 = vsel %vm1128_vm12, %v1099_v41, %v869_v18  ;;  %v531_v1 = vshll.u32 %v2357_v61, 16  ;;  %v529_v12 = vshrl.u32 %v2357_v61, 16  ;;  %v536_v14 = vshll.u32 %v378_v7, 16 }
  0xa1   : > { %788 = vrot.lane.b32.xlu1 %v515_v15, %s1997_s20  ;;  %v1130_v35 = vsel %vm1128_vm12, %v1097_v25, %v867_v24  ;;  %v285_v62 = vshrl.u32 %v189_v56, 16  ;;  %v288_v9 = vshll.u32 %v189_v56, 16  ;;  %v645_v30 = vrot.slane %v2357_v61, 1 }
  0xa2   : > { %786 = vrot.lane.b32.xlu0 %v2269_v29, %s1997_s20  ;;  %v533_v13 = vrot.slane %v531_v1, 1  ;;  %v538_v19 = vrot.slane %v536_v14, 1  ;;  %v646_v31 = vrot.slane %v378_v7, 1 }
  0xa3   : > { %v2330_v32 = vpop.permute.xlu1 %678  ;;  %v287_v8 = vrot.slane %v285_v62, 7 }
  0xa4   : > { %v899_v36 = vpop.permute.xlu0 %898  ;;  %v534_v18 = vor.u32 %v533_v13, %v529_v12  ;;  %v647_v52 = vsel %vm608_vm3, %v645_v30, %v646_v31  ;;  %v174_v12 = vld [vmem:[%s2047_s14 + $0xe8] sm:$0xff] }
  0xa5   : > { %820 = vrot.lane.b32.xlu1 %v641_v26, %s1996_s19  ;;  %v1163_v29 = vsel %vm1161_vm13, %v1130_v35, %v899_v36  ;;  %v290_v16 = vor.u32 %v288_v9, %v287_v8  ;;  %v379_v35 = vsel %vm2023_vm2, %v287_v8, 0 }
  0xa6   : > { %818 = vrot.lane.b32.xlu0 %v2285_v46, %s1996_s19  ;;  %1915 = vmatprep.mubr.msk.bf16.mxu0 %vm1230_vm14, %v1163_v29  ;;  %v527_v46 = vsel %vm383_vm4, %v522_v43, %v526_v44  ;;  %v539_v33 = vsel %vm383_vm4, %v534_v18, %v538_v19  ;;  %v190_v43 = vpack.c.bf16 %v172_v28, %v171_v27 }
  0xa7   : > { %v2340_v45 = vpop.permute.xlu1 %680  ;;  %v2372_v24 = vsel %vm2023_vm2, 0, %v290_v16 }
  0xa8   : > { %v901_v50 = vpop.permute.xlu0 %900  ;;  %v543_v36 = vshll.u32 %v2372_v24, 16  ;;  %v295_v8 = vshll.u32 %v190_v43, 16  ;;  %v648_v19 = vrot.slane %v2372_v24, 1 }
  0xa9   : > { %v1165_v53 = vsel %vm1161_vm13, %v1132_v49, %v901_v50  ;;  %852 = vrot.lane.b32.xlu1 %v2305_v4, %s1995_s18  ;;  %v938_v49 = vsel %vm930_vm6, %v2080_v40, %v2340_v45 }
  0xaa   : > { %850 = vrot.lane.b32.xlu0 %v2279_v39, %s1995_s18  ;;  %1916 = vmatmul.mubr.msk.bf16.vlgmr.msra.gmra.mxu0 %vm1230_vm14, %v1165_v53  ;;  %v545_v34 = vrot.slane %v543_v36, 1 }
  0xab   : > { %v713_v54 = vpop.permute.xlu1 %712 }
  0xac   : > { %v711_v57 = vpop.permute.xlu0 %710  ;;  %v971_v53 = vsel %vm963_vm7, %v938_v49, %v713_v54 }
  0xad   : > { %884 = vrot.lane.b32.xlu1 %v527_v46, %s1998_s21 }
  0xae   : > { %882 = vrot.lane.b32.xlu0 %v515_v15, %s1998_s21 }
  0xaf   : > { %v745_v58 = vpop.permute.xlu1 %744 }
  0xb0   : > { %v743_v63 = vpop.permute.xlu0 %742  ;;  %v1004_v59 = vsel %vm996_vm8, %v971_v53, %v745_v58 }
  0xb1   : > { %694 = vrot.lane.b32.xlu1 %v515_v15, %s1993_s16 }
  0xb2   : > { %914 = vrot.lane.b32.xlu0 %v641_v26, %s1999_s26 }
  0xb3   : > { %v777_v38 = vpop.permute.xlu1 %776 }
  0xb4   : > { %v775_v11 = vpop.permute.xlu0 %774  ;;  %v1037_v45 = vsel %vm1029_vm9, %v1004_v59, %v777_v38 }
  0xb5   : > { %696 = vrot.lane.b32.xlu1 %v527_v46, %s1993_s16 }
  0xb6   : > { %916 = vrot.lane.b32.xlu0 %v644_v5, %s1999_s26 }
  0xb7   : > { %v809_v15 = vpop.permute.xlu1 %808 }
  0xb8   : > { %v807_v17 = vpop.permute.xlu0 %806  ;;  %v1070_v54 = vsel %vm1062_vm10, %v1037_v45, %v809_v15 }
  0xb9   : > { %728 = vrot.lane.b32.xlu1 %v644_v5, %s1992_s15 }
  0xba   : > { %726 = vrot.lane.b32.xlu0 %v641_v26, %s1992_s15  ;;  %v936_v26 = vsel %vm930_vm6, %v2066_v37, %v2330_v32  ;;  %v541_v37 = vshrl.u32 %v2372_v24, 16  ;;  %v548_v32 = vshll.u32 %v379_v35, 16 }
  0xbb   : > { %v841_v22 = vpop.permute.xlu1 %840  ;;  %v969_v41 = vsel %vm963_vm7, %v936_v26, %v711_v57  ;;  %v292_v57 = vshrl.u32 %v190_v43, 16 }
  0xbc   : > { %v839_v25 = vpop.permute.xlu0 %838  ;;  %v1002_v44 = vsel %vm996_vm8, %v969_v41, %v743_v63  ;;  %v546_v62 = vor.u32 %v545_v34, %v541_v37  ;;  %v550_v63 = vrot.slane %v548_v32, 1  ;;  %v1103_v58 = vsel %vm1095_vm11, %v1070_v54, %v841_v22 }
  0xbd   : > { %760 = vrot.lane.b32.xlu1 %v2357_v61, %s1994_s17  ;;  %v1035_v48 = vsel %vm1029_vm9, %v1002_v44, %v775_v11  ;;  %v294_v7 = vrot.slane %v292_v57, 7  ;;  %v173_v11 = vld [vmem:[%s2047_s14 + $0xe0] sm:$0xff]  ;;  %v649_v22 = vrot.slane %v379_v35, 1  ;;  %v176_v57 = vld [vmem:[%s2047_s14 + $0xf8] sm:$0xff] }
  0xbe   : > { %758 = vrot.lane.b32.xlu0 %v2305_v4, %s1994_s17  ;;  %v1068_v50 = vsel %vm1062_vm10, %v1035_v48, %v807_v17  ;;  %v191_v16 = vpack.c.bf16 %v174_v12, %v173_v11 }
  0xbf   : > { %v873_v29 = vpop.permute.xlu1 %872  ;;  %v1101_v55 = vsel %vm1095_vm11, %v1068_v50, %v839_v25  ;;  %v297_v15 = vor.u32 %v295_v8, %v294_v7  ;;  %v650_v26 = vsel %vm608_vm3, %v648_v19, %v649_v22  ;;  %v380_v36 = vsel %vm2023_vm2, %v294_v7, 0 }
  0xc0   : > { %v871_v47 = vpop.permute.xlu0 %870  ;;  %v1136_v38 = vsel %vm1128_vm12, %v1103_v58, %v873_v29  ;;  %v299_v27 = vshrl.u32 %v191_v16, 16  ;;  %v302_v35 = vshll.u32 %v191_v16, 16  ;;  %v560_v44 = vshll.u32 %v380_v36, 16 }
  0xc1   : > { %792 = vrot.lane.b32.xlu1 %v539_v33, %s1997_s20  ;;  %v1134_v60 = vsel %vm1128_vm12, %v1101_v55, %v871_v47  ;;  %v2429_v25 = vsel %vm2023_vm2, 0, %v297_v15  ;;  %v175_v55 = vld [vmem:[%s2047_s14 + $0xf0] sm:$0xff] }
  0xc2   : > { %790 = vrot.lane.b32.xlu0 %v527_v46, %s1997_s20  ;;  %v555_v30 = vshll.u32 %v2429_v25, 16  ;;  %v301_v41 = vrot.slane %v299_v27, 7  ;;  %v562_v49 = vrot.slane %v560_v44, 1  ;;  %v651_v59 = vrot.slane %v2429_v25, 1 }
  0xc3   : > { %v2401_v56 = vpop.permute.xlu1 %682 }
  0xc4   : > { %v903_v40 = vpop.permute.xlu0 %902  ;;  %v557_v43 = vrot.slane %v555_v30, 1  ;;  %v304_v48 = vor.u32 %v302_v35, %v301_v41 }
  0xc5   : > { %v1167_v46 = vsel %vm1161_vm13, %v1134_v60, %v903_v40  ;;  %824 = vrot.lane.b32.xlu1 %v647_v52, %s1996_s19  ;;  %v652_v60 = vrot.slane %v380_v36, 1 }
  0xc6   : > { %822 = vrot.lane.b32.xlu0 %v644_v5, %s1996_s19  ;;  %1919 = vmatprep.mubr.msk.bf16.mxu0 %vm1230_vm14, %v1167_v46  ;;  %v551_v5 = vsel %vm383_vm4, %v546_v62, %v550_v63  ;;  %v2444_v34 = vsel %vm2023_vm2, 0, %v304_v48  ;;  %v381_v62 = vsel %vm2023_vm2, %v301_v41, 0  ;;  %v192_v63 = vpack.c.bf16 %v176_v57, %v175_v55 }
  0xc7   : > { %v2412_v1 = vpop.permute.xlu1 %684  ;;  %v567_v45 = vshll.u32 %v2444_v34, 16  ;;  %v572_v12 = vshll.u32 %v381_v62, 16  ;;  %v654_v48 = vrot.slane %v2444_v34, 1 }
  0xc8   : > { %v905_v9 = vpop.permute.xlu0 %904  ;;  %v309_v41 = vshll.u32 %v192_v63, 16 }
  0xc9   : > { %v1169_v13 = vsel %vm1161_vm13, %v1136_v38, %v905_v9  ;;  %856 = vrot.lane.b32.xlu1 %v2372_v24, %s1995_s18  ;;  %v942_v38 = vsel %vm930_vm6, %v2147_v42, %v2412_v1  ;;  %v569_v11 = vrot.slane %v567_v45, 1 }
  0xca   : > { %854 = vrot.lane.b32.xlu0 %v2357_v61, %s1995_s18  ;;  %1920 = vmatmul.mubr.msk.bf16.gmra.mxu0 %vm1230_vm14, %v1169_v13 }
  0xcb   : > { %v717_v14 = vpop.permute.xlu1 %716 }
  0xcc   : > { %v715_v17 = vpop.permute.xlu0 %714  ;;  %v975_v13 = vsel %vm963_vm7, %v942_v38, %v717_v14  ;;  %v574_v14 = vrot.slane %v572_v12, 1 }
  0xcd   : > { %888 = vrot.lane.b32.xlu1 %v551_v5, %s1998_s21 }
  0xce   : > { %886 = vrot.lane.b32.xlu0 %v539_v33, %s1998_s21 }
  0xcf   : > { %v749_v18 = vpop.permute.xlu1 %748 }
  0xd0   : > { %v747_v28 = vpop.permute.xlu0 %746  ;;  %v1008_v19 = vsel %vm996_vm8, %v975_v13, %v749_v18 }
  0xd1   : > { %698 = vrot.lane.b32.xlu1 %v539_v33, %s1993_s16  ;;  %v553_v33 = vshrl.u32 %v2429_v25, 16 }
  0xd2   : > { %918 = vrot.lane.b32.xlu0 %v647_v52, %s1999_s26 }
  0xd3   : > { %v781_v31 = vpop.permute.xlu1 %780  ;;  %v558_v32 = vor.u32 %v557_v43, %v553_v33 }
  0xd4   : > { %v779_v29 = vpop.permute.xlu0 %778 }
  0xd5   : > { %700 = vrot.lane.b32.xlu1 %v551_v5, %s1993_s16  ;;  %v563_v40 = vsel %vm383_vm4, %v558_v32, %v562_v49 }
  0xd6   : > { %920 = vrot.lane.b32.xlu0 %v650_v26, %s1999_s26 }
  0xd7   : > { %v813_v47 = vpop.permute.xlu1 %812 }
  0xd8   : > { %v811_v37 = vpop.permute.xlu0 %810 }
  0xd9   : > { %732 = vrot.lane.b32.xlu1 %v650_v26, %s1992_s15 }
  0xda   : > { %730 = vrot.lane.b32.xlu0 %v647_v52, %s1992_s15  ;;  %v940_v52 = vsel %vm930_vm6, %v2122_v21, %v2401_v56  ;;  %v653_v21 = vsel %vm608_vm3, %v651_v59, %v652_v60  ;;  %v565_v56 = vshrl.u32 %v2444_v34, 16 }
  0xdb   : > { %v845_v50 = vpop.permute.xlu1 %844  ;;  %v973_v46 = vsel %vm963_vm7, %v940_v52, %v715_v17  ;;  %v306_v17 = vshrl.u32 %v192_v63, 16 }
  0xdc   : > { %v843_v53 = vpop.permute.xlu0 %842  ;;  %v1006_v58 = vsel %vm996_vm8, %v973_v46, %v747_v28  ;;  %v1041_v28 = vsel %vm1029_vm9, %v1008_v19, %v781_v31 }
  0xdd   : > { %764 = vrot.lane.b32.xlu1 %v2429_v25, %s1994_s17  ;;  %v1039_v8 = vsel %vm1029_vm9, %v1006_v58, %v779_v29  ;;  %v1074_v1 = vsel %vm1062_vm10, %v1041_v28, %v813_v47  ;;  %v308_v36 = vrot.slane %v306_v17, 7 }
  0xde   : > { %762 = vrot.lane.b32.xlu0 %v2372_v24, %s1994_s17  ;;  %v1072_v9 = vsel %vm1062_vm10, %v1039_v8, %v811_v37  ;;  %v1107_v30 = vsel %vm1095_vm11, %v1074_v1, %v845_v50  ;;  %v655_v37 = vrot.slane %v381_v62, 1 }
  0xdf   : > { %v877_v54 = vpop.permute.xlu1 %876  ;;  %v1105_v15 = vsel %vm1095_vm11, %v1072_v9, %v843_v53  ;;  %v311_v43 = vor.u32 %v309_v41, %v308_v36  ;;  %v382_v57 = vsel %vm2023_vm2, %v308_v36, 0 }
  0xe0   : > { %v875_v7 = vpop.permute.xlu0 %874  ;;  %v1140_v35 = vsel %vm1128_vm12, %v1107_v30, %v877_v54  ;;  %v656_v55 = vsel %vm608_vm3, %v654_v48, %v655_v37  ;;  %v665_v45 = vshll.u32 %v382_v57, 16 }
  0xe1   : > { %796 = vrot.lane.b32.xlu1 %v563_v40, %s1997_s20  ;;  %v1138_v22 = vsel %vm1128_vm12, %v1105_v15, %v875_v7  ;;  %v365_v32 = vsel %vm2023_vm2, 0, %v311_v43 }
  0xe2   : > { %794 = vrot.lane.b32.xlu0 %v551_v5, %s1997_s20  ;;  %v570_v5 = vor.u32 %v569_v11, %v565_v56  ;;  %v660_v50 = vshll.u32 %v365_v32, 16  ;;  %v658_v60 = vshrl.u32 %v365_v32, 16  ;;  %v667_v62 = vrot.slane %v665_v45, 1 }
  0xe3   : > { %v687_v16 = vpop.permute.xlu1 %686  ;;  %v671_v8 = vrot.slane %v365_v32, 1  ;;  %v672_v56 = vrot.slane %v382_v57, 1 }
  0xe4   : > { %v907_v27 = vpop.permute.xlu0 %906  ;;  %v662_v52 = vrot.slane %v660_v50, 1  ;;  %v944_v2 = vsel %vm930_vm6, %v2182_v6, %v687_v16 }
  0xe5   : > { %v1171_v42 = vsel %vm1161_vm13, %v1138_v22, %v907_v27  ;;  %828 = vrot.lane.b32.xlu1 %v653_v21, %s1996_s19  ;;  %v673_v15 = vsel %vm608_vm3, %v671_v8, %v672_v56 }
  0xe6   : > { %826 = vrot.lane.b32.xlu0 %v650_v26, %s1996_s19  ;;  %1923 = vmatprep.mubr.msk.bf16.mxu0 %vm1230_vm14, %v1171_v42  ;;  %v575_v26 = vsel %vm383_vm4, %v570_v5, %v574_v14 }
  0xe7   : > { %v689_v18 = vpop.permute.xlu1 %688 }
  0xe8   : > { %v909_v31 = vpop.permute.xlu0 %908  ;;  %v946_v6 = vsel %vm930_vm6, %v2197_v20, %v689_v18 }
  0xe9   : > { %v1173_v29 = vsel %vm1161_vm13, %v1140_v35, %v909_v31  ;;  %860 = vrot.lane.b32.xlu1 %v2444_v34, %s1995_s18 }
  0xea   : > { %858 = vrot.lane.b32.xlu0 %v2429_v25, %s1995_s18  ;;  %1924 = vmatmul.mubr.msk.bf16.gmra.mxu0 %vm1230_vm14, %v1173_v29 }
  0xeb   : > { %v721_v33 = vpop.permute.xlu1 %720 }
  0xec   : > { %v719_v44 = vpop.permute.xlu0 %718  ;;  %v979_v16 = vsel %vm963_vm7, %v946_v6, %v721_v33 }
  0xed   : > { %892 = vrot.lane.b32.xlu1 %v575_v26, %s1998_s21  ;;  %v977_v38 = vsel %vm963_vm7, %v944_v2, %v719_v44 }
  0xee   : > { %890 = vrot.lane.b32.xlu0 %v563_v40, %s1998_s21 }
  0xef   : > { %v753_v47 = vpop.permute.xlu1 %752 }
  0xf0   : > { %v751_v49 = vpop.permute.xlu0 %750  ;;  %v1012_v22 = vsel %vm996_vm8, %v979_v16, %v753_v47 }
  0xf1   : > { %702 = vrot.lane.b32.xlu1 %v563_v40, %s1993_s16  ;;  %v663_v40 = vor.u32 %v662_v52, %v658_v60 }
  0xf2   : > { %922 = vrot.lane.b32.xlu0 %v653_v21, %s1999_s26 }
  0xf3   : > { %v785_v53 = vpop.permute.xlu1 %784  ;;  %v668_v7 = vsel %vm383_vm4, %v663_v40, %v667_v62 }
  0xf4   : > { %v783_v59 = vpop.permute.xlu0 %782  ;;  %v1045_v42 = vsel %vm1029_vm9, %v1012_v22, %v785_v53 }
  0xf5   : > { %704 = vrot.lane.b32.xlu1 %v575_v26, %s1993_s16 }
  0xf6   : > { %924 = vrot.lane.b32.xlu0 %v656_v55, %s1999_s26 }
  0xf7   : > { %v817_v46 = vpop.permute.xlu1 %816 }
  0xf8   : > { %v815_v54 = vpop.permute.xlu0 %814  ;;  %v1078_v1 = vsel %vm1062_vm10, %v1045_v42, %v817_v46 }
  0xf9   : > { %736 = vrot.lane.b32.xlu1 %v656_v55, %s1992_s15 }
  0xfa   : > { %734 = vrot.lane.b32.xlu0 %v653_v21, %s1992_s15  ;;  %v1010_v21 = vsel %vm996_vm8, %v977_v38, %v751_v49 }
  0xfb   : > { %v849_v63 = vpop.permute.xlu1 %848  ;;  %v1043_v12 = vsel %vm1029_vm9, %v1010_v21, %v783_v59 }
  0xfc   : > { %v847_v58 = vpop.permute.xlu0 %846  ;;  %v1076_v13 = vsel %vm1062_vm10, %v1043_v12, %v815_v54  ;;  %v1111_v5 = vsel %vm1095_vm11, %v1078_v1, %v849_v63 }
  0xfd   : > { %768 = vrot.lane.b32.xlu1 %v365_v32, %s1994_s17  ;;  %v1109_v17 = vsel %vm1095_vm11, %v1076_v13, %v847_v58 }
  0xfe   : > { %766 = vrot.lane.b32.xlu0 %v2444_v34, %s1994_s17 }
  0xff   : > { %v881_v9 = vpop.permute.xlu1 %880 }
 0x100   : > { %v879_v11 = vpop.permute.xlu0 %878  ;;  %v1144_v30 = vsel %vm1128_vm12, %v1111_v5, %v881_v9 }
 0x101   : > { %800 = vrot.lane.b32.xlu1 %v668_v7, %s1997_s20  ;;  %v1142_v27 = vsel %vm1128_vm12, %v1109_v17, %v879_v11 }
 0x102   : > { %798 = vrot.lane.b32.xlu0 %v575_v26, %s1997_s20 }
 0x103   : > { %v691_v19 = vpop.permute.xlu1 %690 }
 0x104   : > { %v911_v28 = vpop.permute.xlu0 %910  ;;  %v948_v48 = vsel %vm930_vm6, %v2228_v51, %v691_v19 }
 0x105   : > { %v1175_v20 = vsel %vm1161_vm13, %v1142_v27, %v911_v28  ;;  %832 = vrot.lane.b32.xlu1 %v673_v15, %s1996_s19 }
 0x106   : > { %830 = vrot.lane.b32.xlu0 %v656_v55, %s1996_s19  ;;  %1927 = vmatprep.mubr.msk.bf16.mxu0 %vm1230_vm14, %v1175_v20 }
 0x107   : > { %v693_v14 = vpop.permute.xlu1 %692 }
 0x108   : > { %v913_v18 = vpop.permute.xlu0 %912 }
 0x109   : > { %v1177_v36 = vsel %vm1161_vm13, %v1144_v30, %v913_v18  ;;  %864 = vrot.lane.b32.xlu1 %v2029_v3, %s1995_s18 }
 0x10a   : > { %862 = vrot.lane.b32.xlu0 %v365_v32, %s1995_s18  ;;  %1928 = vmatmul.mubr.msk.bf16.gmra.mxu0 %vm1230_vm14, %v1177_v36 }
 0x10b   : > { %v725_v41 = vpop.permute.xlu1 %724 }
 0x10c   : > { %v723_v35 = vpop.permute.xlu0 %722 }
 0x10d   : > { %896 = vrot.lane.b32.xlu1 %v2058_v23, %s1998_s21  ;;  %v981_v23 = vsel %vm963_vm7, %v948_v48, %v723_v35 }
 0x10e   : > { %894 = vrot.lane.b32.xlu0 %v668_v7, %s1998_s21 }
 0x10f   : > { %v757_v31 = vpop.permute.xlu1 %756 }
 0x110   : > { %v755_v29 = vpop.permute.xlu0 %754 }
 0x111   : > { %928 = vrot.lane.b32.xlu1 %v2040_v10, %s1999_s26  ;;  %v1014_v32 = vsel %vm996_vm8, %v981_v23, %v755_v29  ;;  %v950_v10 = vsel %vm930_vm6, %v2243_v0, %v693_v14 }
 0x112   : > { %926 = vrot.lane.b32.xlu0 %v673_v15, %s1999_s26  ;;  %v983_v55 = vsel %vm963_vm7, %v950_v10, %v725_v41 }
 0x113   : > { %v789_v26 = vpop.permute.xlu1 %788  ;;  %v1016_v51 = vsel %vm996_vm8, %v983_v55, %v757_v31 }
 0x114   : > { %v787_v3 = vpop.permute.xlu0 %786  ;;  %v1049_v45 = vsel %vm1029_vm9, %v1016_v51, %v789_v26 }
 0x115   : > { %v1047_v50 = vsel %vm1029_vm9, %v1014_v32, %v787_v3 }
 0x117   : > { %v821_v33 = vpop.permute.xlu1 %820 }
 0x118   : > { %v819_v43 = vpop.permute.xlu0 %818  ;;  %v1082_v54 = vsel %vm1062_vm10, %v1049_v45, %v821_v33 }
 0x119   : > { %v1080_v53 = vsel %vm1062_vm10, %v1047_v50, %v819_v43 }
 0x11b   : > { %v853_v44 = vpop.permute.xlu1 %852 }
 0x11c   : > { %v851_v47 = vpop.permute.xlu0 %850  ;;  %v1115_v0 = vsel %vm1095_vm11, %v1082_v54, %v853_v44 }
 0x11d   : > { %v1113_v57 = vsel %vm1095_vm11, %v1080_v53, %v851_v47 }
 0x11f   : > { %v885_v37 = vpop.permute.xlu1 %884 }
 0x120   : > { %v883_v49 = vpop.permute.xlu0 %882  ;;  %v1148_v62 = vsel %vm1128_vm12, %v1115_v0, %v885_v37 }
 0x121   : > { %v1146_v60 = vsel %vm1128_vm12, %v1113_v57, %v883_v49 }
 0x123   : > { %v695_v59 = vpop.permute.xlu1 %694 }
 0x124   : > { %v915_v52 = vpop.permute.xlu0 %914  ;;  %v952_v13 = vsel %vm930_vm6, %v2279_v39, %v695_v59 }
 0x125   : > { %v1179_v46 = vsel %vm1161_vm13, %v1146_v60, %v915_v52 }
 0x126   : > { %1931 = vmatprep.mubr.msk.bf16.mxu1 %vm1230_vm14, %v1179_v46 }
 0x127   : > { %v697_v40 = vpop.permute.xlu1 %696 }
 0x128   : > { %v917_v63 = vpop.permute.xlu0 %916  ;;  %v954_v27 = vsel %vm930_vm6, %v2305_v4, %v697_v40 }
 0x129   : > { %v1181_v58 = vsel %vm1161_vm13, %v1148_v62, %v917_v63 }
 0x12a   : > { %1932 = vmatmul.mubr.msk.bf16.vlgmr.msra.gmra.mxu1 %vm1230_vm14, %v1181_v58 }
 0x12b   : > { %v729_v2 = vpop.permute.xlu1 %728 }
 0x12c   : > { %v727_v7 = vpop.permute.xlu0 %726  ;;  %v987_v42 = vsel %vm963_vm7, %v954_v27, %v729_v2 }
 0x12d   : > { %v985_v15 = vsel %vm963_vm7, %v952_v13, %v727_v7 }
 0x12f   : > { %v761_v8 = vpop.permute.xlu1 %760 }
 0x130   : > { %v759_v56 = vpop.permute.xlu0 %758  ;;  %v1020_v39 = vsel %vm996_vm8, %v987_v42, %v761_v8 }
 0x131   : > { %v1018_v17 = vsel %vm996_vm8, %v985_v15, %v759_v56 }
 0x133   : > { %v793_v38 = vpop.permute.xlu1 %792 }
 0x134   : > { %v791_v9 = vpop.permute.xlu0 %790  ;;  %v1053_v30 = vsel %vm1029_vm9, %v1020_v39, %v793_v38 }
 0x135   : > { %v1051_v22 = vsel %vm1029_vm9, %v1018_v17, %v791_v9 }
 0x137   : > { %v825_v21 = vpop.permute.xlu1 %824 }
 0x138   : > { %v823_v11 = vpop.permute.xlu0 %822  ;;  %v1086_v36 = vsel %vm1062_vm10, %v1053_v30, %v825_v21 }
 0x139   : > { %v1084_v28 = vsel %vm1062_vm10, %v1051_v22, %v823_v11 }
 0x13b   : > { %v857_v12 = vpop.permute.xlu1 %856 }
 0x13c   : > { %v855_v6 = vpop.permute.xlu0 %854  ;;  %v1119_v4 = vsel %vm1095_vm11, %v1086_v36, %v857_v12 }
 0x13d   : > { %v1117_v20 = vsel %vm1095_vm11, %v1084_v28, %v855_v6 }
 0x13f   : > { %v889_v16 = vpop.permute.xlu1 %888 }
 0x140   : > { %v887_v19 = vpop.permute.xlu0 %886  ;;  %v1152_v35 = vsel %vm1128_vm12, %v1119_v4, %v889_v16 }
 0x141   : > { %v1150_v5 = vsel %vm1128_vm12, %v1117_v20, %v887_v19 }
 0x143   : > { %v699_v1 = vpop.permute.xlu1 %698 }
 0x144   : > { %v919_v14 = vpop.permute.xlu0 %918  ;;  %v956_v49 = vsel %vm930_vm6, %v2357_v61, %v699_v1 }
 0x145   : > { %v1183_v18 = vsel %vm1161_vm13, %v1150_v5, %v919_v14 }
 0x146   : > { %1935 = vmatprep.mubr.msk.bf16.mxu1 %vm1230_vm14, %v1183_v18 }
 0x147   : > { %v701_v41 = vpop.permute.xlu1 %700 }
 0x148   : > { %v921_v31 = vpop.permute.xlu0 %920  ;;  %v958_v59 = vsel %vm930_vm6, %v2372_v24, %v701_v41 }
 0x149   : > { %v1185_v29 = vsel %vm1161_vm13, %v1152_v35, %v921_v31 }
 0x14a   : > { %1936 = vmatmul.mubr.msk.bf16.gmra.mxu1 %vm1230_vm14, %v1185_v29 }
 0x14b   : > { %v733_v26 = vpop.permute.xlu1 %732 }
 0x14c   : > { %v731_v3 = vpop.permute.xlu0 %730  ;;  %v991_v60 = vsel %vm963_vm7, %v958_v59, %v733_v26 }
 0x14d   : > { %v989_v50 = vsel %vm963_vm7, %v956_v49, %v731_v3 }
 0x14f   : > { %v765_v33 = vpop.permute.xlu1 %764 }
 0x150   : > { %v763_v43 = vpop.permute.xlu0 %762  ;;  %v1024_v61 = vsel %vm996_vm8, %v991_v60, %v765_v33 }
 0x151   : > { %v1022_v53 = vsel %vm996_vm8, %v989_v50, %v763_v43 }
 0x153   : > { %v797_v44 = vpop.permute.xlu1 %796 }
 0x154   : > { %v795_v47 = vpop.permute.xlu0 %794  ;;  %v1057_v0 = vsel %vm1029_vm9, %v1024_v61, %v797_v44 }
 0x155   : > { %v1055_v57 = vsel %vm1029_vm9, %v1022_v53, %v795_v47 }
 0x157   : > { %v829_v48 = vpop.permute.xlu1 %828 }
 0x158   : > { %v827_v23 = vpop.permute.xlu0 %826  ;;  %v1090_v62 = vsel %vm1062_vm10, %v1057_v0, %v829_v48 }
 0x159   : > { %v1088_v51 = vsel %vm1062_vm10, %v1055_v57, %v827_v23 }
 0x15b   : > { %v861_v37 = vpop.permute.xlu1 %860 }
 0x15c   : > { %v859_v32 = vpop.permute.xlu0 %858  ;;  %v1123_v24 = vsel %vm1095_vm11, %v1090_v62, %v861_v37 }
 0x15d   : > { %v1121_v52 = vsel %vm1095_vm11, %v1088_v51, %v859_v32 }
 0x15f   : > { %v893_v10 = vpop.permute.xlu1 %892 }
 0x160   : > { %v891_v55 = vpop.permute.xlu0 %890  ;;  %v1156_v58 = vsel %vm1128_vm12, %v1123_v24, %v893_v10 }
 0x161   : > { %v1154_v46 = vsel %vm1128_vm12, %v1121_v52, %v891_v55 }
 0x163   : > { %v703_v45 = vpop.permute.xlu1 %702 }
 0x164   : > { %v923_v54 = vpop.permute.xlu0 %922  ;;  %v960_v17 = vsel %vm930_vm6, %v2429_v25, %v703_v45 }
 0x165   : > { %v1187_v40 = vsel %vm1161_vm13, %v1154_v46, %v923_v54 }
 0x166   : > { %1939 = vmatprep.mubr.msk.bf16.mxu1 %vm1230_vm14, %v1187_v40 }
 0x167   : > { %v705_v63 = vpop.permute.xlu1 %704 }
 0x168   : > { %v925_v2 = vpop.permute.xlu0 %924  ;;  %v962_v16 = vsel %vm930_vm6, %v2444_v34, %v705_v63 }
 0x169   : > { %v1189_v7 = vsel %vm1161_vm13, %v1156_v58, %v925_v2 }
 0x16a   : > { %1940 = vmatmul.mubr.msk.bf16.gmra.mxu1 %vm1230_vm14, %v1189_v7  ;;  %v2622_v31 = vpop.f32.mrf.mxu0 }
 0x16b   : > { %v737_v8 = vpop.permute.xlu1 %736  ;;  %v1431_v32 = vsel %vm930_vm6, %v2622_v31, 0.0 }
 0x16c   : > { %v735_v56 = vpop.permute.xlu0 %734  ;;  %v995_v19 = vsel %vm963_vm7, %v962_v16, %v737_v8  ;;  %v2624_v29 = vpop.f32.mrf.mxu0 }
 0x16d   : > { %v993_v22 = vsel %vm963_vm7, %v960_v17, %v735_v56  ;;  %v1428_v48 = vsel %vm930_vm6, %v2624_v29, 0.0 }
 0x16e   : > { %v2626_v26 = vpop.f32.mrf.mxu0 }
 0x16f   : > { %v769_v38 = vpop.permute.xlu1 %768  ;;  %v1433_v10 = vsel %vm930_vm6, %v2626_v26, 0.0 }
 0x170   : > { %v767_v9 = vpop.permute.xlu0 %766  ;;  %v1028_v27 = vsel %vm996_vm8, %v995_v19, %v769_v38  ;;  %v2628_v3 = vpop.f32.mrf.mxu0 }
 0x171   : > { %v1026_v42 = vsel %vm996_vm8, %v993_v22, %v767_v9  ;;  %v1429_v44 = vsel %vm930_vm6, %v2628_v3, 0.0 }
 0x172   : > { %v1430_v23 = vadd.f32 %v1429_v44, %v1428_v48 }
 0x173   : > { %v801_v21 = vpop.permute.xlu1 %800 }
 0x174   : > { %v799_v11 = vpop.permute.xlu0 %798  ;;  %v1061_v20 = vsel %vm1029_vm9, %v1028_v27, %v801_v21  ;;  %v1432_v49 = vadd.f32 %v1431_v32, %v1430_v23 }
 0x175   : > { %v1059_v39 = vsel %vm1029_vm9, %v1026_v42, %v799_v11 }
 0x176   : > { %v1434_v55 = vadd.f32 %v1433_v10, %v1432_v49 }
 0x177   : > { %v833_v12 = vpop.permute.xlu1 %832 }
 0x178   : > { %v831_v6 = vpop.permute.xlu0 %830  ;;  %v1094_v5 = vsel %vm1062_vm10, %v1061_v20, %v833_v12 }
 0x179   : > { %v1092_v34 = vsel %vm1062_vm10, %v1059_v39, %v831_v6 }
 0x17b   : > { %v865_v13 = vpop.permute.xlu1 %864 }
 0x17c   : > { %v863_v15 = vpop.permute.xlu0 %862  ;;  %v1127_v25 = vsel %vm1095_vm11, %v1094_v5, %v865_v13 }
 0x17d   : > { %v1125_v14 = vsel %vm1095_vm11, %v1092_v34, %v863_v15 }
 0x17f   : > { %v897_v28 = vpop.permute.xlu1 %896 }
 0x180   : > { %v895_v1 = vpop.permute.xlu0 %894  ;;  %v1160_v30 = vsel %vm1128_vm12, %v1127_v25, %v897_v28 }
 0x181   : > { %v1158_v36 = vsel %vm1128_vm12, %v1125_v14, %v895_v1 }
 0x183   : > { %v929_v18 = vpop.permute.xlu1 %928 }
 0x184   : > { %v1193_v4 = vsel %vm1161_vm13, %v1160_v30, %v929_v18  ;;  %v927_v41 = vpop.permute.xlu0 %926 }
 0x185   : > { %v1191_v35 = vsel %vm1161_vm13, %v1158_v36, %v927_v41 }
 0x186   : > { %1943 = vmatprep.mubr.msk.bf16.mxu1 %vm1230_vm14, %v1191_v35 }
 0x187   : > { %1944 = vmatmul.mubr.msk.bf16.gmra.mxu1 %vm1230_vm14, %v1193_v4 }
 0x18a   : > { %v2630_v33 = vpop.f32.mrf.mxu0 }
 0x18b   : > { %v1439_v45 = vsel %vm930_vm6, %v2630_v33, 0.0 }
 0x18c   : > { %v2632_v43 = vpop.f32.mrf.mxu0 }
 0x18d   : > { %v1435_v53 = vsel %vm930_vm6, %v2632_v43, 0.0 }
 0x18e   : > { %v2636_v47 = vpop.f32.mrf.mxu0  ;;  %v1436_v51 = vadd.f32 %v1435_v53, %v1434_v55 }
 0x18f   : > { %v1441_v0 = vsel %vm930_vm6, %v2636_v47, 0.0 }
 0x190   : > { %v2640_v37 = vpop.f32.mrf.mxu0 }
 0x191   : > { %v1437_v59 = vsel %vm930_vm6, %v2640_v37, 0.0 }
 0x192   : > { %v1438_v60 = vadd.f32 %v1437_v59, %v1436_v51 }
 0x194   : > { %v1440_v61 = vadd.f32 %v1439_v45, %v1438_v60 }
 0x196   : > { %v1442_v62 = vadd.f32 %v1441_v0, %v1440_v61 }
 0x1aa   : > { %v2644_v50 = vpop.f32.mrf.mxu0 }
 0x1ab   : > { %v1447_v56 = vsel %vm930_vm6, %v2644_v50, 0.0 }
 0x1ac   : > { %v2650_v57 = vpop.f32.mrf.mxu0 }
 0x1ad   : > { %v1443_v40 = vsel %vm930_vm6, %v2650_v57, 0.0 }
 0x1ae   : > { %v2654_v52 = vpop.f32.mrf.mxu0  ;;  %v1444_v63 = vadd.f32 %v1443_v40, %v1442_v62 }
 0x1af   : > { %v1449_v11 = vsel %vm930_vm6, %v2654_v52, 0.0 }
 0x1b0   : > { %v2658_v46 = vpop.f32.mrf.mxu0 }
 0x1b1   : > { %v1445_v24 = vsel %vm930_vm6, %v2658_v46, 0.0 }
 0x1b2   : > { %v1446_v2 = vadd.f32 %v1445_v24, %v1444_v63 }
 0x1b4   : > { %v1448_v38 = vadd.f32 %v1447_v56, %v1446_v2 }
 0x1b6   : > { %v1450_v6 = vadd.f32 %v1449_v11, %v1448_v38 }
 0x1ca   : > { %v2660_v54 = vpop.f32.mrf.mxu0 }
 0x1cb   : > { %v1455_v22 = vsel %vm930_vm6, %v2660_v54, 0.0 }
 0x1cc   : > { %v2668_v58 = vpop.f32.mrf.mxu0 }
 0x1cd   : > { %v1451_v12 = vsel %vm930_vm6, %v2668_v58, 0.0 }
 0x1ce   : > { %v2670_v7 = vpop.f32.mrf.mxu0  ;;  %v1452_v15 = vadd.f32 %v1451_v12, %v1450_v6 }
 0x1cf   : > { %v1457_v42 = vsel %vm930_vm6, %v2670_v7, 0.0 }
 0x1d0   : > { %v2676_v9 = vpop.f32.mrf.mxu0 }
 0x1d1   : > { %v1453_v13 = vsel %vm930_vm6, %v2676_v9, 0.0 }
 0x1d2   : > { %v1454_v17 = vadd.f32 %v1453_v13, %v1452_v15 }
 0x1d4   : > { %v1456_v27 = vadd.f32 %v1455_v22, %v1454_v17 }
 0x1d6   : > { %v1458_v1 = vadd.f32 %v1457_v42, %v1456_v27 }
 0x1ea   : > { %v2672_v8 = vpop.f32.mrf.mxu1 }
 0x1eb   : > { %v1463_v30 = vsel %vm930_vm6, %v2672_v8, 0.0 }
 0x1ec   : > { %v2678_v21 = vpop.f32.mrf.mxu1 }
 0x1ed   : > { %v1459_v20 = vsel %vm930_vm6, %v2678_v21, 0.0 }
 0x1ee   : > { %v2686_v16 = vpop.f32.mrf.mxu1  ;;  %v1460_v34 = vadd.f32 %v1459_v20, %v1458_v1 }
 0x1ef   : > { %v1465_v41 = vsel %vm930_vm6, %v2686_v16, 0.0 }
 0x1f0   : > { %v2688_v19 = vpop.f32.mrf.mxu1 }
 0x1f1   : > { %v1461_v5 = vsel %vm930_vm6, %v2688_v19, 0.0 }
 0x1f2   : > { %v1462_v25 = vadd.f32 %v1461_v5, %v1460_v34 }
 0x1f4   : > { %v1464_v18 = vadd.f32 %v1463_v30, %v1462_v25 }
 0x1f6   : > { %v1466_v44 = vadd.f32 %v1465_v41, %v1464_v18 }
 0x20a   : > { %v2692_v28 = vpop.f32.mrf.mxu1 }
 0x20b   : > { %v1471_v53 = vsel %vm930_vm6, %v2692_v28, 0.0 }
 0x20c   : > { %v2698_v39 = vpop.f32.mrf.mxu1 }
 0x20d   : > { %v1467_v35 = vsel %vm930_vm6, %v2698_v39, 0.0 }
 0x20e   : > { %v2702_v14 = vpop.f32.mrf.mxu1  ;;  %v1468_v23 = vadd.f32 %v1467_v35, %v1466_v44 }
 0x20f   : > { %v1473_v51 = vsel %vm930_vm6, %v2702_v14, 0.0 }
 0x210   : > { %v2706_v36 = vpop.f32.mrf.mxu1 }
 0x211   : > { %v1469_v48 = vsel %vm930_vm6, %v2706_v36, 0.0 }
 0x212   : > { %v1470_v49 = vadd.f32 %v1469_v48, %v1468_v23 }
 0x214   : > { %v1472_v55 = vadd.f32 %v1471_v53, %v1470_v49 }
 0x216   : > { %v1474_v45 = vadd.f32 %v1473_v51, %v1472_v55 }
 0x22a   : > { %v2708_v4 = vpop.f32.mrf.mxu1 }
 0x22b   : > { %v1479_v62 = vsel %vm930_vm6, %v2708_v4, 0.0 }
 0x22c   : > { %v2716_v32 = vpop.f32.mrf.mxu1 }
 0x22d   : > { %v1475_v60 = vsel %vm930_vm6, %v2716_v32, 0.0 }
 0x22e   : > { %v2718_v10 = vpop.f32.mrf.mxu1  ;;  %v1476_v0 = vadd.f32 %v1475_v60, %v1474_v45 }
 0x22f   : > { %v1481_v56 = vsel %vm930_vm6, %v2718_v10, 0.0 }
 0x230   : > { %v2722_v59 = vpop.f32.mrf.mxu1 }
 0x231   : > { %v1477_v61 = vsel %vm930_vm6, %v2722_v59, 0.0 }
 0x232   : > { %v1478_v40 = vadd.f32 %v1477_v61, %v1476_v0 }
 0x234   : > { %v1480_v24 = vadd.f32 %v1479_v62, %v1478_v40 }
 0x236   : > { %v1482_v11 = vadd.f32 %v1481_v56, %v1480_v24 }
 0x247   : > { %v2732_v63 = vpop.f32.mrf.mxu1 }
 0x248   : > { %v1487_v22 = vsel %vm930_vm6, %v2732_v63, 0.0 }
 0x249   : > { %v2734_v2 = vpop.f32.mrf.mxu1 }
 0x24a   : > { %v1483_v38 = vsel %vm930_vm6, %v2734_v2, 0.0 }
 0x24b   : > { %v2740_v12 = vpop.f32.mrf.mxu1  ;;  %v1484_v6 = vadd.f32 %v1483_v38, %v1482_v11 }
 0x24c   : > { %v1489_v42 = vsel %vm930_vm6, %v2740_v12, 0.0 }
 0x24d   : > { %v2742_v13 = vpop.f32.mrf.mxu1 }
 0x24e   : > { %v1485_v15 = vsel %vm930_vm6, %v2742_v13, 0.0 }
 0x24f   : > { %v1486_v17 = vadd.f32 %v1485_v15, %v1484_v6 }
 0x251   : > { %v1488_v27 = vadd.f32 %v1487_v22, %v1486_v17 }
 0x253   : > { %v1490_v20 = vadd.f32 %v1489_v42, %v1488_v27 }
 0x255   : > { %v1491_v1 = vrot.slane %v1490_v20, 4 }
 0x257   : > { %v1492_v5 = vadd.f32 %v1491_v1, %v1490_v20 }
 0x259   : > { %v1493_v34 = vrot.slane %v1492_v5, 2 }
 0x25b   : > { %v1494_v25 = vadd.f32 %v1493_v34, %v1492_v5 }
 0x25d   : > { %v1495_v30 = vrot.slane %v1494_v25, 1 }
 0x25f   : > { %v1496_v18 = vadd.f32 %v1495_v30, %v1494_v25 }
 0x261   : > { %v2750_v41 = vmul.f32 0.00390625, %v1496_v18 }
 0x263   : > { %v2754_v35 = vsub.f32 %v2624_v29, %v2750_v41  ;;  %v2758_v44 = vsub.f32 %v2628_v3, %v2750_v41  ;;  %v2762_v48 = vsub.f32 %v2622_v31, %v2750_v41  ;;  %v2766_v23 = vsub.f32 %v2626_v26, %v2750_v41 }
 0x264   : > { %v2774_v29 = vsub.f32 %v2632_v43, %v2750_v41  ;;  %v2780_v31 = vsub.f32 %v2640_v37, %v2750_v41  ;;  %v2788_v45 = vsub.f32 %v2630_v33, %v2750_v41  ;;  %v2795_v37 = vsub.f32 %v2636_v47, %v2750_v41 }
 0x265   : > { %v1531_v49 = vmul.f32 %v2754_v35, %v2754_v35  ;;  %v1532_v53 = vmul.f32 %v2758_v44, %v2758_v44  ;;  %v1533_v3 = vmul.f32 %v2762_v48, %v2762_v48  ;;  %v1534_v26 = vmul.f32 %v2766_v23, %v2766_v23 }
 0x266   : > { %v1535_v43 = vmul.f32 %v2774_v29, %v2774_v29  ;;  %v1536_v40 = vmul.f32 %v2780_v31, %v2780_v31  ;;  %v2802_v33 = vsub.f32 %v2650_v57, %v2750_v41  ;;  %v1537_v56 = vmul.f32 %v2788_v45, %v2788_v45 }
 0x267   : > { %v1563_v55 = vsel %vm930_vm6, %v1531_v49, 0.0  ;;  %v1564_v51 = vsel %vm930_vm6, %v1532_v53, 0.0  ;;  %v1566_v61 = vsel %vm930_vm6, %v1533_v3, 0.0  ;;  %v1568_v62 = vsel %vm930_vm6, %v1534_v26, 0.0 }
 0x268   : > { %v1565_v60 = vadd.f32 %v1564_v51, %v1563_v55  ;;  %v1570_v38 = vsel %vm930_vm6, %v1535_v43, 0.0  ;;  %v2809_v47 = vsub.f32 %v2658_v46, %v2750_v41  ;;  %v1538_v6 = vmul.f32 %v2795_v37, %v2795_v37 }
 0x269   : > { %v1572_v15 = vsel %vm930_vm6, %v1536_v40, 0.0  ;;  %v2816_v57 = vsub.f32 %v2644_v50, %v2750_v41  ;;  %v1539_v22 = vmul.f32 %v2802_v33, %v2802_v33  ;;  %v1574_v27 = vsel %vm930_vm6, %v1537_v56, 0.0 }
 0x26a   : > { %v1567_v0 = vadd.f32 %v1566_v61, %v1565_v60  ;;  %v2823_v46 = vsub.f32 %v2654_v52, %v2750_v41  ;;  %v1540_v20 = vmul.f32 %v2809_v47, %v2809_v47  ;;  %v1576_v1 = vsel %vm930_vm6, %v1538_v6, 0.0 }
 0x26b   : > { %v2830_v50 = vsub.f32 %v2668_v58, %v2750_v41  ;;  %v1541_v34 = vmul.f32 %v2816_v57, %v2816_v57  ;;  %v1578_v25 = vsel %vm930_vm6, %v1539_v22, 0.0  ;;  %v2837_v52 = vsub.f32 %v2676_v9, %v2750_v41 }
 0x26c   : > { %v1569_v24 = vadd.f32 %v1568_v62, %v1567_v0  ;;  %v1542_v18 = vmul.f32 %v2823_v46, %v2823_v46  ;;  %v1580_v49 = vsel %vm930_vm6, %v1540_v20, 0.0  ;;  %v2844_v58 = vsub.f32 %v2660_v54, %v2750_v41 }
 0x26d   : > { %v1543_v3 = vmul.f32 %v2830_v50, %v2830_v50  ;;  %v1582_v26 = vsel %vm930_vm6, %v1541_v34, 0.0  ;;  %v2851_v9 = vsub.f32 %v2670_v7, %v2750_v41  ;;  %v1544_v51 = vmul.f32 %v2837_v52, %v2837_v52 }
 0x26e   : > { %v1571_v11 = vadd.f32 %v1570_v38, %v1569_v24  ;;  %v1584_v60 = vsel %vm930_vm6, %v1542_v18, 0.0  ;;  %v2858_v54 = vsub.f32 %v2678_v21, %v2750_v41  ;;  %v1545_v61 = vmul.f32 %v2844_v58, %v2844_v58 }
 0x26f   : > { %v1586_v0 = vsel %vm930_vm6, %v1543_v3, 0.0  ;;  %v2865_v7 = vsub.f32 %v2688_v19, %v2750_v41  ;;  %v1546_v62 = vmul.f32 %v2851_v9, %v2851_v9  ;;  %v1588_v24 = vsel %vm930_vm6, %v1544_v51, 0.0 }
 0x270   : > { %v1573_v17 = vadd.f32 %v1572_v15, %v1571_v11  ;;  %v2872_v21 = vsub.f32 %v2672_v8, %v2750_v41  ;;  %v1547_v38 = vmul.f32 %v2858_v54, %v2858_v54  ;;  %v1590_v11 = vsel %vm930_vm6, %v1545_v61, 0.0 }
 0x271   : > { %v2879_v19 = vsub.f32 %v2686_v16, %v2750_v41  ;;  %v1548_v15 = vmul.f32 %v2865_v7, %v2865_v7  ;;  %v2886_v8 = vsub.f32 %v2698_v39, %v2750_v41  ;;  %v2893_v16 = vsub.f32 %v2706_v36, %v2750_v41 }
 0x272   : > { %v1575_v42 = vadd.f32 %v1574_v27, %v1573_v17  ;;  %v1592_v17 = vsel %vm930_vm6, %v1546_v62, 0.0  ;;  %v1549_v27 = vmul.f32 %v2872_v21, %v2872_v21  ;;  %v2900_v39 = vsub.f32 %v2692_v28, %v2750_v41 }
 0x273   : > { %v1522_v36 = vsub.f32 %v2702_v14, %v2750_v41 }
 0x274   : > { %v1577_v5 = vadd.f32 %v1576_v1, %v1575_v42  ;;  %v1594_v42 = vsel %vm930_vm6, %v1547_v38, 0.0  ;;  %v1550_v1 = vmul.f32 %v2879_v19, %v2879_v19  ;;  %v1553_v28 = vmul.f32 %v2900_v39, %v2900_v39 }
 0x276   : > { %v1579_v30 = vadd.f32 %v1578_v25, %v1577_v5  ;;  %v1596_v5 = vsel %vm930_vm6, %v1548_v15, 0.0  ;;  %v1551_v25 = vmul.f32 %v2886_v8, %v2886_v8  ;;  %v1606_v62 = vsel %vm930_vm6, %v1553_v28, 0.0 }
 0x278   : > { %v1581_v53 = vadd.f32 %v1580_v49, %v1579_v30  ;;  %v1598_v30 = vsel %vm930_vm6, %v1549_v27, 0.0  ;;  %v1552_v49 = vmul.f32 %v2893_v16, %v2893_v16 }
 0x27a   : > { %v1583_v55 = vadd.f32 %v1582_v26, %v1581_v53  ;;  %v1600_v53 = vsel %vm930_vm6, %v1550_v1, 0.0  ;;  %v1523_v26 = vsub.f32 %v2716_v32, %v2750_v41  ;;  %v1604_v14 = vsel %vm930_vm6, %v1552_v49, 0.0 }
 0x27c   : > { %v1585_v43 = vadd.f32 %v1584_v60, %v1583_v55  ;;  %v1602_v55 = vsel %vm930_vm6, %v1551_v25, 0.0  ;;  %v1524_v60 = vsub.f32 %v2722_v59, %v2750_v41  ;;  %v1527_v59 = vsub.f32 %v2734_v2, %v2750_v41 }
 0x27d   : > { %v1530_v2 = vsub.f32 %v2740_v12, %v2750_v41 }
 0x27e   : > { %v1587_v40 = vadd.f32 %v1586_v0, %v1585_v43  ;;  %v1554_v43 = vmul.f32 %v1522_v36, %v1522_v36  ;;  %v1525_v0 = vsub.f32 %v2708_v4, %v2750_v41  ;;  %v1528_v4 = vsub.f32 %v2742_v13, %v2750_v41 }
 0x280   : > { %v1589_v56 = vadd.f32 %v1588_v24, %v1587_v40  ;;  %v1555_v40 = vmul.f32 %v1523_v26, %v1523_v26  ;;  %v1526_v24 = vsub.f32 %v2718_v10, %v2750_v41  ;;  %v1608_v38 = vsel %vm930_vm6, %v1554_v43, 0.0 }
 0x281   : > { %v1529_v10 = vsub.f32 %v2732_v63, %v2750_v41 }
 0x282   : > { %v1591_v6 = vadd.f32 %v1590_v11, %v1589_v56  ;;  %v1556_v56 = vmul.f32 %v1524_v60, %v1524_v60  ;;  %v1610_v15 = vsel %vm930_vm6, %v1555_v40, 0.0 }
 0x284   : > { %v1593_v22 = vadd.f32 %v1592_v17, %v1591_v6  ;;  %v1557_v6 = vmul.f32 %v1525_v0, %v1525_v0  ;;  %v1612_v27 = vsel %vm930_vm6, %v1556_v56, 0.0 }
 0x286   : > { %v1595_v20 = vadd.f32 %v1594_v42, %v1593_v22  ;;  %v1558_v22 = vmul.f32 %v1526_v24, %v1526_v24  ;;  %v1614_v1 = vsel %vm930_vm6, %v1557_v6, 0.0 }
 0x288   : > { %v1597_v34 = vadd.f32 %v1596_v5, %v1595_v20  ;;  %v1559_v20 = vmul.f32 %v1527_v59, %v1527_v59  ;;  %v1616_v25 = vsel %vm930_vm6, %v1558_v22, 0.0 }
 0x28a   : > { %v1599_v18 = vadd.f32 %v1598_v30, %v1597_v34  ;;  %v1560_v34 = vmul.f32 %v1528_v4, %v1528_v4  ;;  %v1618_v13 = vsel %vm930_vm6, %v1559_v20, 0.0 }
 0x28c   : > { %v1601_v3 = vadd.f32 %v1600_v53, %v1599_v18  ;;  %v1561_v18 = vmul.f32 %v1529_v10, %v1529_v10  ;;  %v1562_v53 = vmul.f32 %v1530_v2, %v1530_v2 }
 0x28e   : > { %v1603_v51 = vadd.f32 %v1602_v55, %v1601_v3  ;;  %v1620_v3 = vsel %vm930_vm6, %v1560_v34, 0.0  ;;  %v1622_v63 = vsel %vm930_vm6, %v1561_v18, 0.0 }
 0x290   : > { %v1605_v61 = vadd.f32 %v1604_v14, %v1603_v51  ;;  %v1624_v51 = vsel %vm930_vm6, %v1562_v53, 0.0 }
 0x292   : > { %v1607_v32 = vadd.f32 %v1606_v62, %v1605_v61 }
 0x294   : > { %v1609_v11 = vadd.f32 %v1608_v38, %v1607_v32 }
 0x296   : > { %v1611_v17 = vadd.f32 %v1610_v15, %v1609_v11 }
 0x298   : > { %v1613_v42 = vadd.f32 %v1612_v27, %v1611_v17 }
 0x29a   : > { %v1615_v5 = vadd.f32 %v1614_v1, %v1613_v42 }
 0x29c   : > { %v1617_v30 = vadd.f32 %v1616_v25, %v1615_v5 }
 0x29e   : > { %v1619_v49 = vadd.f32 %v1618_v13, %v1617_v30 }
 0x2a0   : > { %v1621_v28 = vadd.f32 %v1620_v3, %v1619_v49 }
 0x2a2   : > { %v1623_v55 = vadd.f32 %v1622_v63, %v1621_v28 }
 0x2a4   : > { %v1625_v43 = vadd.f32 %v1624_v51, %v1623_v55 }
 0x2a6   : > { %v1626_v14 = vrot.slane %v1625_v43, 4 }
 0x2a8   : > { %v1627_v12 = vadd.f32 %v1626_v14, %v1625_v43 }
 0x2aa   : > { %v1628_v41 = vrot.slane %v1627_v12, 2 }
 0x2ac   : > { %v1629_v61 = vadd.f32 %v1628_v41, %v1627_v12 }
 0x2ae   : > { %v1630_v40 = vrot.slane %v1629_v61, 1 }
 0x2b0   : > { %v1631_v62 = vadd.f32 %v1630_v40, %v1629_v61 }
 0x2b2   : > { %v1632_v32 = vmul.f32 0.00390625, %v1631_v62 }
 0x2b4   : > { %v1633_v56 = vadd.f32 1e-05, %v1632_v32 }
 0x2b6   : > { %1981 = vrsqrt.f32 %v1633_v56 }
 0x2c3   : > { %v1982_v38 = vpop.eup %1981 }
 0x2c4   : > { %v2941_v11 = vmul.f32 %v1982_v38, %v2754_v35  ;;  %v2943_v6 = vmul.f32 %v1982_v38, %v1522_v36  ;;  %v2945_v15 = vmul.f32 %v1982_v38, %v1523_v26  ;;  %v2947_v17 = vmul.f32 %v1982_v38, %v1524_v60 }
 0x2c5   : > { %v2949_v22 = vmul.f32 %v1982_v38, %v1525_v0  ;;  %v2951_v27 = vmul.f32 %v1982_v38, %v1526_v24  ;;  %v2953_v42 = vmul.f32 %v1982_v38, %v1527_v59  ;;  %v2955_v20 = vmul.f32 %v1982_v38, %v1528_v4 }
 0x2c6   : > { %v2957_v1 = vmul.f32 %v1982_v38, %v1529_v10  ;;  %v2959_v5 = vmul.f32 %v1982_v38, %v1530_v2  ;;  %v2962_v35 = vmul.f32 %v1982_v38, %v2758_v44  ;;  %v2965_v36 = vmul.f32 %v1982_v38, %v2762_v48 }
 0x2c7   : > { %v2968_v26 = vmul.f32 %v1982_v38, %v2766_v23  ;;  %v2971_v60 = vmul.f32 %v1982_v38, %v2774_v29  ;;  %v2974_v0 = vmul.f32 %v1982_v38, %v2780_v31  ;;  %v2977_v24 = vmul.f32 %v1982_v38, %v2788_v45 }
 0x2c8   : > { %v2980_v59 = vmul.f32 %v1982_v38, %v2795_v37  ;;  %v2983_v44 = vmul.f32 %v1982_v38, %v2802_v33  ;;  %v2986_v48 = vmul.f32 %v1982_v38, %v2809_v47  ;;  %v2989_v23 = vmul.f32 %v1982_v38, %v2816_v57 }
 0x2c9   : > { %v2992_v29 = vmul.f32 %v1982_v38, %v2823_v46  ;;  %v2995_v31 = vmul.f32 %v1982_v38, %v2830_v50  ;;  %v2998_v45 = vmul.f32 %v1982_v38, %v2837_v52  ;;  %v3001_v37 = vmul.f32 %v1982_v38, %v2844_v58 }
 0x2ca   : > { %v3004_v33 = vmul.f32 %v1982_v38, %v2851_v9  ;;  %v3007_v47 = vmul.f32 %v1982_v38, %v2858_v54  ;;  %v3010_v57 = vmul.f32 %v1982_v38, %v2865_v7  ;;  %v3013_v46 = vmul.f32 %v1982_v38, %v2872_v21 }
 0x2cb   : > { %v3016_v50 = vmul.f32 %v1982_v38, %v2879_v19  ;;  %v3019_v52 = vmul.f32 %v1982_v38, %v2886_v8  ;;  %v3022_v58 = vmul.f32 %v1982_v38, %v2893_v16  ;;  %v3025_v9 = vmul.f32 %v1982_v38, %v2900_v39 }
 0x2cc   : > { %vm1667_vm15 = vcmp.gt.f32.partialorder %v2941_v11, 0.0  ;;  %vm1668_vm0 = vcmp.gt.f32.partialorder %v2962_v35, 0.0  ;;  %vm1669_vm1 = vcmp.gt.f32.partialorder %v2965_v36, 0.0  ;;  %vm1670_vm2 = vcmp.gt.f32.partialorder %v2968_v26, 0.0 }
 0x2cd   : > { %vm1671_vm3 = vcmp.gt.f32.partialorder %v2971_v60, 0.0  ;;  %vm1672_vm4 = vcmp.gt.f32.partialorder %v2974_v0, 0.0  ;;  %vm1673_vm5 = vcmp.gt.f32.partialorder %v2977_v24, 0.0  ;;  %vm1674_vm7 = vcmp.gt.f32.partialorder %v2980_v59, 0.0 }
 0x2ce   : > { %v1699_v54 = vmul.f32 0.01, %v2941_v11  ;;  %v1700_v7 = vmul.f32 0.01, %v2962_v35  ;;  %v1701_v21 = vmul.f32 0.01, %v2965_v36 }
 0x2cf   : > { %vm1682_vm9 = vcmp.gt.f32.partialorder %v3004_v33, 0.0  ;;  %vm1683_vm8 = vcmp.gt.f32.partialorder %v3007_v47, 0.0  ;;  %v1702_v19 = vmul.f32 0.01, %v2968_v26  ;;  %v1703_v8 = vmul.f32 0.01, %v2971_v60 }
 0x2d0   : > { %v1704_v16 = vmul.f32 0.01, %v2974_v0  ;;  %vm1688_vm14 = vcmp.gt.f32.partialorder %v3022_v58, 0.0  ;;  %v1705_v39 = vmul.f32 0.01, %v2977_v24  ;;  %v1731_v2 = vsel %vm1667_vm15, %v2941_v11, %v1699_v54 }
 0x2d1   : > { %v1706_v4 = vmul.f32 0.01, %v2980_v59  ;;  %v1707_v10 = vmul.f32 0.01, %v2983_v44  ;;  %vm1689_vm10 = vcmp.gt.f32.partialorder %v3025_v9, 0.0  ;;  %v1732_v18 = vsel %vm1668_vm0, %v2962_v35, %v1700_v7  ;;  %1763 = vst.msk [vmem:[%s3042_s7] sm:$0xff] %vm930_vm6, %v1731_v2 }
 0x2d2   : > { %v1708_v34 = vmul.f32 0.01, %v2986_v48  ;;  %v1709_v25 = vmul.f32 0.01, %v2989_v23  ;;  %v1710_v30 = vmul.f32 0.01, %v2992_v29  ;;  %v1733_v3 = vsel %vm1669_vm1, %v2965_v36, %v1701_v21 }
 0x2d3   : > { %vm1693_vm15 = vcmp.gt.f32.partialorder %v2949_v22, 0.0  ;;  %vm1694_vm13 = vcmp.gt.f32.partialorder %v2951_v27, 0.0  ;;  %vm1696_vm11 = vcmp.gt.f32.partialorder %v2955_v20, 0.0  ;;  %v1711_v13 = vmul.f32 0.01, %v2995_v31  ;;  %1764 = vst.msk [vmem:[%s3042_s7 + $0x8] sm:$0xff] %vm930_vm6, %v1732_v18 }
 0x2d4   : > { %v1712_v49 = vmul.f32 0.01, %v2998_v45  ;;  %v1713_v53 = vmul.f32 0.01, %v3001_v37  ;;  %vm1697_vm0 = vcmp.gt.f32.partialorder %v2957_v1, 0.0  ;;  %vm1698_vm12 = vcmp.gt.f32.partialorder %v2959_v5, 0.0 }
 0x2d5   : > { %v1714_v28 = vmul.f32 0.01, %v3004_v33  ;;  %v1715_v63 = vmul.f32 0.01, %v3007_v47  ;;  %v1716_v55 = vmul.f32 0.01, %v3010_v57  ;;  %v1734_v51 = vsel %vm1670_vm2, %v2968_v26, %v1702_v19 }
 0x2d6   : > { %1765 = vst.msk [vmem:[%s3042_s7 + $0x10] sm:$0xff] %vm930_vm6, %v1733_v3  ;;  %v1717_v43 = vmul.f32 0.01, %v3013_v46  ;;  %v1718_v14 = vmul.f32 0.01, %v3016_v50  ;;  %v1735_v41 = vsel %vm1671_vm3, %v2971_v60, %v1703_v8  ;;  %1766 = vst.msk [vmem:[%s3042_s7 + $0x18] sm:$0xff] %vm930_vm6, %v1734_v51  ;;  %v1736_v32 = vsel %vm1672_vm4, %v2974_v0, %v1704_v16 }
 0x2d7   : > { %v1719_v12 = vmul.f32 0.01, %v3019_v52  ;;  %v1720_v61 = vmul.f32 0.01, %v3022_v58  ;;  %v1721_v40 = vmul.f32 0.01, %v3025_v9  ;;  %v1737_v35 = vsel %vm1673_vm5, %v2977_v24, %v1705_v39 }
 0x2d8   : > { %v1722_v62 = vmul.f32 0.01, %v2943_v6  ;;  %1767 = vst.msk [vmem:[%s3042_s7 + $0x20] sm:$0xff] %vm930_vm6, %v1735_v41  ;;  %v1723_v56 = vmul.f32 0.01, %v2945_v15  ;;  %1768 = vst.msk [vmem:[%s3042_s7 + $0x28] sm:$0xff] %vm930_vm6, %v1736_v32  ;;  %v1738_v0 = vsel %vm1674_vm7, %v2980_v59, %v1706_v4 }
 0x2d9   : > { %v1724_v38 = vmul.f32 0.01, %v2947_v17  ;;  %v1725_v11 = vmul.f32 0.01, %v2949_v22  ;;  %v1726_v36 = vmul.f32 0.01, %v2951_v27 }
 0x2da   : > { %v1727_v26 = vmul.f32 0.01, %v2953_v42  ;;  %v1728_v60 = vmul.f32 0.01, %v2955_v20  ;;  %1769 = vst.msk [vmem:[%s3042_s7 + $0x30] sm:$0xff] %vm930_vm6, %v1737_v35  ;;  %vm3266_vm1 = vcmp.gt.f32.partialorder %v2983_v44, 0.0 }
 0x2db   : > { %v1729_v54 = vmul.f32 0.01, %v2957_v1  ;;  %v1730_v24 = vmul.f32 0.01, %v2959_v5  ;;  %v1739_v7 = vsel %vm3266_vm1, %v2983_v44, %v1707_v10  ;;  %vm3267_vm2 = vcmp.gt.f32.partialorder %v2986_v48, 0.0  ;;  %1770 = vst.msk [vmem:[%s3042_s7 + $0x38] sm:$0xff] %vm930_vm6, %v1738_v0 }
 0x2dc   : > { %v1740_v21 = vsel %vm3267_vm2, %v2986_v48, %v1708_v34  ;;  %vm3268_vm3 = vcmp.gt.f32.partialorder %v2989_v23, 0.0  ;;  %vm3269_vm4 = vcmp.gt.f32.partialorder %v2992_v29, 0.0  ;;  %vm3270_vm5 = vcmp.gt.f32.partialorder %v2995_v31, 0.0  ;;  %1771 = vst.msk [vmem:[%s3042_s7 + $0x40] sm:$0xff] %vm930_vm6, %v1739_v7 }
 0x2dd   : > { %v1741_v59 = vsel %vm3268_vm3, %v2989_v23, %v1709_v25  ;;  %v1742_v19 = vsel %vm3269_vm4, %v2992_v29, %v1710_v30  ;;  %v1743_v8 = vsel %vm3270_vm5, %v2995_v31, %v1711_v13  ;;  %vm3271_vm7 = vcmp.gt.f32.partialorder %v2998_v45, 0.0  ;;  %1772 = vst.msk [vmem:[%s3042_s7 + $0x48] sm:$0xff] %vm930_vm6, %v1740_v21 }
 0x2de   : > { %v1744_v44 = vsel %vm3271_vm7, %v2998_v45, %v1712_v49  ;;  %vm3272_vm1 = vcmp.gt.f32.partialorder %v3001_v37, 0.0  ;;  %v1746_v23 = vsel %vm1682_vm9, %v3004_v33, %v1714_v28  ;;  %v1747_v29 = vsel %vm1683_vm8, %v3007_v47, %v1715_v63  ;;  %1773 = vst.msk [vmem:[%s3042_s7 + $0x50] sm:$0xff] %vm930_vm6, %v1741_v59  ;;  %1774 = vst.msk [vmem:[%s3042_s7 + $0x58] sm:$0xff] %vm930_vm6, %v1742_v19 }
 0x2df   : > { %v1745_v48 = vsel %vm3272_vm1, %v3001_v37, %v1713_v53  ;;  %vm3273_vm2 = vcmp.gt.f32.partialorder %v3010_v57, 0.0  ;;  %1775 = vst.msk [vmem:[%s3042_s7 + $0x60] sm:$0xff] %vm930_vm6, %v1743_v8  ;;  %1776 = vst.msk [vmem:[%s3042_s7 + $0x68] sm:$0xff] %vm930_vm6, %v1744_v44  ;;  %vm3274_vm9 = vcmp.gt.f32.partialorder %v3013_v46, 0.0  ;;  %vm3275_vm8 = vcmp.gt.f32.partialorder %v3016_v50, 0.0 }
 0x2e0   : > { %v1748_v31 = vsel %vm3273_vm2, %v3010_v57, %v1716_v55  ;;  %v1749_v45 = vsel %vm3274_vm9, %v3013_v46, %v1717_v43  ;;  %v1750_v37 = vsel %vm3275_vm8, %v3016_v50, %v1718_v14  ;;  %vm3276_vm3 = vcmp.gt.f32.partialorder %v3019_v52, 0.0  ;;  %1777 = vst.msk [vmem:[%s3042_s7 + $0x70] sm:$0xff] %vm930_vm6, %v1745_v48  ;;  %1778 = vst.msk [vmem:[%s3042_s7 + $0x78] sm:$0xff] %vm930_vm6, %v1746_v23 }
 0x2e1   : > { %v1751_v33 = vsel %vm3276_vm3, %v3019_v52, %v1719_v12  ;;  %v1752_v47 = vsel %vm1688_vm14, %v3022_v58, %v1720_v61  ;;  %1779 = vst.msk [vmem:[%s3042_s7 + $0x80] sm:$0xff] %vm930_vm6, %v1747_v29  ;;  %1780 = vst.msk [vmem:[%s3042_s7 + $0x88] sm:$0xff] %vm930_vm6, %v1748_v31  ;;  %v1753_v57 = vsel %vm1689_vm10, %v3025_v9, %v1721_v40  ;;  %vm3277_vm4 = vcmp.gt.f32.partialorder %v2943_v6, 0.0 }
 0x2e2   : > { %v1754_v46 = vsel %vm3277_vm4, %v2943_v6, %v1722_v62  ;;  %vm3278_vm14 = vcmp.gt.f32.partialorder %v2945_v15, 0.0  ;;  %vm3279_vm5 = vcmp.gt.f32.partialorder %v2947_v17, 0.0  ;;  %1781 = vst.msk [vmem:[%s3042_s7 + $0x90] sm:$0xff] %vm930_vm6, %v1749_v45  ;;  %1782 = vst.msk [vmem:[%s3042_s7 + $0x98] sm:$0xff] %vm930_vm6, %v1750_v37  ;;  %v1757_v6 = vsel %vm1693_vm15, %v2949_v22, %v1725_v11 }
 0x2e3   : > { %v1755_v50 = vsel %vm3278_vm14, %v2945_v15, %v1723_v56  ;;  %v1756_v52 = vsel %vm3279_vm5, %v2947_v17, %v1724_v38  ;;  %1783 = vst.msk [vmem:[%s3042_s7 + $0xa0] sm:$0xff] %vm930_vm6, %v1751_v33  ;;  %1784 = vst.msk [vmem:[%s3042_s7 + $0xa8] sm:$0xff] %vm930_vm6, %v1752_v47  ;;  %v1758_v15 = vsel %vm1694_vm13, %v2951_v27, %v1726_v36  ;;  %vm3280_vm10 = vcmp.gt.f32.partialorder %v2953_v42, 0.0 }
 0x2e4   : > { %v1759_v17 = vsel %vm3280_vm10, %v2953_v42, %v1727_v26  ;;  %v1760_v58 = vsel %vm1696_vm11, %v2955_v20, %v1728_v60  ;;  %1785 = vst.msk [vmem:[%s3042_s7 + $0xb0] sm:$0xff] %vm930_vm6, %v1753_v57  ;;  %1786 = vst.msk [vmem:[%s3042_s7 + $0xb8] sm:$0xff] %vm930_vm6, %v1754_v46  ;;  %v1761_v22 = vsel %vm1697_vm0, %v2957_v1, %v1729_v54 }
 0x2e5   : > { %1787 = vst.msk [vmem:[%s3042_s7 + $0xc0] sm:$0xff] %vm930_vm6, %v1755_v50  ;;  %1788 = vst.msk [vmem:[%s3042_s7 + $0xc8] sm:$0xff] %vm930_vm6, %v1756_v52  ;;  %v1762_v27 = vsel %vm1698_vm12, %v2959_v5, %v1730_v24 }
 0x2e6   : > { %1789 = vst.msk [vmem:[%s3042_s7 + $0xd0] sm:$0xff] %vm930_vm6, %v1757_v6  ;;  %1790 = vst.msk [vmem:[%s3042_s7 + $0xd8] sm:$0xff] %vm930_vm6, %v1758_v15 }
 0x2e7   : > { %1791 = vst.msk [vmem:[%s3042_s7 + $0xe0] sm:$0xff] %vm930_vm6, %v1759_v17  ;;  %1792 = vst.msk [vmem:[%s3042_s7 + $0xe8] sm:$0xff] %vm930_vm6, %v1760_v58 }
 0x2e8   : > { %1793 = vst.msk [vmem:[%s3042_s7 + $0xf0] sm:$0xff] %vm930_vm6, %v1761_v22  ;;  %1794 = vst.msk [vmem:[%s3042_s7 + $0xf8] sm:$0xff] %vm930_vm6, %v1762_v27 }
 0x2e9 PF: > { %s12_s9 = sadd.s32 1, %s1989_s9  }
 0x2ea   : > { %p9_p4 = scmp.ge.s32.totalorder %s12_s9, 4  }
 0x2ec   :  { %11 = sbr.rel (!%p9_p4) target bundleno = 1 (0x1), region = 58 }

// kernel: _lambda_.11
= control target key start
LH: loop header
LB: loop body
LE: loop exit
PB: predicated region body
PF: predicated region fallthrough
CT: control target
= control target key end

     0   :  { %s2240_s12 = smov 0   ;;  %s3794_s0 = inlined_call_operand.vmem [shape: f32[2,16,16,8], index: 0, kind: input, shape index: {}]   ;;  %s3795_s1 = inlined_call_operand.vmem [shape: bf16[2,16,16,8], index: 1, kind: input, shape index: {}]   ;;  %s3796_s2 = inlined_call_operand.vmem [shape: bf16[144,8], index: 2, kind: input, shape index: {}]   ;;  %s3797_s3 = inlined_call_operand.vmem [shape: f32[2,16,16,8], index: 3, kind: output, shape index: {}]  }
   0x1 LB: > { %s2084_s13 = sadd.s32 4294967295, %s2209_s12   ;;  %p2088_p0 = scmp.ge.s32.totalorder %s2209_s12, 1  ;;  %s2209_s12 = sphi %s2240_s12, %s13_s12  }
   0x2   : > { %p147_p1 = scmp.lt.s32.totalorder %s2209_s12, 3 }
   0x4   : > { %p148_p2 = pnand %p2088_p0, %p147_p1 }
   0x6   : > { %151 = sbr.rel (%p148_p2) target bundleno = 826 (0x33a), region = 32 }
   0xb   : > { %p176_p3 = scmp.lt.s32.totalorder %s2084_s13, 1  ;;  %v2211_v0 = vmov 0   ;;  %s2212_s18 = smov 8   ;;  %vm571_vm0 = vsmask.f32 256  ;;  %vm570_vm1 = vcmask 1040384  }
   0xc   : > { %1489 = vmatprep.subr.bf16.mxu0 %v2211_v0  ;;  %2141 = vmatprep.subr.bf16.mxu1 %v2211_v0  ;;  %vm2268_vm2 = vmand %vm570_vm1, %vm571_vm0  ;;  %v436_v8 = vrot.slane %v2211_v0, 7  ;;  %vm832_vm3 = vcmask 1046528   ;;  %vm607_vm4 = vsmask.f32 7424  ;;  %s2213_s19 = smov 32   ;;  %s2214_s20 = smov 16  }
   0xd   : > { %s3851_s13 = smov (!%p176_p3, %s2084_s13), 1  ;;  %vm384_vm5 = vcmask 64512   ;;  %s2215_s25 = smov 48   ;;  %vm1122_vm6 = vcmask 130048   ;;  %vm1155_vm7 = vcmask 261120   ;;  %vm1188_vm8 = vcmask 392192  }
   0xe   : > { %s2139_s14 = sshll.u32 %s3851_s13, 7  ;;  %v2279_v11 = vsel %vm2268_vm2, 0, %v436_v8  ;;  %v590_v16 = vsel %vm2268_vm2, %v436_v8, 0  ;;  %s2138_s21 = sshll.u32 %s3851_s13, 8  ;;  %vm1221_vm9 = vcmask 523264   ;;  %vm1254_vm10 = vcmask 654336  }
   0xf   : > { %s2256_s17 = scalar_lea.vmem %s3795_s1, %s2139_s14  ;;  %3811 = vst [vmem:[#allocation2_spill] sm:$0xff] %v2279_v11  ;;  %v611_v14 = vshll.u32 %v2279_v11, 16  ;;  %v616_v18 = vshll.u32 %v590_v16, 16  ;;  %v609_v19 = vshrl.u32 %v2279_v11, 16  ;;  %v833_v22 = vrot.slane %v2279_v11, 1  ;;  %s2320_s24 = scalar_lea.vmem %s3794_s0, %s2138_s21 }
  0x10   : > { %v2176_v1 = vld [vmem:[%s2256_s17 + $0x10] sm:$0xff]   ;;  %v2177_v2 = vld [vmem:[%s2256_s17] sm:$0xff]   ;;  %v2178_v3 = vld [vmem:[%s2256_s17 + $0x18] sm:$0xff]   ;;  %v834_v23 = vrot.slane %v590_v16, 1  ;;  %s2216_s26 = smov 96   ;;  %s2217_s14 = smov 80  }
  0x11   : > { %356 = vrot.lane.b32.xlu1 %v2176_v1, %s2212_s18  ;;  %352 = vrot.lane.b32.xlu0 %v2177_v2, %s2212_s18  ;;  %v2179_v4 = vld [vmem:[%s2256_s17 + $0x8] sm:$0xff]   ;;  %v2180_v5 = vld [vmem:[%s2256_s17 + $0x20] sm:$0xff]   ;;  %v613_v20 = vrot.slane %v611_v14, 1  ;;  %v618_v25 = vrot.slane %v616_v18, 1  ;;  %s2218_s27 = smov 64   ;;  %s2219_s28 = smov 112  }
  0x12   : > { %v2183_v6 = vld [vmem:[%s2256_s17 + $0x38] sm:$0xff]   ;;  %v2184_v9 = vld [vmem:[%s2256_s17 + $0x28] sm:$0xff]   ;;  %v2181_v10 = vld [vmem:[%s2256_s17 + $0x40] sm:$0xff]   ;;  %v2301_v27 = vsel %vm832_vm3, %v833_v22, %v834_v23  ;;  %vm1287_vm11 = vcmask 785408   ;;  %vm1320_vm12 = vcmask 916480  }
  0x13   : > { %v2186_v12 = vld [vmem:[%s2256_s17 + $0x30] sm:$0xff]   ;;  %v2182_v13 = vld [vmem:[%s2256_s17 + $0x48] sm:$0xff]   ;;  %v2187_v15 = vld [vmem:[%s2256_s17 + $0x58] sm:$0xff]   ;;  %v614_v26 = vor.u32 %v613_v20, %v609_v19  ;;  %3812 = vst [vmem:[#allocation3_spill] sm:$0xff] %v2301_v27 }
  0x14   : > { %v2185_v17 = vld [vmem:[%s2256_s17 + $0x50] sm:$0xff]   ;;  %v2188_v21 = vld [vmem:[%s2256_s17 + $0x68] sm:$0xff]   ;;  %v2189_v24 = vld [vmem:[%s2256_s17 + $0x60] sm:$0xff]  }
  0x15   : > { %358 = vrot.lane.b32.xlu1 %v2178_v3, %s2212_s18  ;;  %354 = vrot.lane.b32.xlu0 %v2179_v4, %s2212_s18  ;;  %v2304_v28 = vsel %vm607_vm4, %v614_v26, %v618_v25  ;;  %v2190_v29 = vld [vmem:[%s2256_s17 + $0x70] sm:$0xff]   ;;  %v2191_v30 = vld [vmem:[%s2256_s17 + $0x78] sm:$0xff]  }
  0x16   : > { %v192_v31 = vld [vmem:[%s2320_s24] sm:$0xff]  ;;  %v193_v32 = vld [vmem:[%s2320_s24 + $0x8] sm:$0xff]  ;;  %v198_v34 = vld [vmem:[%s2320_s24 + $0x30] sm:$0xff] }
  0x17   : > { %v224_v33 = vpack.c.bf16 %v193_v32, %v192_v31  ;;  %v199_v35 = vld [vmem:[%s2320_s24 + $0x38] sm:$0xff]  ;;  %v196_v36 = vld [vmem:[%s2320_s24 + $0x20] sm:$0xff]  ;;  %v197_v38 = vld [vmem:[%s2320_s24 + $0x28] sm:$0xff] }
  0x18   : > { %v194_v39 = vld [vmem:[%s2320_s24 + $0x10] sm:$0xff]  ;;  %v195_v40 = vld [vmem:[%s2320_s24 + $0x18] sm:$0xff]  ;;  %v227_v42 = vpack.c.bf16 %v199_v35, %v198_v34  ;;  %v226_v44 = vpack.c.bf16 %v197_v38, %v196_v36  ;;  %v208_v54 = vld [vmem:[%s2320_s24 + $0x80] sm:$0xff] }
  0x19   : > { %366 = vrot.lane.b32.xlu1 %v2183_v6, %s2212_s18  ;;  %360 = vrot.lane.b32.xlu0 %v2180_v5, %s2212_s18  ;;  %v225_v46 = vpack.c.bf16 %v195_v40, %v194_v39  ;;  %v209_v55 = vld [vmem:[%s2320_s24 + $0x88] sm:$0xff]  ;;  %v200_v61 = vld [vmem:[%s2320_s24 + $0x40] sm:$0xff] }
  0x1a   : > { %v201_v62 = vld [vmem:[%s2320_s24 + $0x48] sm:$0xff]  ;;  %v232_v2 = vpack.c.bf16 %v209_v55, %v208_v54  ;;  %v210_v8 = vld [vmem:[%s2320_s24 + $0x90] sm:$0xff]  ;;  %v212_v22 = vld [vmem:[%s2320_s24 + $0xa0] sm:$0xff] }
  0x1b   : > { %v213_v23 = vld [vmem:[%s2320_s24 + $0xa8] sm:$0xff]  ;;  %v202_v31 = vld [vmem:[%s2320_s24 + $0x50] sm:$0xff]  ;;  %v203_v32 = vld [vmem:[%s2320_s24 + $0x58] sm:$0xff] }
  0x1c   : > { %v234_v35 = vpack.c.bf16 %v213_v23, %v212_v22 }
  0x1d   : > { %362 = vrot.lane.b32.xlu1 %v2184_v9, %s2212_s18  ;;  %368 = vrot.lane.b32.xlu0 %v2181_v10, %s2212_s18  ;;  %v211_v9 = vld [vmem:[%s2320_s24 + $0x98] sm:$0xff]  ;;  %v228_v10 = vpack.c.bf16 %v201_v62, %v200_v61 }
  0x1e   : > { %v233_v16 = vpack.c.bf16 %v211_v9, %v210_v8 }
  0x21   : > { %364 = vrot.lane.b32.xlu1 %v2186_v12, %s2212_s18  ;;  %370 = vrot.lane.b32.xlu0 %v2182_v13, %s2212_s18 }
  0x25   : > { %374 = vrot.lane.b32.xlu1 %v2187_v15, %s2212_s18  ;;  %372 = vrot.lane.b32.xlu0 %v2185_v17, %s2212_s18 }
  0x29   : > { %378 = vrot.lane.b32.xlu1 %v2188_v21, %s2212_s18  ;;  %376 = vrot.lane.b32.xlu0 %v2189_v24, %s2212_s18 }
  0x2d   : > { %930 = vrot.lane.b32.xlu1 %v2301_v27, %s2213_s19  ;;  %898 = vrot.lane.b32.xlu0 %v2304_v28, %s2214_s20 }
  0x31   : > { %380 = vrot.lane.b32.xlu1 %v2190_v29, %s2212_s18 }
  0x35   : > { %382 = vrot.lane.b32.xlu1 %v2191_v30, %s2212_s18 }
  0x83   : > { %v357_v37 = vpop.permute.xlu1 %356  ;;  %v353_v41 = vpop.permute.xlu0 %352 }
  0x84   : > { %v387_v43 = vsel %vm384_vm5, %v224_v33, %v353_v41  ;;  %v393_v56 = vsel %vm384_vm5, %v226_v44, %v357_v37 }
  0x85   : > { %v440_v45 = vshrl.u32 %v387_v43, 16  ;;  %v443_v49 = vshll.u32 %v387_v43, 16  ;;  %v452_v3 = vshrl.u32 %v393_v56, 16  ;;  %v455_v18 = vshll.u32 %v393_v56, 16 }
  0x86   : > { %v229_v43 = vpack.c.bf16 %v203_v32, %v202_v31 }
  0x87   : > { %v359_v47 = vpop.permute.xlu1 %358  ;;  %v2331_v48 = vrot.slane %v440_v45, 7  ;;  %v355_v51 = vpop.permute.xlu0 %354  ;;  %v2362_v17 = vrot.slane %v452_v3, 7 }
  0x88   : > { %v396_v50 = vsel %vm384_vm5, %v227_v42, %v359_v47  ;;  %v390_v58 = vsel %vm384_vm5, %v225_v46, %v355_v51 }
  0x89   : > { %v458_v52 = vshrl.u32 %v396_v50, 16  ;;  %v461_v53 = vshll.u32 %v396_v50, 16  ;;  %v445_v57 = vor.u32 %v443_v49, %v2331_v48  ;;  %v446_v60 = vshrl.u32 %v390_v58, 16 }
  0x8a   : > { %v449_v6 = vshll.u32 %v390_v58, 16  ;;  %v457_v36 = vor.u32 %v455_v18, %v2362_v17 }
  0x8b   : > { %v2339_v59 = vrot.slane %v458_v52, 7  ;;  %v361_v63 = vpop.permute.xlu0 %360  ;;  %v2345_v1 = vsel %vm2268_vm2, 0, %v445_v57  ;;  %v448_v5 = vrot.slane %v446_v60, 7  ;;  %v2369_v21 = vpop.permute.xlu1 %366  ;;  %v206_v52 = vld [vmem:[%s2320_s24 + $0x70] sm:$0xff]  ;;  %v2192_v60 = vld [vmem:[%s3796_s2 + $0x38] sm:$0xff]  }
  0x8c   : > { %962 = vrot.lane.b32.xlu0 %v2345_v1, %s2215_s25  ;;  %v399_v24 = vsel %vm384_vm5, %v228_v10, %v361_v63  ;;  %v2400_v49 = vsel %vm2268_vm2, 0, %v457_v36  ;;  %v204_v63 = vld [vmem:[%s2320_s24 + $0x60] sm:$0xff]  ;;  %1490 = vmatpush1.bf16.msra.mxu0 %v2192_v60  ;;  %v836_v31 = vrot.slane %v2345_v1, 1 }
  0x8d   : > { %v463_v4 = vor.u32 %v461_v53, %v2339_v59  ;;  %v451_v13 = vor.u32 %v449_v6, %v448_v5  ;;  %v2358_v14 = vsel %vm2268_vm2, %v448_v5, 0  ;;  %v464_v37 = vshrl.u32 %v399_v24, 16  ;;  %v207_v53 = vld [vmem:[%s2320_s24 + $0x78] sm:$0xff]  ;;  %2150 = vmatpush1.bf16.msra.mxu1 %v2192_v60  ;;  %1491 = vmatprep.subr.bf16.mxu0 %v2211_v0 }
  0x8e   : > { %v840_v30 = vrot.slane %v2358_v14, 1  ;;  %v467_v51 = vshll.u32 %v399_v24, 16  ;;  %2142 = vmatprep.subr.bf16.mxu1 %v2211_v0 }
  0x8f   : > { %v2354_v12 = vsel %vm2268_vm2, 0, %v463_v4  ;;  %v369_v15 = vpop.permute.xlu0 %368  ;;  %v2366_v19 = vsel %vm2268_vm2, 0, %v451_v13  ;;  %v363_v44 = vpop.permute.xlu1 %362  ;;  %v2402_v50 = vrot.slane %v464_v37, 7  ;;  %v231_v4 = vpack.c.bf16 %v207_v53, %v206_v52  ;;  %v2197_v53 = vld [vmem:[%s3796_s2 + $0x10] sm:$0xff]  }
  0x90   : > { %1062 = vrot.lane.b32.xlu1 %v2354_v12, %s2216_s26  ;;  %v411_v20 = vsel %vm384_vm5, %v232_v2, %v369_v15  ;;  %1058 = vrot.lane.b32.xlu0 %v2366_v19, %s2216_s26  ;;  %v839_v29 = vrot.slane %v2366_v19, 1  ;;  %v402_v57 = vsel %vm384_vm5, %v229_v43, %v363_v44  ;;  %v205_v2 = vld [vmem:[%s2320_s24 + $0x68] sm:$0xff]  ;;  %v2193_v15 = vld [vmem:[%s3796_s2 + $0x30] sm:$0xff]  }
  0x91   : > { %v488_v25 = vshrl.u32 %v411_v20, 16  ;;  %v491_v26 = vshll.u32 %v411_v20, 16  ;;  %v469_v6 = vor.u32 %v467_v51, %v2402_v50  ;;  %v470_v8 = vshrl.u32 %v402_v57, 16  ;;  %1492 = vmatpush1.bf16.msra.mxu0 %v2193_v15  ;;  %2151 = vmatpush1.bf16.msra.mxu1 %v2193_v15  ;;  %v2196_v44 = vld [vmem:[%s3796_s2 + $0x18] sm:$0xff]  }
  0x92   : > { %v2387_v39 = vsel %vm832_vm3, %v839_v29, %v840_v30  ;;  %v230_v13 = vpack.c.bf16 %v205_v2, %v204_v63  ;;  %v408_v20 = vsel %vm384_vm5, %v231_v4, %v2369_v21  ;;  %v473_v24 = vshll.u32 %v402_v57, 16  ;;  %1493 = vmatprep.subr.bf16.mxu0 %v2211_v0  ;;  %2143 = vmatprep.subr.bf16.mxu1 %v2211_v0 }
  0x93   : > { %v2380_v33 = vrot.slane %v488_v25, 7  ;;  %v371_v34 = vpop.permute.xlu0 %370  ;;  %2120 = vmatprep.mubr.msk.bf16.mxu0 %vm1122_vm6, %v2387_v39  ;;  %v365_v18 = vpop.permute.xlu1 %364  ;;  %v2449_v22 = vsel %vm2268_vm2, 0, %v469_v6  ;;  %v2451_v23 = vrot.slane %v470_v8, 7  ;;  %v2469_v29 = vsel %vm2268_vm2, %v2331_v48, 0  ;;  %v2199_v6 = vld [vmem:[%s3796_s2] sm:$0xff]  }
  0x94   : > { %968 = vrot.lane.b32.xlu1 %v2354_v12, %s2215_s25  ;;  %v414_v38 = vsel %vm384_vm5, %v233_v16, %v371_v34  ;;  %964 = vrot.lane.b32.xlu0 %v2366_v19, %s2215_s25  ;;  %v405_v21 = vsel %vm384_vm5, %v230_v13, %v365_v18  ;;  %v482_v30 = vshrl.u32 %v408_v20, 16  ;;  %v837_v48 = vrot.slane %v2469_v29, 1  ;;  %v2200_v13 = vld [vmem:[%s3796_s2 + $0x40] sm:$0xff]  }
  0x95   : > { %v493_v40 = vor.u32 %v491_v26, %v2380_v33  ;;  %v494_v41 = vshrl.u32 %v414_v38, 16  ;;  %v497_v42 = vshll.u32 %v414_v38, 16  ;;  %v2194_v26 = vld [vmem:[%s3796_s2 + $0x28] sm:$0xff]   ;;  %v475_v32 = vor.u32 %v473_v24, %v2451_v23 }
  0x96   : > { %1494 = vmatpush1.bf16.msra.mxu0 %v2194_v26  ;;  %v476_v34 = vshrl.u32 %v405_v21, 16  ;;  %2152 = vmatpush1.bf16.msra.mxu1 %v2194_v26  ;;  %v484_v36 = vrot.slane %v482_v30, 7  ;;  %v485_v37 = vshll.u32 %v408_v20, 16  ;;  %v838_v38 = vsel %vm832_vm3, %v836_v31, %v837_v48 }
  0x97   : > { %v2396_v45 = vsel %vm2268_vm2, 0, %v493_v40  ;;  %v496_v46 = vrot.slane %v494_v41, 7  ;;  %v373_v47 = vpop.permute.xlu0 %372  ;;  %1495 = vmatprep.subr.bf16.mxu0 %v2211_v0  ;;  %2144 = vmatprep.subr.bf16.mxu1 %v2211_v0  ;;  %v2488_v40 = vsel %vm2268_vm2, %v2339_v59, 0  ;;  %v2492_v41 = vsel %vm2268_vm2, 0, %v475_v32 }
  0x98   : > { %978 = vrot.lane.b32.xlu1 %v2396_v45, %s2215_s25  ;;  %v417_v54 = vsel %vm384_vm5, %v234_v35, %v373_v47  ;;  %1060 = vrot.lane.b32.xlu0 %v2400_v49, %s2216_s26  ;;  %v2195_v35 = vld [vmem:[%s3796_s2 + $0x20] sm:$0xff]   ;;  %3815 = vst [vmem:[#allocation6_spill] sm:$0xff] %v2492_v41  ;;  %v479_v43 = vshll.u32 %v405_v21, 16  ;;  %v487_v59 = vor.u32 %v485_v37, %v484_v36  ;;  %v846_v47 = vrot.slane %v2488_v40, 1 }
  0x99   : > { %v499_v55 = vor.u32 %v497_v42, %v496_v46  ;;  %v2411_v56 = vsel %vm2268_vm2, %v496_v46, 0  ;;  %v500_v58 = vshrl.u32 %v417_v54, 16  ;;  %v503_v61 = vshll.u32 %v417_v54, 16 }
  0x9a   : > { %v864_v62 = vrot.slane %v2411_v56, 1  ;;  %1496 = vmatpush1.bf16.msra.mxu0 %v2195_v35  ;;  %v2494_v42 = vrot.slane %v476_v34, 7  ;;  %2153 = vmatpush1.bf16.msra.mxu1 %v2195_v35  ;;  %v845_v46 = vrot.slane %v2354_v12, 1  ;;  %v2508_v51 = vsel %vm2268_vm2, %v484_v36, 0 }
  0x9b   : > { %v2424_v3 = vsel %vm2268_vm2, 0, %v499_v55  ;;  %v2426_v5 = vrot.slane %v500_v58, 7  ;;  %1497 = vmatprep.subr.bf16.mxu0 %v2211_v0  ;;  %2145 = vmatprep.subr.bf16.mxu1 %v2211_v0  ;;  %v2521_v54 = vsel %vm2268_vm2, 0, %v487_v59  ;;  %v858_v58 = vrot.slane %v2508_v51, 1 }
  0x9c   : > { %3813 = vst [vmem:[#allocation4_spill] sm:$0xff] %v2424_v3  ;;  %1074 = vrot.lane.b32.xlu1 %v2424_v3, %s2216_s26  ;;  %v863_v9 = vrot.slane %v2424_v3, 1  ;;  %966 = vrot.lane.b32.xlu0 %v2400_v49, %s2215_s25  ;;  %v481_v52 = vor.u32 %v479_v43, %v2494_v42  ;;  %v2525_v55 = vsel %vm832_vm3, %v845_v46, %v846_v47  ;;  %v857_v57 = vrot.slane %v2521_v54, 1 }
  0x9d   : > { %v505_v10 = vor.u32 %v503_v61, %v2426_v5  ;;  %v2532_v60 = vsel %vm2268_vm2, %v2380_v33, 0  ;;  %v860_v63 = vrot.slane %v2396_v45, 1  ;;  %v593_v4 = vsel %vm2268_vm2, %v2362_v17, 0 }
  0x9e   : > { %v2441_v16 = vsel %vm832_vm3, %v863_v9, %v864_v62  ;;  %1498 = vmatpush1.bf16.msra.mxu0 %v2196_v44  ;;  %2154 = vmatpush1.bf16.msra.mxu1 %v2196_v44  ;;  %v2536_v61 = vsel %vm2268_vm2, 0, %v481_v52  ;;  %v2198_v62 = vld [vmem:[%s3796_s2 + $0x8] sm:$0xff]   ;;  %v2548_v33 = vsel %vm832_vm3, %v857_v57, %v858_v58  ;;  %v861_v2 = vrot.slane %v2532_v60, 1 }
  0x9f   : > { %2128 = vmatprep.mubr.msk.bf16.mxu1 %vm1122_vm6, %v2441_v16  ;;  %v2458_v25 = vsel %vm2268_vm2, 0, %v505_v10  ;;  %1499 = vmatprep.subr.bf16.mxu0 %v2211_v0  ;;  %3816 = vst [vmem:[#allocation7_spill] sm:$0xff] %v2536_v61  ;;  %3817 = vst [vmem:[#allocation8_spill] sm:$0xff] %v2548_v33  ;;  %v623_v9 = vshll.u32 %v2345_v1, 16  ;;  %v842_v17 = vrot.slane %v2400_v49, 1  ;;  %v843_v10 = vrot.slane %v593_v4, 1 }
  0xa0   : > { %980 = vrot.lane.b32.xlu1 %v2424_v3, %s2215_s25  ;;  %3814 = vst [vmem:[#allocation5_spill] sm:$0xff] %v2458_v25  ;;  %1064 = vrot.lane.b32.xlu0 %v2449_v22, %s2216_s26  ;;  %v2564_v8 = vsel %vm832_vm3, %v860_v63, %v861_v2  ;;  %v635_v18 = vshll.u32 %v2366_v19, 16  ;;  %v628_v24 = vshll.u32 %v2469_v29, 16  ;;  %v640_v26 = vshll.u32 %v2358_v14, 16 }
  0xa1   : > { %2146 = vmatprep.subr.bf16.mxu1 %v2211_v0  ;;  %3818 = vst [vmem:[#allocation9_spill] sm:$0xff] %v2564_v8  ;;  %v625_v15 = vrot.slane %v623_v9, 1  ;;  %v2581_v20 = vsel %vm832_vm3, %v842_v17, %v843_v10  ;;  %v595_v30 = vsel %vm2268_vm2, %v2402_v50, 0  ;;  %v633_v31 = vshrl.u32 %v2366_v19, 16 }
  0xa2   : > { %1500 = vmatpush1.bf16.msra.mxu0 %v2197_v53  ;;  %2155 = vmatpush1.bf16.msra.mxu1 %v2197_v53  ;;  %v630_v29 = vrot.slane %v628_v24, 1  ;;  %v647_v48 = vshll.u32 %v2400_v49, 16  ;;  %v848_v14 = vrot.slane %v2449_v22, 1  ;;  %v849_v35 = vrot.slane %v595_v30, 1 }
  0xa3   : > { %1501 = vmatprep.subr.bf16.mxu0 %v2211_v0  ;;  %2147 = vmatprep.subr.bf16.mxu1 %v2211_v0  ;;  %v642_v50 = vrot.slane %v640_v26, 1  ;;  %v652_v36 = vshll.u32 %v593_v4, 16  ;;  %v2611_v59 = vsel %vm2268_vm2, %v2451_v23, 0  ;;  %v851_v52 = vrot.slane %v2492_v41, 1 }
  0xa4   : > { %1076 = vrot.lane.b32.xlu1 %v2458_v25, %s2216_s26  ;;  %970 = vrot.lane.b32.xlu0 %v2449_v22, %s2215_s25  ;;  %v649_v43 = vrot.slane %v647_v48, 1  ;;  %v2605_v44 = vsel %vm832_vm3, %v848_v14, %v849_v35  ;;  %v852_v53 = vrot.slane %v2611_v59, 1  ;;  %v671_v58 = vshll.u32 %v2449_v22, 16 }
  0xa5   : > { %v654_v47 = vrot.slane %v652_v36, 1  ;;  %v676_v63 = vshll.u32 %v595_v30, 16  ;;  %v669_v2 = vshrl.u32 %v2449_v22, 16  ;;  %v664_v9 = vshll.u32 %v2488_v40, 16 }
  0xa6   : > { %1502 = vmatpush1.bf16.msra.mxu0 %v2198_v62  ;;  %2156 = vmatpush1.bf16.msra.mxu1 %v2198_v62  ;;  %v2623_v23 = vsel %vm832_vm3, %v851_v52, %v852_v53  ;;  %v659_v62 = vshll.u32 %v2354_v12, 16  ;;  %v673_v4 = vrot.slane %v671_v58, 1  ;;  %v657_v17 = vshrl.u32 %v2354_v12, 16 }
  0xa7   : > { %1503 = vmatprep.subr.bf16.mxu0 %v2211_v0  ;;  %2148 = vmatprep.subr.bf16.mxu1 %v2211_v0  ;;  %v705_v24 = vshrl.u32 %v2521_v54, 16  ;;  %v666_v40 = vrot.slane %v664_v9, 1  ;;  %v724_v26 = vshll.u32 %v2532_v60, 16  ;;  %v736_v14 = vshll.u32 %v2411_v56, 16  ;;  %v215_v9 = vld [vmem:[%s2320_s24 + $0xb8] sm:$0xff] }
  0xa8   : > { %932 = vrot.lane.b32.xlu1 %v838_v38, %s2213_s19  ;;  %1066 = vrot.lane.b32.xlu0 %v2492_v41, %s2216_s26  ;;  %v661_v10 = vrot.slane %v659_v62, 1  ;;  %v729_v36 = vshrl.u32 %v2424_v3, 16  ;;  %v688_v52 = vshll.u32 %v2611_v59, 16  ;;  %v681_v53 = vshrl.u32 %v2492_v41, 16 }
  0xa9   : > { %v726_v35 = vrot.slane %v724_v26, 1  ;;  %v738_v56 = vrot.slane %v736_v14, 1  ;;  %v743_v62 = vshll.u32 %v2458_v25, 16  ;;  %v693_v26 = vshrl.u32 %v2536_v61, 16 }
  0xaa   : > { %1504 = vmatpush1.bf16.msra.mxu0 %v2199_v6  ;;  %2157 = vmatpush1.bf16.msra.mxu1 %v2199_v6  ;;  %v707_v6 = vshll.u32 %v2521_v54, 16 }
  0xab   : > { %1519 = vmatprep.subr.bf16.mxu0 %v2211_v0  ;;  %2149 = vmatprep.subr.bf16.mxu1 %v2211_v0  ;;  %v637_v0 = vrot.slane %v635_v18, 1  ;;  %v674_v18 = vor.u32 %v673_v4, %v669_v2  ;;  %v690_v2 = vrot.slane %v688_v52, 1 }
  0xac   : > { %934 = vrot.lane.b32.xlu1 %v2387_v39, %s2213_s19  ;;  %972 = vrot.lane.b32.xlu0 %v2492_v41, %s2215_s25 }
  0xad   : > { %v638_v34 = vor.u32 %v637_v0, %v633_v31  ;;  %v662_v0 = vor.u32 %v661_v10, %v657_v17  ;;  %v741_v10 = vshrl.u32 %v2458_v25, 16 }
  0xae   : > { %1520 = vmatpush2.bf16.msra.mxu0 %v2200_v13  ;;  %2158 = vmatpush2.bf16.msra.mxu1 %v2200_v13  ;;  %v712_v13 = vshll.u32 %v2508_v51, 16 }
  0xaf   : > { %v643_v37 = vsel %vm607_vm4, %v638_v34, %v642_v50  ;;  %v731_v34 = vshll.u32 %v2424_v3, 16  ;;  %v667_v48 = vsel %vm607_vm4, %v662_v0, %v666_v40 }
  0xb0   : > { %1032 = vrot.lane.b32.xlu1 %v2525_v55, %s2217_s14  ;;  %1068 = vrot.lane.b32.xlu0 %v2536_v61, %s2216_s26  ;;  %v714_v30 = vrot.slane %v712_v13, 1  ;;  %v745_v13 = vrot.slane %v743_v62, 1 }
  0xb4   : > { %946 = vrot.lane.b32.xlu1 %v2548_v33, %s2213_s19  ;;  %1026 = vrot.lane.b32.xlu0 %v838_v38, %s2217_s14  ;;  %v645_v38 = vshrl.u32 %v2400_v49, 16 }
  0xb6   : > { %v650_v46 = vor.u32 %v649_v43, %v645_v38  ;;  %v683_v38 = vshll.u32 %v2492_v41, 16  ;;  %v223_v41 = vld [vmem:[%s2320_s24 + $0xf8] sm:$0xff] }
  0xb8   : > { %1042 = vrot.lane.b32.xlu1 %v2564_v8, %s2217_s14  ;;  %1028 = vrot.lane.b32.xlu0 %v2387_v39, %s2217_s14  ;;  %v621_v39 = vshrl.u32 %v2345_v1, 16  ;;  %v655_v57 = vsel %vm607_vm4, %v650_v46, %v654_v47  ;;  %v375_v47 = vpop.permute.xlu1 %374 }
  0xba   : > { %v626_v21 = vor.u32 %v625_v15, %v621_v39  ;;  %v678_v15 = vrot.slane %v676_v63, 1  ;;  %v709_v39 = vrot.slane %v707_v6, 1  ;;  %v2669_v63 = vsel %vm2268_vm2, %v2426_v5, 0  ;;  %v214_v6 = vld [vmem:[%s2320_s24 + $0xb0] sm:$0xff] }
  0xbb   : > { %v748_v17 = vshll.u32 %v2669_v63, 16  ;;  %v695_v5 = vshll.u32 %v2536_v61, 16 }
  0xbc   : > { %948 = vrot.lane.b32.xlu1 %v2564_v8, %s2213_s19  ;;  %1030 = vrot.lane.b32.xlu0 %v2581_v20, %s2217_s14  ;;  %v631_v32 = vsel %vm607_vm4, %v626_v21, %v630_v29  ;;  %v719_v21 = vshll.u32 %v2396_v45, 16  ;;  %v717_v29 = vshrl.u32 %v2396_v45, 16  ;;  %v679_v51 = vsel %vm607_vm4, %v674_v18, %v678_v15  ;;  %v2673_v4 = vpop.permute.xlu1 %378  ;;  %v222_v8 = vld [vmem:[%s2320_s24 + $0xf0] sm:$0xff] }
  0xbd   : > { %v710_v31 = vor.u32 %v709_v39, %v705_v24  ;;  %v597_v18 = vsel %vm2268_vm2, %v2494_v42, 0  ;;  %v235_v24 = vpack.c.bf16 %v215_v9, %v214_v6  ;;  %v746_v39 = vor.u32 %v745_v13, %v741_v10 }
  0xbe   : > { %v700_v40 = vshll.u32 %v597_v18, 16  ;;  %v854_v13 = vrot.slane %v2536_v61, 1 }
  0xbf   : > { %v2649_v60 = vsel %vm607_vm4, %v710_v31, %v714_v30  ;;  %v697_v30 = vrot.slane %v695_v5, 1 }
  0xc0   : > { %1044 = vrot.lane.b32.xlu1 %v2441_v16, %s2217_s14  ;;  %936 = vrot.lane.b32.xlu0 %v2581_v20, %s2213_s19  ;;  %v2687_v0 = vpop.permute.xlu1 %930 }
  0xc4   : > { %994 = vrot.lane.b32.xlu1 %v631_v32, %s2218_s27  ;;  %938 = vrot.lane.b32.xlu0 %v2525_v55, %s2213_s19  ;;  %v2696_v14 = vpop.permute.xlu1 %380 }
  0xc8   : > { %1090 = vrot.lane.b32.xlu1 %v643_v37, %s2219_s28  ;;  %1034 = vrot.lane.b32.xlu0 %v2605_v44, %s2217_s14 }
  0xcc   : > { %996 = vrot.lane.b32.xlu1 %v643_v37, %s2218_s27  ;;  %940 = vrot.lane.b32.xlu0 %v2605_v44, %s2213_s19 }
  0xd0   : > { %1092 = vrot.lane.b32.xlu1 %v655_v57, %s2219_s28  ;;  %1036 = vrot.lane.b32.xlu0 %v2623_v23, %s2217_s14 }
  0xd4   : > { %998 = vrot.lane.b32.xlu1 %v655_v57, %s2218_s27  ;;  %900 = vrot.lane.b32.xlu0 %v631_v32, %s2214_s20  ;;  %v721_v32 = vrot.slane %v719_v21, 1  ;;  %v750_v21 = vrot.slane %v748_v17, 1 }
  0xd6   : > { %v722_v50 = vor.u32 %v721_v32, %v717_v29  ;;  %v420_v29 = vsel %vm384_vm5, %v235_v24, %v375_v47  ;;  %v751_v31 = vsel %vm607_vm4, %v746_v39, %v750_v21  ;;  %v377_v32 = vpop.permute.xlu0 %376 }
  0xd7   : > { %v506_v42 = vshrl.u32 %v420_v29, 16 }
  0xd8   : > { %904 = vrot.lane.b32.xlu1 %v655_v57, %s2214_s20  ;;  %902 = vrot.lane.b32.xlu0 %v643_v37, %s2214_s20  ;;  %v733_v37 = vrot.slane %v731_v34, 1  ;;  %v2657_v43 = vsel %vm607_vm4, %v722_v50, %v726_v35  ;;  %v685_v57 = vrot.slane %v683_v38, 1  ;;  %v698_v34 = vor.u32 %v697_v30, %v693_v26 }
  0xd9   : > { %v508_v35 = vrot.slane %v506_v42, 7  ;;  %v509_v50 = vshll.u32 %v420_v29, 16 }
  0xda   : > { %v734_v46 = vor.u32 %v733_v37, %v729_v36  ;;  %v686_v59 = vor.u32 %v685_v57, %v681_v53  ;;  %v2700_v37 = vpop.permute.xlu0 %898  ;;  %v867_v53 = vrot.slane %v2669_v63, 1 }
  0xdb   : > { %v511_v38 = vor.u32 %v509_v50, %v508_v35 }
  0xdc   : > { %1096 = vrot.lane.b32.xlu1 %v679_v51, %s2219_s28  ;;  %1094 = vrot.lane.b32.xlu0 %v667_v48, %s2219_s28  ;;  %v739_v58 = vsel %vm607_vm4, %v734_v46, %v738_v56  ;;  %v691_v15 = vsel %vm607_vm4, %v686_v59, %v690_v2  ;;  %v216_v59 = vld [vmem:[%s2320_s24 + $0xc0] sm:$0xff]  ;;  %v217_v2 = vld [vmem:[%s2320_s24 + $0xc8] sm:$0xff] }
  0xdd   : > { %v2712_v56 = vsel %vm2268_vm2, 0, %v511_v38  ;;  %v236_v5 = vpack.c.bf16 %v217_v2, %v216_v59  ;;  %v218_v59 = vld [vmem:[%s2320_s24 + $0xd0] sm:$0xff]  ;;  %v219_v2 = vld [vmem:[%s2320_s24 + $0xd8] sm:$0xff] }
  0xde   : > { %3819 = vst [vmem:[#allocation10_spill] sm:$0xff] %v2712_v56  ;;  %v755_v57 = vshll.u32 %v2712_v56, 16  ;;  %v753_v17 = vshrl.u32 %v2712_v56, 16 }
  0xdf   : > { %v423_v30 = vsel %vm384_vm5, %v236_v5, %v377_v32 }
  0xe0   : > { %914 = vrot.lane.b32.xlu1 %v2649_v60, %s2214_s20  ;;  %1000 = vrot.lane.b32.xlu0 %v667_v48, %s2218_s27  ;;  %v757_v10 = vrot.slane %v755_v57, 1  ;;  %v515_v50 = vshll.u32 %v423_v30, 16 }
  0xe2   : > { %v758_v21 = vor.u32 %v757_v10, %v753_v17  ;;  %v237_v17 = vpack.c.bf16 %v219_v2, %v218_v59 }
  0xe4   : > { %1010 = vrot.lane.b32.xlu1 %v2657_v43, %s2218_s27  ;;  %906 = vrot.lane.b32.xlu0 %v667_v48, %s2214_s20  ;;  %v702_v48 = vrot.slane %v700_v40, 1 }
  0xe6   : > { %v703_v36 = vsel %vm607_vm4, %v698_v34, %v702_v48  ;;  %v512_v34 = vshrl.u32 %v423_v30, 16  ;;  %v221_v30 = vld [vmem:[%s2320_s24 + $0xe8] sm:$0xff] }
  0xe8   : > { %1106 = vrot.lane.b32.xlu1 %v739_v58, %s2219_s28  ;;  %1002 = vrot.lane.b32.xlu0 %v679_v51, %s2218_s27 }
  0xec   : > { %916 = vrot.lane.b32.xlu1 %v2657_v43, %s2214_s20  ;;  %1098 = vrot.lane.b32.xlu0 %v691_v15, %s2219_s28 }
  0xf0   : > { %1012 = vrot.lane.b32.xlu1 %v739_v58, %s2218_s27  ;;  %908 = vrot.lane.b32.xlu0 %v679_v51, %s2214_s20  ;;  %v2703_v51 = vpop.permute.xlu1 %382 }
  0xf4   : > { %1108 = vrot.lane.b32.xlu1 %v751_v31, %s2219_s28  ;;  %1004 = vrot.lane.b32.xlu0 %v691_v15, %s2218_s27 }
  0xf8   : > { %918 = vrot.lane.b32.xlu1 %v739_v58, %s2214_s20  ;;  %1100 = vrot.lane.b32.xlu0 %v703_v36, %s2219_s28  ;;  %v2727_v58 = vsel %vm2268_vm2, %v508_v35, 0  ;;  %v514_v35 = vrot.slane %v512_v34, 7  ;;  %v426_v34 = vsel %vm384_vm5, %v237_v17, %v2673_v4 }
  0xf9   : > { %v760_v6 = vshll.u32 %v2727_v58, 16 }
  0xfb   : > { %v762_v40 = vrot.slane %v760_v6, 1 }
  0xfc   : > { %950 = vrot.lane.b32.xlu1 %v2441_v16, %s2213_s19  ;;  %910 = vrot.lane.b32.xlu0 %v691_v15, %s2214_s20  ;;  %v866_v16 = vrot.slane %v2458_v25, 1  ;;  %v855_v15 = vrot.slane %v597_v18, 1 }
  0xfd   : > { %v2764_v42 = vsel %vm607_vm4, %v758_v21, %v762_v40  ;;  %v2807_v21 = vsel %vm2268_vm2, %v514_v35, 0  ;;  %v220_v40 = vld [vmem:[%s2320_s24 + $0xe0] sm:$0xff]  ;;  %s3575_s24 = scalar_lea.vmem %s3797_s3, %s2138_s21 }
  0xfe   : > { %v2708_v46 = vpop.permute.xlu0 %962  ;;  %v2740_v63 = vsel %vm832_vm3, %v866_v16, %v867_v53  ;;  %v2752_v26 = vsel %vm832_vm3, %v854_v13, %v855_v15  ;;  %v517_v53 = vor.u32 %v515_v50, %v514_v35  ;;  %v869_v13 = vrot.slane %v2712_v56, 1 }
  0xff   : > { %v870_v15 = vrot.slane %v2727_v58, 1  ;;  %v772_v58 = vshll.u32 %v2807_v21, 16  ;;  %v238_v27 = vpack.c.bf16 %v221_v30, %v220_v40  ;;  %v873_v3 = vrot.slane %v2807_v21, 1 }
 0x100   : > { %982 = vrot.lane.b32.xlu1 %v2458_v25, %s2215_s25  ;;  %942 = vrot.lane.b32.xlu0 %v2623_v23, %s2213_s19  ;;  %v2792_v6 = vsel %vm2268_vm2, 0, %v517_v53  ;;  %v239_v21 = vpack.c.bf16 %v223_v41, %v222_v8 }
 0x101   : > { %v767_v5 = vshll.u32 %v2792_v6, 16  ;;  %v2823_v35 = vsel %vm832_vm3, %v869_v13, %v870_v15  ;;  %v765_v59 = vshrl.u32 %v2792_v6, 16  ;;  %v774_v17 = vrot.slane %v772_v58, 1 }
 0x102   : > { %v2718_v47 = vpop.permute.xlu1 %1062  ;;  %v2720_v52 = vpop.permute.xlu0 %1058  ;;  %3821 = vst [vmem:[#allocation12_spill] sm:$0xff] %v2823_v35  ;;  %v429_v13 = vsel %vm384_vm5, %v238_v27, %v2696_v14 }
 0x103   : > { %v769_v2 = vrot.slane %v767_v5, 1  ;;  %v521_v5 = vshll.u32 %v426_v34, 16  ;;  %v524_v30 = vshrl.u32 %v429_v13, 16 }
 0x104   : > { %1014 = vrot.lane.b32.xlu1 %v751_v31, %s2218_s27  ;;  %974 = vrot.lane.b32.xlu0 %v2536_v61, %s2215_s25 }
 0x105   : > { %v770_v25 = vor.u32 %v769_v2, %v765_v59  ;;  %v526_v14 = vrot.slane %v524_v30, 7 }
 0x106   : > { %v2732_v62 = vpop.permute.xlu1 %968  ;;  %v2737_v9 = vpop.permute.xlu0 %964 }
 0x107   : > { %v775_v58 = vsel %vm607_vm4, %v770_v25, %v774_v17  ;;  %v1124_v25 = vsel %vm1122_vm6, %v2279_v11, %v2700_v37  ;;  %v2900_v11 = vsel %vm2268_vm2, %v526_v14, 0 }
 0x108   : > { %1046 = vrot.lane.b32.xlu1 %v2740_v63, %s2217_s14  ;;  %1006 = vrot.lane.b32.xlu0 %v703_v36, %s2218_s27 }
 0x10a   : > { %v2747_v24 = vpop.permute.xlu1 %978  ;;  %v2749_v39 = vpop.permute.xlu0 %1060 }
 0x10c   : > { %1078 = vrot.lane.b32.xlu1 %v2712_v56, %s2216_s26  ;;  %1038 = vrot.lane.b32.xlu0 %v2752_v26, %s2217_s14 }
 0x10e   : > { %v2759_v18 = vpop.permute.xlu1 %1074  ;;  %v2761_v29 = vpop.permute.xlu0 %966 }
 0x110   : > { %1110 = vrot.lane.b32.xlu1 %v2764_v42, %s2219_s28  ;;  %1070 = vrot.lane.b32.xlu0 %v2521_v54, %s2216_s26 }
 0x112   : > { %v2770_v32 = vpop.permute.xlu1 %980  ;;  %v2772_v48 = vpop.permute.xlu0 %1064 }
 0x114   : > { %920 = vrot.lane.b32.xlu1 %v751_v31, %s2214_s20  ;;  %1102 = vrot.lane.b32.xlu0 %v2649_v60, %s2219_s28 }
 0x116   : > { %v2777_v38 = vpop.permute.xlu1 %1076  ;;  %v2779_v16 = vpop.permute.xlu0 %970 }
 0x118   : > { %952 = vrot.lane.b32.xlu1 %v2740_v63, %s2213_s19  ;;  %912 = vrot.lane.b32.xlu0 %v703_v36, %s2214_s20 }
 0x11a   : > { %v2784_v57 = vpop.permute.xlu1 %932  ;;  %v2788_v31 = vpop.permute.xlu0 %1066 }
 0x11c   : > { %984 = vrot.lane.b32.xlu1 %v2712_v56, %s2215_s25  ;;  %944 = vrot.lane.b32.xlu0 %v2752_v26, %s2213_s19  ;;  %v518_v56 = vshrl.u32 %v426_v34, 16 }
 0x11e   : > { %v2798_v36 = vpop.permute.xlu1 %934  ;;  %v2800_v10 = vpop.permute.xlu0 %972  ;;  %v520_v15 = vrot.slane %v518_v56, 7  ;;  %v527_v56 = vshll.u32 %v429_v13, 16 }
 0x120   : > { %1016 = vrot.lane.b32.xlu1 %v2764_v42, %s2218_s27  ;;  %976 = vrot.lane.b32.xlu0 %v2521_v54, %s2215_s25  ;;  %v523_v59 = vor.u32 %v521_v5, %v520_v15  ;;  %v604_v13 = vsel %vm2268_vm2, %v520_v15, 0  ;;  %v529_v5 = vor.u32 %v527_v56, %v526_v14  ;;  %v796_v14 = vshll.u32 %v2900_v11, 16 }
 0x121   : > { %v784_v37 = vshll.u32 %v604_v13, 16 }
 0x122   : > { %v2817_v50 = vpop.permute.xlu1 %1032  ;;  %v2820_v53 = vpop.permute.xlu0 %1068  ;;  %v2854_v2 = vsel %vm2268_vm2, 0, %v523_v59  ;;  %v1157_v59 = vsel %vm1155_vm7, %v1124_v25, %v2687_v0 }
 0x123   : > { %3820 = vst [vmem:[#allocation11_spill] sm:$0xff] %v2820_v53  ;;  %3822 = vst [vmem:[#allocation13_spill] sm:$0xff] %v2854_v2  ;;  %v1190_v15 = vsel %vm1188_vm8, %v1157_v59, %v2708_v46  ;;  %v777_v46 = vshrl.u32 %v2854_v2, 16 }
 0x124   : > { %1048 = vrot.lane.b32.xlu1 %v2823_v35, %s2217_s14  ;;  %1008 = vrot.lane.b32.xlu0 %v2649_v60, %s2218_s27 }
 0x126   : > { %v2830_v4 = vpop.permute.xlu1 %946  ;;  %v1027_v61 = vpop.permute.xlu0 %1026 }
 0x128   : > { %1080 = vrot.lane.b32.xlu1 %v2792_v6, %s2216_s26  ;;  %1040 = vrot.lane.b32.xlu0 %v2548_v33, %s2217_s14  ;;  %v2880_v33 = vsel %vm2268_vm2, 0, %v529_v5 }
 0x12a   : > { %v2838_v40 = vpop.permute.xlu1 %1042  ;;  %v2840_v60 = vpop.permute.xlu0 %1028 }
 0x12c   : > { %1112 = vrot.lane.b32.xlu1 %v775_v58, %s2219_s28  ;;  %1072 = vrot.lane.b32.xlu0 %v2396_v45, %s2216_s26 }
 0x12e   : > { %v2846_v27 = vpop.permute.xlu1 %948  ;;  %v2848_v34 = vpop.permute.xlu0 %1030 }
 0x130   : > { %954 = vrot.lane.b32.xlu1 %v2823_v35, %s2213_s19  ;;  %1104 = vrot.lane.b32.xlu0 %v2657_v43, %s2219_s28  ;;  %v779_v43 = vshll.u32 %v2854_v2, 16 }
 0x132   : > { %v2861_v17 = vpop.permute.xlu1 %1044  ;;  %v2865_v30 = vpop.permute.xlu0 %936  ;;  %v781_v59 = vrot.slane %v779_v43, 1 }
 0x134   : > { %1018 = vrot.lane.b32.xlu1 %v775_v58, %s2218_s27  ;;  %922 = vrot.lane.b32.xlu0 %v2764_v42, %s2214_s20  ;;  %v872_v42 = vrot.slane %v2792_v6, 1  ;;  %v782_v8 = vor.u32 %v781_v59, %v777_v46 }
 0x136   : > { %v995_v56 = vpop.permute.xlu1 %994  ;;  %v2882_v53 = vpop.permute.xlu0 %938  ;;  %v2903_v41 = vsel %vm832_vm3, %v872_v42, %v873_v3  ;;  %v875_v3 = vrot.slane %v2854_v2, 1 }
 0x137   : > { %v1223_v0 = vsel %vm1221_vm9, %v1190_v15, %v995_v56 }
 0x138   : > { %v1256_v25 = vsel %vm1254_vm10, %v1223_v0, %v1027_v61  ;;  %1082 = vrot.lane.b32.xlu1 %v2854_v2, %s2216_s26  ;;  %986 = vrot.lane.b32.xlu0 %v2792_v6, %s2215_s25  ;;  %v791_v61 = vshll.u32 %v2880_v33, 16  ;;  %v786_v0 = vrot.slane %v784_v37, 1 }
 0x139   : > { %v1289_v5 = vsel %vm1287_vm11, %v1256_v25, %v2720_v52  ;;  %v432_v52 = vsel %vm384_vm5, %v239_v21, %v2703_v51 }
 0x13a   : > { %v1091_v35 = vpop.permute.xlu1 %1090  ;;  %v2894_v15 = vpop.permute.xlu0 %1034  ;;  %v793_v42 = vrot.slane %v791_v61, 1  ;;  %v530_v25 = vshrl.u32 %v432_v52, 16  ;;  %v787_v51 = vsel %vm607_vm4, %v782_v8, %v786_v0 }
 0x13b   : > { %v1322_v56 = vsel %vm1320_vm12, %v1289_v5, %v1091_v35  ;;  %v876_v35 = vrot.slane %v604_v13, 1  ;;  %v798_v13 = vrot.slane %v796_v14, 1 }
 0x13c   : > { %924 = vrot.lane.b32.xlu1 %v775_v58, %s2214_s20  ;;  %1522 = vmatmul.mubr.bf16.vlgmr.msra.gmra.mxu0 %v1322_v56  ;;  %v789_v58 = vshrl.u32 %v2880_v33, 16  ;;  %v532_v5 = vrot.slane %v530_v25, 7  ;;  %v533_v56 = vshll.u32 %v432_v52, 16 }
 0x13d   : > { %1050 = vrot.lane.b32.xlu0 %v2903_v41, %s2217_s14  ;;  %2121 = vmatprep.mubr.msk.bf16.mxu0 %vm1122_vm6, %v2581_v20  ;;  %v2924_v59 = vsel %vm832_vm3, %v875_v3, %v876_v35 }
 0x13e   : > { %v997_v43 = vpop.permute.xlu1 %996  ;;  %v2913_v37 = vpop.permute.xlu0 %940  ;;  %v794_v21 = vor.u32 %v793_v42, %v789_v58 }
 0x140   : > { %988 = vrot.lane.b32.xlu1 %v2854_v2, %s2215_s25  ;;  %v799_v8 = vsel %vm607_vm4, %v794_v21, %v798_v13  ;;  %v535_v2 = vor.u32 %v533_v56, %v532_v5 }
 0x141   : > { %1114 = vrot.lane.b32.xlu0 %v787_v51, %s2219_s28 }
 0x142   : > { %v1093_v20 = vpop.permute.xlu1 %1092  ;;  %v2921_v46 = vpop.permute.xlu0 %1036 }
 0x144   : > { %1052 = vrot.lane.b32.xlu1 %v2924_v59, %s2217_s14 }
 0x145   : > { %956 = vrot.lane.b32.xlu0 %v2903_v41, %s2213_s19 }
 0x146   : > { %v999_v61 = vpop.permute.xlu1 %998  ;;  %v901_v0 = vpop.permute.xlu0 %900 }
 0x147   : > { %v1126_v14 = vsel %vm1122_vm6, %v2345_v1, %v901_v0  ;;  %v878_v0 = vrot.slane %v2880_v33, 1 }
 0x148   : > { %1116 = vrot.lane.b32.xlu1 %v799_v8, %s2219_s28  ;;  %v1159_v35 = vsel %vm1155_vm7, %v1126_v14, %v2784_v57  ;;  %v2948_v57 = vsel %vm2268_vm2, 0, %v535_v2 }
 0x149   : > { %1020 = vrot.lane.b32.xlu0 %v787_v51, %s2218_s27  ;;  %v1192_v52 = vsel %vm1188_vm8, %v1159_v35, %v2737_v9  ;;  %v882_v7 = vshrl.u32 %v2948_v57, 16 }
 0x14a   : > { %v905_v3 = vpop.permute.xlu1 %904  ;;  %v903_v58 = vpop.permute.xlu0 %902  ;;  %v1225_v42 = vsel %vm1221_vm9, %v1192_v52, %v997_v43 }
 0x14b   : > { %v1128_v25 = vsel %vm1122_vm6, %v2366_v19, %v903_v58  ;;  %v1258_v1 = vsel %vm1254_vm10, %v1225_v42, %v2840_v60  ;;  %v1130_v13 = vsel %vm1122_vm6, %v2400_v49, %v905_v3  ;;  %v606_v49 = vsel %vm2268_vm2, %v532_v5, 0 }
 0x14c   : > { %958 = vrot.lane.b32.xlu1 %v2924_v59, %s2213_s19  ;;  %v1161_v9 = vsel %vm1155_vm7, %v1128_v25, %v2798_v36  ;;  %v1291_v43 = vsel %vm1287_vm11, %v1258_v1, %v2749_v39  ;;  %v884_v36 = vshll.u32 %v2948_v57, 16  ;;  %v889_v35 = vshll.u32 %v606_v49, 16 }
 0x14d   : > { %1084 = vrot.lane.b32.xlu0 %v2880_v33, %s2216_s26  ;;  %v1194_v19 = vsel %vm1188_vm8, %v1161_v9, %v2761_v29  ;;  %v1325_v60 = vsel %vm1320_vm12, %v1291_v43, %v1093_v20  ;;  %v1163_v29 = vsel %vm1155_vm7, %v1130_v13, %v2865_v30  ;;  %v879_v20 = vrot.slane %v2900_v11, 1 }
 0x14e   : > { %v1097_v21 = vpop.permute.xlu1 %1096  ;;  %v1095_v2 = vpop.permute.xlu0 %1094  ;;  %1530 = vmatmul.mubr.bf16.gmra.mxu0 %v1325_v60  ;;  %v1227_v56 = vsel %vm1221_vm9, %v1194_v19, %v999_v61  ;;  %v886_v5 = vrot.slane %v884_v36, 1  ;;  %v1196_v30 = vsel %vm1188_vm8, %v1163_v29, %v2732_v62  ;;  %v891_v42 = vrot.slane %v889_v35, 1 }
 0x14f   : > { %2122 = vmatprep.mubr.msk.bf16.mxu0 %vm1122_vm6, %v2525_v55  ;;  %v1260_v39 = vsel %vm1254_vm10, %v1227_v56, %v2848_v34  ;;  %v896_v19 = vrot.slane %v606_v49, 1 }
 0x150   : > { %1022 = vrot.lane.b32.xlu1 %v799_v8, %s2218_s27  ;;  %v1293_v34 = vsel %vm1287_vm11, %v1260_v39, %v2718_v47  ;;  %v887_v58 = vor.u32 %v886_v5, %v882_v7 }
 0x151   : > { %926 = vrot.lane.b32.xlu0 %v787_v51, %s2214_s20  ;;  %v1328_v47 = vsel %vm1320_vm12, %v1293_v34, %v1095_v2 }
 0x152   : > { %v915_v61 = vpop.permute.xlu1 %914  ;;  %v1001_v14 = vpop.permute.xlu0 %1000 }
 0x153   : > { %v1140_v55 = vsel %vm1122_vm6, %v2521_v54, %v915_v61  ;;  %v1229_v51 = vsel %vm1221_vm9, %v1196_v30, %v1001_v14  ;;  %v3825_v14 = vld [vmem:[#allocation11_spill] sm:$0xff] }
 0x154   : > { %v1173_v11 = vsel %vm1155_vm7, %v1140_v55, %v2830_v4  ;;  %1086 = vrot.lane.b32.xlu1 %v2948_v57, %s2216_s26  ;;  %v2994_v4 = vsel %vm832_vm3, %v878_v0, %v879_v20  ;;  %v1262_v25 = vsel %vm1254_vm10, %v1229_v51, %v2817_v50 }
 0x155   : > { %990 = vrot.lane.b32.xlu0 %v2880_v33, %s2215_s25  ;;  %v1206_v54 = vsel %vm1188_vm8, %v1173_v11, %v2747_v24 }
 0x156   : > { %v1011_v52 = vpop.permute.xlu1 %1010  ;;  %v907_v3 = vpop.permute.xlu0 %906  ;;  %1538 = vmatmul.mubr.bf16.gmra.mxu0 %v1328_v47  ;;  %v3827_v47 = vld [vmem:[#allocation4_spill] sm:$0xff] }
 0x157   : > { %v1239_v62 = vsel %vm1221_vm9, %v1206_v54, %v1011_v52  ;;  %v1132_v1 = vsel %vm1122_vm6, %v2354_v12, %v907_v3  ;;  %2123 = vmatprep.mubr.msk.bf16.mxu0 %vm1122_vm6, %v2605_v44  ;;  %v1295_v44 = vsel %vm1287_vm11, %v1262_v25, %v2772_v48 }
 0x158   : > { %v1272_v24 = vsel %vm1254_vm10, %v1239_v62, %v2838_v40  ;;  %928 = vrot.lane.b32.xlu1 %v799_v8, %s2214_s20  ;;  %v1165_v9 = vsel %vm1155_vm7, %v1132_v1, %v2882_v53  ;;  %v895_v8 = vrot.slane %v2948_v57, 1  ;;  %v892_v53 = vsel %vm607_vm4, %v887_v58, %v891_v42 }
 0x159   : > { %1054 = vrot.lane.b32.xlu0 %v2994_v4, %s2217_s14  ;;  %v1305_v50 = vsel %vm1287_vm11, %v1272_v24, %v2759_v18  ;;  %v1198_v12 = vsel %vm1188_vm8, %v1165_v9, %v2779_v16  ;;  %v1331_v16 = vsel %vm1320_vm12, %v1295_v44, %v1097_v21  ;;  %v3828_v24 = vld [vmem:[#allocation6_spill] sm:$0xff] }
 0x15a   : > { %v1107_v43 = vpop.permute.xlu1 %1106  ;;  %v1003_v40 = vpop.permute.xlu0 %1002  ;;  %v3028_v56 = vsel %vm832_vm3, %v895_v8, %v896_v19 }
 0x15b   : > { %v1346_v13 = vsel %vm1320_vm12, %v1305_v50, %v1107_v43  ;;  %v1231_v18 = vsel %vm1221_vm9, %v1198_v12, %v1003_v40 }
 0x15c   : > { %992 = vrot.lane.b32.xlu1 %v2948_v57, %s2215_s25  ;;  %1586 = vmatmul.mubr.bf16.vlgmr.msra.gmra.mxu1 %v1346_v13  ;;  %v1264_v57 = vsel %vm1254_vm10, %v1231_v18, %v2894_v15 }
 0x15d   : > { %1118 = vrot.lane.b32.xlu0 %v892_v53, %s2219_s28  ;;  %2129 = vmatprep.mubr.msk.bf16.mxu1 %vm1122_vm6, %v2740_v63  ;;  %v1297_v15 = vsel %vm1287_vm11, %v1264_v57, %v2788_v31 }
 0x15e   : > { %v917_v60 = vpop.permute.xlu1 %916  ;;  %v1099_v2 = vpop.permute.xlu0 %1098  ;;  %1546 = vmatmul.mubr.bf16.gmra.mxu0 %v1331_v16 }
 0x15f   : > { %v1142_v48 = vsel %vm1122_vm6, %v2396_v45, %v917_v60  ;;  %2124 = vmatprep.mubr.msk.bf16.mxu0 %vm1122_vm6, %v2623_v23  ;;  %v1334_v29 = vsel %vm1320_vm12, %v1297_v15, %v1099_v2  ;;  %v3829_v2 = vld [vmem:[#allocation9_spill] sm:$0xff] }
 0x160   : > { %v1175_v36 = vsel %vm1155_vm7, %v1142_v48, %v2846_v27  ;;  %1056 = vrot.lane.b32.xlu1 %v3028_v56, %s2217_s14  ;;  %v3830_v15 = vld [vmem:[#allocation5_spill] sm:$0xff] }
 0x161   : > { %960 = vrot.lane.b32.xlu0 %v2994_v4, %s2213_s19  ;;  %v1208_v45 = vsel %vm1188_vm8, %v1175_v36, %v2770_v32 }
 0x162   : > { %v1013_v63 = vpop.permute.xlu1 %1012  ;;  %v909_v21 = vpop.permute.xlu0 %908 }
 0x163   : > { %v1241_v39 = vsel %vm1221_vm9, %v1208_v45, %v1013_v63  ;;  %v1134_v27 = vsel %vm1122_vm6, %v2449_v22, %v909_v21 }
 0x164   : > { %v1274_v23 = vsel %vm1254_vm10, %v1241_v39, %v2861_v17  ;;  %1120 = vrot.lane.b32.xlu1 %v2304_v28, %s2219_s28  ;;  %v1167_v49 = vsel %vm1155_vm7, %v1134_v27, %v2913_v37 }
 0x165   : > { %1024 = vrot.lane.b32.xlu0 %v892_v53, %s2218_s27  ;;  %v1307_v32 = vsel %vm1287_vm11, %v1274_v23, %v2777_v38  ;;  %v1200_v31 = vsel %vm1188_vm8, %v1167_v49, %v2800_v10  ;;  %v3823_v38 = vld [vmem:[#allocation2_spill] sm:$0xff]  ;;  %v3824_v10 = vld [vmem:[#allocation12_spill] sm:$0xff] }
 0x166   : > { %v1109_v22 = vpop.permute.xlu1 %1108  ;;  %v1005_v20 = vpop.permute.xlu0 %1004  ;;  %1554 = vmatmul.mubr.bf16.gmra.mxu0 %v1334_v29 }
 0x167   : > { %v1349_v17 = vsel %vm1320_vm12, %v1307_v32, %v1109_v22  ;;  %v1233_v28 = vsel %vm1221_vm9, %v1200_v31, %v1005_v20  ;;  %2125 = vmatprep.mubr.msk.bf16.mxu0 %vm1122_vm6, %v2752_v26  ;;  %v3826_v26 = vld [vmem:[#allocation8_spill] sm:$0xff]  ;;  %v3831_v20 = vld [vmem:[#allocation7_spill] sm:$0xff] }
 0x168   : > { %1594 = vmatmul.mubr.bf16.gmra.mxu1 %v1349_v17  ;;  %v1266_v37 = vsel %vm1254_vm10, %v1233_v28, %v2921_v46 }
 0x169   : > { %1088 = vrot.lane.b32.xlu0 %v3823_v38, %s2216_s26  ;;  %2130 = vmatprep.mubr.msk.bf16.mxu1 %vm1122_vm6, %v3824_v10  ;;  %v1299_v55 = vsel %vm1287_vm11, %v1266_v37, %v3825_v14 }
 0x16a   : > { %v919_v61 = vpop.permute.xlu1 %918  ;;  %v1101_v0 = vpop.permute.xlu0 %1100 }
 0x16b   : > { %v1337_v34 = vsel %vm1320_vm12, %v1299_v55, %v1101_v0  ;;  %v1144_v52 = vsel %vm1122_vm6, %v3827_v47, %v919_v61 }
 0x16e   : > { %v951_v7 = vpop.permute.xlu1 %950  ;;  %v911_v5 = vpop.permute.xlu0 %910  ;;  %1562 = vmatmul.mubr.bf16.gmra.mxu0 %v1337_v34 }
 0x16f   : > { %2126 = vmatprep.mubr.msk.bf16.mxu0 %vm1122_vm6, %v3826_v26  ;;  %v1177_v3 = vsel %vm1155_vm7, %v1144_v52, %v951_v7  ;;  %v1136_v9 = vsel %vm1122_vm6, %v3828_v24, %v911_v5 }
 0x172   : > { %v983_v46 = vpop.permute.xlu1 %982  ;;  %v943_v35 = vpop.permute.xlu0 %942 }
 0x173   : > { %v1210_v58 = vsel %vm1188_vm8, %v1177_v3, %v983_v46  ;;  %v1169_v43 = vsel %vm1155_vm7, %v1136_v9, %v943_v35 }
 0x176   : > { %v1015_v30 = vpop.permute.xlu1 %1014  ;;  %v975_v11 = vpop.permute.xlu0 %974 }
 0x177   : > { %v1243_v25 = vsel %vm1221_vm9, %v1210_v58, %v1015_v30  ;;  %v1202_v13 = vsel %vm1188_vm8, %v1169_v43, %v975_v11  ;;  %v3832_v30 = vld [vmem:[#allocation10_spill] sm:$0xff] }
 0x17a   : > { %v1047_v51 = vpop.permute.xlu1 %1046  ;;  %v1007_v54 = vpop.permute.xlu0 %1006 }
 0x17b   : > { %v1276_v1 = vsel %vm1254_vm10, %v1243_v25, %v1047_v51  ;;  %v1235_v44 = vsel %vm1221_vm9, %v1202_v13, %v1007_v54 }
 0x17e   : > { %v1079_v62 = vpop.permute.xlu1 %1078  ;;  %v1039_v42 = vpop.permute.xlu0 %1038 }
 0x17f   : > { %v1309_v50 = vsel %vm1287_vm11, %v1276_v1, %v1079_v62  ;;  %v1268_v8 = vsel %vm1254_vm10, %v1235_v44, %v1039_v42 }
 0x182   : > { %v1111_v12 = vpop.permute.xlu1 %1110  ;;  %v1071_v19 = vpop.permute.xlu0 %1070 }
 0x183   : > { %v1352_v40 = vsel %vm1320_vm12, %v1309_v50, %v1111_v12  ;;  %v1301_v18 = vsel %vm1287_vm11, %v1268_v8, %v1071_v19 }
 0x184   : > { %1602 = vmatmul.mubr.bf16.gmra.mxu1 %v1352_v40 }
 0x185   : > { %2131 = vmatprep.mubr.msk.bf16.mxu1 %vm1122_vm6, %v2903_v41 }
 0x186   : > { %v921_v53 = vpop.permute.xlu1 %920  ;;  %v1103_v16 = vpop.permute.xlu0 %1102 }
 0x187   : > { %v1340_v60 = vsel %vm1320_vm12, %v1301_v18, %v1103_v16  ;;  %v1146_v27 = vsel %vm1122_vm6, %v3830_v15, %v921_v53 }
 0x188   : > { %1570 = vmatmul.mubr.bf16.gmra.mxu0 %v1340_v60 }
 0x189   : > { %2127 = vmatprep.mubr.msk.bf16.mxu0 %vm1122_vm6, %v3829_v2  ;;  %v3833_v2 = vld [vmem:[#allocation13_spill] sm:$0xff] }
 0x18a   : > { %v953_v48 = vpop.permute.xlu1 %952  ;;  %v913_v57 = vpop.permute.xlu0 %912 }
 0x18b   : > { %v1179_v23 = vsel %vm1155_vm7, %v1146_v27, %v953_v48  ;;  %v1138_v17 = vsel %vm1122_vm6, %v3831_v20, %v913_v57 }
 0x18e   : > { %v985_v36 = vpop.permute.xlu1 %984  ;;  %v945_v45 = vpop.permute.xlu0 %944 }
 0x18f   : > { %v1212_v32 = vsel %vm1188_vm8, %v1179_v23, %v985_v36  ;;  %v1171_v38 = vsel %vm1155_vm7, %v1138_v17, %v945_v45 }
 0x192   : > { %v1017_v63 = vpop.permute.xlu1 %1016  ;;  %v977_v21 = vpop.permute.xlu0 %976 }
 0x193   : > { %v1245_v29 = vsel %vm1221_vm9, %v1212_v32, %v1017_v63  ;;  %v1204_v0 = vsel %vm1188_vm8, %v1171_v38, %v977_v21  ;;  %v3834_v32 = vld [vmem:[#allocation3_spill] sm:$0xff] }
 0x196   : > { %v1049_v39 = vpop.permute.xlu1 %1048  ;;  %v1009_v41 = vpop.permute.xlu0 %1008 }
 0x197   : > { %v1278_v22 = vsel %vm1254_vm10, %v1245_v29, %v1049_v39  ;;  %v1237_v14 = vsel %vm1221_vm9, %v1204_v0, %v1009_v41 }
 0x19a   : > { %v1081_v49 = vpop.permute.xlu1 %1080  ;;  %v1041_v31 = vpop.permute.xlu0 %1040 }
 0x19b   : > { %v1311_v28 = vsel %vm1287_vm11, %v1278_v22, %v1081_v49  ;;  %v1270_v55 = vsel %vm1254_vm10, %v1237_v14, %v1041_v31 }
 0x19e   : > { %v1113_v37 = vpop.permute.xlu1 %1112  ;;  %v1073_v10 = vpop.permute.xlu0 %1072 }
 0x19f   : > { %v1355_v61 = vsel %vm1320_vm12, %v1311_v28, %v1113_v37  ;;  %v1303_v7 = vsel %vm1287_vm11, %v1270_v55, %v1073_v10 }
 0x1a0   : > { %1610 = vmatmul.mubr.bf16.gmra.mxu1 %v1355_v61 }
 0x1a1   : > { %2132 = vmatprep.mubr.msk.bf16.mxu1 %vm1122_vm6, %v2924_v59 }
 0x1a2   : > { %v955_v34 = vpop.permute.xlu1 %954  ;;  %v1105_v5 = vpop.permute.xlu0 %1104 }
 0x1a3   : > { %v1343_v26 = vsel %vm1320_vm12, %v1303_v7, %v1105_v5 }
 0x1a4   : > { %1578 = vmatmul.mubr.bf16.gmra.mxu0 %v1343_v26 }
 0x1a6   : > { %v1019_v46 = vpop.permute.xlu1 %1018  ;;  %v923_v35 = vpop.permute.xlu0 %922 }
 0x1a7   : > { %v1148_v11 = vsel %vm1122_vm6, %v3832_v30, %v923_v35 }
 0x1a8   : > { %v1181_v47 = vsel %vm1155_vm7, %v1148_v11, %v955_v34 }
 0x1aa   : > { %v1083_v51 = vpop.permute.xlu1 %1082  ;;  %v987_v54 = vpop.permute.xlu0 %986 }
 0x1ab   : > { %v1214_v59 = vsel %vm1188_vm8, %v1181_v47, %v987_v54 }
 0x1ac   : > { %v1247_v62 = vsel %vm1221_vm9, %v1214_v59, %v1019_v46 }
 0x1ae   : > { %v925_v52 = vpop.permute.xlu1 %924 }
 0x1af   : > { %v1051_v3 = vpop.permute.xlu0 %1050  ;;  %v1150_v50 = vsel %vm1122_vm6, %v2792_v6, %v925_v52 }
 0x1b0   : > { %v1280_v58 = vsel %vm1254_vm10, %v1247_v62, %v1051_v3 }
 0x1b1   : > { %v1313_v1 = vsel %vm1287_vm11, %v1280_v58, %v1083_v51 }
 0x1b2   : > { %v989_v42 = vpop.permute.xlu1 %988 }
 0x1b3   : > { %v1115_v25 = vpop.permute.xlu0 %1114 }
 0x1b4   : > { %v1358_v24 = vsel %vm1320_vm12, %v1313_v1, %v1115_v25 }
 0x1b5   : > { %1618 = vmatmul.mubr.bf16.gmra.mxu1 %v1358_v24 }
 0x1b6   : > { %2133 = vmatprep.mubr.msk.bf16.mxu1 %vm1122_vm6, %v2994_v4  ;;  %v1053_v9 = vpop.permute.xlu1 %1052 }
 0x1b7   : > { %v957_v12 = vpop.permute.xlu0 %956 }
 0x1b8   : > { %v1183_v43 = vsel %vm1155_vm7, %v1150_v50, %v957_v12 }
 0x1b9   : > { %v1216_v13 = vsel %vm1188_vm8, %v1183_v43, %v989_v42 }
 0x1ba   : > { %v1117_v19 = vpop.permute.xlu1 %1116 }
 0x1bb   : > { %v1021_v40 = vpop.permute.xlu0 %1020 }
 0x1bc   : > { %v1249_v44 = vsel %vm1221_vm9, %v1216_v13, %v1021_v40 }
 0x1bd   : > { %v1282_v18 = vsel %vm1254_vm10, %v1249_v44, %v1053_v9 }
 0x1be   : > { %v959_v8 = vpop.permute.xlu1 %958 }
 0x1bf   : > { %v1085_v53 = vpop.permute.xlu0 %1084 }
 0x1c0   : > { %v1315_v16 = vsel %vm1287_vm11, %v1282_v18, %v1085_v53 }
 0x1c1   : > { %v1361_v4 = vsel %vm1320_vm12, %v1315_v16, %v1117_v19 }
 0x1c2   : > { %1626 = vmatmul.mubr.bf16.gmra.mxu1 %v1361_v4  ;;  %v1023_v60 = vpop.permute.xlu1 %1022 }
 0x1c3   : > { %v927_v6 = vpop.permute.xlu0 %926  ;;  %2134 = vmatprep.mubr.msk.bf16.mxu1 %vm1122_vm6, %v3028_v56 }
 0x1c4   : > { %v1152_v48 = vsel %vm1122_vm6, %v3833_v2, %v927_v6 }
 0x1c5   : > { %v1185_v45 = vsel %vm1155_vm7, %v1152_v48, %v959_v8 }
 0x1c6   : > { %v1087_v57 = vpop.permute.xlu1 %1086 }
 0x1c7   : > { %v991_v36 = vpop.permute.xlu0 %990 }
 0x1c8   : > { %v1218_v63 = vsel %vm1188_vm8, %v1185_v45, %v991_v36 }
 0x1c9   : > { %v1251_v41 = vsel %vm1221_vm9, %v1218_v63, %v1023_v60 }
 0x1ca   : > { %v929_v21 = vpop.permute.xlu1 %928 }
 0x1cb   : > { %v1055_v39 = vpop.permute.xlu0 %1054  ;;  %v1154_v31 = vsel %vm1122_vm6, %v2880_v33, %v929_v21 }
 0x1cc   : > { %v1284_v15 = vsel %vm1254_vm10, %v1251_v41, %v1055_v39 }
 0x1cd   : > { %v1317_v23 = vsel %vm1287_vm11, %v1284_v15, %v1087_v57 }
 0x1ce   : > { %v993_v49 = vpop.permute.xlu1 %992 }
 0x1cf   : > { %v1119_v27 = vpop.permute.xlu0 %1118 }
 0x1d0   : > { %v1364_v56 = vsel %vm1320_vm12, %v1317_v23, %v1119_v27 }
 0x1d1   : > { %1634 = vmatmul.mubr.bf16.gmra.mxu1 %v1364_v56 }
 0x1d2   : > { %2135 = vmatprep.mubr.msk.bf16.mxu1 %vm1122_vm6, %v3834_v32  ;;  %v1057_v20 = vpop.permute.xlu1 %1056 }
 0x1d3   : > { %v961_v29 = vpop.permute.xlu0 %960 }
 0x1d4   : > { %v1187_v22 = vsel %vm1155_vm7, %v1154_v31, %v961_v29 }
 0x1d5   : > { %v1220_v28 = vsel %vm1188_vm8, %v1187_v22, %v993_v49 }
 0x1d6   : > { %v1121_v38 = vpop.permute.xlu1 %1120 }
 0x1d7   : > { %v1025_v17 = vpop.permute.xlu0 %1024 }
 0x1d8   : > { %v1253_v37 = vsel %vm1221_vm9, %v1220_v28, %v1025_v17 }
 0x1d9   : > { %v1286_v61 = vsel %vm1254_vm10, %v1253_v37, %v1057_v20 }
 0x1db   : > { %v1089_v10 = vpop.permute.xlu0 %1088 }
 0x1dc   : > { %v1319_v0 = vsel %vm1287_vm11, %v1286_v61, %v1089_v10 }
 0x1dd   : > { %v1367_v14 = vsel %vm1320_vm12, %v1319_v0, %v1121_v38 }
 0x1de   : > { %1642 = vmatmul.mubr.bf16.gmra.mxu1 %v1367_v14 }
 0x1fc   : > { %v3150_v55 = vpop.f32.mrf.mxu0 }
 0x1fd   : > { %v1650_v45 = vsel %vm384_vm5, %v3150_v55, 0.0 }
 0x1fe   : > { %v1525_v33 = vpop.f32.mrf.mxu0 }
 0x200   : > { %v3152_v34 = vpop.f32.mrf.mxu0 }
 0x201   : > { %v1651_v36 = vsel %vm384_vm5, %v3152_v34, 0.0 }
 0x202   : > { %v1528_v7 = vpop.f32.mrf.mxu0  ;;  %v1652_v21 = vadd.f32 %v1651_v36, %v1650_v45 }
 0x20e   : > { %v3154_v5 = vpop.f32.mrf.mxu0 }
 0x20f   : > { %v1653_v63 = vsel %vm384_vm5, %v3154_v5, 0.0 }
 0x210   : > { %v1533_v26 = vpop.f32.mrf.mxu0  ;;  %v1654_v41 = vadd.f32 %v1653_v63, %v1652_v21 }
 0x212   : > { %v3156_v46 = vpop.f32.mrf.mxu0 }
 0x213   : > { %v1655_v39 = vsel %vm384_vm5, %v3156_v46, 0.0 }
 0x214   : > { %v1536_v35 = vpop.f32.mrf.mxu0  ;;  %v1656_v27 = vadd.f32 %v1655_v39, %v1654_v41 }
 0x216   : > { %v3158_v30 = vpop.f32.mrf.mxu0 }
 0x217   : > { %v1657_v15 = vsel %vm384_vm5, %v3158_v30, 0.0 }
 0x218   : > { %v1541_v11 = vpop.f32.mrf.mxu0  ;;  %v1658_v49 = vadd.f32 %v1657_v15, %v1656_v27 }
 0x21a   : > { %v3160_v51 = vpop.f32.mrf.mxu0 }
 0x21b   : > { %v1659_v23 = vsel %vm384_vm5, %v3160_v51, 0.0 }
 0x21c   : > { %v3162_v54 = vpop.f32.mrf.mxu1  ;;  %v1544_v47 = vpop.f32.mrf.mxu0  ;;  %v1660_v32 = vadd.f32 %v1659_v23, %v1658_v49 }
 0x21e   : > { %v1589_v59 = vpop.f32.mrf.mxu1  ;;  %v3164_v52 = vpop.f32.mrf.mxu0 }
 0x21f   : > { %v1661_v56 = vsel %vm384_vm5, %v3164_v52, 0.0 }
 0x220   : > { %v3166_v3 = vpop.f32.mrf.mxu1  ;;  %v1549_v62 = vpop.f32.mrf.mxu0  ;;  %v1662_v29 = vadd.f32 %v1661_v56, %v1660_v32 }
 0x222   : > { %v1592_v58 = vpop.f32.mrf.mxu1  ;;  %v3168_v42 = vpop.f32.mrf.mxu0 }
 0x223   : > { %v1663_v31 = vsel %vm384_vm5, %v3168_v42, 0.0 }
 0x224   : > { %v1552_v25 = vpop.f32.mrf.mxu0  ;;  %v1664_v20 = vadd.f32 %v1663_v31, %v1662_v29 }
 0x226   : > { %v3170_v1 = vpop.f32.mrf.mxu0 }
 0x227   : > { %v1665_v22 = vsel %vm384_vm5, %v3170_v1, 0.0 }
 0x228   : > { %v3172_v24 = vpop.f32.mrf.mxu1  ;;  %v1557_v9 = vpop.f32.mrf.mxu0  ;;  %v1666_v37 = vadd.f32 %v1665_v22, %v1664_v20 }
 0x229   : > { %v1685_v63 = vsel %vm384_vm5, %v3172_v24, 0.0 }
 0x22a   : > { %v1597_v50 = vpop.f32.mrf.mxu1  ;;  %v3174_v12 = vpop.f32.mrf.mxu0 }
 0x22b   : > { %v1667_v28 = vsel %vm384_vm5, %v3174_v12, 0.0 }
 0x22c   : > { %v3176_v43 = vpop.f32.mrf.mxu1  ;;  %v1560_v19 = vpop.f32.mrf.mxu0  ;;  %v1668_v61 = vadd.f32 %v1667_v28, %v1666_v37 }
 0x22d   : > { %v1687_v41 = vsel %vm384_vm5, %v3176_v43, 0.0 }
 0x22e   : > { %v1600_v40 = vpop.f32.mrf.mxu1  ;;  %v3178_v13 = vpop.f32.mrf.mxu0 }
 0x22f   : > { %v1669_v10 = vsel %vm384_vm5, %v3178_v13, 0.0 }
 0x230   : > { %v1565_v44 = vpop.f32.mrf.mxu0  ;;  %v1670_v7 = vadd.f32 %v1669_v10, %v1668_v61 }
 0x232   : > { %v3180_v8 = vpop.f32.mrf.mxu0 }
 0x233   : > { %v1671_v14 = vsel %vm384_vm5, %v3180_v8, 0.0 }
 0x234   : > { %v1568_v53 = vpop.f32.mrf.mxu0  ;;  %v1672_v47 = vadd.f32 %v1671_v14, %v1670_v7 }
 0x235   : > { %v1681_v53 = vsel %vm384_vm5, %v3162_v54, 0.0 }
 0x244   : > { %v3182_v18 = vpop.f32.mrf.mxu1 }
 0x245   : > { %v1689_v23 = vsel %vm384_vm5, %v3182_v18, 0.0 }
 0x246   : > { %v1605_v16 = vpop.f32.mrf.mxu1 }
 0x248   : > { %v3184_v4 = vpop.f32.mrf.mxu1  ;;  %v3186_v60 = vpop.f32.mrf.mxu0 }
 0x249   : > { %v1673_v35 = vsel %vm384_vm5, %v3186_v60, 0.0  ;;  %v1691_v31 = vsel %vm384_vm5, %v3184_v4, 0.0 }
 0x24a   : > { %v1608_v6 = vpop.f32.mrf.mxu1  ;;  %v1573_v2 = vpop.f32.mrf.mxu0  ;;  %v1674_v58 = vadd.f32 %v1673_v35, %v1672_v47 }
 0x24b   : > { %v1683_v2 = vsel %vm384_vm5, %v3166_v3, 0.0 }
 0x24c   : > { %v3188_v48 = vpop.f32.mrf.mxu0 }
 0x24d   : > { %v1675_v59 = vsel %vm384_vm5, %v3188_v48, 0.0 }
 0x24e   : > { %v1576_v57 = vpop.f32.mrf.mxu0  ;;  %v1676_v50 = vadd.f32 %v1675_v59, %v1674_v58 }
 0x260   : > { %v3208_v17 = vpop.f32.mrf.mxu1 }
 0x261   : > { %v1693_v20 = vsel %vm384_vm5, %v3208_v17, 0.0 }
 0x262   : > { %v1613_v38 = vpop.f32.mrf.mxu1 }
 0x264   : > { %v3214_v0 = vpop.f32.mrf.mxu1  ;;  %v3218_v33 = vpop.f32.mrf.mxu0 }
 0x265   : > { %v1677_v25 = vsel %vm384_vm5, %v3218_v33, 0.0  ;;  %v1695_v37 = vsel %vm384_vm5, %v3214_v0, 0.0 }
 0x266   : > { %v1616_v26 = vpop.f32.mrf.mxu1  ;;  %v1581_v11 = vpop.f32.mrf.mxu0  ;;  %v1678_v40 = vadd.f32 %v1677_v25, %v1676_v50 }
 0x268   : > { %v3224_v62 = vpop.f32.mrf.mxu0 }
 0x269   : > { %v1679_v19 = vsel %vm384_vm5, %v3224_v62, 0.0 }
 0x26a   : > { %v1584_v9 = vpop.f32.mrf.mxu0  ;;  %v1680_v44 = vadd.f32 %v1679_v19, %v1678_v40 }
 0x26c   : > { %v1682_v16 = vadd.f32 %v1681_v53, %v1680_v44 }
 0x26e   : > { %v1684_v36 = vadd.f32 %v1683_v2, %v1682_v16 }
 0x270   : > { %v1686_v39 = vadd.f32 %v1685_v63, %v1684_v36 }
 0x272   : > { %v1688_v15 = vadd.f32 %v1687_v41, %v1686_v39 }
 0x274   : > { %v1690_v49 = vadd.f32 %v1689_v23, %v1688_v15 }
 0x275   : > { %v3232_v6 = vpop.f32.mrf.mxu1 }
 0x276   : > { %v1692_v29 = vadd.f32 %v1691_v31, %v1690_v49  ;;  %v1697_v61 = vsel %vm384_vm5, %v3232_v6, 0.0 }
 0x277   : > { %v1621_v57 = vpop.f32.mrf.mxu1 }
 0x278   : > { %v1694_v28 = vadd.f32 %v1693_v20, %v1692_v29 }
 0x279   : > { %v3236_v45 = vpop.f32.mrf.mxu1 }
 0x27a   : > { %v1696_v38 = vadd.f32 %v1695_v37, %v1694_v28  ;;  %v1699_v35 = vsel %vm384_vm5, %v3236_v45, 0.0 }
 0x27b   : > { %v1624_v21 = vpop.f32.mrf.mxu1 }
 0x27c   : > { %v1698_v7 = vadd.f32 %v1697_v61, %v1696_v38 }
 0x27e   : > { %v1700_v59 = vadd.f32 %v1699_v35, %v1698_v7 }
 0x282   : > { %v3242_v27 = vpop.f32.mrf.mxu1 }
 0x283   : > { %v1701_v11 = vsel %vm384_vm5, %v3242_v27, 0.0 }
 0x284   : > { %v1629_v56 = vpop.f32.mrf.mxu1  ;;  %v1702_v25 = vadd.f32 %v1701_v11, %v1700_v59 }
 0x286   : > { %v3246_v32 = vpop.f32.mrf.mxu1 }
 0x287   : > { %v1703_v58 = vsel %vm384_vm5, %v3246_v32, 0.0 }
 0x288   : > { %v1632_v22 = vpop.f32.mrf.mxu1  ;;  %v1704_v50 = vadd.f32 %v1703_v58, %v1702_v25 }
 0x291   : > { %v3254_v10 = vpop.f32.mrf.mxu1 }
 0x292   : > { %v1705_v9 = vsel %vm384_vm5, %v3254_v10, 0.0 }
 0x293   : > { %v1637_v14 = vpop.f32.mrf.mxu1  ;;  %v1706_v40 = vadd.f32 %v1705_v9, %v1704_v50 }
 0x295   : > { %v3258_v26 = vpop.f32.mrf.mxu1 }
 0x296   : > { %v1707_v19 = vsel %vm384_vm5, %v3258_v26, 0.0 }
 0x297   : > { %v1640_v47 = vpop.f32.mrf.mxu1  ;;  %v1708_v16 = vadd.f32 %v1707_v19, %v1706_v40 }
 0x29e   : > { %v3270_v44 = vpop.f32.mrf.mxu1 }
 0x29f   : > { %v1709_v53 = vsel %vm384_vm5, %v3270_v44, 0.0 }
 0x2a0   : > { %v1645_v2 = vpop.f32.mrf.mxu1  ;;  %v1710_v57 = vadd.f32 %v1709_v53, %v1708_v16 }
 0x2a2   : > { %v3274_v36 = vpop.f32.mrf.mxu1 }
 0x2a3   : > { %v1711_v63 = vsel %vm384_vm5, %v3274_v36, 0.0 }
 0x2a4   : > { %v1712_v21 = vadd.f32 %v1711_v63, %v1710_v57  ;;  %v1648_v39 = vpop.f32.mrf.mxu1 }
 0x2a6   : > { %v1713_v41 = vrot.slane %v1712_v21, 4 }
 0x2a8   : > { %v1714_v15 = vadd.f32 %v1713_v41, %v1712_v21 }
 0x2aa   : > { %v1715_v23 = vrot.slane %v1714_v15, 2 }
 0x2ac   : > { %v1716_v49 = vadd.f32 %v1715_v23, %v1714_v15 }
 0x2ae   : > { %v1717_v56 = vrot.slane %v1716_v49, 1 }
 0x2b0   : > { %v1718_v31 = vadd.f32 %v1717_v56, %v1716_v49 }
 0x2b2   : > { %v3278_v29 = vmul.f32 0.00390625, %v1718_v31 }
 0x2b4   : > { %v3282_v22 = vsub.f32 %v3150_v55, %v3278_v29  ;;  %v3286_v20 = vsub.f32 %v3152_v34, %v3278_v29  ;;  %v3290_v28 = vsub.f32 %v3154_v5, %v3278_v29  ;;  %v3294_v37 = vsub.f32 %v3156_v46, %v3278_v29 }
 0x2b5   : > { %v3302_v55 = vsub.f32 %v3158_v30, %v3278_v29  ;;  %v3308_v5 = vsub.f32 %v3160_v51, %v3278_v29  ;;  %v3316_v11 = vsub.f32 %v3164_v52, %v3278_v29  ;;  %v3323_v51 = vsub.f32 %v3168_v42, %v3278_v29 }
 0x2b6   : > { %v1753_v38 = vmul.f32 %v3282_v22, %v3282_v22  ;;  %v1754_v61 = vmul.f32 %v3286_v20, %v3286_v20  ;;  %v1755_v34 = vmul.f32 %v3290_v28, %v3290_v28  ;;  %v1756_v46 = vmul.f32 %v3294_v37, %v3294_v37 }
 0x2b7   : > { %v1757_v30 = vmul.f32 %v3302_v55, %v3302_v55  ;;  %v1758_v58 = vmul.f32 %v3308_v5, %v3308_v5  ;;  %v3330_v52 = vsub.f32 %v3170_v1, %v3278_v29  ;;  %v1759_v50 = vmul.f32 %v3316_v11, %v3316_v11 }
 0x2b8   : > { %v1785_v14 = vsel %vm384_vm5, %v1753_v38, 0.0  ;;  %v1786_v7 = vsel %vm384_vm5, %v1754_v61, 0.0  ;;  %v1788_v47 = vsel %vm384_vm5, %v1755_v34, 0.0  ;;  %v1790_v25 = vsel %vm384_vm5, %v1756_v46, 0.0 }
 0x2b9   : > { %v1787_v35 = vadd.f32 %v1786_v7, %v1785_v14  ;;  %v1792_v19 = vsel %vm384_vm5, %v1757_v30, 0.0  ;;  %v3337_v42 = vsub.f32 %v3174_v12, %v3278_v29  ;;  %v1760_v53 = vmul.f32 %v3323_v51, %v3323_v51 }
 0x2ba   : > { %v1794_v16 = vsel %vm384_vm5, %v1758_v58, 0.0  ;;  %v3344_v1 = vsub.f32 %v3178_v13, %v3278_v29  ;;  %v1761_v57 = vmul.f32 %v3330_v52, %v3330_v52  ;;  %v1796_v63 = vsel %vm384_vm5, %v1759_v50, 0.0 }
 0x2bb   : > { %v1789_v59 = vadd.f32 %v1788_v47, %v1787_v35  ;;  %v3351_v12 = vsub.f32 %v3180_v8, %v3278_v29  ;;  %v1762_v39 = vmul.f32 %v3337_v42, %v3337_v42  ;;  %v1798_v41 = vsel %vm384_vm5, %v1760_v53, 0.0 }
 0x2bc   : > { %v3358_v13 = vsub.f32 %v3186_v60, %v3278_v29  ;;  %v1763_v23 = vmul.f32 %v3344_v1, %v3344_v1  ;;  %v1800_v49 = vsel %vm384_vm5, %v1761_v57, 0.0  ;;  %v3365_v8 = vsub.f32 %v3188_v48, %v3278_v29 }
 0x2bd   : > { %v1791_v9 = vadd.f32 %v1790_v25, %v1789_v59  ;;  %v1764_v31 = vmul.f32 %v3351_v12, %v3351_v12  ;;  %v1802_v38 = vsel %vm384_vm5, %v1762_v39, 0.0  ;;  %v3372_v60 = vsub.f32 %v3218_v33, %v3278_v29 }
 0x2be   : > { %v1765_v34 = vmul.f32 %v3358_v13, %v3358_v13  ;;  %v1804_v46 = vsel %vm384_vm5, %v1763_v23, 0.0  ;;  %v3379_v48 = vsub.f32 %v3224_v62, %v3278_v29  ;;  %v1766_v7 = vmul.f32 %v3365_v8, %v3365_v8 }
 0x2bf   : > { %v1793_v40 = vadd.f32 %v1792_v19, %v1791_v9  ;;  %v1806_v35 = vsel %vm384_vm5, %v1764_v31, 0.0  ;;  %v3386_v33 = vsub.f32 %v3162_v54, %v3278_v29  ;;  %v1767_v47 = vmul.f32 %v3372_v60, %v3372_v60 }
 0x2c0   : > { %v1808_v59 = vsel %vm384_vm5, %v1765_v34, 0.0  ;;  %v3393_v62 = vsub.f32 %v3166_v3, %v3278_v29  ;;  %v1768_v25 = vmul.f32 %v3379_v48, %v3379_v48  ;;  %v1810_v9 = vsel %vm384_vm5, %v1766_v7, 0.0 }
 0x2c1   : > { %v1795_v2 = vadd.f32 %v1794_v16, %v1793_v40  ;;  %v3400_v54 = vsub.f32 %v3172_v24, %v3278_v29  ;;  %v1769_v19 = vmul.f32 %v3386_v33, %v3386_v33  ;;  %v1812_v40 = vsel %vm384_vm5, %v1767_v47, 0.0 }
 0x2c2   : > { %v3407_v3 = vsub.f32 %v3176_v43, %v3278_v29  ;;  %v1770_v16 = vmul.f32 %v3393_v62, %v3393_v62  ;;  %v3414_v24 = vsub.f32 %v3182_v18, %v3278_v29  ;;  %v3421_v43 = vsub.f32 %v3184_v4, %v3278_v29 }
 0x2c3   : > { %v1797_v21 = vadd.f32 %v1796_v63, %v1795_v2  ;;  %v1814_v2 = vsel %vm384_vm5, %v1768_v25, 0.0  ;;  %v1771_v63 = vmul.f32 %v3400_v54, %v3400_v54  ;;  %v3428_v18 = vsub.f32 %v3208_v17, %v3278_v29 }
 0x2c4   : > { %v1744_v4 = vsub.f32 %v3214_v0, %v3278_v29 }
 0x2c5   : > { %v1799_v15 = vadd.f32 %v1798_v41, %v1797_v21  ;;  %v1816_v21 = vsel %vm384_vm5, %v1769_v19, 0.0  ;;  %v1772_v41 = vmul.f32 %v3407_v3, %v3407_v3  ;;  %v1775_v17 = vmul.f32 %v3428_v18, %v3428_v18 }
 0x2c6   : > { %v1776_v0 = vmul.f32 %v1744_v4, %v1744_v4 }
 0x2c7   : > { %v1801_v56 = vadd.f32 %v1800_v49, %v1799_v15  ;;  %v1818_v15 = vsel %vm384_vm5, %v1770_v16, 0.0  ;;  %v1773_v49 = vmul.f32 %v3414_v24, %v3414_v24 }
 0x2c8   : > { %v1830_v19 = vsel %vm384_vm5, %v1776_v0, 0.0 }
 0x2c9   : > { %v1803_v61 = vadd.f32 %v1802_v38, %v1801_v56  ;;  %v1820_v56 = vsel %vm384_vm5, %v1771_v63, 0.0  ;;  %v1774_v38 = vmul.f32 %v3421_v43, %v3421_v43 }
 0x2cb   : > { %v1805_v14 = vadd.f32 %v1804_v46, %v1803_v61  ;;  %v1822_v61 = vsel %vm384_vm5, %v1772_v41, 0.0  ;;  %v3440_v46 = vsub.f32 %v3232_v6, %v3278_v29 }
 0x2cd   : > { %v1807_v30 = vadd.f32 %v1806_v35, %v1805_v14  ;;  %v1824_v14 = vsel %vm384_vm5, %v1773_v49, 0.0  ;;  %v1746_v35 = vsub.f32 %v3236_v45, %v3278_v29  ;;  %v1777_v6 = vmul.f32 %v3440_v46, %v3440_v46 }
 0x2cf   : > { %v1809_v58 = vadd.f32 %v1808_v59, %v1807_v30  ;;  %v1826_v30 = vsel %vm384_vm5, %v1774_v38, 0.0  ;;  %v1747_v59 = vsub.f32 %v3242_v27, %v3278_v29  ;;  %v1832_v16 = vsel %vm384_vm5, %v1777_v6, 0.0 }
 0x2d1   : > { %v1811_v50 = vadd.f32 %v1810_v9, %v1809_v58  ;;  %v1828_v58 = vsel %vm384_vm5, %v1775_v17, 0.0  ;;  %v1748_v9 = vsub.f32 %v3246_v32, %v3278_v29  ;;  %v1751_v32 = vsub.f32 %v3270_v44, %v3278_v29 }
 0x2d3   : > { %v1813_v53 = vadd.f32 %v1812_v40, %v1811_v50  ;;  %v1778_v50 = vmul.f32 %v1746_v35, %v1746_v35  ;;  %v1749_v40 = vsub.f32 %v3254_v10, %v3278_v29  ;;  %v1752_v10 = vsub.f32 %v3274_v36, %v3278_v29 }
 0x2d5   : > { %v1815_v57 = vadd.f32 %v1814_v2, %v1813_v53  ;;  %v1779_v53 = vmul.f32 %v1747_v59, %v1747_v59  ;;  %v1750_v2 = vsub.f32 %v3258_v26, %v3278_v29  ;;  %v1834_v63 = vsel %vm384_vm5, %v1778_v50, 0.0 }
 0x2d7   : > { %v1817_v39 = vadd.f32 %v1816_v21, %v1815_v57  ;;  %v1780_v57 = vmul.f32 %v1748_v9, %v1748_v9  ;;  %v1836_v41 = vsel %vm384_vm5, %v1779_v53, 0.0 }
 0x2d9   : > { %v1819_v23 = vadd.f32 %v1818_v15, %v1817_v39  ;;  %v1781_v39 = vmul.f32 %v1749_v40, %v1749_v40  ;;  %v1838_v49 = vsel %vm384_vm5, %v1780_v57, 0.0 }
 0x2db   : > { %v1821_v31 = vadd.f32 %v1820_v56, %v1819_v23  ;;  %v1782_v23 = vmul.f32 %v1750_v2, %v1750_v2  ;;  %v1840_v26 = vsel %vm384_vm5, %v1781_v39, 0.0 }
 0x2dd   : > { %v1823_v34 = vadd.f32 %v1822_v61, %v1821_v31  ;;  %v1783_v31 = vmul.f32 %v1751_v32, %v1751_v32  ;;  %v1784_v61 = vmul.f32 %v1752_v10, %v1752_v10 }
 0x2df   : > { %v1825_v7 = vadd.f32 %v1824_v14, %v1823_v34  ;;  %v1842_v34 = vsel %vm384_vm5, %v1782_v23, 0.0  ;;  %v1844_v44 = vsel %vm384_vm5, %v1783_v31, 0.0 }
 0x2e1   : > { %v1827_v47 = vadd.f32 %v1826_v30, %v1825_v7  ;;  %v1846_v7 = vsel %vm384_vm5, %v1784_v61, 0.0 }
 0x2e3   : > { %v1829_v25 = vadd.f32 %v1828_v58, %v1827_v47 }
 0x2e5   : > { %v1831_v45 = vadd.f32 %v1830_v19, %v1829_v25 }
 0x2e7   : > { %v1833_v27 = vadd.f32 %v1832_v16, %v1831_v45 }
 0x2e9   : > { %v1835_v21 = vadd.f32 %v1834_v63, %v1833_v27 }
 0x2eb   : > { %v1837_v15 = vadd.f32 %v1836_v41, %v1835_v21 }
 0x2ed   : > { %v1839_v56 = vadd.f32 %v1838_v49, %v1837_v15 }
 0x2ef   : > { %v1841_v38 = vadd.f32 %v1840_v26, %v1839_v56 }
 0x2f1   : > { %v1843_v17 = vadd.f32 %v1842_v34, %v1841_v38 }
 0x2f3   : > { %v1845_v14 = vadd.f32 %v1844_v44, %v1843_v17 }
 0x2f5   : > { %v1847_v0 = vadd.f32 %v1846_v7, %v1845_v14 }
 0x2f7   : > { %v1848_v30 = vrot.slane %v1847_v0, 4 }
 0x2f9   : > { %v1849_v36 = vadd.f32 %v1848_v30, %v1847_v0 }
 0x2fb   : > { %v1850_v29 = vrot.slane %v1849_v36, 2 }
 0x2fd   : > { %v1851_v47 = vadd.f32 %v1850_v29, %v1849_v36 }
 0x2ff   : > { %v1852_v6 = vrot.slane %v1851_v47, 1 }
 0x301   : > { %v1853_v58 = vadd.f32 %v1852_v6, %v1851_v47 }
 0x303   : > { %v1854_v25 = vmul.f32 0.00390625, %v1853_v58 }
 0x305   : > { %v1855_v50 = vadd.f32 1e-05, %v1854_v25 }
 0x307   : > { %2201 = vrsqrt.f32 %v1855_v50 }
 0x314   : > { %v2202_v19 = vpop.eup %2201 }
 0x315   : > { %v3473_v45 = vmul.f32 %v2202_v19, %v3282_v22  ;;  %v3475_v53 = vmul.f32 %v2202_v19, %v1744_v4  ;;  %v3478_v16 = vmul.f32 %v2202_v19, %v3286_v20  ;;  %v3480_v27 = vmul.f32 %v2202_v19, %v1746_v35 }
 0x316   : > { %v3482_v57 = vmul.f32 %v2202_v19, %v1747_v59  ;;  %v3484_v63 = vmul.f32 %v2202_v19, %v1748_v9  ;;  %v3486_v21 = vmul.f32 %v2202_v19, %v1749_v40  ;;  %v3488_v39 = vmul.f32 %v2202_v19, %v1750_v2 }
 0x317   : > { %v3490_v41 = vmul.f32 %v2202_v19, %v1751_v32  ;;  %v3492_v15 = vmul.f32 %v2202_v19, %v1752_v10  ;;  %v3495_v22 = vmul.f32 %v2202_v19, %v3290_v28  ;;  %v3498_v20 = vmul.f32 %v2202_v19, %v3294_v37 }
 0x318   : > { %v3501_v4 = vmul.f32 %v2202_v19, %v3302_v55  ;;  %v3504_v35 = vmul.f32 %v2202_v19, %v3308_v5  ;;  %v3507_v59 = vmul.f32 %v2202_v19, %v3316_v11  ;;  %v3510_v9 = vmul.f32 %v2202_v19, %v3323_v51 }
 0x319   : > { %v3513_v40 = vmul.f32 %v2202_v19, %v3330_v52  ;;  %v3516_v28 = vmul.f32 %v2202_v19, %v3337_v42  ;;  %v3519_v37 = vmul.f32 %v2202_v19, %v3344_v1  ;;  %v3522_v55 = vmul.f32 %v2202_v19, %v3351_v12 }
 0x31a   : > { %v3525_v5 = vmul.f32 %v2202_v19, %v3358_v13  ;;  %v3528_v11 = vmul.f32 %v2202_v19, %v3365_v8  ;;  %v3531_v51 = vmul.f32 %v2202_v19, %v3372_v60  ;;  %v3534_v52 = vmul.f32 %v2202_v19, %v3379_v48 }
 0x31b   : > { %v3537_v42 = vmul.f32 %v2202_v19, %v3386_v33  ;;  %v3540_v1 = vmul.f32 %v2202_v19, %v3393_v62  ;;  %v3543_v12 = vmul.f32 %v2202_v19, %v3400_v54  ;;  %v3546_v13 = vmul.f32 %v2202_v19, %v3407_v3 }
 0x31c   : > { %v3549_v8 = vmul.f32 %v2202_v19, %v3414_v24  ;;  %v3552_v60 = vmul.f32 %v2202_v19, %v3421_v43  ;;  %v3555_v48 = vmul.f32 %v2202_v19, %v3428_v18  ;;  %v3558_v33 = vmul.f32 %v2202_v19, %v3440_v46 }
 0x31d   : > { %vm1889_vm13 = vcmp.gt.f32.partialorder %v3473_v45, 0.0  ;;  %vm1890_vm14 = vcmp.gt.f32.partialorder %v3478_v16, 0.0  ;;  %vm1891_vm15 = vcmp.gt.f32.partialorder %v3495_v22, 0.0  ;;  %vm1892_vm0 = vcmp.gt.f32.partialorder %v3498_v20, 0.0 }
 0x31e   : > { %vm1893_vm1 = vcmp.gt.f32.partialorder %v3501_v4, 0.0  ;;  %vm1894_vm2 = vcmp.gt.f32.partialorder %v3504_v35, 0.0  ;;  %vm1895_vm3 = vcmp.gt.f32.partialorder %v3507_v59, 0.0  ;;  %vm1896_vm4 = vcmp.gt.f32.partialorder %v3510_v9, 0.0 }
 0x31f   : > { %v1921_v62 = vmul.f32 0.01, %v3473_v45  ;;  %v1922_v54 = vmul.f32 0.01, %v3478_v16  ;;  %v1923_v3 = vmul.f32 0.01, %v3495_v22 }
 0x320   : > { %vm1904_vm7 = vcmp.gt.f32.partialorder %v3534_v52, 0.0  ;;  %vm1905_vm6 = vcmp.gt.f32.partialorder %v3537_v42, 0.0  ;;  %v1924_v24 = vmul.f32 0.01, %v3498_v20  ;;  %v1925_v43 = vmul.f32 0.01, %v3501_v4 }
 0x321   : > { %v1926_v18 = vmul.f32 0.01, %v3504_v35  ;;  %vm1910_vm12 = vcmp.gt.f32.partialorder %v3552_v60, 0.0  ;;  %v1927_v46 = vmul.f32 0.01, %v3507_v59  ;;  %v1953_v10 = vsel %vm1889_vm13, %v3473_v45, %v1921_v62 }
 0x322   : > { %v1928_v2 = vmul.f32 0.01, %v3510_v9  ;;  %v1929_v32 = vmul.f32 0.01, %v3513_v40  ;;  %vm1911_vm8 = vcmp.gt.f32.partialorder %v3555_v48, 0.0  ;;  %v1954_v31 = vsel %vm1890_vm14, %v3478_v16, %v1922_v54  ;;  %1985 = vst.msk [vmem:[%s3575_s24] sm:$0xff] %vm384_vm5, %v1953_v10 }
 0x323   : > { %v1930_v23 = vmul.f32 0.01, %v3516_v28  ;;  %v1931_v49 = vmul.f32 0.01, %v3519_v37  ;;  %v1932_v56 = vmul.f32 0.01, %v3522_v55  ;;  %v1955_v34 = vsel %vm1891_vm15, %v3495_v22, %v1923_v3 }
 0x324   : > { %vm1915_vm13 = vcmp.gt.f32.partialorder %v3482_v57, 0.0  ;;  %vm1916_vm11 = vcmp.gt.f32.partialorder %v3484_v63, 0.0  ;;  %vm1918_vm9 = vcmp.gt.f32.partialorder %v3488_v39, 0.0  ;;  %v1933_v26 = vmul.f32 0.01, %v3525_v5  ;;  %1986 = vst.msk [vmem:[%s3575_s24 + $0x8] sm:$0xff] %vm384_vm5, %v1954_v31 }
 0x325   : > { %v1934_v38 = vmul.f32 0.01, %v3528_v11  ;;  %v1935_v61 = vmul.f32 0.01, %v3531_v51  ;;  %vm1919_vm14 = vcmp.gt.f32.partialorder %v3490_v41, 0.0  ;;  %vm1920_vm10 = vcmp.gt.f32.partialorder %v3492_v15, 0.0 }
 0x326   : > { %v1936_v17 = vmul.f32 0.01, %v3534_v52  ;;  %v1937_v44 = vmul.f32 0.01, %v3537_v42  ;;  %v1938_v14 = vmul.f32 0.01, %v3540_v1  ;;  %v1956_v7 = vsel %vm1892_vm0, %v3498_v20, %v1924_v24 }
 0x327   : > { %1987 = vst.msk [vmem:[%s3575_s24 + $0x10] sm:$0xff] %vm384_vm5, %v1955_v34  ;;  %v1939_v0 = vmul.f32 0.01, %v3543_v12  ;;  %v1940_v30 = vmul.f32 0.01, %v3546_v13  ;;  %v1957_v29 = vsel %vm1893_vm1, %v3501_v4, %v1925_v43  ;;  %1988 = vst.msk [vmem:[%s3575_s24 + $0x18] sm:$0xff] %vm384_vm5, %v1956_v7  ;;  %v1958_v25 = vsel %vm1894_vm2, %v3504_v35, %v1926_v18 }
 0x328   : > { %v1941_v36 = vmul.f32 0.01, %v3549_v8  ;;  %v1942_v47 = vmul.f32 0.01, %v3552_v60  ;;  %v1943_v6 = vmul.f32 0.01, %v3555_v48  ;;  %v1959_v16 = vsel %vm1895_vm3, %v3507_v59, %v1927_v46 }
 0x329   : > { %v1944_v58 = vmul.f32 0.01, %v3475_v53  ;;  %1989 = vst.msk [vmem:[%s3575_s24 + $0x20] sm:$0xff] %vm384_vm5, %v1957_v29  ;;  %v1945_v50 = vmul.f32 0.01, %v3558_v33  ;;  %1990 = vst.msk [vmem:[%s3575_s24 + $0x28] sm:$0xff] %vm384_vm5, %v1958_v25  ;;  %v1960_v35 = vsel %vm1896_vm4, %v3510_v9, %v1928_v2 }
 0x32a   : > { %v1946_v19 = vmul.f32 0.01, %v3480_v27  ;;  %v1947_v45 = vmul.f32 0.01, %v3482_v57  ;;  %v1948_v22 = vmul.f32 0.01, %v3484_v63 }
 0x32b   : > { %v1949_v20 = vmul.f32 0.01, %v3486_v21  ;;  %v1950_v4 = vmul.f32 0.01, %v3488_v39  ;;  %1991 = vst.msk [vmem:[%s3575_s24 + $0x30] sm:$0xff] %vm384_vm5, %v1959_v16  ;;  %vm3835_vm15 = vcmp.gt.f32.partialorder %v3513_v40, 0.0 }
 0x32c   : > { %v1951_v62 = vmul.f32 0.01, %v3490_v41  ;;  %v1952_v59 = vmul.f32 0.01, %v3492_v15  ;;  %v1961_v54 = vsel %vm3835_vm15, %v3513_v40, %v1929_v32  ;;  %vm3836_vm0 = vcmp.gt.f32.partialorder %v3516_v28, 0.0  ;;  %1992 = vst.msk [vmem:[%s3575_s24 + $0x38] sm:$0xff] %vm384_vm5, %v1960_v35 }
 0x32d   : > { %v1962_v3 = vsel %vm3836_vm0, %v3516_v28, %v1930_v23  ;;  %vm3837_vm1 = vcmp.gt.f32.partialorder %v3519_v37, 0.0  ;;  %vm3838_vm2 = vcmp.gt.f32.partialorder %v3522_v55, 0.0  ;;  %vm3839_vm3 = vcmp.gt.f32.partialorder %v3525_v5, 0.0  ;;  %1993 = vst.msk [vmem:[%s3575_s24 + $0x40] sm:$0xff] %vm384_vm5, %v1961_v54 }
 0x32e   : > { %v1963_v9 = vsel %vm3837_vm1, %v3519_v37, %v1931_v49  ;;  %v1964_v24 = vsel %vm3838_vm2, %v3522_v55, %v1932_v56  ;;  %v1965_v43 = vsel %vm3839_vm3, %v3525_v5, %v1933_v26  ;;  %vm3840_vm4 = vcmp.gt.f32.partialorder %v3528_v11, 0.0  ;;  %1994 = vst.msk [vmem:[%s3575_s24 + $0x48] sm:$0xff] %vm384_vm5, %v1962_v3 }
 0x32f   : > { %v1966_v40 = vsel %vm3840_vm4, %v3528_v11, %v1934_v38  ;;  %vm3841_vm15 = vcmp.gt.f32.partialorder %v3531_v51, 0.0  ;;  %v1968_v37 = vsel %vm1904_vm7, %v3534_v52, %v1936_v17  ;;  %v1969_v55 = vsel %vm1905_vm6, %v3537_v42, %v1937_v44  ;;  %1995 = vst.msk [vmem:[%s3575_s24 + $0x50] sm:$0xff] %vm384_vm5, %v1963_v9  ;;  %1996 = vst.msk [vmem:[%s3575_s24 + $0x58] sm:$0xff] %vm384_vm5, %v1964_v24 }
 0x330   : > { %v1967_v28 = vsel %vm3841_vm15, %v3531_v51, %v1935_v61  ;;  %vm3842_vm0 = vcmp.gt.f32.partialorder %v3540_v1, 0.0  ;;  %1997 = vst.msk [vmem:[%s3575_s24 + $0x60] sm:$0xff] %vm384_vm5, %v1965_v43  ;;  %1998 = vst.msk [vmem:[%s3575_s24 + $0x68] sm:$0xff] %vm384_vm5, %v1966_v40  ;;  %vm3843_vm7 = vcmp.gt.f32.partialorder %v3543_v12, 0.0  ;;  %vm3844_vm6 = vcmp.gt.f32.partialorder %v3546_v13, 0.0 }
 0x331   : > { %v1970_v5 = vsel %vm3842_vm0, %v3540_v1, %v1938_v14  ;;  %v1971_v11 = vsel %vm3843_vm7, %v3543_v12, %v1939_v0  ;;  %v1972_v51 = vsel %vm3844_vm6, %v3546_v13, %v1940_v30  ;;  %vm3845_vm1 = vcmp.gt.f32.partialorder %v3549_v8, 0.0  ;;  %1999 = vst.msk [vmem:[%s3575_s24 + $0x70] sm:$0xff] %vm384_vm5, %v1967_v28  ;;  %2000 = vst.msk [vmem:[%s3575_s24 + $0x78] sm:$0xff] %vm384_vm5, %v1968_v37 }
 0x332   : > { %v1973_v52 = vsel %vm3845_vm1, %v3549_v8, %v1941_v36  ;;  %v1974_v42 = vsel %vm1910_vm12, %v3552_v60, %v1942_v47  ;;  %2001 = vst.msk [vmem:[%s3575_s24 + $0x80] sm:$0xff] %vm384_vm5, %v1969_v55  ;;  %2002 = vst.msk [vmem:[%s3575_s24 + $0x88] sm:$0xff] %vm384_vm5, %v1970_v5  ;;  %v1975_v1 = vsel %vm1911_vm8, %v3555_v48, %v1943_v6  ;;  %vm3846_vm2 = vcmp.gt.f32.partialorder %v3475_v53, 0.0 }
 0x333   : > { %v1976_v12 = vsel %vm3846_vm2, %v3475_v53, %v1944_v58  ;;  %vm3847_vm12 = vcmp.gt.f32.partialorder %v3558_v33, 0.0  ;;  %vm3848_vm3 = vcmp.gt.f32.partialorder %v3480_v27, 0.0  ;;  %2003 = vst.msk [vmem:[%s3575_s24 + $0x90] sm:$0xff] %vm384_vm5, %v1971_v11  ;;  %2004 = vst.msk [vmem:[%s3575_s24 + $0x98] sm:$0xff] %vm384_vm5, %v1972_v51  ;;  %v1979_v53 = vsel %vm1915_vm13, %v3482_v57, %v1947_v45 }
 0x334   : > { %v1977_v13 = vsel %vm3847_vm12, %v3558_v33, %v1945_v50  ;;  %v1978_v8 = vsel %vm3848_vm3, %v3480_v27, %v1946_v19  ;;  %2005 = vst.msk [vmem:[%s3575_s24 + $0xa0] sm:$0xff] %vm384_vm5, %v1973_v52  ;;  %2006 = vst.msk [vmem:[%s3575_s24 + $0xa8] sm:$0xff] %vm384_vm5, %v1974_v42  ;;  %v1980_v27 = vsel %vm1916_vm11, %v3484_v63, %v1948_v22  ;;  %vm3849_vm8 = vcmp.gt.f32.partialorder %v3486_v21, 0.0 }
 0x335   : > { %v1981_v60 = vsel %vm3849_vm8, %v3486_v21, %v1949_v20  ;;  %v1982_v48 = vsel %vm1918_vm9, %v3488_v39, %v1950_v4  ;;  %2007 = vst.msk [vmem:[%s3575_s24 + $0xb0] sm:$0xff] %vm384_vm5, %v1975_v1  ;;  %2008 = vst.msk [vmem:[%s3575_s24 + $0xb8] sm:$0xff] %vm384_vm5, %v1976_v12  ;;  %v1983_v57 = vsel %vm1919_vm14, %v3490_v41, %v1951_v62 }
 0x336   : > { %2009 = vst.msk [vmem:[%s3575_s24 + $0xc0] sm:$0xff] %vm384_vm5, %v1977_v13  ;;  %2010 = vst.msk [vmem:[%s3575_s24 + $0xc8] sm:$0xff] %vm384_vm5, %v1978_v8  ;;  %v1984_v63 = vsel %vm1920_vm10, %v3492_v15, %v1952_v59 }
 0x337   : > { %2011 = vst.msk [vmem:[%s3575_s24 + $0xd0] sm:$0xff] %vm384_vm5, %v1979_v53  ;;  %2012 = vst.msk [vmem:[%s3575_s24 + $0xd8] sm:$0xff] %vm384_vm5, %v1980_v27 }
 0x338   : > { %2013 = vst.msk [vmem:[%s3575_s24 + $0xe0] sm:$0xff] %vm384_vm5, %v1981_v60  ;;  %2014 = vst.msk [vmem:[%s3575_s24 + $0xe8] sm:$0xff] %vm384_vm5, %v1982_v48 }
 0x339   : > { %2015 = vst.msk [vmem:[%s3575_s24 + $0xf0] sm:$0xff] %vm384_vm5, %v1983_v57  ;;  %2016 = vst.msk [vmem:[%s3575_s24 + $0xf8] sm:$0xff] %vm384_vm5, %v1984_v63 }
 0x33a PF: > { %s13_s12 = sadd.s32 1, %s2209_s12  }
 0x33b   : > { %p10_p4 = scmp.ge.s32.totalorder %s13_s12, 4  }
 0x33d   :  { %12 = sbr.rel (!%p10_p4) target bundleno = 1 (0x1), region = 65 }

</bundles_post_ra>
